<compile_context>
chip_gen: v7x
topology: tpu7x:2x2x1
jax: 0.10.0
libtpu: 0.0.40
codegen_flags: <defaults>
</compile_context>

<pallas_src>
import functools

import jax
import jax.numpy as jnp
from jax.experimental import pallas as pl
from jax.experimental.pallas import tpu as pltpu

LANE = 128  # TPU lane width; channel dims are zero-padded to a multiple of it.


def _round_up(x, m):
    return ((x + m - 1) // m) * m


def _pick_depth_tile(d, max_td=4):
    """Largest divisor of `d` that is <= max_td, preferring >= 2 depth steps so
    the grid has multiple parallel steps (v7x has 2 TensorCores)."""
    divisors = [t for t in range(1, d + 1) if d % t == 0 and t <= max_td]
    multi = [t for t in divisors if d // t >= 2]
    return max(multi) if multi else max(divisors)


def _vmem_limit_bytes():
    """Explicit scoped-VMEM limit: above the 16/32 MiB defaults, below v7x's
    64 MiB physical VMEM (per-step footprint here is only a few MiB)."""
    cap = 64 * 1024 * 1024
    try:
        cap = int(getattr(pltpu.get_tpu_info(), "vmem_capacity_bytes", cap))
    except Exception:
        pass
    return int(min(96 * 1024 * 1024, max(cap - 16 * 1024 * 1024, 24 * 1024 * 1024)))


# ------------------------------ fused kernel ------------------------------- #

def _bottleneck_kernel(x_hbm, w1_ref, w2_ref, w3_ref, b1_ref, b2_ref, b3_ref,
                       o_ref, xbuf, y1p, dma_sem, *, td, d_pad, h, w, cpad, ppad):
    """Fully fused Bottleneck forward for one (batch, depth-slab) tile.

    x_hbm : (N*(D+2), H, W, Cpad) f32 in HBM (pl.ANY), zero-padded in D and C.
    w1    : (Cpad, Ppad)     bf16  conv1 weight, bn1 scale folded in.
    w2    : (27, Ppad, Ppad) bf16  conv2 per-tap weights, bn2 scale folded in.
    w3    : (Ppad, Cpad)     bf16  conv3 weight, bn3 scale folded in.
    b1,b2 : (1, Ppad) f32 ; b3 : (1, Cpad) f32  folded BN biases.
    o_ref : (1, td, H, W, Cpad) f32 output block.
    xbuf  : VMEM (td+2, H, W, Cpad) f32 scratch (halo'd input slab + residual).
    y1p   : VMEM (td+2, H+2, W+2, Ppad) bf16 scratch (zero-padded conv1 output).
    """
    n = pl.program_id(0)
    db = pl.program_id(1)
    d0 = db * td

    # ---- manual DMA of the depth-halo'd input slab (td + 2 slices) ---------
    src = x_hbm.at[pl.ds(n * d_pad + d0, td + 2)]
    cp = pltpu.make_async_copy(src, xbuf, dma_sem)
    cp.start()
    cp.wait()

    rows_halo = (td + 2) * h * w
    rows = td * h * w

    # ---- conv1 (1x1x1) + bn1 + relu on the halo'd slab, kept in VMEM -------
    xb = xbuf[...]                                        # (td+2, H, W, Cpad) f32
    x2d = xb.reshape(rows_halo, cpad).astype(jnp.bfloat16)
    a1 = jnp.dot(x2d, w1_ref[...], preferred_element_type=jnp.float32)
    y1 = jnp.maximum(a1 + b1_ref[...], 0.0)

    # Zero-padded (D/H/W) copy of y1 for the 3x3x3 taps of conv2.
    y1p[...] = jnp.zeros(y1p.shape, y1p.dtype)
    y1p[:, 1:h + 1, 1:w + 1, :] = y1.reshape(td + 2, h, w, ppad).astype(y1p.dtype)

    # Depth-halo slices that came from the zero padding of x must be zero in y1
    # (conv1 of a zero slice is relu(bias), not zero).
    @pl.when(db == 0)
    def _():
        y1p[0, :, :, :] = jnp.zeros((h + 2, w + 2, ppad), y1p.dtype)

    @pl.when(db == pl.num_programs(1) - 1)
    def _():
        y1p[td + 1, :, :, :] = jnp.zeros((h + 2, w + 2, ppad), y1p.dtype)

    # ---- conv2 (3x3x3, pad 1) as 27 in-VMEM tap matmuls + bn2 + relu -------
    acc = jnp.zeros((rows, ppad), jnp.float32)
    for kd in range(3):
        for kh in range(3):
            for kw in range(3):
                tap = kd * 9 + kh * 3 + kw
                patch = y1p[kd:kd + td, kh:kh + h, kw:kw + w, :]
                acc += jnp.dot(patch.reshape(rows, ppad), w2_ref[tap],
                               preferred_element_type=jnp.float32)
    y2 = jnp.maximum(acc + b2_ref[...], 0.0).astype(jnp.bfloat16)

    # ---- conv3 (1x1x1) + bn3 + identity residual (no final ReLU) -----------
    a3 = jnp.dot(y2, w3_ref[...], preferred_element_type=jnp.float32)
    res = xbuf[1:td + 1, :, :, :].reshape(rows, cpad)     # exact f32 residual
    out = a3 + b3_ref[...] + res
    o_ref[...] = out.reshape(1, td, h, w, cpad).astype(o_ref.dtype)


# --------------------------- Bottleneck forward ----------------------------- #

def bottleneck_forward(x_ndhwc, p):
    """x_ndhwc: (N, D, H, W, Cin) float32 -> (N, D, H, W, planes*expansion)."""
    N, D, H, W, Cin = x_ndhwc.shape
    Ppad = p["w1k"].shape[1]
    Cpad = p["w3k"].shape[1]
    Cout = p["cout"]
    assert Cin == Cout, "identity residual requires inplanes == planes*expansion"

    td = _pick_depth_tile(D)
    db = D // td
    d_pad = D + 2

    # Channels-last, lane-dense channel padding (to 128) + depth zero padding.
    x_p = jnp.pad(x_ndhwc, ((0, 0), (1, 1), (0, 0), (0, 0), (0, Cpad - Cin)))
    x_flat = x_p.reshape(N * d_pad, H, W, Cpad)

    kernel = functools.partial(_bottleneck_kernel, td=td, d_pad=d_pad,
                               h=H, w=W, cpad=Cpad, ppad=Ppad)

    out = pl.pallas_call(
        kernel,
        out_shape=jax.ShapeDtypeStruct((N, D, H, W, Cpad), jnp.float32),
        grid=(N, db),
        in_specs=[
            pl.BlockSpec(memory_space=pl.ANY),                        # x (HBM)
            pl.BlockSpec((Cpad, Ppad), lambda n, d: (0, 0)),          # w1 (invariant)
            pl.BlockSpec((27, Ppad, Ppad), lambda n, d: (0, 0, 0)),   # w2
            pl.BlockSpec((Ppad, Cpad), lambda n, d: (0, 0)),          # w3
            pl.BlockSpec((1, Ppad), lambda n, d: (0, 0)),             # b1
            pl.BlockSpec((1, Ppad), lambda n, d: (0, 0)),             # b2
            pl.BlockSpec((1, Cpad), lambda n, d: (0, 0)),             # b3
        ],
        out_specs=pl.BlockSpec((1, td, H, W, Cpad),
                               lambda n, d: (n, d, 0, 0, 0)),
        scratch_shapes=[
            pltpu.VMEM((td + 2, H, W, Cpad), jnp.float32),            # x slab
            pltpu.VMEM((td + 2, H + 2, W + 2, Ppad), jnp.bfloat16),   # padded y1
            pltpu.SemaphoreType.DMA(()),
        ],
        compiler_params=pltpu.CompilerParams(
            dimension_semantics=("parallel", "parallel"),
            vmem_limit_bytes=_vmem_limit_bytes()),
    )(x_flat, p["w1k"], p["w2k"], p["w3k"], p["b1k"], p["b2k"], p["b3k"])

    return out[..., :Cout]


# --------------------------- deterministic params --------------------------- #

def init_bottleneck_params(key, inplanes, planes, expansion=4, eps=1e-5):
    keys = jax.random.split(key, 15)
    cexp = planes * expansion

    # PyTorch-layout conv weights: (O, I, kd, kh, kw)
    w1_t = 0.1 * jax.random.normal(keys[0], (planes, inplanes, 1, 1, 1), jnp.float32)
    w2_t = 0.1 * jax.random.normal(keys[1], (planes, planes, 3, 3, 3), jnp.float32)
    w3_t = 0.1 * jax.random.normal(keys[2], (cexp, planes, 1, 1, 1), jnp.float32)

    def bn_fold(kg, kb, km, kv, c):
        gamma = 1.0 + 0.1 * jax.random.normal(kg, (c,), jnp.float32)
        beta = 0.1 * jax.random.normal(kb, (c,), jnp.float32)
        mean = 0.1 * jax.random.normal(km, (c,), jnp.float32)
        var = 1.0 + 0.1 * jnp.abs(jax.random.normal(kv, (c,), jnp.float32))
        scale = gamma / jnp.sqrt(var + eps)
        bias = beta - mean * scale
        return scale, bias

    s1, b1 = bn_fold(keys[3], keys[4], keys[5], keys[6], planes)
    s2, b2 = bn_fold(keys[7], keys[8], keys[9], keys[10], planes)
    s3, b3 = bn_fold(keys[11], keys[12], keys[13], keys[14], cexp)

    ppad = _round_up(planes, LANE)
    cpad = _round_up(max(inplanes, cexp), LANE)

    # Fold the BN scale into the conv weight columns, lay out for channels-last
    # matmuls, zero-pad channels to lane width (128), cast to bf16 for the MXU.
    w1m = w1_t.reshape(planes, inplanes).T * s1[None, :]                     # (Cin, P)
    w2m = (jnp.transpose(w2_t, (2, 3, 4, 1, 0)).reshape(27, planes, planes)
           * s2[None, None, :])                                              # (27, P, P)
    w3m = w3_t.reshape(cexp, planes).T * s3[None, :]                         # (P, Cexp)

    w1k = jnp.zeros((cpad, ppad), jnp.float32).at[:inplanes, :planes].set(w1m)
    w2k = jnp.zeros((27, ppad, ppad), jnp.float32).at[:, :planes, :planes].set(w2m)
    w3k = jnp.zeros((ppad, cpad), jnp.float32).at[:planes, :cexp].set(w3m)

    b1k = jnp.zeros((1, ppad), jnp.float32).at[0, :planes].set(b1)
    b2k = jnp.zeros((1, ppad), jnp.float32).at[0, :planes].set(b2)
    b3k = jnp.zeros((1, cpad), jnp.float32).at[0, :cexp].set(b3)

    return dict(
        # fused-kernel parameters (bf16, BN-folded, lane-padded)
        w1k=w1k.astype(jnp.bfloat16), w2k=w2k.astype(jnp.bfloat16),
        w3k=w3k.astype(jnp.bfloat16), b1k=b1k, b2k=b2k, b3k=b3k, cout=cexp,
        # f32 torch-layout copies for the XLA reference check
        w1_t=w1_t, w2_t=w2_t, w3_t=w3_t,
        s1=s1, b1=b1, s2=s2, b2=b2, s3=s3, b3=b3,
    )


# ------------------------- pure-JAX reference check ------------------------- #

def reference_forward(x_ndhwc, p):
    def conv3d(x, w_torch, padding):
        w = jnp.transpose(w_torch, (2, 3, 4, 1, 0))  # (O,I,kd,kh,kw) -> DHWIO
        return jax.lax.conv_general_dilated(
            x, w, window_strides=(1, 1, 1),
            padding=[(padding, padding)] * 3,
            dimension_numbers=("NDHWC", "DHWIO", "NDHWC"),
            precision=jax.lax.Precision.HIGHEST)

    def bn(x, s, b):
        return x * s.reshape(1, 1, 1, 1, -1) + b.reshape(1, 1, 1, 1, -1)

    out = jax.nn.relu(bn(conv3d(x_ndhwc, p["w1_t"], 0), p["s1"], p["b1"]))
    out = jax.nn.relu(bn(conv3d(out, p["w2_t"], 1), p["s2"], p["b2"]))
    out = bn(conv3d(out, p["w3_t"], 0), p["s3"], p["b3"])
    return out + x_ndhwc  # identity residual, no final ReLU


# ----------------------------------- main ----------------------------------- #

if __name__ == "__main__":
    key = jax.random.PRNGKey(0)
    kx, kp = jax.random.split(key)

    # Small shapes consistent with the module: inplanes == planes * expansion
    N, Cin, D, H, W = 2, 16, 4, 8, 8        # PyTorch NCDHW input shape
    planes, expansion = 4, 4                # downsample=None, stride=1 path

    x_ncdhw = jax.random.normal(kx, (N, Cin, D, H, W), jnp.float32)
    params = init_bottleneck_params(kp, Cin, planes, expansion)

    x_ndhwc = jnp.transpose(x_ncdhw, (0, 2, 3, 4, 1))
    out_ndhwc = bottleneck_forward(x_ndhwc, params)
    out_ncdhw = jnp.transpose(out_ndhwc, (0, 4, 1, 2, 3))   # back to NCDHW
    jax.block_until_ready(out_ncdhw)

    ref = reference_forward(x_ndhwc, params)
    err = float(jnp.max(jnp.abs(out_ndhwc - ref)))
    assert err < 2e-2, f"mismatch vs XLA reference: max abs err = {err}"

    print("KERNEL_OK")
</pallas_src>

<mosaic_0001>
module attributes {stable_mosaic.version = 11 : i64} {
  func.func @_bottleneck_kernel(%arg0: i32, %arg1: i32, %arg2: memref<12x8x8x128xf32, #tpu.memory_space<any>>, %arg3: memref<128x128xbf16, #tpu.memory_space<vmem>>, %arg4: memref<27x128x128xbf16, #tpu.memory_space<vmem>>, %arg5: memref<128x128xbf16, #tpu.memory_space<vmem>>, %arg6: memref<1x128xf32, #tpu.memory_space<vmem>>, %arg7: memref<1x128xf32, #tpu.memory_space<vmem>>, %arg8: memref<1x128xf32, #tpu.memory_space<vmem>>, %arg9: memref<1x2x8x8x128xf32, #tpu.memory_space<vmem>>, %arg10: memref<4x8x8x128xf32, #tpu.memory_space<vmem>>, %arg11: memref<4x10x10x128xbf16, #tpu.memory_space<vmem>>, %arg12: memref<!tpu.dma_semaphore, #tpu.memory_space<semaphore_mem>>) attributes {dimension_semantics = [#tpu.dimension_semantics<parallel>, #tpu.dimension_semantics<parallel>], iteration_bounds = array<i64: 2, 2>, scalar_prefetch = 0 : i64, scratch_operands = 3 : i64, tpu.core_type = #tpu.core_type<tc>, window_params = [{}, {pipeline_mode = #tpu.pipeline_mode<synchronous>, transform_indices = @transform_1, window_bounds = array<i64: 128, 128>}, {pipeline_mode = #tpu.pipeline_mode<synchronous>, transform_indices = @transform_2, window_bounds = array<i64: 27, 128, 128>}, {pipeline_mode = #tpu.pipeline_mode<synchronous>, transform_indices = @transform_3, window_bounds = array<i64: 128, 128>}, {pipeline_mode = #tpu.pipeline_mode<synchronous>, transform_indices = @transform_4, window_bounds = array<i64: 1, 128>}, {pipeline_mode = #tpu.pipeline_mode<synchronous>, transform_indices = @transform_5, window_bounds = array<i64: 1, 128>}, {pipeline_mode = #tpu.pipeline_mode<synchronous>, transform_indices = @transform_6, window_bounds = array<i64: 1, 128>}, {transform_indices = @transform_7, window_bounds = array<i64: 1, 2, 8, 8, 128>}]} {
    %c2_i32 = arith.constant 2 : i32
    %0 = arith.muli %arg1, %c2_i32 : i32
    %c6_i32 = arith.constant 6 : i32
    %1 = arith.muli %arg0, %c6_i32 : i32
    %2 = arith.addi %1, %0 : i32
    %c0_i32 = arith.constant 0 : i32
    %c0_i32_0 = arith.constant 0 : i32
    %c0_i32_1 = arith.constant 0 : i32
    %3 = tpu.memref_slice %arg2[%2, %c0_i32, %c0_i32_0, %c0_i32_1] : memref<12x8x8x128xf32, #tpu.memory_space<any>> -> memref<4x8x8x128xf32, #tpu.memory_space<any>>
    tpu.enqueue_dma source(%3 : memref<4x8x8x128xf32, #tpu.memory_space<any>>) target(%arg10 : memref<4x8x8x128xf32, #tpu.memory_space<vmem>>) target_semaphore(%arg12 : memref<!tpu.dma_semaphore, #tpu.memory_space<semaphore_mem>>)
    %c0_i32_2 = arith.constant 0 : i32
    %c0_i32_3 = arith.constant 0 : i32
    %c0_i32_4 = arith.constant 0 : i32
    %4 = tpu.memref_slice %arg2[%2, %c0_i32_2, %c0_i32_3, %c0_i32_4] : memref<12x8x8x128xf32, #tpu.memory_space<any>> -> memref<4x8x8x128xf32, #tpu.memory_space<any>>
    tpu.wait_dma2 semaphore(%arg12 : memref<!tpu.dma_semaphore, #tpu.memory_space<semaphore_mem>>) src(%4 : memref<4x8x8x128xf32, #tpu.memory_space<any>>) dst(%arg10 : memref<4x8x8x128xf32, #tpu.memory_space<vmem>>)
    %c0 = arith.constant 0 : index
    %c0_5 = arith.constant 0 : index
    %c0_6 = arith.constant 0 : index
    %c0_7 = arith.constant 0 : index
    %5 = vector.load %arg10[%c0, %c0_5, %c0_6, %c0_7] : memref<4x8x8x128xf32, #tpu.memory_space<vmem>>, vector<4x8x8x128xf32>
    %6 = vector.shape_cast %5 : vector<4x8x8x128xf32> to vector<256x128xf32>
    %7 = arith.truncf %6 : vector<256x128xf32> to vector<256x128xbf16>
    %c0_8 = arith.constant 0 : index
    %c0_9 = arith.constant 0 : index
    %8 = vector.load %arg3[%c0_8, %c0_9] : memref<128x128xbf16, #tpu.memory_space<vmem>>, vector<128x128xbf16>
    %cst = arith.constant dense<0.000000e+00> : vector<256x128xf32>
    %9 = tpu.matmul %7, %8, %cst {dimension_numbers = #tpu.dot_dimension_numbers<[1], [0], [0], [1], [0, 0, 1, 1], [], []>} : vector<256x128xbf16>, vector<128x128xbf16>, vector<256x128xf32> -> vector<256x128xf32>
    %c0_10 = arith.constant 0 : index
    %c0_11 = arith.constant 0 : index
    %10 = vector.load %arg6[%c0_10, %c0_11] : memref<1x128xf32, #tpu.memory_space<vmem>>, vector<1x128xf32>
    %11 = vector.broadcast %10 : vector<1x128xf32> to vector<256x128xf32>
    %12 = arith.addf %9, %11 : vector<256x128xf32>
    %cst_12 = arith.constant 0.000000e+00 : f32
    %13 = vector.broadcast %cst_12 : f32 to vector<256x128xf32>
    %14 = arith.maximumf %12, %13 : vector<256x128xf32>
    %cst_13 = arith.constant 0.000000e+00 : bf16
    %15 = vector.broadcast %cst_13 : bf16 to vector<4x10x10x128xbf16>
    %c0_14 = arith.constant 0 : index
    %c0_15 = arith.constant 0 : index
    %c0_16 = arith.constant 0 : index
    %c0_17 = arith.constant 0 : index
    %16 = vector.load %arg11[%c0_14, %c0_15, %c0_16, %c0_17] : memref<4x10x10x128xbf16, #tpu.memory_space<vmem>>, vector<4x10x10x128xbf16>
    tpu.vector_store %arg11[%c0_14, %c0_15, %c0_16, %c0_17], %15 {strides = array<i32>} : memref<4x10x10x128xbf16, #tpu.memory_space<vmem>>, vector<4x10x10x128xbf16>,
    %17 = vector.shape_cast %14 : vector<256x128xf32> to vector<4x8x8x128xf32>
    %18 = arith.truncf %17 : vector<4x8x8x128xf32> to vector<4x8x8x128xbf16>
    %c0_18 = arith.constant 0 : index
    %c1 = arith.constant 1 : index
    %c1_19 = arith.constant 1 : index
    %c0_20 = arith.constant 0 : index
    %19 = vector.load %arg11[%c0_18, %c1, %c1_19, %c0_20] : memref<4x10x10x128xbf16, #tpu.memory_space<vmem>>, vector<4x8x8x128xbf16>
    tpu.vector_store %arg11[%c0_18, %c1, %c1_19, %c0_20], %18 {strides = array<i32>} : memref<4x10x10x128xbf16, #tpu.memory_space<vmem>>, vector<4x8x8x128xbf16>,
    %c0_i32_21 = arith.constant 0 : i32
    %20 = arith.cmpi eq, %arg1, %c0_i32_21 : i32
    %21 = arith.extui %20 : i1 to i32
    %c0_i32_22 = arith.constant 0 : i32
    %22 = arith.cmpi ne, %21, %c0_i32_22 : i32
    scf.if %22 {
      %cst_233 = arith.constant 0.000000e+00 : bf16
      %205 = vector.broadcast %cst_233 : bf16 to vector<10x10x128xbf16>
      %c0_234 = arith.constant 0 : index
      %c0_235 = arith.constant 0 : index
      %c0_236 = arith.constant 0 : index
      %c0_237 = arith.constant 0 : index
      %206 = vector.load %arg11[%c0_234, %c0_235, %c0_236, %c0_237] : memref<4x10x10x128xbf16, #tpu.memory_space<vmem>>, vector<1x10x10x128xbf16>
      %207 = vector.shape_cast %206 : vector<1x10x10x128xbf16> to vector<10x10x128xbf16>
      %208 = vector.shape_cast %205 : vector<10x10x128xbf16> to vector<1x10x10x128xbf16>
      tpu.vector_store %arg11[%c0_234, %c0_235, %c0_236, %c0_237], %208 {strides = array<i32>} : memref<4x10x10x128xbf16, #tpu.memory_space<vmem>>, vector<1x10x10x128xbf16>,
    } else {
    }
    %c1_i32 = arith.constant 1 : i32
    %23 = arith.cmpi eq, %arg1, %c1_i32 : i32
    %24 = arith.extui %23 : i1 to i32
    %c0_i32_23 = arith.constant 0 : i32
    %25 = arith.cmpi ne, %24, %c0_i32_23 : i32
    scf.if %25 {
      %cst_233 = arith.constant 0.000000e+00 : bf16
      %205 = vector.broadcast %cst_233 : bf16 to vector<10x10x128xbf16>
      %c3_234 = arith.constant 3 : index
      %c0_235 = arith.constant 0 : index
      %c0_236 = arith.constant 0 : index
      %c0_237 = arith.constant 0 : index
      %206 = vector.load %arg11[%c3_234, %c0_235, %c0_236, %c0_237] : memref<4x10x10x128xbf16, #tpu.memory_space<vmem>>, vector<1x10x10x128xbf16>
      %207 = vector.shape_cast %206 : vector<1x10x10x128xbf16> to vector<10x10x128xbf16>
      %208 = vector.shape_cast %205 : vector<10x10x128xbf16> to vector<1x10x10x128xbf16>
      tpu.vector_store %arg11[%c3_234, %c0_235, %c0_236, %c0_237], %208 {strides = array<i32>} : memref<4x10x10x128xbf16, #tpu.memory_space<vmem>>, vector<1x10x10x128xbf16>,
    } else {
    }
    %cst_24 = arith.constant 0.000000e+00 : f32
    %26 = vector.broadcast %cst_24 : f32 to vector<128x128xf32>
    %c0_25 = arith.constant 0 : index
    %c0_26 = arith.constant 0 : index
    %c0_27 = arith.constant 0 : index
    %c0_28 = arith.constant 0 : index
    %27 = vector.load %arg11[%c0_25, %c0_26, %c0_27, %c0_28] : memref<4x10x10x128xbf16, #tpu.memory_space<vmem>>, vector<2x8x8x128xbf16>
    %28 = vector.shape_cast %27 : vector<2x8x8x128xbf16> to vector<128x128xbf16>
    %c0_29 = arith.constant 0 : index
    %c0_30 = arith.constant 0 : index
    %c0_31 = arith.constant 0 : index
    %29 = vector.load %arg4[%c0_29, %c0_30, %c0_31] : memref<27x128x128xbf16, #tpu.memory_space<vmem>>, vector<1x128x128xbf16>
    %30 = vector.shape_cast %29 : vector<1x128x128xbf16> to vector<128x128xbf16>
    %cst_32 = arith.constant dense<0.000000e+00> : vector<128x128xf32>
    %31 = tpu.matmul %28, %30, %cst_32 {dimension_numbers = #tpu.dot_dimension_numbers<[1], [0], [0], [1], [0, 0, 1, 1], [], []>} : vector<128x128xbf16>, vector<128x128xbf16>, vector<128x128xf32> -> vector<128x128xf32>
    %32 = arith.addf %26, %31 : vector<128x128xf32>
    %c0_33 = arith.constant 0 : index
    %c0_34 = arith.constant 0 : index
    %c1_35 = arith.constant 1 : index
    %c0_36 = arith.constant 0 : index
    %33 = vector.load %arg11[%c0_33, %c0_34, %c1_35, %c0_36] : memref<4x10x10x128xbf16, #tpu.memory_space<vmem>>, vector<2x8x8x128xbf16>
    %34 = vector.shape_cast %33 : vector<2x8x8x128xbf16> to vector<128x128xbf16>
    %c1_37 = arith.constant 1 : index
    %c0_38 = arith.constant 0 : index
    %c0_39 = arith.constant 0 : index
    %35 = vector.load %arg4[%c1_37, %c0_38, %c0_39] : memref<27x128x128xbf16, #tpu.memory_space<vmem>>, vector<1x128x128xbf16>
    %36 = vector.shape_cast %35 : vector<1x128x128xbf16> to vector<128x128xbf16>
    %cst_40 = arith.constant dense<0.000000e+00> : vector<128x128xf32>
    %37 = tpu.matmul %34, %36, %cst_40 {dimension_numbers = #tpu.dot_dimension_numbers<[1], [0], [0], [1], [0, 0, 1, 1], [], []>} : vector<128x128xbf16>, vector<128x128xbf16>, vector<128x128xf32> -> vector<128x128xf32>
    %38 = arith.addf %32, %37 : vector<128x128xf32>
    %c0_41 = arith.constant 0 : index
    %c0_42 = arith.constant 0 : index
    %c2 = arith.constant 2 : index
    %c0_43 = arith.constant 0 : index
    %39 = vector.load %arg11[%c0_41, %c0_42, %c2, %c0_43] : memref<4x10x10x128xbf16, #tpu.memory_space<vmem>>, vector<2x8x8x128xbf16>
    %40 = vector.shape_cast %39 : vector<2x8x8x128xbf16> to vector<128x128xbf16>
    %c2_44 = arith.constant 2 : index
    %c0_45 = arith.constant 0 : index
    %c0_46 = arith.constant 0 : index
    %41 = vector.load %arg4[%c2_44, %c0_45, %c0_46] : memref<27x128x128xbf16, #tpu.memory_space<vmem>>, vector<1x128x128xbf16>
    %42 = vector.shape_cast %41 : vector<1x128x128xbf16> to vector<128x128xbf16>
    %cst_47 = arith.constant dense<0.000000e+00> : vector<128x128xf32>
    %43 = tpu.matmul %40, %42, %cst_47 {dimension_numbers = #tpu.dot_dimension_numbers<[1], [0], [0], [1], [0, 0, 1, 1], [], []>} : vector<128x128xbf16>, vector<128x128xbf16>, vector<128x128xf32> -> vector<128x128xf32>
    %44 = arith.addf %38, %43 : vector<128x128xf32>
    %c0_48 = arith.constant 0 : index
    %c1_49 = arith.constant 1 : index
    %c0_50 = arith.constant 0 : index
    %c0_51 = arith.constant 0 : index
    %45 = vector.load %arg11[%c0_48, %c1_49, %c0_50, %c0_51] : memref<4x10x10x128xbf16, #tpu.memory_space<vmem>>, vector<2x8x8x128xbf16>
    %46 = vector.shape_cast %45 : vector<2x8x8x128xbf16> to vector<128x128xbf16>
    %c3 = arith.constant 3 : index
    %c0_52 = arith.constant 0 : index
    %c0_53 = arith.constant 0 : index
    %47 = vector.load %arg4[%c3, %c0_52, %c0_53] : memref<27x128x128xbf16, #tpu.memory_space<vmem>>, vector<1x128x128xbf16>
    %48 = vector.shape_cast %47 : vector<1x128x128xbf16> to vector<128x128xbf16>
    %cst_54 = arith.constant dense<0.000000e+00> : vector<128x128xf32>
    %49 = tpu.matmul %46, %48, %cst_54 {dimension_numbers = #tpu.dot_dimension_numbers<[1], [0], [0], [1], [0, 0, 1, 1], [], []>} : vector<128x128xbf16>, vector<128x128xbf16>, vector<128x128xf32> -> vector<128x128xf32>
    %50 = arith.addf %44, %49 : vector<128x128xf32>
    %c0_55 = arith.constant 0 : index
    %c1_56 = arith.constant 1 : index
    %c1_57 = arith.constant 1 : index
    %c0_58 = arith.constant 0 : index
    %51 = vector.load %arg11[%c0_55, %c1_56, %c1_57, %c0_58] : memref<4x10x10x128xbf16, #tpu.memory_space<vmem>>, vector<2x8x8x128xbf16>
    %52 = vector.shape_cast %51 : vector<2x8x8x128xbf16> to vector<128x128xbf16>
    %c4 = arith.constant 4 : index
    %c0_59 = arith.constant 0 : index
    %c0_60 = arith.constant 0 : index
    %53 = vector.load %arg4[%c4, %c0_59, %c0_60] : memref<27x128x128xbf16, #tpu.memory_space<vmem>>, vector<1x128x128xbf16>
    %54 = vector.shape_cast %53 : vector<1x128x128xbf16> to vector<128x128xbf16>
    %cst_61 = arith.constant dense<0.000000e+00> : vector<128x128xf32>
    %55 = tpu.matmul %52, %54, %cst_61 {dimension_numbers = #tpu.dot_dimension_numbers<[1], [0], [0], [1], [0, 0, 1, 1], [], []>} : vector<128x128xbf16>, vector<128x128xbf16>, vector<128x128xf32> -> vector<128x128xf32>
    %56 = arith.addf %50, %55 : vector<128x128xf32>
    %c0_62 = arith.constant 0 : index
    %c1_63 = arith.constant 1 : index
    %c2_64 = arith.constant 2 : index
    %c0_65 = arith.constant 0 : index
    %57 = vector.load %arg11[%c0_62, %c1_63, %c2_64, %c0_65] : memref<4x10x10x128xbf16, #tpu.memory_space<vmem>>, vector<2x8x8x128xbf16>
    %58 = vector.shape_cast %57 : vector<2x8x8x128xbf16> to vector<128x128xbf16>
    %c5 = arith.constant 5 : index
    %c0_66 = arith.constant 0 : index
    %c0_67 = arith.constant 0 : index
    %59 = vector.load %arg4[%c5, %c0_66, %c0_67] : memref<27x128x128xbf16, #tpu.memory_space<vmem>>, vector<1x128x128xbf16>
    %60 = vector.shape_cast %59 : vector<1x128x128xbf16> to vector<128x128xbf16>
    %cst_68 = arith.constant dense<0.000000e+00> : vector<128x128xf32>
    %61 = tpu.matmul %58, %60, %cst_68 {dimension_numbers = #tpu.dot_dimension_numbers<[1], [0], [0], [1], [0, 0, 1, 1], [], []>} : vector<128x128xbf16>, vector<128x128xbf16>, vector<128x128xf32> -> vector<128x128xf32>
    %62 = arith.addf %56, %61 : vector<128x128xf32>
    %c0_69 = arith.constant 0 : index
    %c2_70 = arith.constant 2 : index
    %c0_71 = arith.constant 0 : index
    %c0_72 = arith.constant 0 : index
    %63 = vector.load %arg11[%c0_69, %c2_70, %c0_71, %c0_72] : memref<4x10x10x128xbf16, #tpu.memory_space<vmem>>, vector<2x8x8x128xbf16>
    %64 = vector.shape_cast %63 : vector<2x8x8x128xbf16> to vector<128x128xbf16>
    %c6 = arith.constant 6 : index
    %c0_73 = arith.constant 0 : index
    %c0_74 = arith.constant 0 : index
    %65 = vector.load %arg4[%c6, %c0_73, %c0_74] : memref<27x128x128xbf16, #tpu.memory_space<vmem>>, vector<1x128x128xbf16>
    %66 = vector.shape_cast %65 : vector<1x128x128xbf16> to vector<128x128xbf16>
    %cst_75 = arith.constant dense<0.000000e+00> : vector<128x128xf32>
    %67 = tpu.matmul %64, %66, %cst_75 {dimension_numbers = #tpu.dot_dimension_numbers<[1], [0], [0], [1], [0, 0, 1, 1], [], []>} : vector<128x128xbf16>, vector<128x128xbf16>, vector<128x128xf32> -> vector<128x128xf32>
    %68 = arith.addf %62, %67 : vector<128x128xf32>
    %c0_76 = arith.constant 0 : index
    %c2_77 = arith.constant 2 : index
    %c1_78 = arith.constant 1 : index
    %c0_79 = arith.constant 0 : index
    %69 = vector.load %arg11[%c0_76, %c2_77, %c1_78, %c0_79] : memref<4x10x10x128xbf16, #tpu.memory_space<vmem>>, vector<2x8x8x128xbf16>
    %70 = vector.shape_cast %69 : vector<2x8x8x128xbf16> to vector<128x128xbf16>
    %c7 = arith.constant 7 : index
    %c0_80 = arith.constant 0 : index
    %c0_81 = arith.constant 0 : index
    %71 = vector.load %arg4[%c7, %c0_80, %c0_81] : memref<27x128x128xbf16, #tpu.memory_space<vmem>>, vector<1x128x128xbf16>
    %72 = vector.shape_cast %71 : vector<1x128x128xbf16> to vector<128x128xbf16>
    %cst_82 = arith.constant dense<0.000000e+00> : vector<128x128xf32>
    %73 = tpu.matmul %70, %72, %cst_82 {dimension_numbers = #tpu.dot_dimension_numbers<[1], [0], [0], [1], [0, 0, 1, 1], [], []>} : vector<128x128xbf16>, vector<128x128xbf16>, vector<128x128xf32> -> vector<128x128xf32>
    %74 = arith.addf %68, %73 : vector<128x128xf32>
    %c0_83 = arith.constant 0 : index
    %c2_84 = arith.constant 2 : index
    %c2_85 = arith.constant 2 : index
    %c0_86 = arith.constant 0 : index
    %75 = vector.load %arg11[%c0_83, %c2_84, %c2_85, %c0_86] : memref<4x10x10x128xbf16, #tpu.memory_space<vmem>>, vector<2x8x8x128xbf16>
    %76 = vector.shape_cast %75 : vector<2x8x8x128xbf16> to vector<128x128xbf16>
    %c8 = arith.constant 8 : index
    %c0_87 = arith.constant 0 : index
    %c0_88 = arith.constant 0 : index
    %77 = vector.load %arg4[%c8, %c0_87, %c0_88] : memref<27x128x128xbf16, #tpu.memory_space<vmem>>, vector<1x128x128xbf16>
    %78 = vector.shape_cast %77 : vector<1x128x128xbf16> to vector<128x128xbf16>
    %cst_89 = arith.constant dense<0.000000e+00> : vector<128x128xf32>
    %79 = tpu.matmul %76, %78, %cst_89 {dimension_numbers = #tpu.dot_dimension_numbers<[1], [0], [0], [1], [0, 0, 1, 1], [], []>} : vector<128x128xbf16>, vector<128x128xbf16>, vector<128x128xf32> -> vector<128x128xf32>
    %80 = arith.addf %74, %79 : vector<128x128xf32>
    %c1_90 = arith.constant 1 : index
    %c0_91 = arith.constant 0 : index
    %c0_92 = arith.constant 0 : index
    %c0_93 = arith.constant 0 : index
    %81 = vector.load %arg11[%c1_90, %c0_91, %c0_92, %c0_93] : memref<4x10x10x128xbf16, #tpu.memory_space<vmem>>, vector<2x8x8x128xbf16>
    %82 = vector.shape_cast %81 : vector<2x8x8x128xbf16> to vector<128x128xbf16>
    %c9 = arith.constant 9 : index
    %c0_94 = arith.constant 0 : index
    %c0_95 = arith.constant 0 : index
    %83 = vector.load %arg4[%c9, %c0_94, %c0_95] : memref<27x128x128xbf16, #tpu.memory_space<vmem>>, vector<1x128x128xbf16>
    %84 = vector.shape_cast %83 : vector<1x128x128xbf16> to vector<128x128xbf16>
    %cst_96 = arith.constant dense<0.000000e+00> : vector<128x128xf32>
    %85 = tpu.matmul %82, %84, %cst_96 {dimension_numbers = #tpu.dot_dimension_numbers<[1], [0], [0], [1], [0, 0, 1, 1], [], []>} : vector<128x128xbf16>, vector<128x128xbf16>, vector<128x128xf32> -> vector<128x128xf32>
    %86 = arith.addf %80, %85 : vector<128x128xf32>
    %c1_97 = arith.constant 1 : index
    %c0_98 = arith.constant 0 : index
    %c1_99 = arith.constant 1 : index
    %c0_100 = arith.constant 0 : index
    %87 = vector.load %arg11[%c1_97, %c0_98, %c1_99, %c0_100] : memref<4x10x10x128xbf16, #tpu.memory_space<vmem>>, vector<2x8x8x128xbf16>
    %88 = vector.shape_cast %87 : vector<2x8x8x128xbf16> to vector<128x128xbf16>
    %c10 = arith.constant 10 : index
    %c0_101 = arith.constant 0 : index
    %c0_102 = arith.constant 0 : index
    %89 = vector.load %arg4[%c10, %c0_101, %c0_102] : memref<27x128x128xbf16, #tpu.memory_space<vmem>>, vector<1x128x128xbf16>
    %90 = vector.shape_cast %89 : vector<1x128x128xbf16> to vector<128x128xbf16>
    %cst_103 = arith.constant dense<0.000000e+00> : vector<128x128xf32>
    %91 = tpu.matmul %88, %90, %cst_103 {dimension_numbers = #tpu.dot_dimension_numbers<[1], [0], [0], [1], [0, 0, 1, 1], [], []>} : vector<128x128xbf16>, vector<128x128xbf16>, vector<128x128xf32> -> vector<128x128xf32>
    %92 = arith.addf %86, %91 : vector<128x128xf32>
    %c1_104 = arith.constant 1 : index
    %c0_105 = arith.constant 0 : index
    %c2_106 = arith.constant 2 : index
    %c0_107 = arith.constant 0 : index
    %93 = vector.load %arg11[%c1_104, %c0_105, %c2_106, %c0_107] : memref<4x10x10x128xbf16, #tpu.memory_space<vmem>>, vector<2x8x8x128xbf16>
    %94 = vector.shape_cast %93 : vector<2x8x8x128xbf16> to vector<128x128xbf16>
    %c11 = arith.constant 11 : index
    %c0_108 = arith.constant 0 : index
    %c0_109 = arith.constant 0 : index
    %95 = vector.load %arg4[%c11, %c0_108, %c0_109] : memref<27x128x128xbf16, #tpu.memory_space<vmem>>, vector<1x128x128xbf16>
    %96 = vector.shape_cast %95 : vector<1x128x128xbf16> to vector<128x128xbf16>
    %cst_110 = arith.constant dense<0.000000e+00> : vector<128x128xf32>
    %97 = tpu.matmul %94, %96, %cst_110 {dimension_numbers = #tpu.dot_dimension_numbers<[1], [0], [0], [1], [0, 0, 1, 1], [], []>} : vector<128x128xbf16>, vector<128x128xbf16>, vector<128x128xf32> -> vector<128x128xf32>
    %98 = arith.addf %92, %97 : vector<128x128xf32>
    %c1_111 = arith.constant 1 : index
    %c1_112 = arith.constant 1 : index
    %c0_113 = arith.constant 0 : index
    %c0_114 = arith.constant 0 : index
    %99 = vector.load %arg11[%c1_111, %c1_112, %c0_113, %c0_114] : memref<4x10x10x128xbf16, #tpu.memory_space<vmem>>, vector<2x8x8x128xbf16>
    %100 = vector.shape_cast %99 : vector<2x8x8x128xbf16> to vector<128x128xbf16>
    %c12 = arith.constant 12 : index
    %c0_115 = arith.constant 0 : index
    %c0_116 = arith.constant 0 : index
    %101 = vector.load %arg4[%c12, %c0_115, %c0_116] : memref<27x128x128xbf16, #tpu.memory_space<vmem>>, vector<1x128x128xbf16>
    %102 = vector.shape_cast %101 : vector<1x128x128xbf16> to vector<128x128xbf16>
    %cst_117 = arith.constant dense<0.000000e+00> : vector<128x128xf32>
    %103 = tpu.matmul %100, %102, %cst_117 {dimension_numbers = #tpu.dot_dimension_numbers<[1], [0], [0], [1], [0, 0, 1, 1], [], []>} : vector<128x128xbf16>, vector<128x128xbf16>, vector<128x128xf32> -> vector<128x128xf32>
    %104 = arith.addf %98, %103 : vector<128x128xf32>
    %c1_118 = arith.constant 1 : index
    %c1_119 = arith.constant 1 : index
    %c1_120 = arith.constant 1 : index
    %c0_121 = arith.constant 0 : index
    %105 = vector.load %arg11[%c1_118, %c1_119, %c1_120, %c0_121] : memref<4x10x10x128xbf16, #tpu.memory_space<vmem>>, vector<2x8x8x128xbf16>
    %106 = vector.shape_cast %105 : vector<2x8x8x128xbf16> to vector<128x128xbf16>
    %c13 = arith.constant 13 : index
    %c0_122 = arith.constant 0 : index
    %c0_123 = arith.constant 0 : index
    %107 = vector.load %arg4[%c13, %c0_122, %c0_123] : memref<27x128x128xbf16, #tpu.memory_space<vmem>>, vector<1x128x128xbf16>
    %108 = vector.shape_cast %107 : vector<1x128x128xbf16> to vector<128x128xbf16>
    %cst_124 = arith.constant dense<0.000000e+00> : vector<128x128xf32>
    %109 = tpu.matmul %106, %108, %cst_124 {dimension_numbers = #tpu.dot_dimension_numbers<[1], [0], [0], [1], [0, 0, 1, 1], [], []>} : vector<128x128xbf16>, vector<128x128xbf16>, vector<128x128xf32> -> vector<128x128xf32>
    %110 = arith.addf %104, %109 : vector<128x128xf32>
    %c1_125 = arith.constant 1 : index
    %c1_126 = arith.constant 1 : index
    %c2_127 = arith.constant 2 : index
    %c0_128 = arith.constant 0 : index
    %111 = vector.load %arg11[%c1_125, %c1_126, %c2_127, %c0_128] : memref<4x10x10x128xbf16, #tpu.memory_space<vmem>>, vector<2x8x8x128xbf16>
    %112 = vector.shape_cast %111 : vector<2x8x8x128xbf16> to vector<128x128xbf16>
    %c14 = arith.constant 14 : index
    %c0_129 = arith.constant 0 : index
    %c0_130 = arith.constant 0 : index
    %113 = vector.load %arg4[%c14, %c0_129, %c0_130] : memref<27x128x128xbf16, #tpu.memory_space<vmem>>, vector<1x128x128xbf16>
    %114 = vector.shape_cast %113 : vector<1x128x128xbf16> to vector<128x128xbf16>
    %cst_131 = arith.constant dense<0.000000e+00> : vector<128x128xf32>
    %115 = tpu.matmul %112, %114, %cst_131 {dimension_numbers = #tpu.dot_dimension_numbers<[1], [0], [0], [1], [0, 0, 1, 1], [], []>} : vector<128x128xbf16>, vector<128x128xbf16>, vector<128x128xf32> -> vector<128x128xf32>
    %116 = arith.addf %110, %115 : vector<128x128xf32>
    %c1_132 = arith.constant 1 : index
    %c2_133 = arith.constant 2 : index
    %c0_134 = arith.constant 0 : index
    %c0_135 = arith.constant 0 : index
    %117 = vector.load %arg11[%c1_132, %c2_133, %c0_134, %c0_135] : memref<4x10x10x128xbf16, #tpu.memory_space<vmem>>, vector<2x8x8x128xbf16>
    %118 = vector.shape_cast %117 : vector<2x8x8x128xbf16> to vector<128x128xbf16>
    %c15 = arith.constant 15 : index
    %c0_136 = arith.constant 0 : index
    %c0_137 = arith.constant 0 : index
    %119 = vector.load %arg4[%c15, %c0_136, %c0_137] : memref<27x128x128xbf16, #tpu.memory_space<vmem>>, vector<1x128x128xbf16>
    %120 = vector.shape_cast %119 : vector<1x128x128xbf16> to vector<128x128xbf16>
    %cst_138 = arith.constant dense<0.000000e+00> : vector<128x128xf32>
    %121 = tpu.matmul %118, %120, %cst_138 {dimension_numbers = #tpu.dot_dimension_numbers<[1], [0], [0], [1], [0, 0, 1, 1], [], []>} : vector<128x128xbf16>, vector<128x128xbf16>, vector<128x128xf32> -> vector<128x128xf32>
    %122 = arith.addf %116, %121 : vector<128x128xf32>
    %c1_139 = arith.constant 1 : index
    %c2_140 = arith.constant 2 : index
    %c1_141 = arith.constant 1 : index
    %c0_142 = arith.constant 0 : index
    %123 = vector.load %arg11[%c1_139, %c2_140, %c1_141, %c0_142] : memref<4x10x10x128xbf16, #tpu.memory_space<vmem>>, vector<2x8x8x128xbf16>
    %124 = vector.shape_cast %123 : vector<2x8x8x128xbf16> to vector<128x128xbf16>
    %c16 = arith.constant 16 : index
    %c0_143 = arith.constant 0 : index
    %c0_144 = arith.constant 0 : index
    %125 = vector.load %arg4[%c16, %c0_143, %c0_144] : memref<27x128x128xbf16, #tpu.memory_space<vmem>>, vector<1x128x128xbf16>
    %126 = vector.shape_cast %125 : vector<1x128x128xbf16> to vector<128x128xbf16>
    %cst_145 = arith.constant dense<0.000000e+00> : vector<128x128xf32>
    %127 = tpu.matmul %124, %126, %cst_145 {dimension_numbers = #tpu.dot_dimension_numbers<[1], [0], [0], [1], [0, 0, 1, 1], [], []>} : vector<128x128xbf16>, vector<128x128xbf16>, vector<128x128xf32> -> vector<128x128xf32>
    %128 = arith.addf %122, %127 : vector<128x128xf32>
    %c1_146 = arith.constant 1 : index
    %c2_147 = arith.constant 2 : index
    %c2_148 = arith.constant 2 : index
    %c0_149 = arith.constant 0 : index
    %129 = vector.load %arg11[%c1_146, %c2_147, %c2_148, %c0_149] : memref<4x10x10x128xbf16, #tpu.memory_space<vmem>>, vector<2x8x8x128xbf16>
    %130 = vector.shape_cast %129 : vector<2x8x8x128xbf16> to vector<128x128xbf16>
    %c17 = arith.constant 17 : index
    %c0_150 = arith.constant 0 : index
    %c0_151 = arith.constant 0 : index
    %131 = vector.load %arg4[%c17, %c0_150, %c0_151] : memref<27x128x128xbf16, #tpu.memory_space<vmem>>, vector<1x128x128xbf16>
    %132 = vector.shape_cast %131 : vector<1x128x128xbf16> to vector<128x128xbf16>
    %cst_152 = arith.constant dense<0.000000e+00> : vector<128x128xf32>
    %133 = tpu.matmul %130, %132, %cst_152 {dimension_numbers = #tpu.dot_dimension_numbers<[1], [0], [0], [1], [0, 0, 1, 1], [], []>} : vector<128x128xbf16>, vector<128x128xbf16>, vector<128x128xf32> -> vector<128x128xf32>
    %134 = arith.addf %128, %133 : vector<128x128xf32>
    %c2_153 = arith.constant 2 : index
    %c0_154 = arith.constant 0 : index
    %c0_155 = arith.constant 0 : index
    %c0_156 = arith.constant 0 : index
    %135 = vector.load %arg11[%c2_153, %c0_154, %c0_155, %c0_156] : memref<4x10x10x128xbf16, #tpu.memory_space<vmem>>, vector<2x8x8x128xbf16>
    %136 = vector.shape_cast %135 : vector<2x8x8x128xbf16> to vector<128x128xbf16>
    %c18 = arith.constant 18 : index
    %c0_157 = arith.constant 0 : index
    %c0_158 = arith.constant 0 : index
    %137 = vector.load %arg4[%c18, %c0_157, %c0_158] : memref<27x128x128xbf16, #tpu.memory_space<vmem>>, vector<1x128x128xbf16>
    %138 = vector.shape_cast %137 : vector<1x128x128xbf16> to vector<128x128xbf16>
    %cst_159 = arith.constant dense<0.000000e+00> : vector<128x128xf32>
    %139 = tpu.matmul %136, %138, %cst_159 {dimension_numbers = #tpu.dot_dimension_numbers<[1], [0], [0], [1], [0, 0, 1, 1], [], []>} : vector<128x128xbf16>, vector<128x128xbf16>, vector<128x128xf32> -> vector<128x128xf32>
    %140 = arith.addf %134, %139 : vector<128x128xf32>
    %c2_160 = arith.constant 2 : index
    %c0_161 = arith.constant 0 : index
    %c1_162 = arith.constant 1 : index
    %c0_163 = arith.constant 0 : index
    %141 = vector.load %arg11[%c2_160, %c0_161, %c1_162, %c0_163] : memref<4x10x10x128xbf16, #tpu.memory_space<vmem>>, vector<2x8x8x128xbf16>
    %142 = vector.shape_cast %141 : vector<2x8x8x128xbf16> to vector<128x128xbf16>
    %c19 = arith.constant 19 : index
    %c0_164 = arith.constant 0 : index
    %c0_165 = arith.constant 0 : index
    %143 = vector.load %arg4[%c19, %c0_164, %c0_165] : memref<27x128x128xbf16, #tpu.memory_space<vmem>>, vector<1x128x128xbf16>
    %144 = vector.shape_cast %143 : vector<1x128x128xbf16> to vector<128x128xbf16>
    %cst_166 = arith.constant dense<0.000000e+00> : vector<128x128xf32>
    %145 = tpu.matmul %142, %144, %cst_166 {dimension_numbers = #tpu.dot_dimension_numbers<[1], [0], [0], [1], [0, 0, 1, 1], [], []>} : vector<128x128xbf16>, vector<128x128xbf16>, vector<128x128xf32> -> vector<128x128xf32>
    %146 = arith.addf %140, %145 : vector<128x128xf32>
    %c2_167 = arith.constant 2 : index
    %c0_168 = arith.constant 0 : index
    %c2_169 = arith.constant 2 : index
    %c0_170 = arith.constant 0 : index
    %147 = vector.load %arg11[%c2_167, %c0_168, %c2_169, %c0_170] : memref<4x10x10x128xbf16, #tpu.memory_space<vmem>>, vector<2x8x8x128xbf16>
    %148 = vector.shape_cast %147 : vector<2x8x8x128xbf16> to vector<128x128xbf16>
    %c20 = arith.constant 20 : index
    %c0_171 = arith.constant 0 : index
    %c0_172 = arith.constant 0 : index
    %149 = vector.load %arg4[%c20, %c0_171, %c0_172] : memref<27x128x128xbf16, #tpu.memory_space<vmem>>, vector<1x128x128xbf16>
    %150 = vector.shape_cast %149 : vector<1x128x128xbf16> to vector<128x128xbf16>
    %cst_173 = arith.constant dense<0.000000e+00> : vector<128x128xf32>
    %151 = tpu.matmul %148, %150, %cst_173 {dimension_numbers = #tpu.dot_dimension_numbers<[1], [0], [0], [1], [0, 0, 1, 1], [], []>} : vector<128x128xbf16>, vector<128x128xbf16>, vector<128x128xf32> -> vector<128x128xf32>
    %152 = arith.addf %146, %151 : vector<128x128xf32>
    %c2_174 = arith.constant 2 : index
    %c1_175 = arith.constant 1 : index
    %c0_176 = arith.constant 0 : index
    %c0_177 = arith.constant 0 : index
    %153 = vector.load %arg11[%c2_174, %c1_175, %c0_176, %c0_177] : memref<4x10x10x128xbf16, #tpu.memory_space<vmem>>, vector<2x8x8x128xbf16>
    %154 = vector.shape_cast %153 : vector<2x8x8x128xbf16> to vector<128x128xbf16>
    %c21 = arith.constant 21 : index
    %c0_178 = arith.constant 0 : index
    %c0_179 = arith.constant 0 : index
    %155 = vector.load %arg4[%c21, %c0_178, %c0_179] : memref<27x128x128xbf16, #tpu.memory_space<vmem>>, vector<1x128x128xbf16>
    %156 = vector.shape_cast %155 : vector<1x128x128xbf16> to vector<128x128xbf16>
    %cst_180 = arith.constant dense<0.000000e+00> : vector<128x128xf32>
    %157 = tpu.matmul %154, %156, %cst_180 {dimension_numbers = #tpu.dot_dimension_numbers<[1], [0], [0], [1], [0, 0, 1, 1], [], []>} : vector<128x128xbf16>, vector<128x128xbf16>, vector<128x128xf32> -> vector<128x128xf32>
    %158 = arith.addf %152, %157 : vector<128x128xf32>
    %c2_181 = arith.constant 2 : index
    %c1_182 = arith.constant 1 : index
    %c1_183 = arith.constant 1 : index
    %c0_184 = arith.constant 0 : index
    %159 = vector.load %arg11[%c2_181, %c1_182, %c1_183, %c0_184] : memref<4x10x10x128xbf16, #tpu.memory_space<vmem>>, vector<2x8x8x128xbf16>
    %160 = vector.shape_cast %159 : vector<2x8x8x128xbf16> to vector<128x128xbf16>
    %c22 = arith.constant 22 : index
    %c0_185 = arith.constant 0 : index
    %c0_186 = arith.constant 0 : index
    %161 = vector.load %arg4[%c22, %c0_185, %c0_186] : memref<27x128x128xbf16, #tpu.memory_space<vmem>>, vector<1x128x128xbf16>
    %162 = vector.shape_cast %161 : vector<1x128x128xbf16> to vector<128x128xbf16>
    %cst_187 = arith.constant dense<0.000000e+00> : vector<128x128xf32>
    %163 = tpu.matmul %160, %162, %cst_187 {dimension_numbers = #tpu.dot_dimension_numbers<[1], [0], [0], [1], [0, 0, 1, 1], [], []>} : vector<128x128xbf16>, vector<128x128xbf16>, vector<128x128xf32> -> vector<128x128xf32>
    %164 = arith.addf %158, %163 : vector<128x128xf32>
    %c2_188 = arith.constant 2 : index
    %c1_189 = arith.constant 1 : index
    %c2_190 = arith.constant 2 : index
    %c0_191 = arith.constant 0 : index
    %165 = vector.load %arg11[%c2_188, %c1_189, %c2_190, %c0_191] : memref<4x10x10x128xbf16, #tpu.memory_space<vmem>>, vector<2x8x8x128xbf16>
    %166 = vector.shape_cast %165 : vector<2x8x8x128xbf16> to vector<128x128xbf16>
    %c23 = arith.constant 23 : index
    %c0_192 = arith.constant 0 : index
    %c0_193 = arith.constant 0 : index
    %167 = vector.load %arg4[%c23, %c0_192, %c0_193] : memref<27x128x128xbf16, #tpu.memory_space<vmem>>, vector<1x128x128xbf16>
    %168 = vector.shape_cast %167 : vector<1x128x128xbf16> to vector<128x128xbf16>
    %cst_194 = arith.constant dense<0.000000e+00> : vector<128x128xf32>
    %169 = tpu.matmul %166, %168, %cst_194 {dimension_numbers = #tpu.dot_dimension_numbers<[1], [0], [0], [1], [0, 0, 1, 1], [], []>} : vector<128x128xbf16>, vector<128x128xbf16>, vector<128x128xf32> -> vector<128x128xf32>
    %170 = arith.addf %164, %169 : vector<128x128xf32>
    %c2_195 = arith.constant 2 : index
    %c2_196 = arith.constant 2 : index
    %c0_197 = arith.constant 0 : index
    %c0_198 = arith.constant 0 : index
    %171 = vector.load %arg11[%c2_195, %c2_196, %c0_197, %c0_198] : memref<4x10x10x128xbf16, #tpu.memory_space<vmem>>, vector<2x8x8x128xbf16>
    %172 = vector.shape_cast %171 : vector<2x8x8x128xbf16> to vector<128x128xbf16>
    %c24 = arith.constant 24 : index
    %c0_199 = arith.constant 0 : index
    %c0_200 = arith.constant 0 : index
    %173 = vector.load %arg4[%c24, %c0_199, %c0_200] : memref<27x128x128xbf16, #tpu.memory_space<vmem>>, vector<1x128x128xbf16>
    %174 = vector.shape_cast %173 : vector<1x128x128xbf16> to vector<128x128xbf16>
    %cst_201 = arith.constant dense<0.000000e+00> : vector<128x128xf32>
    %175 = tpu.matmul %172, %174, %cst_201 {dimension_numbers = #tpu.dot_dimension_numbers<[1], [0], [0], [1], [0, 0, 1, 1], [], []>} : vector<128x128xbf16>, vector<128x128xbf16>, vector<128x128xf32> -> vector<128x128xf32>
    %176 = arith.addf %170, %175 : vector<128x128xf32>
    %c2_202 = arith.constant 2 : index
    %c2_203 = arith.constant 2 : index
    %c1_204 = arith.constant 1 : index
    %c0_205 = arith.constant 0 : index
    %177 = vector.load %arg11[%c2_202, %c2_203, %c1_204, %c0_205] : memref<4x10x10x128xbf16, #tpu.memory_space<vmem>>, vector<2x8x8x128xbf16>
    %178 = vector.shape_cast %177 : vector<2x8x8x128xbf16> to vector<128x128xbf16>
    %c25 = arith.constant 25 : index
    %c0_206 = arith.constant 0 : index
    %c0_207 = arith.constant 0 : index
    %179 = vector.load %arg4[%c25, %c0_206, %c0_207] : memref<27x128x128xbf16, #tpu.memory_space<vmem>>, vector<1x128x128xbf16>
    %180 = vector.shape_cast %179 : vector<1x128x128xbf16> to vector<128x128xbf16>
    %cst_208 = arith.constant dense<0.000000e+00> : vector<128x128xf32>
    %181 = tpu.matmul %178, %180, %cst_208 {dimension_numbers = #tpu.dot_dimension_numbers<[1], [0], [0], [1], [0, 0, 1, 1], [], []>} : vector<128x128xbf16>, vector<128x128xbf16>, vector<128x128xf32> -> vector<128x128xf32>
    %182 = arith.addf %176, %181 : vector<128x128xf32>
    %c2_209 = arith.constant 2 : index
    %c2_210 = arith.constant 2 : index
    %c2_211 = arith.constant 2 : index
    %c0_212 = arith.constant 0 : index
    %183 = vector.load %arg11[%c2_209, %c2_210, %c2_211, %c0_212] : memref<4x10x10x128xbf16, #tpu.memory_space<vmem>>, vector<2x8x8x128xbf16>
    %184 = vector.shape_cast %183 : vector<2x8x8x128xbf16> to vector<128x128xbf16>
    %c26 = arith.constant 26 : index
    %c0_213 = arith.constant 0 : index
    %c0_214 = arith.constant 0 : index
    %185 = vector.load %arg4[%c26, %c0_213, %c0_214] : memref<27x128x128xbf16, #tpu.memory_space<vmem>>, vector<1x128x128xbf16>
    %186 = vector.shape_cast %185 : vector<1x128x128xbf16> to vector<128x128xbf16>
    %cst_215 = arith.constant dense<0.000000e+00> : vector<128x128xf32>
    %187 = tpu.matmul %184, %186, %cst_215 {dimension_numbers = #tpu.dot_dimension_numbers<[1], [0], [0], [1], [0, 0, 1, 1], [], []>} : vector<128x128xbf16>, vector<128x128xbf16>, vector<128x128xf32> -> vector<128x128xf32>
    %188 = arith.addf %182, %187 : vector<128x128xf32>
    %c0_216 = arith.constant 0 : index
    %c0_217 = arith.constant 0 : index
    %189 = vector.load %arg7[%c0_216, %c0_217] : memref<1x128xf32, #tpu.memory_space<vmem>>, vector<1x128xf32>
    %190 = vector.broadcast %189 : vector<1x128xf32> to vector<128x128xf32>
    %191 = arith.addf %188, %190 : vector<128x128xf32>
    %cst_218 = arith.constant 0.000000e+00 : f32
    %192 = vector.broadcast %cst_218 : f32 to vector<128x128xf32>
    %193 = arith.maximumf %191, %192 : vector<128x128xf32>
    %194 = arith.truncf %193 : vector<128x128xf32> to vector<128x128xbf16>
    %c0_219 = arith.constant 0 : index
    %c0_220 = arith.constant 0 : index
    %195 = vector.load %arg5[%c0_219, %c0_220] : memref<128x128xbf16, #tpu.memory_space<vmem>>, vector<128x128xbf16>
    %cst_221 = arith.constant dense<0.000000e+00> : vector<128x128xf32>
    %196 = tpu.matmul %194, %195, %cst_221 {dimension_numbers = #tpu.dot_dimension_numbers<[1], [0], [0], [1], [0, 0, 1, 1], [], []>} : vector<128x128xbf16>, vector<128x128xbf16>, vector<128x128xf32> -> vector<128x128xf32>
    %c1_222 = arith.constant 1 : index
    %c0_223 = arith.constant 0 : index
    %c0_224 = arith.constant 0 : index
    %c0_225 = arith.constant 0 : index
    %197 = vector.load %arg10[%c1_222, %c0_223, %c0_224, %c0_225] : memref<4x8x8x128xf32, #tpu.memory_space<vmem>>, vector<2x8x8x128xf32>
    %198 = vector.shape_cast %197 : vector<2x8x8x128xf32> to vector<128x128xf32>
    %c0_226 = arith.constant 0 : index
    %c0_227 = arith.constant 0 : index
    %199 = vector.load %arg8[%c0_226, %c0_227] : memref<1x128xf32, #tpu.memory_space<vmem>>, vector<1x128xf32>
    %200 = vector.broadcast %199 : vector<1x128xf32> to vector<128x128xf32>
    %201 = arith.addf %196, %200 : vector<128x128xf32>
    %202 = arith.addf %201, %198 : vector<128x128xf32>
    %203 = vector.shape_cast %202 : vector<128x128xf32> to vector<1x2x8x8x128xf32>
    %c0_228 = arith.constant 0 : index
    %c0_229 = arith.constant 0 : index
    %c0_230 = arith.constant 0 : index
    %c0_231 = arith.constant 0 : index
    %c0_232 = arith.constant 0 : index
    %204 = vector.load %arg9[%c0_228, %c0_229, %c0_230, %c0_231, %c0_232] : memref<1x2x8x8x128xf32, #tpu.memory_space<vmem>>, vector<1x2x8x8x128xf32>
    tpu.vector_store %arg9[%c0_228, %c0_229, %c0_230, %c0_231, %c0_232], %203 {strides = array<i32>} : memref<1x2x8x8x128xf32, #tpu.memory_space<vmem>>, vector<1x2x8x8x128xf32>,
    return
  }
  func.func @transform_1(%arg0: i32, %arg1: i32) -> (i32, i32) {
    %c0_i32 = arith.constant 0 : i32
    %c0_i32_0 = arith.constant 0 : i32
    %c0_i32_1 = arith.constant 0 : i32
    return %c0_i32, %c0_i32_0 : i32, i32
  }
  func.func @transform_2(%arg0: i32, %arg1: i32) -> (i32, i32, i32) {
    %c0_i32 = arith.constant 0 : i32
    %c0_i32_0 = arith.constant 0 : i32
    %c0_i32_1 = arith.constant 0 : i32
    %c0_i32_2 = arith.constant 0 : i32
    return %c0_i32, %c0_i32_0, %c0_i32_1 : i32, i32, i32
  }
  func.func @transform_3(%arg0: i32, %arg1: i32) -> (i32, i32) {
    %c0_i32 = arith.constant 0 : i32
    %c0_i32_0 = arith.constant 0 : i32
    %c0_i32_1 = arith.constant 0 : i32
    return %c0_i32, %c0_i32_0 : i32, i32
  }
  func.func @transform_4(%arg0: i32, %arg1: i32) -> (i32, i32) {
    %c0_i32 = arith.constant 0 : i32
    %c0_i32_0 = arith.constant 0 : i32
    %c0_i32_1 = arith.constant 0 : i32
    return %c0_i32, %c0_i32_0 : i32, i32
  }
  func.func @transform_5(%arg0: i32, %arg1: i32) -> (i32, i32) {
    %c0_i32 = arith.constant 0 : i32
    %c0_i32_0 = arith.constant 0 : i32
    %c0_i32_1 = arith.constant 0 : i32
    return %c0_i32, %c0_i32_0 : i32, i32
  }
  func.func @transform_6(%arg0: i32, %arg1: i32) -> (i32, i32) {
    %c0_i32 = arith.constant 0 : i32
    %c0_i32_0 = arith.constant 0 : i32
    %c0_i32_1 = arith.constant 0 : i32
    return %c0_i32, %c0_i32_0 : i32, i32
  }
  func.func @transform_7(%arg0: i32, %arg1: i32) -> (i32, i32, i32, i32, i32) {
    %c0_i32 = arith.constant 0 : i32
    %c0_i32_0 = arith.constant 0 : i32
    %c0_i32_1 = arith.constant 0 : i32
    %c0_i32_2 = arith.constant 0 : i32
    return %arg0, %arg1, %c0_i32, %c0_i32_0, %c0_i32_1 : i32, i32, i32, i32, i32
  }
}

</mosaic_0001>

<bundles_post_ra>
// kernel: tpu_custom_call.1
= control target key start
LH: loop header
LB: loop body
LE: loop exit
PB: predicated region body
PF: predicated region fallthrough
CT: control target
= control target key end

     0   :  { %12 = vsyncpa [#allocation6], 0  ;;  %s16133_s0 = inlined_call_operand.hbm [shape: f32[12,8,8,128], index: 0, kind: input, shape index: {}]   ;;  %s16134_s1 = inlined_call_operand.hbm [shape: bf16[128,128], index: 1, kind: input, shape index: {}]   ;;  %s16135_s2 = inlined_call_operand.hbm [shape: bf16[27,128,128], index: 2, kind: input, shape index: {}]   ;;  %s16136_s3 = inlined_call_operand.hbm [shape: bf16[128,128], index: 3, kind: input, shape index: {}]   ;;  %s16137_s4 = inlined_call_operand.vmem [shape: f32[1,128], index: 4, kind: input, shape index: {}]   ;;  %s16138_s5 = inlined_call_operand.vmem [shape: f32[1,128], index: 5, kind: input, shape index: {}]   ;;  %s16139_s6 = inlined_call_operand.vmem [shape: f32[1,128], index: 6, kind: input, shape index: {}]   ;;  %s16140_s7 = inlined_call_operand.hbm [shape: f32[2,4,8,8,128], index: 7, kind: output, shape index: {}]  }
   0x1   :  { %13 = vsyncpa [#allocation9], 0 }
   0x2   :  { %14 = vsyncpa [#allocation7], 0 }
   0x3   :  { %16 = vsyncpa [#allocation7 + $0x1], 0  ;;  %s14231_s24 = smov 0   ;;  %s14233_s25 = smov 0  }
   0x4   :  { %s14235_s26 = smov 0   ;;  %s14237_s27 = smov 0  }
   0x5   :  { %s14239_s28 = smov 0   ;;  %s14241_s29 = smov 0  }
   0x6   :  { %s14243_s30 = smov 0   ;;  %s14245_s8 = smov 0  }
   0x7 LB: > { %16154 = sst [smem:[#allocation20_spill]] %s14149_s24  ;;  %s11022_s9 = sadd.s32 4294967295, %s14177_s8   ;;  %s14177_s8 = sphi %s14245_s8, %s22_s8   ;;  %s14173_s30 = sphi %s14243_s30, %s16191_s30   ;;  %s14169_s29 = sphi %s14241_s29, %s16190_s29   ;;  %s14165_s28 = sphi %s14239_s28, %s16189_s28   ;;  %s14161_s27 = sphi %s14237_s27, %s16188_s27   ;;  %s14157_s26 = sphi %s14235_s26, %s16187_s26   ;;  %s14153_s25 = sphi %s14233_s25, %s16193_s25   ;;  %s14149_s24 = sphi %s14231_s24, %s16192_s24  }
   0x8   : > { %16155 = sst [smem:[#allocation21_spill]] %s14157_s26  ;;  %s11023_s10 = sadd.s32 4294967294, %s14177_s8  }
   0x9   : > { %16156 = sst [smem:[#allocation22_spill]] %s14169_s29  ;;  %s31_s11 = sadd.s32 1, %s14169_s29 }
   0xa   : > { %16157 = sst [smem:[#allocation23_spill]] %s14173_s30  ;;  %s34_s12 = sadd.s32 1, %s14173_s30 }
   0xb   : > { %p32_p0 = scmp.ge.s32.totalorder %s31_s11, 2  ;;  %s169_s13 = sadd.s32 1, %s14157_s26 }
   0xc   : > { %p179_p1 = scmp.ne.s32.totalorder %s14157_s26, %s14153_s25  ;;  %p180_p2 = scmp.eq.s32.totalorder %s11022_s9, 3 }
   0xd   : > { %s16195_s11 = smov (%p32_p0, %s31_s11), 0  ;;  %s16197_s12 = smov (!%p32_p0, %s34_s12), %s14173_s30 }
   0xe   : > { %16158 = sst [smem:[#allocation24_spill]] %s16195_s11  ;;  %s165_s14 = ssub.s32 %s14169_s29, %s16195_s11 }
   0xf   : > { %p14283_p3 = por %p180_p2, %p179_p1  ;;  %p36_p4 = scmp.ge.s32.totalorder %s16197_s12, 2 }
  0x10   : > { %p185_p5 = scmp.ne.s32.totalorder %s14153_s25, %s14149_s24  ;;  %p186_p6 = scmp.eq.s32.totalorder %s11023_s10, 3 }
  0x11   : > { %s16159_s15 = scalar_select %p14283_p3, 1, 0 }
  0x12   : > { %p11024_p7 = scmp.ge.s32.totalorder %s14177_s8, 1  ;;  %s16199_s12 = smov (%p36_p4, %s16197_s12), 0 }
  0x13   : > { %16160 = sst [smem:[#allocation25_spill]] %s16199_s12  ;;  %p14292_p8 = por %p186_p6, %p185_p5 }
  0x14   : > { %p193_p9 = scmp.lt.s32.totalorder %s14177_s8, 5  ;;  %s164_s17 = ssub.s32 %s14173_s30, %s16199_s12 }
  0x15   : > { %s16161_s16 = scalar_select %p14292_p8, 1, 0 }
  0x16   : > { %s166_s18 = sor.u32 %s165_s14, %s164_s17  ;;  %p14299_p10 = pnand %p11024_p7, %p193_p9 }
  0x17   : > { %16162 = sst [smem:[#allocation26_spill]] %s16161_s16  ;;  %p167_p11 = scmp.eq.s32.totalorder %s166_s18, 0 }
  0x18   : > { %s16163_s19 = scalar_select %p14299_p10, 1, 0 }
  0x19   : > { %p14303_p12 = scmp.eq.s32.totalorder %s11022_s9, 0  ;;  %p13553_p13 = pneg %p14299_p10 }
  0x1a   : > { %s14310_s21 = scalar_select %p167_p11, %s14157_s26, %s169_s13  }
  0x1b   : > { %s16164_s20 = scalar_select %p14303_p12, 1, 0 }
  0x1c   : > { %16165 = sst [smem:[#allocation27_spill]] %s14310_s21  ;;  %p14314_p0 = pnand %p14303_p12, %p13553_p13 }
  0x1d   : > { %s14179_s23 = smov [#allocation8]   ;;  %s13965_s9 = scalar_lea.hbm %s16135_s2, 27648 }
  0x1e   : > { %s218_s10 = sshll.u32 %s14179_s23, 4  ;;  %p13966_p1 = scmp.ne.s32.totalorder %s16135_s2, %s13965_s9  ;;  %s219_s10 = int_to_ptr.vmem [resolvable:$true] %s218_s10 }
  0x1f   : > { %p14326_p2 = pneg %p14314_p0  ;;  %p13972_p6 = scmp.lt.u32.totalorder %s13965_s9, %s16135_s2 }
  0x21   : > { %p13968_p4 = pnand %p14326_p2, %p13966_p1 }
  0x23   : > { %p13969_p5 = pneg %p13968_p4 }
  0x25   : > { %p13974_p7 = pnand %p13972_p6, %p13969_p5 }
  0x27   : > { %13977 = shalt.err (!%p13974_p7)
}
  0x28   : > { %s13978_s14 = scalar_lea.vmem %s219_s10, 27648  ;;  %p13986_p8 = scmp.lt.s32.totalorder %s219_s10, %s219_s10 }
  0x29   : > { %p13979_p9 = scmp.ne.s32.totalorder %s219_s10, %s13978_s14  ;;  %p13987_p3 = scmp.lt.s32.totalorder %s13978_s14, %s13978_s14 }
  0x2b   : > { %p13981_p11 = pnand %p13979_p9, %p14326_p2  ;;  %p13988_p12 = por %p13987_p3, %p13986_p8 }
  0x2d   : > { %p13982_p13 = pneg %p13981_p11 }
  0x2f   : > { %p13989_p10 = pnand %p13988_p12, %p13982_p13 }
  0x31   : > { %13992 = shalt.err (!%p13989_p10)
}
  0x32   : > { %s14180_s12 = smov 64   ;;  %s14181_s17 = smov 4  }
  0x33   : > { %13559 = dma.hbm_to_vmem [thread:$0]  (!%p14314_p0), %s16135_s2, 27648, %s219_s10, [#allocation9], %s14180_s12, %s14180_s12, %s14181_s17  }
  0x34   : > { %s14182_s18 = smov [#allocation5]   ;;  %s14183_s30 = smov [#allocation10]  }
  0x35   : > { %s205_s23 = sshll.u32 %s14182_s18, 4  ;;  %s231_s29 = sshll.u32 %s14183_s30, 4  ;;  %s206_s23 = int_to_ptr.vmem [resolvable:$true] %s205_s23  ;;  %s14345_s29 = int_to_ptr.vmem [resolvable:$true] %s231_s29 }
  0x36   : > { %s13993_s26 = scalar_lea.hbm %s16134_s1, 1024 }
  0x37   : > { %p13994_p3 = scmp.ne.s32.totalorder %s16134_s1, %s13993_s26  ;;  %p14000_p12 = scmp.lt.u32.totalorder %s13993_s26, %s16134_s1 }
  0x39   : > { %p13996_p8 = pnand %p13994_p3, %p14326_p2 }
  0x3b   : > { %p13997_p10 = pneg %p13996_p8 }
  0x3d   : > { %p14002_p1 = pnand %p14000_p12, %p13997_p10 }
  0x3f   : > { %14005 = shalt.err (!%p14002_p1)
}
  0x40   : > { %s14006_s30 = scalar_lea.vmem %s206_s23, 1024  ;;  %p14014_p7 = scmp.lt.s32.totalorder %s206_s23, %s206_s23 }
  0x41   : > { %p14007_p4 = scmp.ne.s32.totalorder %s206_s23, %s14006_s30  ;;  %p14015_p9 = scmp.lt.s32.totalorder %s14006_s30, %s14006_s30 }
  0x43   : > { %p14009_p5 = pnand %p14007_p4, %p14326_p2  ;;  %p14016_p11 = por %p14015_p9, %p14014_p7 }
  0x45   : > { %p14010_p6 = pneg %p14009_p5 }
  0x47   : > { %p14017_p13 = pnand %p14016_p11, %p14010_p6 }
  0x49   : > { %14020 = shalt.err (!%p14017_p13)
}
  0x4a   : > { %13556 = dma.hbm_to_vmem [thread:$0]  (!%p14314_p0), %s16134_s1, 1024, %s206_s23, [#allocation6], %s14180_s12, %s14180_s12, %s14181_s17  }
  0x4b   : > { %s14021_s9 = scalar_lea.hbm %s16136_s3, 1024 }
  0x4c   : > { %p14022_p3 = scmp.ne.s32.totalorder %s16136_s3, %s14021_s9  ;;  %p14028_p12 = scmp.lt.u32.totalorder %s14021_s9, %s16136_s3 }
  0x4e   : > { %p14024_p8 = pnand %p14022_p3, %p14326_p2 }
  0x50   : > { %p14025_p10 = pneg %p14024_p8 }
  0x52   : > { %p14030_p1 = pnand %p14028_p12, %p14025_p10 }
  0x54   : > { %14033 = shalt.err (!%p14030_p1)
}
  0x55   : > { %s14034_s23 = scalar_lea.vmem %s14345_s29, 1024  ;;  %p14042_p7 = scmp.lt.s32.totalorder %s14345_s29, %s14345_s29 }
  0x56   : > { %p14035_p4 = scmp.ne.s32.totalorder %s14345_s29, %s14034_s23  ;;  %p14043_p9 = scmp.lt.s32.totalorder %s14034_s23, %s14034_s23 }
  0x58   : > { %p14037_p5 = pnand %p14035_p4, %p14326_p2  ;;  %p14044_p11 = por %p14043_p9, %p14042_p7 }
  0x5a   : > { %p14038_p6 = pneg %p14037_p5 }
  0x5c   : > { %p14045_p13 = pnand %p14044_p11, %p14038_p6 }
  0x5e   : > { %14048 = shalt.err (!%p14045_p13)
}
  0x5f   : > { %13562 = dma.hbm_to_vmem [thread:$0]  (!%p14314_p0), %s16136_s3, 1024, %s14345_s29, [#allocation9], %s14180_s12, %s14180_s12, %s14181_s17  }
  0x60   : > { %p16168_p3 = scmp.ne.s32.totalorder %s16163_s19, 0 }
  0x62   : > { %256 = sbr.rel (%p16168_p3) target bundleno = 1571 (0x623), region = 44 }
  0x69   : > { %p16169_p2 = scmp.ne.s32.totalorder %s16164_s20, 0 }
  0x6b   : > { %14134 = dma.done.wait (%p16169_p2), [#allocation6], 1024  }
  0x6c   : > { %14136 = vsyncadd (%p16169_p2), [#allocation6], 4294966272 }
  0x6d   : > { %14138 = dma.done.wait (%p16169_p2), [#allocation9], 28672  }
  0x6e   : > { %14140 = vsyncadd (%p16169_p2), [#allocation9], 4294938624  ;;  %s286_s29 = sand.u32 1, %s14153_s25   ;;  %s11033_s22 = sshll.u32 %s14161_s27, 1 }
  0x6f   : > { %s11032_s19 = sshll.u32 %s286_s29, 7  ;;  %s292_s13 = smul.u32 6, %s14165_s28 }
  0x70   : > { %s14184_s17 = smov [#allocation2]   ;;  %s14051_s10 = scalar_lea.hbm %s16133_s0, 12288 }
  0x71   : > { %s293_s12 = sadd.s32 %s11033_s22, %s292_s13  ;;  %s304_s26 = sshll.u32 %s14184_s17, 4  ;;  %s305_s26 = int_to_ptr.vmem [resolvable:$true] %s304_s26 }
  0x72   : > { %s11673_s16 = sshll.u32 %s293_s12, 10 }
  0x73   : > { %s296_s18 = scalar_lea.hbm %s16133_s0, %s11673_s16 }
  0x74   : > { %s14049_s20 = scalar_lea.hbm %s296_s18, 4096  ;;  %p14052_p8 = scmp.lt.u32.totalorder %s296_s18, %s16133_s0 }
  0x75   : > { %p14050_p0 = scmp.ne.s32.totalorder %s296_s18, %s14049_s20  ;;  %p14053_p10 = scmp.lt.u32.totalorder %s14051_s10, %s14049_s20 }
  0x76   : > { %p14055_p1 = scmp.lt.u32.totalorder %s14049_s20, %s296_s18 }
  0x77   : > { %p14054_p12 = por %p14053_p10, %p14052_p8 }
  0x79   : > { %p14056_p4 = por %p14055_p1, %p14054_p12 }
  0x7b   : > { %p14057_p5 = pnand %p14056_p4, %p14050_p0 }
  0x7d   : > { %14060 = shalt.err (!%p14057_p5)  }
  0x7e   : > { %s14061_s24 = scalar_lea.vmem %s305_s26, 4096  ;;  %p14066_p7 = scmp.lt.s32.totalorder %s305_s26, %s305_s26 }
  0x7f   : > { %p14062_p6 = scmp.ne.s32.totalorder %s305_s26, %s14061_s24  ;;  %p14067_p9 = scmp.lt.s32.totalorder %s14061_s24, %s14061_s24 }
  0x81   : > { %p14068_p11 = por %p14067_p9, %p14066_p7 }
  0x83   : > { %p14069_p13 = pnand %p14068_p11, %p14062_p6 }
  0x85   : > { %14072 = shalt.err (!%p14069_p13)  }
  0x86   : > { %307 = dma.hbm_to_vmem [thread:$0]  %s296_s18, 4096, %s305_s26, [#allocation4] }
  0x87   : > { %s14418_s22 = scalar_lea.vmem [#allocation11], %s11032_s19 }
  0x88   : > { %14141 = dma.done.wait [#allocation4], 4096 }
  0x89   : > { %14142 = vsyncadd [#allocation4], 4294963200  ;;  %v14185_v0 = vmov 0   ;;  %v13649_v1 = vld [vmem:[#allocation5] sm:$0xff]   ;;  %v13650_v2 = vld [vmem:[#allocation5 + $0x8] sm:$0xff]   ;;  %vm1154_vm0 = vcmask 1043456  }
  0x8a   : > { %625 = vst [vmem:[#allocation3] sm:$0xf] %v14185_v0  ;;  %626 = vst [vmem:[#allocation3 + $0x4] sm:$0x1] %v14185_v0  ;;  %12179 = vmatprep.subr.bf16.mxu0 %v13649_v1  ;;  %v13651_v3 = vld [vmem:[#allocation5 + $0x10] sm:$0xff]   ;;  %v13652_v4 = vld [vmem:[#allocation5 + $0x18] sm:$0xff]  }
  0x8b   : > { %643 = vst [vmem:[#allocation3 + $0x48] sm:$0xf] %v14185_v0  ;;  %644 = vst [vmem:[#allocation3 + $0x4c] sm:$0x1] %v14185_v0  ;;  %12180 = vmatpush3.bf16.msra.mxu0 %v13649_v1  ;;  %v313_v5 = vld [vmem:[#allocation2] sm:$0xff]  ;;  %v314_v6 = vld [vmem:[#allocation2 + $0x8] sm:$0xff] }
  0x8c   : > { %645 = vst [vmem:[#allocation3 + $0x50] sm:$0xf] %v14185_v0  ;;  %646 = vst [vmem:[#allocation3 + $0x54] sm:$0x1] %v14185_v0  ;;  %12181 = vmatprep.subr.bf16.mxu0 %v13650_v2  ;;  %v345_v7 = vpack.c.bf16 %v314_v6, %v313_v5  ;;  %v13653_v8 = vld [vmem:[#allocation5 + $0x20] sm:$0xff]   ;;  %v13654_v9 = vld [vmem:[#allocation5 + $0x28] sm:$0xff]  }
  0x8d   : > { %663 = vst [vmem:[#allocation3 + $0x98] sm:$0xf] %v14185_v0  ;;  %664 = vst [vmem:[#allocation3 + $0x9c] sm:$0x1] %v14185_v0  ;;  %v13655_v10 = vld [vmem:[#allocation5 + $0x30] sm:$0xff]   ;;  %v13656_v11 = vld [vmem:[#allocation5 + $0x38] sm:$0xff]  }
  0x8e   : > { %665 = vst [vmem:[#allocation3 + $0xa0] sm:$0xf] %v14185_v0  ;;  %666 = vst [vmem:[#allocation3 + $0xa4] sm:$0x1] %v14185_v0  ;;  %12195 = vmatprep.mubr.bf16.mxu0 %v345_v7  ;;  %v315_v12 = vld [vmem:[#allocation2 + $0x10] sm:$0xff]  ;;  %v316_v13 = vld [vmem:[#allocation2 + $0x18] sm:$0xff] }
  0x8f   : > { %683 = vst [vmem:[#allocation3 + $0xe8] sm:$0xf] %v14185_v0  ;;  %684 = vst [vmem:[#allocation3 + $0xec] sm:$0x1] %v14185_v0  ;;  %12182 = vmatpush3.bf16.msra.mxu0 %v13650_v2  ;;  %v317_v14 = vld [vmem:[#allocation2 + $0x20] sm:$0xff]  ;;  %v318_v15 = vld [vmem:[#allocation2 + $0x28] sm:$0xff]  ;;  %v346_v16 = vpack.c.bf16 %v316_v13, %v315_v12 }
  0x90   : > { %685 = vst [vmem:[#allocation3 + $0xf0] sm:$0xf] %v14185_v0  ;;  %686 = vst [vmem:[#allocation3 + $0xf4] sm:$0x1] %v14185_v0  ;;  %12183 = vmatprep.subr.bf16.mxu0 %v13651_v3  ;;  %v347_v17 = vpack.c.bf16 %v318_v15, %v317_v14  ;;  %v319_v18 = vld [vmem:[#allocation2 + $0x30] sm:$0xff]  ;;  %v320_v19 = vld [vmem:[#allocation2 + $0x38] sm:$0xff] }
  0x91   : > { %703 = vst [vmem:[#allocation3 + $0x138] sm:$0xf] %v14185_v0  ;;  %704 = vst [vmem:[#allocation3 + $0x13c] sm:$0x1] %v14185_v0  ;;  %v321_v20 = vld [vmem:[#allocation2 + $0x40] sm:$0xff]  ;;  %v322_v21 = vld [vmem:[#allocation2 + $0x48] sm:$0xff]  ;;  %v348_v22 = vpack.c.bf16 %v320_v19, %v319_v18 }
  0x92   : > { %627 = vst [vmem:[#allocation3 + $0x8] sm:$0xf] %v14185_v0  ;;  %628 = vst [vmem:[#allocation3 + $0xc] sm:$0x1] %v14185_v0  ;;  %v349_v23 = vpack.c.bf16 %v322_v21, %v321_v20  ;;  %v323_v24 = vld [vmem:[#allocation2 + $0x50] sm:$0xff]  ;;  %v324_v25 = vld [vmem:[#allocation2 + $0x58] sm:$0xff] }
  0x93   : > { %629 = vst [vmem:[#allocation3 + $0x10] sm:$0xf] %v14185_v0  ;;  %630 = vst [vmem:[#allocation3 + $0x14] sm:$0x1] %v14185_v0  ;;  %12184 = vmatpush3.bf16.msra.mxu0 %v13651_v3  ;;  %v325_v26 = vld [vmem:[#allocation2 + $0x60] sm:$0xff]  ;;  %v326_v27 = vld [vmem:[#allocation2 + $0x68] sm:$0xff]  ;;  %v350_v28 = vpack.c.bf16 %v324_v25, %v323_v24 }
  0x94   : > { %631 = vst [vmem:[#allocation3 + $0x18] sm:$0xf] %v14185_v0  ;;  %632 = vst [vmem:[#allocation3 + $0x1c] sm:$0x1] %v14185_v0  ;;  %12185 = vmatprep.subr.bf16.mxu0 %v13652_v4  ;;  %v351_v29 = vpack.c.bf16 %v326_v27, %v325_v26  ;;  %v327_v30 = vld [vmem:[#allocation2 + $0x70] sm:$0xff]  ;;  %v328_v31 = vld [vmem:[#allocation2 + $0x78] sm:$0xff] }
  0x95   : > { %633 = vst [vmem:[#allocation3 + $0x20] sm:$0xf] %v14185_v0  ;;  %634 = vst [vmem:[#allocation3 + $0x24] sm:$0x1] %v14185_v0  ;;  %v329_v32 = vld [vmem:[#allocation2 + $0x80] sm:$0xff]  ;;  %v330_v33 = vld [vmem:[#allocation2 + $0x88] sm:$0xff]  ;;  %v352_v34 = vpack.c.bf16 %v328_v31, %v327_v30 }
  0x96   : > { %635 = vst [vmem:[#allocation3 + $0x28] sm:$0xf] %v14185_v0  ;;  %636 = vst [vmem:[#allocation3 + $0x2c] sm:$0x1] %v14185_v0  ;;  %v353_v35 = vpack.c.bf16 %v330_v33, %v329_v32  ;;  %v331_v36 = vld [vmem:[#allocation2 + $0x90] sm:$0xff]  ;;  %v332_v37 = vld [vmem:[#allocation2 + $0x98] sm:$0xff] }
  0x97   : > { %637 = vst [vmem:[#allocation3 + $0x30] sm:$0xf] %v14185_v0  ;;  %638 = vst [vmem:[#allocation3 + $0x34] sm:$0x1] %v14185_v0  ;;  %12186 = vmatpush3.bf16.msra.mxu0 %v13652_v4  ;;  %v333_v38 = vld [vmem:[#allocation2 + $0xa0] sm:$0xff]  ;;  %v334_v39 = vld [vmem:[#allocation2 + $0xa8] sm:$0xff]  ;;  %v354_v40 = vpack.c.bf16 %v332_v37, %v331_v36 }
  0x98   : > { %639 = vst [vmem:[#allocation3 + $0x38] sm:$0xf] %v14185_v0  ;;  %640 = vst [vmem:[#allocation3 + $0x3c] sm:$0x1] %v14185_v0  ;;  %12187 = vmatprep.subr.bf16.mxu0 %v13653_v8  ;;  %v355_v41 = vpack.c.bf16 %v334_v39, %v333_v38  ;;  %v335_v42 = vld [vmem:[#allocation2 + $0xb0] sm:$0xff]  ;;  %v336_v43 = vld [vmem:[#allocation2 + $0xb8] sm:$0xff] }
  0x99   : > { %641 = vst [vmem:[#allocation3 + $0x40] sm:$0xf] %v14185_v0  ;;  %642 = vst [vmem:[#allocation3 + $0x44] sm:$0x1] %v14185_v0  ;;  %v337_v44 = vld [vmem:[#allocation2 + $0xc0] sm:$0xff]  ;;  %v338_v45 = vld [vmem:[#allocation2 + $0xc8] sm:$0xff]  ;;  %v356_v46 = vpack.c.bf16 %v336_v43, %v335_v42 }
  0x9a   : > { %647 = vst [vmem:[#allocation3 + $0x58] sm:$0xf] %v14185_v0  ;;  %648 = vst [vmem:[#allocation3 + $0x5c] sm:$0x1] %v14185_v0  ;;  %v357_v47 = vpack.c.bf16 %v338_v45, %v337_v44  ;;  %v339_v48 = vld [vmem:[#allocation2 + $0xd0] sm:$0xff]  ;;  %v340_v49 = vld [vmem:[#allocation2 + $0xd8] sm:$0xff] }
  0x9b   : > { %649 = vst [vmem:[#allocation3 + $0x60] sm:$0xf] %v14185_v0  ;;  %650 = vst [vmem:[#allocation3 + $0x64] sm:$0x1] %v14185_v0  ;;  %12188 = vmatpush3.bf16.msra.mxu0 %v13653_v8  ;;  %v341_v50 = vld [vmem:[#allocation2 + $0xe0] sm:$0xff]  ;;  %v342_v51 = vld [vmem:[#allocation2 + $0xe8] sm:$0xff]  ;;  %v358_v52 = vpack.c.bf16 %v340_v49, %v339_v48 }
  0x9c   : > { %651 = vst [vmem:[#allocation3 + $0x68] sm:$0xf] %v14185_v0  ;;  %652 = vst [vmem:[#allocation3 + $0x6c] sm:$0x1] %v14185_v0  ;;  %12189 = vmatprep.subr.bf16.mxu0 %v13654_v9  ;;  %v359_v53 = vpack.c.bf16 %v342_v51, %v341_v50  ;;  %v343_v54 = vld [vmem:[#allocation2 + $0xf0] sm:$0xff]  ;;  %v344_v55 = vld [vmem:[#allocation2 + $0xf8] sm:$0xff] }
  0x9d   : > { %653 = vst [vmem:[#allocation3 + $0x70] sm:$0xf] %v14185_v0  ;;  %654 = vst [vmem:[#allocation3 + $0x74] sm:$0x1] %v14185_v0  ;;  %v360_v56 = vpack.c.bf16 %v344_v55, %v343_v54  ;;  %v14503_v57 = vld [vmem:[%s16137_s4] ss:$0 sm:$0xff] }
  0x9e   : > { %655 = vst [vmem:[#allocation3 + $0x78] sm:$0xf] %v14185_v0  ;;  %656 = vst [vmem:[#allocation3 + $0x7c] sm:$0x1] %v14185_v0  ;;  %vm1155_vm1 = vsmask.f32 7938 }
  0x9f   : > { %657 = vst [vmem:[#allocation3 + $0x80] sm:$0xf] %v14185_v0  ;;  %658 = vst [vmem:[#allocation3 + $0x84] sm:$0x1] %v14185_v0  ;;  %12190 = vmatpush3.bf16.msra.mxu0 %v13654_v9  ;;  %vm1160_vm2 = vcmask 1040384   ;;  %p11077_p3 = scmp.ne.s32.totalorder %s14161_s27, 0 }
  0xa0   : > { %659 = vst [vmem:[#allocation3 + $0x88] sm:$0xf] %v14185_v0  ;;  %660 = vst [vmem:[#allocation3 + $0x8c] sm:$0x1] %v14185_v0  ;;  %12191 = vmatprep.subr.bf16.mxu0 %v13655_v10  ;;  %vm1161_vm3 = vsmask.f32 256 }
  0xa1   : > { %661 = vst [vmem:[#allocation3 + $0x90] sm:$0xf] %v14185_v0  ;;  %662 = vst [vmem:[#allocation3 + $0x94] sm:$0x1] %v14185_v0  ;;  %v1175_v12 = vld [vmem:[#allocation3 + $0x1c] sm:$0x1] }
  0xa2   : > { %667 = vst [vmem:[#allocation3 + $0xa8] sm:$0xf] %v14185_v0  ;;  %668 = vst [vmem:[#allocation3 + $0xac] sm:$0x1] %v14185_v0  ;;  %v1157_v19 = vld [vmem:[#allocation3 + $0x8] sm:$0xf] }
  0xa3   : > { %669 = vst [vmem:[#allocation3 + $0xb0] sm:$0xf] %v14185_v0  ;;  %670 = vst [vmem:[#allocation3 + $0xb4] sm:$0x1] %v14185_v0  ;;  %12192 = vmatpush3.bf16.msra.mxu0 %v13655_v10  ;;  %v1163_v26 = vld [vmem:[#allocation3 + $0xc] sm:$0x1] }
  0xa4   : > { %671 = vst [vmem:[#allocation3 + $0xb8] sm:$0xf] %v14185_v0  ;;  %672 = vst [vmem:[#allocation3 + $0xbc] sm:$0x1] %v14185_v0  ;;  %12193 = vmatprep.subr.bf16.mxu0 %v13656_v11  ;;  %v1181_v39 = vld [vmem:[#allocation3 + $0x24] sm:$0x1] }
  0xa5   : > { %673 = vst [vmem:[#allocation3 + $0xc0] sm:$0xf] %v14185_v0  ;;  %674 = vst [vmem:[#allocation3 + $0xc4] sm:$0x1] %v14185_v0 }
  0xa6   : > { %675 = vst [vmem:[#allocation3 + $0xc8] sm:$0xf] %v14185_v0  ;;  %676 = vst [vmem:[#allocation3 + $0xcc] sm:$0x1] %v14185_v0 }
  0xa7   : > { %677 = vst [vmem:[#allocation3 + $0xd0] sm:$0xf] %v14185_v0  ;;  %678 = vst [vmem:[#allocation3 + $0xd4] sm:$0x1] %v14185_v0  ;;  %12194 = vmatpush3.bf16.msra.mxu0 %v13656_v11  ;;  %v1172_v11 = vld [vmem:[#allocation3 + $0x18] sm:$0xf] }
  0xa8   : > { %679 = vst [vmem:[#allocation3 + $0xd8] sm:$0xf] %v14185_v0  ;;  %680 = vst [vmem:[#allocation3 + $0xdc] sm:$0x1] %v14185_v0 }
  0xa9   : > { %681 = vst [vmem:[#allocation3 + $0xe0] sm:$0xf] %v14185_v0  ;;  %682 = vst [vmem:[#allocation3 + $0xe4] sm:$0x1] %v14185_v0 }
  0xaa   : > { %687 = vst [vmem:[#allocation3 + $0xf8] sm:$0xf] %v14185_v0  ;;  %688 = vst [vmem:[#allocation3 + $0xfc] sm:$0x1] %v14185_v0  ;;  %12196 = vmatmul.mubr.bf16.vlgmr.msra.gmra.mrb[0].mxu0 %v346_v16 }
  0xab   : > { %689 = vst [vmem:[#allocation3 + $0x100] sm:$0xf] %v14185_v0  ;;  %690 = vst [vmem:[#allocation3 + $0x104] sm:$0x1] %v14185_v0  ;;  %12199 = vmatprep.mubr.bf16.mxu0 %v347_v17 }
  0xac   : > { %691 = vst [vmem:[#allocation3 + $0x108] sm:$0xf] %v14185_v0  ;;  %692 = vst [vmem:[#allocation3 + $0x10c] sm:$0x1] %v14185_v0 }
  0xad   : > { %693 = vst [vmem:[#allocation3 + $0x110] sm:$0xf] %v14185_v0  ;;  %694 = vst [vmem:[#allocation3 + $0x114] sm:$0x1] %v14185_v0 }
  0xae   : > { %695 = vst [vmem:[#allocation3 + $0x118] sm:$0xf] %v14185_v0  ;;  %696 = vst [vmem:[#allocation3 + $0x11c] sm:$0x1] %v14185_v0 }
  0xaf   : > { %697 = vst [vmem:[#allocation3 + $0x120] sm:$0xf] %v14185_v0  ;;  %698 = vst [vmem:[#allocation3 + $0x124] sm:$0x1] %v14185_v0 }
  0xb0   : > { %699 = vst [vmem:[#allocation3 + $0x128] sm:$0xf] %v14185_v0  ;;  %700 = vst [vmem:[#allocation3 + $0x12c] sm:$0x1] %v14185_v0 }
  0xb1   : > { %701 = vst [vmem:[#allocation3 + $0x130] sm:$0xf] %v14185_v0  ;;  %702 = vst [vmem:[#allocation3 + $0x134] sm:$0x1] %v14185_v0 }
  0xb2   : > { %12200 = vmatmul.mubr.bf16.gmra.mrb[4].mxu0 %v348_v22  ;;  %vm14511_vm4 = vmand %vm1154_vm0, %vm1155_vm1 }
  0xb3   : > { %12203 = vmatprep.mubr.bf16.mxu0 %v349_v23  ;;  %vm14518_vm5 = vmand %vm1160_vm2, %vm1161_vm3 }
  0xba   : > { %12204 = vmatmul.mubr.bf16.gmra.mrb[8].mxu0 %v350_v28 }
  0xbb   : > { %12207 = vmatprep.mubr.bf16.mxu0 %v351_v29 }
  0xc2   : > { %12208 = vmatmul.mubr.bf16.gmra.mrb[12].mxu0 %v352_v34  ;;  %v1178_v34 = vld [vmem:[#allocation3 + $0x20] sm:$0xf] }
  0xc3   : > { %12211 = vmatprep.mubr.bf16.mxu0 %v353_v35 }
  0xca   : > { %12212 = vmatmul.mubr.bf16.gmra.mrb[16].mxu0 %v354_v40 }
  0xcb   : > { %12215 = vmatprep.mubr.bf16.mxu0 %v355_v41 }
  0xd2   : > { %12216 = vmatmul.mubr.bf16.gmra.mrb[20].mxu0 %v356_v46  ;;  %v1166_v46 = vld [vmem:[#allocation3 + $0x10] sm:$0xf] }
  0xd3   : > { %12219 = vmatprep.mubr.bf16.mxu0 %v357_v47  ;;  %v1169_v47 = vld [vmem:[#allocation3 + $0x14] sm:$0x1] }
  0xda   : > { %12220 = vmatmul.mubr.bf16.gmra.mrb[24].mxu0 %v358_v52 }
  0xdb   : > { %12223 = vmatprep.mubr.bf16.mxu0 %v359_v53 }
  0xe2   : > { %12224 = vmatmul.mubr.bf16.gmra.mrb[28].mxu0 %v360_v56 }
 0x17d   : > { %v12197_v58 = vpop.f32.mrb[0].mxu0 }
 0x17e   : > { %v475_v59 = vadd.f32 %v12197_v58, %v14503_v57  ;;  %v466_v60 = vpop.f32.mrb[1].mxu0 }
 0x17f   : > { %v467_v61 = vadd.f32 %v14503_v57, %v466_v60  ;;  %v12198_v62 = vpop.f32.mrb[2].mxu0 }
 0x180   : > { %v595_v63 = vmax.f32 %v475_v59, 0.0  ;;  %v478_v0 = vadd.f32 %v12198_v62, %v14503_v57  ;;  %v469_v1 = vpop.f32.mrb[3].mxu0 }
 0x181   : > { %v593_v2 = vmax.f32 %v467_v61, 0.0  ;;  %v470_v3 = vadd.f32 %v14503_v57, %v469_v1 }
 0x182   : > { %v11676_v4 = vpack.c.bf16 %v595_v63, %v595_v63  ;;  %v596_v5 = vmax.f32 %v478_v0, 0.0 }
 0x183   : > { %v11674_v6 = vpack.c.bf16 %v593_v2, %v593_v2  ;;  %v594_v7 = vmax.f32 %v470_v3, 0.0  ;;  %v1196_v2 = vld [vmem:[#allocation3 + $0x38] sm:$0xf] }
 0x184   : > { %v850_v8 = vshrl.u32 %v11676_v4, 16  ;;  %v11677_v9 = vpack.c.bf16 %v596_v5, %v596_v5  ;;  %v853_v10 = vshll.u32 %v11676_v4, 16 }
 0x185   : > { %v834_v13 = vshrl.u32 %v11674_v6, 16  ;;  %v837_v14 = vshll.u32 %v11674_v6, 16  ;;  %v11675_v15 = vpack.c.bf16 %v594_v7, %v594_v7  ;;  %v12201_v16 = vpop.f32.mrb[4].mxu0 }
 0x186   : > { %v852_v17 = vrot.slane %v850_v8, 7  ;;  %v858_v20 = vshrl.u32 %v11677_v9, 16  ;;  %v861_v21 = vshll.u32 %v11677_v9, 16  ;;  %v491_v22 = vadd.f32 %v12201_v16, %v14503_v57  ;;  %v482_v23 = vpop.f32.mrb[5].mxu0  ;;  %v1199_v9 = vld [vmem:[#allocation3 + $0x3c] sm:$0x1] }
 0x187   : > { %v836_v25 = vrot.slane %v834_v13, 7  ;;  %v842_v27 = vshrl.u32 %v11675_v15, 16  ;;  %v845_v28 = vshll.u32 %v11675_v15, 16  ;;  %v483_v29 = vadd.f32 %v14503_v57, %v482_v23  ;;  %v12202_v30 = vpop.f32.mrb[6].mxu0  ;;  %v1187_v15 = vld [vmem:[#allocation3 + $0x2c] sm:$0x1] }
 0x188   : > { %v855_v31 = vor.u32 %v853_v10, %v852_v17  ;;  %v856_v32 = vrot.slane %v852_v17, 4  ;;  %v860_v33 = vrot.slane %v858_v20, 7  ;;  %v599_v35 = vmax.f32 %v491_v22, 0.0  ;;  %v485_v36 = vpop.f32.mrb[7].mxu0 }
 0x189   : > { %v839_v37 = vor.u32 %v837_v14, %v836_v25  ;;  %v840_v38 = vrot.slane %v836_v25, 4  ;;  %v844_v40 = vrot.slane %v842_v27, 7  ;;  %v597_v41 = vmax.f32 %v483_v29, 0.0  ;;  %v1184_v14 = vld [vmem:[#allocation3 + $0x28] sm:$0xf] }
 0x18a   : > { %v1173_v42 = vsel %vm14511_vm4, %v855_v31, %v1172_v11  ;;  %v1176_v43 = vsel %vm14518_vm5, %v856_v32, %v1175_v12  ;;  %v863_v44 = vor.u32 %v861_v21, %v860_v33  ;;  %v864_v45 = vrot.slane %v860_v33, 4 }
 0x18b   : > { %1174 = vst [vmem:[#allocation3 + $0x18] sm:$0xf] %v1173_v42  ;;  %1177 = vst [vmem:[#allocation3 + $0x1c] sm:$0x1] %v1176_v43  ;;  %v1158_v48 = vsel %vm14511_vm4, %v839_v37, %v1157_v19  ;;  %v1164_v49 = vsel %vm14518_vm5, %v840_v38, %v1163_v26  ;;  %v847_v50 = vor.u32 %v845_v28, %v844_v40  ;;  %v848_v51 = vrot.slane %v844_v40, 4 }
 0x18c   : > { %1159 = vst [vmem:[#allocation3 + $0x8] sm:$0xf] %v1158_v48  ;;  %1165 = vst [vmem:[#allocation3 + $0xc] sm:$0x1] %v1164_v49  ;;  %v1179_v52 = vsel %vm14511_vm4, %v863_v44, %v1178_v34  ;;  %v1182_v53 = vsel %vm14518_vm5, %v864_v45, %v1181_v39  ;;  %v11680_v54 = vpack.c.bf16 %v599_v35, %v599_v35  ;;  %v1202_v34 = vld [vmem:[#allocation3 + $0x40] sm:$0xf] }
 0x18d   : > { %v11678_v55 = vpack.c.bf16 %v597_v41, %v597_v41  ;;  %1180 = vst [vmem:[#allocation3 + $0x20] sm:$0xf] %v1179_v52  ;;  %1183 = vst [vmem:[#allocation3 + $0x24] sm:$0x1] %v1182_v53  ;;  %v1167_v56 = vsel %vm14511_vm4, %v847_v50, %v1166_v46  ;;  %v1170_v58 = vsel %vm14518_vm5, %v848_v51, %v1169_v47  ;;  %v12205_v61 = vpop.f32.mrb[8].mxu0 }
 0x18e   : > { %v494_v59 = vadd.f32 %v12202_v30, %v14503_v57  ;;  %v486_v60 = vadd.f32 %v14503_v57, %v485_v36  ;;  %1168 = vst [vmem:[#allocation3 + $0x10] sm:$0xf] %v1167_v56  ;;  %1171 = vst [vmem:[#allocation3 + $0x14] sm:$0x1] %v1170_v58  ;;  %v882_v62 = vshrl.u32 %v11680_v54, 16  ;;  %v885_v63 = vshll.u32 %v11680_v54, 16 }
 0x18f   : > { %v866_v0 = vshrl.u32 %v11678_v55, 16  ;;  %v498_v1 = vpop.f32.mrb[9].mxu0  ;;  %v507_v5 = vadd.f32 %v12205_v61, %v14503_v57  ;;  %v869_v11 = vshll.u32 %v11678_v55, 16  ;;  %v1205_v36 = vld [vmem:[#allocation3 + $0x44] sm:$0x1] }
 0x190   : > { %v600_v3 = vmax.f32 %v494_v59, 0.0  ;;  %v598_v4 = vmax.f32 %v486_v60, 0.0  ;;  %v499_v6 = vadd.f32 %v14503_v57, %v498_v1  ;;  %v12206_v7 = vpop.f32.mrb[10].mxu0  ;;  %v884_v8 = vrot.slane %v882_v62, 7  ;;  %v1190_v41 = vld [vmem:[#allocation3 + $0x30] sm:$0xf] }
 0x191   : > { %v868_v10 = vrot.slane %v866_v0, 7  ;;  %v510_v12 = vadd.f32 %v12206_v7, %v14503_v57  ;;  %v501_v13 = vpop.f32.mrb[11].mxu0  ;;  %v603_v19 = vmax.f32 %v507_v5, 0.0  ;;  %v1193_v42 = vld [vmem:[#allocation3 + $0x34] sm:$0x1] }
 0x192   : > { %v11681_v16 = vpack.c.bf16 %v600_v3, %v600_v3  ;;  %v11679_v17 = vpack.c.bf16 %v598_v4, %v598_v4  ;;  %v601_v20 = vmax.f32 %v499_v6, 0.0  ;;  %v887_v21 = vor.u32 %v885_v63, %v884_v8  ;;  %v1220_v62 = vld [vmem:[#allocation3 + $0x68] sm:$0xf]  ;;  %v1223_v0 = vld [vmem:[#allocation3 + $0x6c] sm:$0x1] }
 0x193   : > { %v888_v22 = vrot.slane %v884_v8, 4  ;;  %v871_v23 = vor.u32 %v869_v11, %v868_v10  ;;  %v872_v25 = vrot.slane %v868_v10, 4  ;;  %v11684_v38 = vpack.c.bf16 %v603_v19, %v603_v19  ;;  %v1208_v4 = vld [vmem:[#allocation3 + $0x58] sm:$0xf]  ;;  %v1211_v5 = vld [vmem:[#allocation3 + $0x5c] sm:$0x1] }
 0x194   : > { %v890_v26 = vshrl.u32 %v11681_v16, 16  ;;  %v893_v27 = vshll.u32 %v11681_v16, 16  ;;  %v874_v28 = vshrl.u32 %v11679_v17, 16  ;;  %v877_v29 = vshll.u32 %v11679_v17, 16 }
 0x195   : > { %v1197_v30 = vsel %vm14511_vm4, %v887_v21, %v1196_v2  ;;  %v1200_v31 = vsel %vm14518_vm5, %v888_v22, %v1199_v9  ;;  %v1185_v32 = vsel %vm14511_vm4, %v871_v23, %v1184_v14  ;;  %v1188_v33 = vsel %vm14518_vm5, %v872_v25, %v1187_v15  ;;  %v12209_v40 = vpop.f32.mrb[12].mxu0  ;;  %v1226_v25 = vld [vmem:[#allocation3 + $0x70] sm:$0xf] }
 0x196   : > { %1198 = vst [vmem:[#allocation3 + $0x38] sm:$0xf] %v1197_v30  ;;  %1201 = vst [vmem:[#allocation3 + $0x3c] sm:$0x1] %v1200_v31  ;;  %v892_v35 = vrot.slane %v890_v26, 7  ;;  %v876_v37 = vrot.slane %v874_v28, 7  ;;  %v11682_v39 = vpack.c.bf16 %v601_v20, %v601_v20  ;;  %v502_v44 = vadd.f32 %v14503_v57, %v501_v13 }
 0x197   : > { %1186 = vst [vmem:[#allocation3 + $0x28] sm:$0xf] %v1185_v32  ;;  %1189 = vst [vmem:[#allocation3 + $0x2c] sm:$0x1] %v1188_v33  ;;  %v604_v43 = vmax.f32 %v510_v12, 0.0  ;;  %v523_v45 = vadd.f32 %v12209_v40, %v14503_v57  ;;  %v514_v46 = vpop.f32.mrb[13].mxu0 }
 0x198   : > { %v895_v47 = vor.u32 %v893_v27, %v892_v35  ;;  %v896_v48 = vrot.slane %v892_v35, 4  ;;  %v879_v49 = vor.u32 %v877_v29, %v876_v37  ;;  %v880_v50 = vrot.slane %v876_v37, 4  ;;  %v12210_v51 = vpop.f32.mrb[14].mxu0  ;;  %v1229_v26 = vld [vmem:[#allocation3 + $0x74] sm:$0x1] }
 0x199   : > { %v914_v52 = vshrl.u32 %v11684_v38, 16  ;;  %v917_v53 = vshll.u32 %v11684_v38, 16  ;;  %v898_v54 = vshrl.u32 %v11682_v39, 16  ;;  %v901_v55 = vshll.u32 %v11682_v39, 16  ;;  %v517_v56 = vpop.f32.mrb[15].mxu0 }
 0x19a   : > { %v1203_v58 = vsel %vm14511_vm4, %v895_v47, %v1202_v34  ;;  %v1206_v59 = vsel %vm14518_vm5, %v896_v48, %v1205_v36  ;;  %v1191_v60 = vsel %vm14511_vm4, %v879_v49, %v1190_v41  ;;  %v1194_v61 = vsel %vm14518_vm5, %v880_v50, %v1193_v42  ;;  %v1214_v42 = vld [vmem:[#allocation3 + $0x60] sm:$0xf] }
 0x19b   : > { %1204 = vst [vmem:[#allocation3 + $0x40] sm:$0xf] %v1203_v58  ;;  %1207 = vst [vmem:[#allocation3 + $0x44] sm:$0x1] %v1206_v59  ;;  %v916_v63 = vrot.slane %v914_v52, 7  ;;  %v900_v1 = vrot.slane %v898_v54, 7  ;;  %v11685_v2 = vpack.c.bf16 %v604_v43, %v604_v43  ;;  %v515_v7 = vadd.f32 %v14503_v57, %v514_v46 }
 0x19c   : > { %1192 = vst [vmem:[#allocation3 + $0x30] sm:$0xf] %v1191_v60  ;;  %1195 = vst [vmem:[#allocation3 + $0x34] sm:$0x1] %v1194_v61  ;;  %v602_v3 = vmax.f32 %v502_v44, 0.0  ;;  %v607_v6 = vmax.f32 %v523_v45, 0.0  ;;  %v526_v8 = vadd.f32 %v12210_v51, %v14503_v57  ;;  %v518_v9 = vadd.f32 %v14503_v57, %v517_v56 }
 0x19d   : > { %v919_v10 = vor.u32 %v917_v53, %v916_v63  ;;  %v920_v11 = vrot.slane %v916_v63, 4  ;;  %v903_v12 = vor.u32 %v901_v55, %v900_v1  ;;  %v904_v13 = vrot.slane %v900_v1, 4  ;;  %v12213_v19 = vpop.f32.mrb[16].mxu0  ;;  %v1217_v43 = vld [vmem:[#allocation3 + $0x64] sm:$0x1] }
 0x19e   : > { %v922_v14 = vshrl.u32 %v11685_v2, 16  ;;  %v925_v15 = vshll.u32 %v11685_v2, 16  ;;  %v11683_v16 = vpack.c.bf16 %v602_v3, %v602_v3  ;;  %v11688_v17 = vpack.c.bf16 %v607_v6, %v607_v6  ;;  %v530_v27 = vpop.f32.mrb[17].mxu0  ;;  %v1244_v52 = vld [vmem:[#allocation3 + $0x88] sm:$0xf] }
 0x19f   : > { %v1221_v20 = vsel %vm14511_vm4, %v919_v10, %v1220_v62  ;;  %v1224_v21 = vsel %vm14518_vm5, %v920_v11, %v1223_v0  ;;  %v1209_v22 = vsel %vm14511_vm4, %v903_v12, %v1208_v4  ;;  %v1212_v23 = vsel %vm14518_vm5, %v904_v13, %v1211_v5  ;;  %v12214_v32 = vpop.f32.mrb[18].mxu0  ;;  %v1247_v53 = vld [vmem:[#allocation3 + $0x8c] sm:$0x1]  ;;  %v1232_v61 = vld [vmem:[#allocation3 + $0x78] sm:$0xf] }
 0x1a0   : > { %1222 = vst [vmem:[#allocation3 + $0x68] sm:$0xf] %v1221_v20  ;;  %1225 = vst [vmem:[#allocation3 + $0x6c] sm:$0x1] %v1224_v21  ;;  %v924_v28 = vrot.slane %v922_v14, 7  ;;  %v906_v29 = vshrl.u32 %v11683_v16, 16  ;;  %v539_v47 = vadd.f32 %v12213_v19, %v14503_v57  ;;  %v531_v11 = vadd.f32 %v14503_v57, %v530_v27 }
 0x1a1   : > { %1210 = vst [vmem:[#allocation3 + $0x58] sm:$0xf] %v1209_v22  ;;  %1213 = vst [vmem:[#allocation3 + $0x5c] sm:$0x1] %v1212_v23  ;;  %v909_v30 = vshll.u32 %v11683_v16, 16  ;;  %v946_v31 = vshrl.u32 %v11688_v17, 16 }
 0x1a2   : > { %v949_v33 = vshll.u32 %v11688_v17, 16  ;;  %v605_v34 = vmax.f32 %v515_v7, 0.0  ;;  %v608_v35 = vmax.f32 %v526_v8, 0.0  ;;  %v606_v36 = vmax.f32 %v518_v9, 0.0  ;;  %v14573_v37 = vpop.f32.mrb[19].mxu0 }
 0x1a3   : > { %v927_v38 = vor.u32 %v925_v15, %v924_v28  ;;  %v928_v39 = vrot.slane %v924_v28, 4  ;;  %v908_v40 = vrot.slane %v906_v29, 7  ;;  %v948_v41 = vrot.slane %v946_v31, 7  ;;  %v1235_v4 = vld [vmem:[#allocation3 + $0x7c] sm:$0x1] }
 0x1a4   : > { %v11686_v44 = vpack.c.bf16 %v605_v34, %v605_v34  ;;  %v11689_v45 = vpack.c.bf16 %v608_v35, %v608_v35  ;;  %v11687_v46 = vpack.c.bf16 %v606_v36, %v606_v36  ;;  %v1250_v8 = vld [vmem:[#allocation3 + $0x90] sm:$0xf]  ;;  %v611_v10 = vmax.f32 %v539_v47, 0.0  ;;  %v1253_v15 = vld [vmem:[#allocation3 + $0x94] sm:$0x1] }
 0x1a5   : > { %v1227_v48 = vsel %vm14511_vm4, %v927_v38, %v1226_v25  ;;  %v1230_v49 = vsel %vm14518_vm5, %v928_v39, %v1229_v26  ;;  %v911_v50 = vor.u32 %v909_v30, %v908_v40  ;;  %v912_v51 = vrot.slane %v908_v40, 4  ;;  %v12217_v0 = vpop.f32.mrb[20].mxu0  ;;  %v1238_v22 = vld [vmem:[#allocation3 + $0x80] sm:$0xf]  ;;  %v1241_v23 = vld [vmem:[#allocation3 + $0x84] sm:$0x1] }
 0x1a6   : > { %1228 = vst [vmem:[#allocation3 + $0x70] sm:$0xf] %v1227_v48  ;;  %1231 = vst [vmem:[#allocation3 + $0x74] sm:$0x1] %v1230_v49  ;;  %v951_v54 = vor.u32 %v949_v33, %v948_v41  ;;  %v952_v55 = vrot.slane %v948_v41, 4  ;;  %v930_v56 = vshrl.u32 %v11686_v44, 16  ;;  %v542_v17 = vadd.f32 %v12214_v32, %v14503_v57 }
 0x1a7   : > { %v933_v58 = vshll.u32 %v11686_v44, 16  ;;  %v1215_v59 = vsel %vm14511_vm4, %v911_v50, %v1214_v42  ;;  %v1218_v60 = vsel %vm14518_vm5, %v912_v51, %v1217_v43  ;;  %v954_v62 = vshrl.u32 %v11689_v45, 16  ;;  %v546_v6 = vpop.f32.mrb[21].mxu0  ;;  %v1268_v41 = vld [vmem:[#allocation3 + $0xb8] sm:$0xf] }
 0x1a8   : > { %v957_v63 = vshll.u32 %v11689_v45, 16  ;;  %1216 = vst [vmem:[#allocation3 + $0x60] sm:$0xf] %v1215_v59  ;;  %1219 = vst [vmem:[#allocation3 + $0x64] sm:$0x1] %v1218_v60  ;;  %v1245_v1 = vsel %vm14511_vm4, %v951_v54, %v1244_v52  ;;  %v1248_v2 = vsel %vm14518_vm5, %v952_v55, %v1247_v53  ;;  %v932_v3 = vrot.slane %v930_v56, 7 }
 0x1a9   : > { %v938_v5 = vshrl.u32 %v11687_v46, 16  ;;  %1246 = vst [vmem:[#allocation3 + $0x88] sm:$0xf] %v1245_v1  ;;  %1249 = vst [vmem:[#allocation3 + $0x8c] sm:$0x1] %v1248_v2  ;;  %v956_v7 = vrot.slane %v954_v62, 7  ;;  %v11692_v25 = vpack.c.bf16 %v611_v10, %v611_v10  ;;  %v534_v42 = vadd.f32 %v14503_v57, %v14573_v37 }
 0x1aa   : > { %v941_v9 = vshll.u32 %v11687_v46, 16  ;;  %v12218_v12 = vpop.f32.mrb[22].mxu0  ;;  %v935_v13 = vor.u32 %v933_v58, %v932_v3  ;;  %v936_v14 = vrot.slane %v932_v3, 4  ;;  %v609_v26 = vmax.f32 %v531_v11, 0.0  ;;  %v1271_v46 = vld [vmem:[#allocation3 + $0xbc] sm:$0x1] }
 0x1ab   : > { %v940_v16 = vrot.slane %v938_v5, 7  ;;  %v14590_v19 = vpop.f32.mrb[23].mxu0  ;;  %v959_v20 = vor.u32 %v957_v63, %v956_v7  ;;  %v960_v21 = vrot.slane %v956_v7, 4  ;;  %v978_v33 = vshrl.u32 %v11692_v25, 16  ;;  %v1259_v1 = vld [vmem:[#allocation3 + $0xac] sm:$0x1] }
 0x1ac   : > { %v1233_v28 = vsel %vm14511_vm4, %v935_v13, %v1232_v61  ;;  %v1236_v27 = vsel %vm14518_vm5, %v936_v14, %v1235_v4  ;;  %v981_v34 = vshll.u32 %v11692_v25, 16  ;;  %v11690_v38 = vpack.c.bf16 %v609_v26, %v609_v26  ;;  %v1274_v7 = vld [vmem:[#allocation3 + $0xc0] sm:$0xf] }
 0x1ad   : > { %v943_v29 = vor.u32 %v941_v9, %v940_v16  ;;  %v944_v30 = vrot.slane %v940_v16, 4  ;;  %1234 = vst [vmem:[#allocation3 + $0x78] sm:$0xf] %v1233_v28  ;;  %1237 = vst [vmem:[#allocation3 + $0x7c] sm:$0x1] %v1236_v27  ;;  %v1251_v31 = vsel %vm14511_vm4, %v959_v20, %v1250_v8  ;;  %v1254_v32 = vsel %vm14518_vm5, %v960_v21, %v1253_v15  ;;  %v14608_v45 = vpop.f32.mrb[24].mxu0 }
 0x1ae   : > { %1252 = vst [vmem:[#allocation3 + $0x90] sm:$0xf] %v1251_v31  ;;  %1255 = vst [vmem:[#allocation3 + $0x94] sm:$0x1] %v1254_v32  ;;  %v612_v39 = vmax.f32 %v542_v17, 0.0  ;;  %v980_v40 = vrot.slane %v978_v33, 7  ;;  %v555_v43 = vadd.f32 %v12217_v0, %v14503_v57  ;;  %v547_v44 = vadd.f32 %v14503_v57, %v546_v6 }
 0x1af   : > { %v1239_v35 = vsel %vm14511_vm4, %v943_v29, %v1238_v22  ;;  %v1242_v36 = vsel %vm14518_vm5, %v944_v30, %v1241_v23  ;;  %v962_v47 = vshrl.u32 %v11690_v38, 16  ;;  %v965_v48 = vshll.u32 %v11690_v38, 16  ;;  %v14611_v51 = vpop.f32.mrb[25].mxu0  ;;  %v1256_v0 = vld [vmem:[#allocation3 + $0xa8] sm:$0xf] }
 0x1b0   : > { %1240 = vst [vmem:[#allocation3 + $0x80] sm:$0xf] %v1239_v35  ;;  %1243 = vst [vmem:[#allocation3 + $0x84] sm:$0x1] %v1242_v36  ;;  %v11693_v49 = vpack.c.bf16 %v612_v39, %v612_v39  ;;  %v558_v50 = vadd.f32 %v12218_v12, %v14503_v57  ;;  %v983_v52 = vor.u32 %v981_v34, %v980_v40  ;;  %v984_v53 = vrot.slane %v980_v40, 4  ;;  %v14613_v56 = vpop.f32.mrb[26].mxu0 }
 0x1b1   : > { %v610_v54 = vmax.f32 %v534_v42, 0.0  ;;  %v615_v55 = vmax.f32 %v555_v43, 0.0  ;;  %v964_v37 = vrot.slane %v962_v47, 7  ;;  %v613_v60 = vmax.f32 %v547_v44, 0.0  ;;  %v14615_v61 = vpop.f32.mrb[27].mxu0 }
 0x1b2   : > { %v986_v58 = vshrl.u32 %v11693_v49, 16  ;;  %v989_v59 = vshll.u32 %v11693_v49, 16  ;;  %v1269_v62 = vsel %vm14511_vm4, %v983_v52, %v1268_v41  ;;  %v1272_v63 = vsel %vm14518_vm5, %v984_v53, %v1271_v46  ;;  %v1277_v9 = vld [vmem:[#allocation3 + $0xc4] sm:$0x1]  ;;  %v1262_v20 = vld [vmem:[#allocation3 + $0xb0] sm:$0xf] }
 0x1b3   : > { %v11691_v2 = vpack.c.bf16 %v610_v54, %v610_v54  ;;  %v11696_v3 = vpack.c.bf16 %v615_v55, %v615_v55  ;;  %1270 = vst [vmem:[#allocation3 + $0xb8] sm:$0xf] %v1269_v62  ;;  %1273 = vst [vmem:[#allocation3 + $0xbc] sm:$0x1] %v1272_v63  ;;  %v967_v4 = vor.u32 %v965_v48, %v964_v37  ;;  %v968_v5 = vrot.slane %v964_v37, 4 }
 0x1b4   : > { %v988_v6 = vrot.slane %v986_v58, 7  ;;  %v11694_v8 = vpack.c.bf16 %v613_v60, %v613_v60  ;;  %v1265_v21 = vld [vmem:[#allocation3 + $0xb4] sm:$0x1]  ;;  %v1292_v30 = vld [vmem:[#allocation3 + $0xd8] sm:$0xf]  ;;  %v616_v32 = vmax.f32 %v558_v50, 0.0  ;;  %v550_v33 = vadd.f32 %v14503_v57, %v14590_v19 }
 0x1b5   : > { %v970_v10 = vshrl.u32 %v11691_v2, 16  ;;  %v973_v11 = vshll.u32 %v11691_v2, 16  ;;  %v1010_v12 = vshrl.u32 %v11696_v3, 16  ;;  %v1013_v13 = vshll.u32 %v11696_v3, 16  ;;  %v14625_v28 = vpop.f32.mrb[28].mxu0 }
 0x1b6   : > { %v1257_v14 = vsel %vm14511_vm4, %v967_v4, %v1256_v0  ;;  %v1260_v15 = vsel %vm14518_vm5, %v968_v5, %v1259_v1  ;;  %v991_v16 = vor.u32 %v989_v59, %v988_v6  ;;  %v992_v17 = vrot.slane %v988_v6, 4  ;;  %v1295_v31 = vld [vmem:[#allocation3 + $0xdc] sm:$0x1]  ;;  %v14633_v34 = vpop.f32.mrb[29].mxu0  ;;  %v1280_v50 = vld [vmem:[#allocation3 + $0xc8] sm:$0xf] }
 0x1b7   : > { %1258 = vst [vmem:[#allocation3 + $0xa8] sm:$0xf] %v1257_v14  ;;  %1261 = vst [vmem:[#allocation3 + $0xac] sm:$0x1] %v1260_v15  ;;  %v972_v22 = vrot.slane %v970_v10, 7  ;;  %v1012_v23 = vrot.slane %v1010_v12, 7  ;;  %v11697_v42 = vpack.c.bf16 %v616_v32, %v616_v32  ;;  %v571_v44 = vadd.f32 %v14608_v45, %v14503_v57 }
 0x1b8   : > { %v994_v25 = vshrl.u32 %v11694_v8, 16  ;;  %v997_v26 = vshll.u32 %v11694_v8, 16  ;;  %v1275_v27 = vsel %vm14511_vm4, %v991_v16, %v1274_v7  ;;  %v1278_v29 = vsel %vm14518_vm5, %v992_v17, %v1277_v9  ;;  %v14635_v40 = vpop.f32.mrb[30].mxu0  ;;  %v1283_v52 = vld [vmem:[#allocation3 + $0xcc] sm:$0x1] }
 0x1b9   : > { %1276 = vst [vmem:[#allocation3 + $0xc0] sm:$0xf] %v1275_v27  ;;  %1279 = vst [vmem:[#allocation3 + $0xc4] sm:$0x1] %v1278_v29  ;;  %v975_v35 = vor.u32 %v973_v11, %v972_v22  ;;  %v976_v36 = vrot.slane %v972_v22, 4  ;;  %v1015_v38 = vor.u32 %v1013_v13, %v1012_v23  ;;  %v1016_v39 = vrot.slane %v1012_v23, 4 }
 0x1ba   : > { %v996_v41 = vrot.slane %v994_v25, 7  ;;  %v614_v43 = vmax.f32 %v550_v33, 0.0  ;;  %v14639_v46 = vpop.f32.mrb[31].mxu0  ;;  %v1018_v54 = vshrl.u32 %v11697_v42, 16  ;;  %v1021_v55 = vshll.u32 %v11697_v42, 16 }
 0x1bb   : > { %v1263_v19 = vsel %vm14511_vm4, %v975_v35, %v1262_v20  ;;  %v1266_v47 = vsel %vm14518_vm5, %v976_v36, %v1265_v21  ;;  %v1293_v48 = vsel %vm14511_vm4, %v1015_v38, %v1292_v30  ;;  %v1296_v49 = vsel %vm14518_vm5, %v1016_v39, %v1295_v31  ;;  %v1298_v1 = vld [vmem:[#allocation3 + $0xe0] sm:$0xf]  ;;  %v1301_v3 = vld [vmem:[#allocation3 + $0xe4] sm:$0x1]  ;;  %v1286_v15 = vld [vmem:[#allocation3 + $0xd0] sm:$0xf] }
 0x1bc   : > { %1264 = vst [vmem:[#allocation3 + $0xb0] sm:$0xf] %v1263_v19  ;;  %1267 = vst [vmem:[#allocation3 + $0xb4] sm:$0x1] %v1266_v47  ;;  %v999_v45 = vor.u32 %v997_v26, %v996_v41  ;;  %v1000_v53 = vrot.slane %v996_v41, 4  ;;  %v11695_v37 = vpack.c.bf16 %v614_v43, %v614_v43  ;;  %v619_v58 = vmax.f32 %v571_v44, 0.0 }
 0x1bd   : > { %1294 = vst [vmem:[#allocation3 + $0xd8] sm:$0xf] %v1293_v48  ;;  %1297 = vst [vmem:[#allocation3 + $0xdc] sm:$0x1] %v1296_v49  ;;  %v563_v59 = vadd.f32 %v14503_v57, %v14611_v51  ;;  %v574_v60 = vadd.f32 %v14613_v56, %v14503_v57  ;;  %v1020_v0 = vrot.slane %v1018_v54, 7  ;;  %v566_v2 = vadd.f32 %v14503_v57, %v14615_v61 }
 0x1be   : > { %v1281_v62 = vsel %vm14511_vm4, %v999_v45, %v1280_v50  ;;  %v1284_v63 = vsel %vm14518_vm5, %v1000_v53, %v1283_v52  ;;  %v1002_v4 = vshrl.u32 %v11695_v37, 16  ;;  %v1005_v5 = vshll.u32 %v11695_v37, 16  ;;  %v1289_v16 = vld [vmem:[#allocation3 + $0xd4] sm:$0x1]  ;;  %v1316_v25 = vld [vmem:[#allocation3 + $0x108] sm:$0xf] }
 0x1bf   : > { %1282 = vst [vmem:[#allocation3 + $0xc8] sm:$0xf] %v1281_v62  ;;  %1285 = vst [vmem:[#allocation3 + $0xcc] sm:$0x1] %v1284_v63  ;;  %v11700_v51 = vpack.c.bf16 %v619_v58, %v619_v58  ;;  %v617_v6 = vmax.f32 %v563_v59, 0.0  ;;  %v1023_v7 = vor.u32 %v1021_v55, %v1020_v0  ;;  %v1024_v56 = vrot.slane %v1020_v0, 4 }
 0x1c0   : > { %v620_v8 = vmax.f32 %v574_v60, 0.0  ;;  %v618_v9 = vmax.f32 %v566_v2, 0.0  ;;  %v1004_v10 = vrot.slane %v1002_v4, 7  ;;  %v1319_v27 = vld [vmem:[#allocation3 + $0x10c] sm:$0x1]  ;;  %v587_v52 = vadd.f32 %v14625_v28, %v14503_v57 }
 0x1c1   : > { %v1042_v11 = vshrl.u32 %v11700_v51, 16  ;;  %v1045_v12 = vshll.u32 %v11700_v51, 16  ;;  %v11698_v13 = vpack.c.bf16 %v617_v6, %v617_v6  ;;  %v1299_v14 = vsel %vm14511_vm4, %v1023_v7, %v1298_v1  ;;  %v1304_v41 = vld [vmem:[#allocation3 + $0xf8] sm:$0xf]  ;;  %v1307_v48 = vld [vmem:[#allocation3 + $0xfc] sm:$0x1] }
 0x1c2   : > { %v1302_v61 = vsel %vm14518_vm5, %v1024_v56, %v1301_v3  ;;  %v11701_v17 = vpack.c.bf16 %v620_v8, %v620_v8  ;;  %v11699_v20 = vpack.c.bf16 %v618_v9, %v618_v9  ;;  %1300 = vst [vmem:[#allocation3 + $0xe0] sm:$0xf] %v1299_v14  ;;  %v1007_v21 = vor.u32 %v1005_v5, %v1004_v10  ;;  %v1322_v49 = vld [vmem:[#allocation3 + $0x110] sm:$0xf]  ;;  %v1325_v50 = vld [vmem:[#allocation3 + $0x114] sm:$0x1] }
 0x1c3   : > { %1303 = vst [vmem:[#allocation3 + $0xe4] sm:$0x1] %v1302_v61  ;;  %v1008_v22 = vrot.slane %v1004_v10, 4  ;;  %v1044_v23 = vrot.slane %v1042_v11, 7  ;;  %v1026_v26 = vshrl.u32 %v11698_v13, 16  ;;  %v1029_v29 = vshll.u32 %v11698_v13, 16 }
 0x1c4   : > { %v1050_v30 = vshrl.u32 %v11701_v17, 16  ;;  %v1053_v31 = vshll.u32 %v11701_v17, 16  ;;  %v1034_v32 = vshrl.u32 %v11699_v20, 16  ;;  %v1287_v33 = vsel %vm14511_vm4, %v1007_v21, %v1286_v15  ;;  %v1310_v58 = vld [vmem:[#allocation3 + $0x100] sm:$0xf] }
 0x1c5   : > { %v1290_v35 = vsel %vm14518_vm5, %v1008_v22, %v1289_v16  ;;  %v1047_v36 = vor.u32 %v1045_v12, %v1044_v23  ;;  %v1048_v38 = vrot.slane %v1044_v23, 4  ;;  %1288 = vst [vmem:[#allocation3 + $0xd0] sm:$0xf] %v1287_v33  ;;  %v1028_v39 = vrot.slane %v1026_v26, 7  ;;  %v1313_v59 = vld [vmem:[#allocation3 + $0x104] sm:$0x1] }
 0x1c6   : > { %1291 = vst [vmem:[#allocation3 + $0xd4] sm:$0x1] %v1290_v35  ;;  %v1052_v42 = vrot.slane %v1050_v30, 7  ;;  %v1036_v43 = vrot.slane %v1034_v32, 7  ;;  %v1037_v44 = vshll.u32 %v11699_v20, 16  ;;  %v579_v45 = vadd.f32 %v14503_v57, %v14633_v34 }
 0x1c7   : > { %v1317_v19 = vsel %vm14511_vm4, %v1047_v36, %v1316_v25  ;;  %v1320_v47 = vsel %vm14518_vm5, %v1048_v38, %v1319_v27  ;;  %v1031_v53 = vor.u32 %v1029_v29, %v1028_v39  ;;  %v1032_v54 = vrot.slane %v1028_v39, 4  ;;  %v1340_v13 = vld [vmem:[#allocation3 + $0x128] sm:$0xf]  ;;  %v1343_v15 = vld [vmem:[#allocation3 + $0x12c] sm:$0x1] }
 0x1c8   : > { %1318 = vst [vmem:[#allocation3 + $0x108] sm:$0xf] %v1317_v19  ;;  %1321 = vst [vmem:[#allocation3 + $0x10c] sm:$0x1] %v1320_v47  ;;  %v1055_v55 = vor.u32 %v1053_v31, %v1052_v42  ;;  %v1056_v37 = vrot.slane %v1052_v42, 4  ;;  %v1039_v60 = vor.u32 %v1037_v44, %v1036_v43  ;;  %v1040_v62 = vrot.slane %v1036_v43, 4 }
 0x1c9   : > { %v623_v63 = vmax.f32 %v587_v52, 0.0  ;;  %v621_v0 = vmax.f32 %v579_v45, 0.0  ;;  %v1305_v1 = vsel %vm14511_vm4, %v1031_v53, %v1304_v41  ;;  %v1308_v28 = vsel %vm14518_vm5, %v1032_v54, %v1307_v48  ;;  %v1328_v16 = vld [vmem:[#allocation3 + $0x118] sm:$0xf]  ;;  %v1331_v17 = vld [vmem:[#allocation3 + $0x11c] sm:$0x1] }
 0x1ca   : > { %v1323_v34 = vsel %vm14511_vm4, %v1055_v55, %v1322_v49  ;;  %v1326_v2 = vsel %vm14518_vm5, %v1056_v37, %v1325_v50  ;;  %1306 = vst [vmem:[#allocation3 + $0xf8] sm:$0xf] %v1305_v1  ;;  %1309 = vst [vmem:[#allocation3 + $0xfc] sm:$0x1] %v1308_v28  ;;  %v1311_v3 = vsel %vm14511_vm4, %v1039_v60, %v1310_v58  ;;  %v1346_v33 = vld [vmem:[#allocation3 + $0x130] sm:$0xf] }
 0x1cb   : > { %1324 = vst [vmem:[#allocation3 + $0x110] sm:$0xf] %v1323_v34  ;;  %1327 = vst [vmem:[#allocation3 + $0x114] sm:$0x1] %v1326_v2  ;;  %v1314_v4 = vsel %vm14518_vm5, %v1040_v62, %v1313_v59  ;;  %v11704_v5 = vpack.c.bf16 %v623_v63, %v623_v63  ;;  %v11702_v51 = vpack.c.bf16 %v621_v0, %v621_v0  ;;  %v1349_v38 = vld [vmem:[#allocation3 + $0x134] sm:$0x1] }
 0x1cc   : > { %1312 = vst [vmem:[#allocation3 + $0x100] sm:$0xf] %v1311_v3  ;;  %1315 = vst [vmem:[#allocation3 + $0x104] sm:$0x1] %v1314_v4  ;;  %v590_v6 = vadd.f32 %v14635_v40, %v14503_v57  ;;  %v582_v7 = vadd.f32 %v14503_v57, %v14639_v46  ;;  %v1334_v39 = vld [vmem:[#allocation3 + $0x120] sm:$0xf] }
 0x1cd   : > { %v1074_v56 = vshrl.u32 %v11704_v5, 16  ;;  %v1058_v8 = vshrl.u32 %v11702_v51, 16  ;;  %v1077_v12 = vshll.u32 %v11704_v5, 16  ;;  %v1061_v61 = vshll.u32 %v11702_v51, 16  ;;  %v1337_v41 = vld [vmem:[#allocation3 + $0x124] sm:$0x1] }
 0x1ce   : > { %v624_v9 = vmax.f32 %v590_v6, 0.0  ;;  %v622_v10 = vmax.f32 %v582_v7, 0.0  ;;  %v14186_v52 = vmov (!%p11077_p3), 0  }
 0x1cf   : > { %v1076_v11 = vrot.slane %v1074_v56, 7  ;;  %v1060_v14 = vrot.slane %v1058_v8, 7  ;;  %1356 = vst [vmem:[#allocation3] sm:$0xf] (!%p11077_p3), %v14186_v52  ;;  %1357 = vst [vmem:[#allocation3 + $0x4] sm:$0x1] (!%p11077_p3), %v14186_v52 }
 0x1d0   : > { %v11705_v20 = vpack.c.bf16 %v624_v9, %v624_v9  ;;  %v11703_v21 = vpack.c.bf16 %v622_v10, %v622_v10  ;;  %1358 = vst [vmem:[#allocation3 + $0x8] sm:$0xf] (!%p11077_p3), %v14186_v52  ;;  %1359 = vst [vmem:[#allocation3 + $0xc] sm:$0x1] (!%p11077_p3), %v14186_v52 }
 0x1d1   : > { %v1079_v22 = vor.u32 %v1077_v12, %v1076_v11  ;;  %v1080_v23 = vrot.slane %v1076_v11, 4  ;;  %v1063_v40 = vor.u32 %v1061_v61, %v1060_v14  ;;  %v1064_v25 = vrot.slane %v1060_v14, 4  ;;  %1360 = vst [vmem:[#allocation3 + $0x10] sm:$0xf] (!%p11077_p3), %v14186_v52  ;;  %1361 = vst [vmem:[#allocation3 + $0x14] sm:$0x1] (!%p11077_p3), %v14186_v52 }
 0x1d2   : > { %v1082_v26 = vshrl.u32 %v11705_v20, 16  ;;  %v1066_v57 = vshrl.u32 %v11703_v21, 16  ;;  %v1085_v32 = vshll.u32 %v11705_v20, 16  ;;  %v1069_v36 = vshll.u32 %v11703_v21, 16  ;;  %1362 = vst [vmem:[#allocation3 + $0x18] sm:$0xf] (!%p11077_p3), %v14186_v52 }
 0x1d3   : > { %v1341_v46 = vsel %vm14511_vm4, %v1079_v22, %v1340_v13  ;;  %v1344_v27 = vsel %vm14518_vm5, %v1080_v23, %v1343_v15  ;;  %v1329_v29 = vsel %vm14511_vm4, %v1063_v40, %v1328_v16  ;;  %v1332_v30 = vsel %vm14518_vm5, %v1064_v25, %v1331_v17  ;;  %1363 = vst [vmem:[#allocation3 + $0x1c] sm:$0x1] (!%p11077_p3), %v14186_v52 }
 0x1d4   : > { %1342 = vst [vmem:[#allocation3 + $0x128] sm:$0xf] %v1341_v46  ;;  %1345 = vst [vmem:[#allocation3 + $0x12c] sm:$0x1] %v1344_v27  ;;  %v1084_v31 = vrot.slane %v1082_v26, 7  ;;  %v1068_v35 = vrot.slane %v1066_v57, 7 }
 0x1d5   : > { %1330 = vst [vmem:[#allocation3 + $0x118] sm:$0xf] %v1329_v29  ;;  %1333 = vst [vmem:[#allocation3 + $0x11c] sm:$0x1] %v1332_v30  ;;  %1355 = sbr.rel (%p11077_p3) target bundleno = 479 (0x1df), region = 64 }
 0x1d6   : > { %v1087_v42 = vor.u32 %v1085_v32, %v1084_v31  ;;  %v1088_v43 = vrot.slane %v1084_v31, 4  ;;  %v1071_v44 = vor.u32 %v1069_v36, %v1068_v35  ;;  %v1072_v19 = vrot.slane %v1068_v35, 4  ;;  %1364 = vst [vmem:[#allocation3 + $0x20] sm:$0xf] (!%p11077_p3), %v14186_v52  ;;  %1365 = vst [vmem:[#allocation3 + $0x24] sm:$0x1] (!%p11077_p3), %v14186_v52 }
 0x1d7   : > { %1366 = vst [vmem:[#allocation3 + $0x28] sm:$0xf] (!%p11077_p3), %v14186_v52  ;;  %1367 = vst [vmem:[#allocation3 + $0x2c] sm:$0x1] (!%p11077_p3), %v14186_v52 }
 0x1d8   : > { %v1347_v47 = vsel %vm14511_vm4, %v1087_v42, %v1346_v33  ;;  %v1350_v48 = vsel %vm14518_vm5, %v1088_v43, %v1349_v38  ;;  %v1335_v49 = vsel %vm14511_vm4, %v1071_v44, %v1334_v39  ;;  %v1338_v50 = vsel %vm14518_vm5, %v1072_v19, %v1337_v41  ;;  %1368 = vst [vmem:[#allocation3 + $0x30] sm:$0xf] (!%p11077_p3), %v14186_v52 }
 0x1d9   : > { %1348 = vst [vmem:[#allocation3 + $0x130] sm:$0xf] %v1347_v47  ;;  %1351 = vst [vmem:[#allocation3 + $0x134] sm:$0x1] %v1350_v48 }
 0x1da   : > { %1336 = vst [vmem:[#allocation3 + $0x120] sm:$0xf] %v1335_v49  ;;  %1339 = vst [vmem:[#allocation3 + $0x124] sm:$0x1] %v1338_v50 }
 0x1db   : > { %1369 = vst [vmem:[#allocation3 + $0x34] sm:$0x1] (!%p11077_p3), %v14186_v52  ;;  %1370 = vst [vmem:[#allocation3 + $0x38] sm:$0xf] (!%p11077_p3), %v14186_v52 }
 0x1dc   : > { %1371 = vst [vmem:[#allocation3 + $0x3c] sm:$0x1] %v14186_v52  ;;  %1372 = vst [vmem:[#allocation3 + $0x40] sm:$0xf] %v14186_v52 }
 0x1dd   : > { %1373 = vst [vmem:[#allocation3 + $0x44] sm:$0x1] %v14186_v52  ;;  %1374 = vst [vmem:[#allocation3 + $0x48] sm:$0xf] %v14186_v52 }
 0x1de   : > { %1375 = vst [vmem:[#allocation3 + $0x4c] sm:$0x1] %v14186_v52 }
 0x1df PF: > { %p11078_p2 = scmp.ne.s32.totalorder %s14161_s27, 1 }
 0x1e0   : > { %v14187_v18 = vmov (!%p11078_p2), 0  }
 0x1e1   : > { %1379 = sbr.rel (%p11078_p2) target bundleno = 491 (0x1eb), region = 68  ;;  %1381 = vst [vmem:[#allocation3 + $0xf0] sm:$0xf] (!%p11078_p2), %v14187_v18  ;;  %1382 = vst [vmem:[#allocation3 + $0xf4] sm:$0x1] (!%p11078_p2), %v14187_v18 }
 0x1e2   : > { %1383 = vst [vmem:[#allocation3 + $0xf8] sm:$0xf] (!%p11078_p2), %v14187_v18  ;;  %1384 = vst [vmem:[#allocation3 + $0xfc] sm:$0x1] (!%p11078_p2), %v14187_v18 }
 0x1e3   : > { %1385 = vst [vmem:[#allocation3 + $0x100] sm:$0xf] (!%p11078_p2), %v14187_v18  ;;  %1386 = vst [vmem:[#allocation3 + $0x104] sm:$0x1] (!%p11078_p2), %v14187_v18 }
 0x1e4   : > { %1387 = vst [vmem:[#allocation3 + $0x108] sm:$0xf] (!%p11078_p2), %v14187_v18  ;;  %1388 = vst [vmem:[#allocation3 + $0x10c] sm:$0x1] (!%p11078_p2), %v14187_v18 }
 0x1e5   : > { %1389 = vst [vmem:[#allocation3 + $0x110] sm:$0xf] (!%p11078_p2), %v14187_v18  ;;  %1390 = vst [vmem:[#allocation3 + $0x114] sm:$0x1] (!%p11078_p2), %v14187_v18 }
 0x1e6   : > { %1391 = vst [vmem:[#allocation3 + $0x118] sm:$0xf] (!%p11078_p2), %v14187_v18  ;;  %1392 = vst [vmem:[#allocation3 + $0x11c] sm:$0x1] (!%p11078_p2), %v14187_v18 }
 0x1e7   : > { %1393 = vst [vmem:[#allocation3 + $0x120] sm:$0xf] (!%p11078_p2), %v14187_v18  ;;  %1394 = vst [vmem:[#allocation3 + $0x124] sm:$0x1] (!%p11078_p2), %v14187_v18 }
 0x1e8   : > { %1395 = vst [vmem:[#allocation3 + $0x128] sm:$0xf] %v14187_v18  ;;  %1396 = vst [vmem:[#allocation3 + $0x12c] sm:$0x1] %v14187_v18 }
 0x1e9   : > { %1397 = vst [vmem:[#allocation3 + $0x130] sm:$0xf] %v14187_v18  ;;  %1398 = vst [vmem:[#allocation3 + $0x134] sm:$0x1] %v14187_v18 }
 0x1ea   : > { %1399 = vst [vmem:[#allocation3 + $0x138] sm:$0xf] %v14187_v18  ;;  %1400 = vst [vmem:[#allocation3 + $0x13c] sm:$0x1] %v14187_v18 }
 0x1eb PF: > { %v13657_v24 = vld [vmem:[#allocation8 + $0x40] sm:$0xff]   ;;  %v13659_v53 = vld [vmem:[#allocation8 + $0x48] sm:$0xff]   ;;  %v13661_v55 = vld [vmem:[#allocation8 + $0x50] sm:$0xff]   ;;  %vm1449_vm6 = vsmask.f32 3328  ;;  %vm2111_vm9 = vcmask 1042432  }
 0x1ec   : > { %v13658_v45 = vld [vmem:[#allocation8 + $0x300] sm:$0xff]   ;;  %12227 = vmatprep.subr.bf16.mxu0 %v13657_v24  ;;  %v13660_v54 = vld [vmem:[#allocation8 + $0x308] sm:$0xff]   ;;  %v13662_v37 = vld [vmem:[#allocation8 + $0x310] sm:$0xff]   ;;  %vm1450_vm7 = vsmask.f32 7440  ;;  %vm2112_vm10 = vcmask 1046532  }
 0x1ed   : > { %12611 = vmatprep.subr.bf16.mxu1 %v13658_v45  ;;  %12228 = vmatpush3.bf16.msra.mxu0 %v13657_v24  ;;  %v13663_v58 = vld [vmem:[#allocation8 + $0x58] sm:$0xff]   ;;  %v13665_v60 = vld [vmem:[#allocation8 + $0x60] sm:$0xff]   ;;  %v13667_v63 = vld [vmem:[#allocation8 + $0x68] sm:$0xff]   ;;  %s11706_s21 = sshll.u32 %s14161_s27, 4  ;;  %s11668_s9 = sshll.u32 %s14165_s28, 5 }
 0x1ee   : > { %12612 = vmatpush3.bf16.msra.mxu1 %v13658_v45  ;;  %12229 = vmatprep.subr.bf16.mxu0 %v13659_v53  ;;  %v13664_v59 = vld [vmem:[#allocation8 + $0x318] sm:$0xff]   ;;  %v13666_v62 = vld [vmem:[#allocation8 + $0x320] sm:$0xff]   ;;  %v14711_v1 = vld [vmem:[#allocation3 + $0x8] sm:$0xf]  ;;  %s10913_s18 = sadd.s32 %s11706_s21, %s11668_s9  ;;  %s10916_s28 = sshll.u32 %s14418_s22, 4  ;;  %s16074_s28 = int_to_ptr.vmem [resolvable:$true] %s10916_s28 }
 0x1ef   : > { %12613 = vmatprep.subr.bf16.mxu1 %v13660_v54  ;;  %v14709_v0 = vld [vmem:[#allocation3] sm:$0xf]  ;;  %v14713_v28 = vld [vmem:[#allocation3 + $0x4] sm:$0x1]  ;;  %v13668_v34 = vld [vmem:[#allocation8 + $0x328] sm:$0xff]   ;;  %v1467_v6 = vshrl.u32 %v14711_v1, 16 }
 0x1f0   : > { %v14715_v2 = vld [vmem:[#allocation3 + $0xc] sm:$0x1]  ;;  %v13669_v3 = vld [vmem:[#allocation8 + $0x70] sm:$0xff]   ;;  %v1453_v4 = vshrl.u32 %v14709_v0, 16  ;;  %v1456_v5 = vshll.u32 %v14709_v0, 16  ;;  %v1462_v51 = vshll.u32 %v14713_v28, 16  ;;  %vm14735_vm8 = vmor %vm1449_vm6, %vm1450_vm7 }
 0x1f1   : > { %12230 = vmatpush3.bf16.msra.mxu0 %v13659_v53  ;;  %v13670_v7 = vld [vmem:[#allocation8 + $0x330] sm:$0xff]   ;;  %v1470_v56 = vshll.u32 %v14711_v1, 16  ;;  %v1476_v8 = vshll.u32 %v14715_v2, 16  ;;  %v1469_v12 = vrot.slane %v1467_v6, 4  ;;  %v13673_v13 = vld [vmem:[#allocation3 + $0x58] ss:$8 sps:$4 sm:$0xff]   ;;  %vm14936_vm11 = vmor %vm2111_vm9, %vm2112_vm10 }
 0x1f2   : > { %12614 = vmatpush3.bf16.msra.mxu1 %v13660_v54  ;;  %12231 = vmatprep.subr.bf16.mxu0 %v13661_v55  ;;  %v1455_v9 = vrot.slane %v1453_v4, 4  ;;  %v1458_v10 = vrot.slane %v1456_v5, 5  ;;  %v1464_v11 = vrot.slane %v1462_v51, 5  ;;  %v14723_v15 = vld [vmem:[#allocation3 + $0x10] sm:$0xf]  ;;  %v13671_v40 = vld [vmem:[#allocation8 + $0x78] sm:$0xff]  }
 0x1f3   : > { %12615 = vmatprep.subr.bf16.mxu1 %v13662_v37  ;;  %v1472_v14 = vrot.slane %v1470_v56, 5  ;;  %v1478_v61 = vrot.slane %v1476_v8, 5  ;;  %v14725_v16 = vld [vmem:[#allocation3 + $0x18] sm:$0xf]  ;;  %12627 = vmatprep.mubr.bf16.mxu1 %v13673_v13  ;;  %v14727_v20 = vld [vmem:[#allocation3 + $0x14] sm:$0x1] }
 0x1f4   : > { %v1459_v17 = vor.u32 %v1458_v10, %v1455_v9  ;;  %v14729_v21 = vld [vmem:[#allocation3 + $0x1c] sm:$0x1]  ;;  %v1481_v22 = vshrl.u32 %v14723_v15, 16  ;;  %v1484_v23 = vshll.u32 %v14723_v15, 16  ;;  %v1490_v57 = vshll.u32 %v14727_v20, 16  ;;  %v13674_v49 = vld [vmem:[#allocation8] sm:$0xff]  }
 0x1f5   : > { %12232 = vmatpush3.bf16.msra.mxu0 %v13661_v55  ;;  %v1473_v26 = vor.u32 %v1472_v14, %v1469_v12  ;;  %v1495_v46 = vshrl.u32 %v14725_v16, 16  ;;  %v1498_v27 = vshll.u32 %v14725_v16, 16  ;;  %v1504_v32 = vshll.u32 %v14729_v21, 16  ;;  %v13672_v33 = vld [vmem:[#allocation8 + $0x338] sm:$0xff]   ;;  %v13675_v52 = vld [vmem:[#allocation3 + $0x68] ss:$8 sps:$4 sm:$0xff]  }
 0x1f6   : > { %12616 = vmatpush3.bf16.msra.mxu1 %v13662_v37  ;;  %12233 = vmatprep.subr.bf16.mxu0 %v13663_v58  ;;  %v1460_v29 = vrot.slane %v1459_v17, 4  ;;  %v1483_v30 = vrot.slane %v1481_v22, 4  ;;  %v1486_v31 = vrot.slane %v1484_v23, 5  ;;  %v1492_v42 = vrot.slane %v1490_v57, 5  ;;  %v13676_v18 = vld [vmem:[#allocation8 + $0x340] sm:$0xff]   ;;  %v13678_v5 = vld [vmem:[#allocation8 + $0x348] sm:$0xff]  }
 0x1f7   : > { %12617 = vmatprep.subr.bf16.mxu1 %v13664_v59  ;;  %v1474_v35 = vrot.slane %v1473_v26, 4  ;;  %v1497_v36 = vrot.slane %v1495_v46, 4  ;;  %v1500_v38 = vrot.slane %v1498_v27, 5  ;;  %v1506_v19 = vrot.slane %v1504_v32, 5  ;;  %v14749_v45 = vld [vmem:[#allocation3 + $0x20] sm:$0xf] }
 0x1f8   : > { %v1465_v39 = vsel %vm14735_vm8, %v1460_v29, %v1464_v11  ;;  %v1487_v41 = vor.u32 %v1486_v31, %v1483_v30  ;;  %v14751_v53 = vld [vmem:[#allocation3 + $0x28] sm:$0xf]  ;;  %v1437_v54 = vld [vmem:[#allocation3 + $0x24] sm:$0x1]  ;;  %v1438_v37 = vld [vmem:[#allocation3 + $0x2c] sm:$0x1] }
 0x1f9   : > { %12234 = vmatpush3.bf16.msra.mxu0 %v13663_v58  ;;  %v1479_v43 = vsel %vm14735_vm8, %v1474_v35, %v1478_v61  ;;  %v1501_v44 = vor.u32 %v1500_v38, %v1497_v36  ;;  %v1509_v58 = vshrl.u32 %v14749_v45, 16  ;;  %v1532_v4 = vshll.u32 %v1438_v37, 16  ;;  %v13679_v10 = vld [vmem:[#allocation3 + $0x78] ss:$8 sps:$4 sm:$0xff]   ;;  %v13680_v11 = vld [vmem:[#allocation8 + $0x10] sm:$0xff]   ;;  %s11669_s27 = sshll.u32 %s10913_s18, 7 }
 0x1fa   : > { %12618 = vmatpush3.bf16.msra.mxu1 %v13664_v59  ;;  %12235 = vmatprep.subr.bf16.mxu0 %v13665_v60  ;;  %v11079_v47 = vcombine.low %v1465_v39, %v1479_v43  ;;  %v1488_v48 = vrot.slane %v1487_v41, 4  ;;  %v1512_v59 = vshll.u32 %v14749_v45, 16  ;;  %v14759_v13 = vld [vmem:[#allocation3 + $0x30] sm:$0xf]  ;;  %v14761_v14 = vld [vmem:[#allocation3 + $0x38] sm:$0xf]  ;;  %s16072_s11 = scalar_lea.hbm %s16140_s7, %s11669_s27 }
 0x1fb   : > { %12619 = vmatprep.subr.bf16.mxu1 %v13666_v62  ;;  %v1502_v50 = vrot.slane %v1501_v44, 4  ;;  %v1511_v51 = vrot.slane %v1509_v58, 4  ;;  %v1534_v9 = vrot.slane %v1532_v4, 5  ;;  %v1439_v61 = vld [vmem:[#allocation3 + $0x34] sm:$0x1]  ;;  %v1537_v23 = vshrl.u32 %v14759_v13, 16 }
 0x1fc   : > { %12243 = vmatprep.mubr.bf16.mxu0 %v11079_v47  ;;  %v1493_v24 = vsel %vm14735_vm8, %v1488_v48, %v1492_v42  ;;  %v1514_v6 = vrot.slane %v1512_v59, 5  ;;  %v1440_v22 = vld [vmem:[#allocation3 + $0x3c] sm:$0x1]  ;;  %v1546_v26 = vshll.u32 %v1439_v61, 16  ;;  %v13682_v57 = vld [vmem:[#allocation8 + $0x350] sm:$0xff]   ;;  %v1551_v27 = vshrl.u32 %v14761_v14, 16 }
 0x1fd   : > { %12236 = vmatpush3.bf16.msra.mxu0 %v13665_v60  ;;  %v1507_v55 = vsel %vm14735_vm8, %v1502_v50, %v1506_v19  ;;  %v1518_v60 = vshll.u32 %v1437_v54, 16  ;;  %v1554_v29 = vshll.u32 %v14761_v14, 16  ;;  %v1560_v30 = vshll.u32 %v1440_v22, 16  ;;  %v13683_v42 = vld [vmem:[#allocation8 + $0x18] sm:$0xff]   ;;  %v13681_v47 = vld [vmem:[#allocation3 + $0x88] ss:$8 sps:$4 sm:$0xff]  }
 0x1fe   : > { %12620 = vmatpush3.bf16.msra.mxu1 %v13666_v62  ;;  %12237 = vmatprep.subr.bf16.mxu0 %v13667_v63  ;;  %v11080_v62 = vcombine.low %v1493_v24, %v1507_v55  ;;  %v1515_v12 = vor.u32 %v1514_v6, %v1511_v51  ;;  %v1539_v32 = vrot.slane %v1537_v23, 4  ;;  %v1548_v35 = vrot.slane %v1546_v26, 5  ;;  %v13684_v43 = vld [vmem:[#allocation8 + $0x358] sm:$0xff]   ;;  %v1441_v55 = vld [vmem:[#allocation3 + $0x54] sm:$0x1]  ;;  %v13689_v23 = vld [vmem:[#allocation8 + $0x28] sm:$0xff]  }
 0x1ff   : > { %12621 = vmatprep.subr.bf16.mxu1 %v13668_v34  ;;  %v1553_v38 = vrot.slane %v1551_v27, 4  ;;  %v1556_v39 = vrot.slane %v1554_v29, 5  ;;  %v1562_v41 = vrot.slane %v1560_v30, 5  ;;  %v14773_v24 = vld [vmem:[#allocation3 + $0x58] sm:$0xf]  ;;  %s16081_s10 = scalar_lea.sflag [#allocation7], %s286_s29 }
 0x200   : > { %v1516_v46 = vrot.slane %v1515_v12, 4  ;;  %v1442_v37 = vld [vmem:[#allocation3 + $0x5c] sm:$0x1]  ;;  %v14785_v22 = vld [vmem:[#allocation3 + $0x68] sm:$0xf]  ;;  %s14073_s23 = scalar_lea.vmem %s16074_s28, 2048 }
 0x201   : > { %12238 = vmatpush3.bf16.msra.mxu0 %v13667_v63  ;;  %v13677_v63 = vld [vmem:[#allocation8 + $0x8] sm:$0xff]   ;;  %v1588_v6 = vshll.u32 %v1442_v37, 16  ;;  %v1443_v26 = vld [vmem:[#allocation3 + $0x64] sm:$0x1]  ;;  %p14074_p0 = scmp.ne.s32.totalorder %s16074_s28, %s14073_s23  ;;  %p16182_p8 = scmp.ne.s32.totalorder %s16159_s15, 0 }
 0x202   : > { %12622 = vmatpush3.bf16.msra.mxu1 %v13668_v34  ;;  %12239 = vmatprep.subr.bf16.mxu0 %v13669_v3  ;;  %v1523_v34 = vshrl.u32 %v14751_v53, 16  ;;  %v1602_v30 = vshll.u32 %v1443_v26, 16  ;;  %s14188_s30 = smov [#allocation11]  }
 0x203   : > { %12623 = vmatprep.subr.bf16.mxu1 %v13670_v7  ;;  %v1590_v61 = vrot.slane %v1588_v6, 5  ;;  %p14075_p10 = pnand %p14074_p0, %p16182_p8  ;;  %s14077_s24 = sshll.u32 %s14188_s30, 4  ;;  %s14078_s24 = int_to_ptr.vmem [resolvable:$false] %s14077_s24 }
 0x204   : > { %v1525_v56 = vrot.slane %v1523_v34, 4  ;;  %v1582_v34 = vshll.u32 %v14773_v24, 16  ;;  %s14079_s19 = scalar_lea.vmem %s14078_s24, 4096  ;;  %p14080_p1 = scmp.lt.s32.totalorder %s16074_s28, %s14078_s24 }
 0x205   : > { %12240 = vmatpush3.bf16.msra.mxu0 %v13669_v3  ;;  %v1526_v3 = vshll.u32 %v14751_v53, 16  ;;  %p14076_p12 = pneg %p14075_p10  ;;  %p14081_p4 = scmp.lt.s32.totalorder %s14079_s19, %s14073_s23 }
 0x206   : > { %12624 = vmatpush3.bf16.msra.mxu1 %v13670_v7  ;;  %12241 = vmatprep.subr.bf16.mxu0 %v13671_v40  ;;  %v1520_v7 = vrot.slane %v1518_v60, 5 }
 0x207   : > { %12625 = vmatprep.subr.bf16.mxu1 %v13672_v33  ;;  %v1528_v8 = vrot.slane %v1526_v3, 5  ;;  %v13686_v3 = vld [vmem:[#allocation8 + $0x20] sm:$0xff]   ;;  %p14082_p5 = por %p14081_p4, %p14080_p1 }
 0x208   : > { %v1521_v36 = vsel %vm14735_vm8, %v1516_v46, %v1520_v7  ;;  %v13688_v7 = vld [vmem:[#allocation8 + $0x360] sm:$0xff]  }
 0x209   : > { %12242 = vmatpush3.bf16.msra.mxu0 %v13671_v40  ;;  %v1529_v17 = vor.u32 %v1528_v8, %v1525_v56  ;;  %v1540_v40 = vshll.u32 %v14759_v13, 16  ;;  %v1584_v8 = vrot.slane %v1582_v34, 5  ;;  %v1445_v34 = vld [vmem:[#allocation3 + $0x74] sm:$0x1]  ;;  %p14083_p6 = pnand %p14082_p5, %p14076_p12 }
 0x20a   : > { %12626 = vmatpush3.bf16.msra.mxu1 %v13672_v33  ;;  %12259 = vmatprep.subr.bf16.mxu0 %v13674_v49  ;;  %v1630_v6 = vshll.u32 %v1445_v34, 16 }
 0x20b   : > { %12643 = vmatprep.subr.bf16.mxu1 %v13676_v18  ;;  %v1530_v31 = vrot.slane %v1529_v17, 4  ;;  %v1542_v33 = vrot.slane %v1540_v40, 5  ;;  %v14783_v17 = vld [vmem:[#allocation3 + $0x60] sm:$0xf] }
 0x20c   : > { %12244 = vmatmul.mubr.bf16.vlgmr.msra.gmra.mrb[32].mxu0 %v11080_v62  ;;  %v1574_v62 = vshll.u32 %v1441_v55, 16  ;;  %v1593_v46 = vshrl.u32 %v14783_v17, 16  ;;  %v1596_v27 = vshll.u32 %v14783_v17, 16  ;;  %v2116_v55 = vrot.slane %v14713_v28, 5 }
 0x20d   : > { %12628 = vmatmul.mubr.bf16.vlgmr.msra.gmra.mrb[0].mxu1 %v13675_v52  ;;  %12260 = vmatpush3.bf16.msra.mxu0 %v13674_v49  ;;  %v1535_v44 = vsel %vm14735_vm8, %v1530_v31, %v1534_v9  ;;  %v1543_v19 = vor.u32 %v1542_v33, %v1539_v32  ;;  %v1557_v49 = vor.u32 %v1556_v39, %v1553_v38  ;;  %v13685_v9 = vld [vmem:[#allocation3 + $0xa8] ss:$8 sps:$4 sm:$0xff]   ;;  %v1607_v31 = vshrl.u32 %v14785_v22, 16 }
 0x20e   : > { %12644 = vmatpush3.bf16.msra.mxu1 %v13676_v18  ;;  %12261 = vmatprep.subr.bf16.mxu0 %v13677_v63  ;;  %v11081_v48 = vcombine.low %v1521_v36, %v1535_v44  ;;  %v14771_v18 = vld [vmem:[#allocation3 + $0x50] sm:$0xf]  ;;  %v1576_v12 = vrot.slane %v1574_v62, 5  ;;  %v1610_v32 = vshll.u32 %v14785_v22, 16  ;;  %v1598_v36 = vrot.slane %v1596_v27, 5 }
 0x20f   : > { %12645 = vmatprep.subr.bf16.mxu1 %v13678_v5  ;;  %12631 = vmatprep.mubr.bf16.mxu1 %v13679_v10  ;;  %v1544_v50 = vrot.slane %v1543_v19, 4  ;;  %v1558_v52 = vrot.slane %v1557_v49, 4  ;;  %v1565_v58 = vshrl.u32 %v14771_v18, 16  ;;  %v1568_v59 = vshll.u32 %v14771_v18, 16  ;;  %v13690_v10 = vld [vmem:[#allocation8 + $0x368] sm:$0xff]   ;;  %v13694_v44 = vld [vmem:[#allocation8 + $0x370] sm:$0xff]  }
 0x210   : > { %12247 = vmatprep.mubr.bf16.mxu0 %v11081_v48  ;;  %v1604_v48 = vrot.slane %v1602_v30, 5  ;;  %v1632_v26 = vrot.slane %v1630_v6, 5  ;;  %v5723_v6 = vld [vmem:[#allocation3 + $0x58] sm:$0xf] }
 0x211   : > { %12262 = vmatpush3.bf16.msra.mxu0 %v13677_v63  ;;  %v1549_v54 = vsel %vm14735_vm8, %v1544_v50, %v1548_v35  ;;  %v1563_v60 = vsel %vm14735_vm8, %v1558_v52, %v1562_v41  ;;  %v1579_v63 = vshrl.u32 %v14773_v24, 16  ;;  %v1570_v51 = vrot.slane %v1568_v59, 5  ;;  %v13687_v50 = vld [vmem:[#allocation3 + $0xb8] ss:$8 sps:$4 sm:$0xff]   ;;  %v14796_v59 = vld [vmem:[#allocation3 + $0x70] sm:$0xf] }
 0x212   : > { %12646 = vmatpush3.bf16.msra.mxu1 %v13678_v5  ;;  %12263 = vmatprep.subr.bf16.mxu0 %v13680_v11  ;;  %v11082_v4 = vcombine.low %v1549_v54, %v1563_v60  ;;  %v1567_v5 = vrot.slane %v1565_v58, 4  ;;  %v1595_v35 = vrot.slane %v1593_v46, 4  ;;  %v1609_v41 = vrot.slane %v1607_v31, 4  ;;  %v13696_v60 = vld [vmem:[#allocation8 + $0x378] sm:$0xff]   ;;  %v14813_v31 = vld [vmem:[#allocation3 + $0x88] sm:$0xf] }
 0x213   : > { %12647 = vmatprep.subr.bf16.mxu1 %v13682_v57  ;;  %v1581_v56 = vrot.slane %v1579_v63, 4  ;;  %v14800_v63 = vld [vmem:[#allocation3 + $0x78] sm:$0xf] }
 0x214   : > { %12248 = vmatmul.mubr.bf16.gmra.mrb[36].mxu0 %v11082_v4 }
 0x215   : > { %12632 = vmatmul.mubr.bf16.gmra.mrb[4].mxu1 %v13681_v47  ;;  %12264 = vmatpush3.bf16.msra.mxu0 %v13680_v11  ;;  %v1571_v11 = vor.u32 %v1570_v51, %v1567_v5  ;;  %v1585_v40 = vor.u32 %v1584_v8, %v1581_v56  ;;  %v1599_v47 = vor.u32 %v1598_v36, %v1595_v35  ;;  %v1621_v5 = vshrl.u32 %v14796_v59, 16 }
 0x216   : > { %12648 = vmatpush3.bf16.msra.mxu1 %v13682_v57  ;;  %12265 = vmatprep.subr.bf16.mxu0 %v13683_v42  ;;  %v1444_v57 = vld [vmem:[#allocation3 + $0x6c] sm:$0x1]  ;;  %v1624_v51 = vshll.u32 %v14796_v59, 16  ;;  %v1635_v56 = vshrl.u32 %v14800_v63, 16  ;;  %v1638_v8 = vshll.u32 %v14800_v63, 16 }
 0x217   : > { %12649 = vmatprep.subr.bf16.mxu1 %v13684_v43  ;;  %12635 = vmatprep.mubr.bf16.mxu1 %v13685_v9  ;;  %v1572_v29 = vrot.slane %v1571_v11, 4  ;;  %v1586_v33 = vrot.slane %v1585_v40, 4  ;;  %v1616_v38 = vshll.u32 %v1444_v57, 16  ;;  %v1600_v37 = vrot.slane %v1599_v47, 4  ;;  %v14809_v40 = vld [vmem:[#allocation8 + $0x380] sm:$0xff]  }
 0x218   : > { %v2120_v11 = vrot.slane %v14715_v2, 5  ;;  %v1637_v57 = vrot.slane %v1635_v56, 4  ;;  %v1640_v46 = vrot.slane %v1638_v8, 5  ;;  %v11095_v56 = vcombine.low %v14709_v0, %v14711_v1  ;;  %v14830_v8 = vld [vmem:[#allocation3 + $0x5c] sm:$0x1] }
 0x219   : > { %12266 = vmatpush3.bf16.msra.mxu0 %v13683_v42  ;;  %v1577_v39 = vsel %vm14735_vm8, %v1572_v29, %v1576_v12  ;;  %v1612_v42 = vrot.slane %v1610_v32, 5  ;;  %v1591_v19 = vsel %vm14735_vm8, %v1586_v33, %v1590_v61  ;;  %v1618_v49 = vrot.slane %v1616_v38, 5  ;;  %v14811_v29 = vld [vmem:[#allocation3 + $0x80] sm:$0xf]  ;;  %v1447_v32 = vld [vmem:[#allocation3 + $0x84] sm:$0x1] }
 0x21a   : > { %12650 = vmatpush3.bf16.msra.mxu1 %v13684_v43  ;;  %12267 = vmatprep.subr.bf16.mxu0 %v13686_v3  ;;  %v13692_v43 = vld [vmem:[#allocation8 + $0x30] sm:$0xff]   ;;  %v11083_v52 = vcombine.low %v1577_v39, %v1591_v19  ;;  %v1605_v62 = vsel %vm14735_vm8, %v1600_v37, %v1604_v48  ;;  %v1623_v12 = vrot.slane %v1621_v5, 4  ;;  %v1626_v61 = vrot.slane %v1624_v51, 5  ;;  %v1448_v33 = vld [vmem:[#allocation3 + $0x8c] sm:$0x1] }
 0x21b   : > { %12651 = vmatprep.subr.bf16.mxu1 %v13688_v7  ;;  %v1613_v54 = vor.u32 %v1612_v42, %v1609_v41  ;;  %v1641_v35 = vor.u32 %v1640_v46, %v1637_v57  ;;  %v1649_v36 = vshrl.u32 %v14811_v29, 16  ;;  %v1652_v38 = vshll.u32 %v14811_v29, 16  ;;  %v14817_v41 = vld [vmem:[#allocation8 + $0x80] sm:$0xff]  }
 0x21c   : > { %12251 = vmatprep.mubr.bf16.mxu0 %v11083_v52  ;;  %v1627_v30 = vor.u32 %v1626_v61, %v1623_v12  ;;  %v1658_v39 = vshll.u32 %v1447_v32, 16  ;;  %v1666_v19 = vshll.u32 %v14813_v31, 16  ;;  %v1672_v47 = vshll.u32 %v1448_v33, 16  ;;  %v14834_v61 = vld [vmem:[#allocation3 + $0x64] sm:$0x1] }
 0x21d   : > { %12268 = vmatpush3.bf16.msra.mxu0 %v13686_v3  ;;  %12636 = vmatmul.mubr.bf16.gmra.mrb[8].mxu1 %v13687_v50  ;;  %v1614_v58 = vrot.slane %v1613_v54, 4  ;;  %v1446_v3 = vld [vmem:[#allocation3 + $0x7c] sm:$0x1]  ;;  %v1642_v48 = vrot.slane %v1641_v35, 4  ;;  %v1654_v50 = vrot.slane %v1652_v38, 5  ;;  %v2124_v5 = vrot.slane %v14727_v20, 5 }
 0x21e   : > { %12652 = vmatpush3.bf16.msra.mxu1 %v13688_v7  ;;  %12269 = vmatprep.subr.bf16.mxu0 %v13689_v23  ;;  %v1644_v9 = vshll.u32 %v1446_v3, 16  ;;  %v1628_v42 = vrot.slane %v1627_v30, 4  ;;  %v1668_v37 = vrot.slane %v1666_v19, 5  ;;  %v13693_v3 = vld [vmem:[#allocation3 + $0xd8] ss:$8 sps:$4 sm:$0xff]   ;;  %v5779_v0 = vshll.u32 %v14834_v61, 16 }
 0x21f   : > { %12653 = vmatprep.subr.bf16.mxu1 %v13690_v10  ;;  %v1619_v4 = vsel %vm14735_vm8, %v1614_v58, %v1618_v49  ;;  %v1651_v49 = vrot.slane %v1649_v36, 4  ;;  %v1674_v58 = vrot.slane %v1672_v47, 5  ;;  %v11096_v19 = vcombine.low %v14723_v15, %v14725_v16  ;;  %v5729_v47 = vld [vmem:[#allocation3 + $0x70] sm:$0xf] }
 0x220   : > { %v11084_v7 = vcombine.low %v1605_v62, %v1619_v4  ;;  %v1646_v27 = vrot.slane %v1644_v9, 5  ;;  %v1633_v52 = vsel %vm14735_vm8, %v1628_v42, %v1632_v26  ;;  %v5725_v9 = vld [vmem:[#allocation3 + $0x60] sm:$0xf]  ;;  %v5765_v26 = vshll.u32 %v14830_v8, 16  ;;  %v14840_v42 = vld [vmem:[#allocation3 + $0x6c] sm:$0x1] }
 0x221   : > { %12270 = vmatpush3.bf16.msra.mxu0 %v13689_v23  ;;  %v13691_v23 = vld [vmem:[#allocation3 + $0xc8] ss:$8 sps:$4 sm:$0xff]   ;;  %v1655_v34 = vor.u32 %v1654_v50, %v1651_v49  ;;  %v5770_v57 = vshrl.u32 %v5725_v9, 16  ;;  %v5773_v30 = vshll.u32 %v5725_v9, 16  ;;  %v5781_v38 = vrot.slane %v5779_v0, 5 }
 0x222   : > { %12654 = vmatpush3.bf16.msra.mxu1 %v13690_v10  ;;  %12271 = vmatprep.subr.bf16.mxu0 %v13692_v43  ;;  %v13695_v10 = vld [vmem:[#allocation8 + $0x38] sm:$0xff]   ;;  %v1647_v62 = vsel %vm14735_vm8, %v1642_v48, %v1646_v27  ;;  %v5767_v33 = vrot.slane %v5765_v26, 5  ;;  %v14844_v48 = vld [vmem:[#allocation3 + $0x74] sm:$0x1]  ;;  %v13701_v9 = vld [vmem:[#allocation8 + $0x88] sm:$0xff]  }
 0x223   : > { %12655 = vmatprep.subr.bf16.mxu1 %v13694_v44  ;;  %12252 = vmatmul.mubr.bf16.gmra.mrb[40].mxu0 %v11084_v7  ;;  %v1656_v51 = vrot.slane %v1655_v34, 4  ;;  %v5772_v35 = vrot.slane %v5770_v57, 4  ;;  %v5775_v36 = vrot.slane %v5773_v30, 5  ;;  %v5731_v26 = vld [vmem:[#allocation3 + $0x78] sm:$0xf] }
 0x224   : > { %12639 = vmatprep.mubr.bf16.mxu1 %v13691_v23  ;;  %v5759_v23 = vshll.u32 %v5723_v6, 16  ;;  %v14855_v57 = vld [vmem:[#allocation3 + $0x7c] sm:$0x1]  ;;  %v5733_v30 = vld [vmem:[#allocation3 + $0x80] sm:$0xf] }
 0x225   : > { %12272 = vmatpush3.bf16.msra.mxu0 %v13692_v43  ;;  %v1660_v43 = vrot.slane %v1658_v39, 5  ;;  %12640 = vmatmul.mubr.bf16.gmra.mrb[12].mxu1 %v13693_v3  ;;  %v5727_v39 = vld [vmem:[#allocation3 + $0x68] sm:$0xf]  ;;  %v5807_v3 = vshll.u32 %v14844_v48, 16  ;;  %v14857_v0 = vld [vmem:[#allocation3 + $0x84] sm:$0x1] }
 0x226   : > { %12656 = vmatpush3.bf16.msra.mxu1 %v13694_v44  ;;  %12273 = vmatprep.subr.bf16.mxu0 %v13695_v10  ;;  %v1663_v44 = vshrl.u32 %v14813_v31, 16  ;;  %v5761_v32 = vrot.slane %v5759_v23, 5  ;;  %v5784_v49 = vshrl.u32 %v5727_v39, 16  ;;  %v5787_v50 = vshll.u32 %v5727_v39, 16 }
 0x227   : > { %12657 = vmatprep.subr.bf16.mxu1 %v13696_v60  ;;  %v1661_v12 = vsel %vm14735_vm8, %v1656_v51, %v1660_v43  ;;  %v5776_v43 = vor.u32 %v5775_v36, %v5772_v35  ;;  %v11097_v23 = vcombine.low %v14749_v45, %v14751_v53  ;;  %v5821_v35 = vshll.u32 %v14855_v57, 16  ;;  %v13702_v45 = vld [vmem:[#allocation8 + $0x388] sm:$0xff]  }
 0x228   : > { %v1665_v54 = vrot.slane %v1663_v44, 4  ;;  %v5789_v34 = vrot.slane %v5787_v50, 5  ;;  %v5826_v36 = vshrl.u32 %v5733_v30, 16  ;;  %v5829_v39 = vshll.u32 %v5733_v30, 16 }
 0x229   : > { %12274 = vmatpush3.bf16.msra.mxu0 %v13695_v10  ;;  %v5756_v10 = vshrl.u32 %v5723_v6, 16  ;;  %v5823_v50 = vrot.slane %v5821_v35, 5 }
 0x22a   : > { %12658 = vmatpush3.bf16.msra.mxu1 %v13696_v60  ;;  %12291 = vmatprep.subr.bf16.mxu0 %v14817_v41  ;;  %v11085_v60 = vcombine.low %v1633_v52, %v1647_v62  ;;  %v1669_v4 = vor.u32 %v1668_v37, %v1665_v54  ;;  %v5793_v52 = vshll.u32 %v14840_v42, 16  ;;  %v5798_v54 = vshrl.u32 %v5729_v47, 16 }
 0x22b   : > { %12675 = vmatprep.subr.bf16.mxu1 %v14809_v40  ;;  %v5758_v27 = vrot.slane %v5756_v10, 4  ;;  %v5801_v37 = vshll.u32 %v5729_v47, 16  ;;  %v5786_v62 = vrot.slane %v5784_v49, 4 }
 0x22c   : > { %12255 = vmatprep.mubr.bf16.mxu0 %v11085_v60  ;;  %v1670_v7 = vrot.slane %v1669_v4, 4  ;;  %v2128_v60 = vrot.slane %v14729_v21, 5  ;;  %v5777_v4 = vrot.slane %v5776_v43, 4  ;;  %v5800_v15 = vrot.slane %v5798_v54, 4  ;;  %v5735_v54 = vld [vmem:[#allocation3 + $0x88] sm:$0xf] }
 0x22d   : > { %v5762_v44 = vor.u32 %v5761_v32, %v5758_v27  ;;  %v5803_v16 = vrot.slane %v5801_v37, 5  ;;  %v5790_v6 = vor.u32 %v5789_v34, %v5786_v62  ;;  %v5828_v43 = vrot.slane %v5826_v36, 4  ;;  %v14868_v34 = vld [vmem:[#allocation3 + $0x8c] sm:$0x1] }
 0x22e   : > { %v1675_v46 = vsel %vm14735_vm8, %v1670_v7, %v1674_v58  ;;  %v5795_v7 = vrot.slane %v5793_v52, 5  ;;  %v5782_v10 = vsel %vm14735_vm8, %v5777_v4, %v5781_v38  ;;  %v13705_v52 = vld [vmem:[#allocation8 + $0x90] sm:$0xff]   ;;  %v5831_v37 = vrot.slane %v5829_v39, 5  ;;  %v14881_v39 = vld [vmem:[#allocation3 + $0xac] sm:$0x1] }
 0x22f   : > { %v11086_v1 = vcombine.low %v1661_v12, %v1675_v46  ;;  %v5763_v58 = vrot.slane %v5762_v44, 4  ;;  %v5804_v12 = vor.u32 %v5803_v16, %v5800_v15  ;;  %v5791_v27 = vrot.slane %v5790_v6, 4  ;;  %v14870_v15 = vld [vmem:[#allocation3 + $0x94] sm:$0x1]  ;;  %v13954_v21 = vld [vmem:[#allocation3 + $0x2c] sm:$0x1] }
 0x230   : > { %v5835_v44 = vshll.u32 %v14857_v0, 16  ;;  %v11098_v62 = vcombine.low %v14759_v13, %v14761_v14  ;;  %v5843_v16 = vshll.u32 %v5735_v54, 16  ;;  %v5832_v6 = vor.u32 %v5831_v37, %v5828_v43 }
 0x231   : > { %12256 = vmatmul.mubr.bf16.gmra.mrb[44].mxu0 %v11086_v1  ;;  %v5768_v51 = vsel %vm14735_vm8, %v5763_v58, %v5767_v33  ;;  %v5812_v1 = vshrl.u32 %v5731_v26, 16  ;;  %v5805_v32 = vrot.slane %v5804_v12, 4  ;;  %v5815_v33 = vshll.u32 %v5731_v26, 16  ;;  %v13706_v12 = vld [vmem:[#allocation8 + $0x390] sm:$0xff]  }
 0x232   : > { %12275 = vmatprep.mubr.bf16.mxu0 %v11095_v56  ;;  %v5809_v56 = vrot.slane %v5807_v3, 5  ;;  %v11351_v46 = vcombine.low %v5768_v51, %v5782_v10  ;;  %v5796_v38 = vsel %vm14735_vm8, %v5791_v27, %v5795_v7  ;;  %v5837_v58 = vrot.slane %v5835_v44, 5  ;;  %v5737_v3 = vld [vmem:[#allocation3 + $0x90] sm:$0xf] }
 0x233   : > { %v5814_v53 = vrot.slane %v5812_v1, 4  ;;  %v5817_v49 = vrot.slane %v5815_v33, 5  ;;  %v5849_v51 = vshll.u32 %v14868_v34, 16  ;;  %v5854_v7 = vshrl.u32 %v5737_v3, 16  ;;  %v5741_v44 = vld [vmem:[#allocation3 + $0xb0] sm:$0xf] }
 0x234   : > { %12659 = vmatprep.mubr.bf16.mxu1 %v11351_v46  ;;  %v5810_v47 = vsel %vm14735_vm8, %v5805_v32, %v5809_v56  ;;  %v5857_v56 = vshll.u32 %v5737_v3, 16  ;;  %v5863_v10 = vshll.u32 %v14870_v15, 16  ;;  %v5845_v26 = vrot.slane %v5843_v16, 5 }
 0x235   : > { %v5818_v4 = vor.u32 %v5817_v49, %v5814_v53  ;;  %v5851_v46 = vrot.slane %v5849_v51, 5  ;;  %v5833_v27 = vrot.slane %v5832_v6, 4  ;;  %v5856_v30 = vrot.slane %v5854_v7, 4  ;;  %v5739_v53 = vld [vmem:[#allocation3 + $0xa8] sm:$0xf]  ;;  %v13712_v7 = vld [vmem:[#allocation8 + $0x3a0] sm:$0xff]  }
 0x236   : > { %v5859_v1 = vrot.slane %v5857_v56, 5  ;;  %v5865_v32 = vrot.slane %v5863_v10, 5  ;;  %v11099_v36 = vcombine.low %v14771_v18, %v14773_v24  ;;  %v11101_v49 = vcombine.low %v14796_v59, %v14800_v63  ;;  %v14887_v18 = vld [vmem:[#allocation3 + $0xb4] sm:$0x1]  ;;  %v5743_v6 = vld [vmem:[#allocation3 + $0xb8] sm:$0xf] }
 0x237   : > { %v5819_v13 = vrot.slane %v5818_v4, 4  ;;  %v5868_v24 = vshrl.u32 %v5739_v53, 16  ;;  %v5885_v3 = vshll.u32 %v5741_v44, 16 }
 0x239   : > { %12276 = vmatmul.mubr.bf16.vlgmr.msra.gmra.mrb[32].mxu0 %v11096_v19  ;;  %v11352_v19 = vcombine.low %v5796_v38, %v5810_v47  ;;  %v5824_v33 = vsel %vm14735_vm8, %v5819_v13, %v5823_v50  ;;  %v13708_v38 = vld [vmem:[#allocation8 + $0x398] sm:$0xff]   ;;  %v11100_v47 = vcombine.low %v14783_v17, %v14785_v22  ;;  %v5870_v22 = vrot.slane %v5868_v24, 4 }
 0x23a   : > { %12292 = vmatpush3.bf16.msra.mxu0 %v14817_v41  ;;  %12279 = vmatprep.mubr.bf16.mxu0 %v11097_v23  ;;  %v5840_v41 = vshrl.u32 %v5735_v54, 16  ;;  %v13707_v23 = vld [vmem:[#allocation8 + $0x98] sm:$0xff]   ;;  %v5871_v54 = vshll.u32 %v5739_v53, 16  ;;  %v5887_v51 = vrot.slane %v5885_v3, 5 }
 0x23b   : > { %12293 = vmatprep.subr.bf16.mxu0 %v13701_v9  ;;  %12660 = vmatmul.mubr.bf16.vlgmr.msra.gmra.mrb[0].mxu1 %v11352_v19  ;;  %v13711_v19 = vld [vmem:[#allocation8 + $0xa0] sm:$0xff]  }
 0x23c   : > { %12676 = vmatpush3.bf16.msra.mxu1 %v14809_v40  ;;  %v5842_v14 = vrot.slane %v5840_v41, 4  ;;  %v5838_v40 = vsel %vm14735_vm8, %v5833_v27, %v5837_v58  ;;  %v5877_v58 = vshll.u32 %v14881_v39, 16 }
 0x23d   : > { %12677 = vmatprep.subr.bf16.mxu1 %v13702_v45  ;;  %v11353_v50 = vcombine.low %v5824_v33, %v5838_v40 }
 0x23e   : > { %12294 = vmatpush3.bf16.msra.mxu0 %v13701_v9  ;;  %v5846_v35 = vor.u32 %v5845_v26, %v5842_v14  ;;  %v5860_v9 = vor.u32 %v5859_v1, %v5856_v30  ;;  %v5879_v41 = vrot.slane %v5877_v58, 5  ;;  %v14895_v14 = vld [vmem:[#allocation3 + $0xbc] sm:$0x1]  ;;  %v5745_v26 = vld [vmem:[#allocation3 + $0xc0] sm:$0xf]  ;;  %v5899_v1 = vshll.u32 %v5743_v6, 16 }
 0x23f   : > { %12295 = vmatprep.subr.bf16.mxu0 %v13705_v52  ;;  %12663 = vmatprep.mubr.bf16.mxu1 %v11353_v50  ;;  %v14897_v30 = vld [vmem:[#allocation3 + $0xc4] sm:$0x1]  ;;  %v5910_v33 = vshrl.u32 %v5745_v26, 16  ;;  %v14903_v58 = vld [vmem:[#allocation8 + $0xb0] sm:$0xff]  }
 0x240   : > { %12678 = vmatpush3.bf16.msra.mxu1 %v13702_v45  ;;  %v5847_v43 = vrot.slane %v5846_v35, 4  ;;  %v5861_v37 = vrot.slane %v5860_v9, 4  ;;  %v5873_v45 = vrot.slane %v5871_v54, 5  ;;  %v13713_v35 = vld [vmem:[#allocation8 + $0xa8] sm:$0xff]   ;;  %v5919_v40 = vshll.u32 %v14897_v30, 16 }
 0x241   : > { %12280 = vmatmul.mubr.bf16.gmra.mrb[36].mxu0 %v11098_v62  ;;  %12679 = vmatprep.subr.bf16.mxu1 %v13706_v12  ;;  %v5882_v62 = vshrl.u32 %v5741_v44, 16  ;;  %v5901_v53 = vrot.slane %v5899_v1, 5  ;;  %v5912_v50 = vrot.slane %v5910_v33, 4  ;;  %v13719_v33 = vld [vmem:[#allocation8 + $0xb8] sm:$0xff]  }
 0x242   : > { %12296 = vmatpush3.bf16.msra.mxu0 %v13705_v52  ;;  %v5852_v17 = vsel %vm14735_vm8, %v5847_v43, %v5851_v46  ;;  %12283 = vmatprep.mubr.bf16.mxu0 %v11099_v36  ;;  %v5891_v52 = vshll.u32 %v14887_v18, 16  ;;  %v5866_v4 = vsel %vm14735_vm8, %v5861_v37, %v5865_v32  ;;  %v5874_v10 = vor.u32 %v5873_v45, %v5870_v22  ;;  %v13714_v43 = vld [vmem:[#allocation8 + $0x3a8] sm:$0xff]   ;;  %v14912_v45 = vld [vmem:[#allocation3 + $0xd4] sm:$0x1] }
 0x243   : > { %12297 = vmatprep.subr.bf16.mxu0 %v13707_v23  ;;  %v5884_v16 = vrot.slane %v5882_v62, 4  ;;  %v11354_v56 = vcombine.low %v5852_v17, %v5866_v4  ;;  %v5896_v46 = vshrl.u32 %v5743_v6, 16  ;;  %v5905_v32 = vshll.u32 %v14895_v14, 16 }
 0x244   : > { %12680 = vmatpush3.bf16.msra.mxu1 %v13706_v12  ;;  %v5893_v13 = vrot.slane %v5891_v52, 5  ;;  %v5875_v36 = vrot.slane %v5874_v10, 4  ;;  %v5921_v37 = vrot.slane %v5919_v40, 5  ;;  %v11102_v52 = vcombine.low %v14811_v29, %v14813_v31  ;;  %v5751_v31 = vld [vmem:[#allocation3 + $0xd8] sm:$0xf] }
 0x245   : > { %12681 = vmatprep.subr.bf16.mxu1 %v13708_v38  ;;  %v5888_v27 = vor.u32 %v5887_v51, %v5884_v16  ;;  %12664 = vmatmul.mubr.bf16.gmra.mrb[4].mxu1 %v11354_v56  ;;  %v5898_v12 = vrot.slane %v5896_v46, 4  ;;  %v5907_v44 = vrot.slane %v5905_v32, 5  ;;  %v5947_v59 = vshll.u32 %v14912_v45, 16  ;;  %v14923_v32 = vld [vmem:[#allocation3 + $0xdc] sm:$0x1] }
 0x246   : > { %12298 = vmatpush3.bf16.msra.mxu0 %v13707_v23  ;;  %v5913_v23 = vshll.u32 %v5745_v26, 16  ;;  %v5880_v24 = vsel %vm14735_vm8, %v5875_v36, %v5879_v41  ;;  %v13718_v26 = vld [vmem:[#allocation8 + $0x3b0] sm:$0xff]   ;;  %v5952_v40 = vshrl.u32 %v5751_v31, 16 }
 0x247   : > { %12299 = vmatprep.subr.bf16.mxu0 %v13711_v19  ;;  %v5889_v9 = vrot.slane %v5888_v27, 4  ;;  %v5902_v3 = vor.u32 %v5901_v53, %v5898_v12 }
 0x248   : > { %12682 = vmatpush3.bf16.msra.mxu1 %v13708_v38  ;;  %v5915_v54 = vrot.slane %v5913_v23, 5  ;;  %v14910_v38 = vld [vmem:[#allocation3 + $0xcc] sm:$0x1]  ;;  %v14925_v23 = vld [vmem:[#allocation3 + $0xe4] sm:$0x1] }
 0x249   : > { %12284 = vmatmul.mubr.bf16.gmra.mrb[40].mxu0 %v11100_v47  ;;  %v5894_v62 = vsel %vm14735_vm8, %v5889_v9, %v5893_v13  ;;  %12683 = vmatprep.subr.bf16.mxu1 %v13712_v7  ;;  %v5747_v47 = vld [vmem:[#allocation3 + $0xc8] sm:$0xf]  ;;  %v5903_v4 = vrot.slane %v5902_v3, 4  ;;  %v5933_v51 = vshll.u32 %v14910_v38, 16  ;;  %v5955_v9 = vshll.u32 %v5751_v31, 16 }
 0x24a   : > { %12300 = vmatpush3.bf16.msra.mxu0 %v13711_v19  ;;  %v11355_v17 = vcombine.low %v5880_v24, %v5894_v62  ;;  %v5916_v22 = vor.u32 %v5915_v54, %v5912_v50  ;;  %12287 = vmatprep.mubr.bf16.mxu0 %v11101_v49  ;;  %v5749_v19 = vld [vmem:[#allocation3 + $0xd0] sm:$0xf]  ;;  %v5924_v41 = vshrl.u32 %v5747_v47, 16  ;;  %v5927_v16 = vshll.u32 %v5747_v47, 16  ;;  %v13720_v54 = vld [vmem:[#allocation8 + $0x3b8] sm:$0xff]  }
 0x24b   : > { %12301 = vmatprep.subr.bf16.mxu0 %v13713_v35  ;;  %v5938_v56 = vshrl.u32 %v5749_v19, 16  ;;  %v5941_v10 = vshll.u32 %v5749_v19, 16  ;;  %v5908_v63 = vsel %vm14735_vm8, %v5903_v4, %v5907_v44  ;;  %v5935_v29 = vrot.slane %v5933_v51, 5  ;;  %v6189_v31 = vld [vmem:[#allocation3 + $0x58] sm:$0xe] }
 0x24c   : > { %12667 = vmatprep.mubr.bf16.mxu1 %v11355_v17  ;;  %v5917_v6 = vrot.slane %v5916_v22, 4  ;;  %12684 = vmatpush3.bf16.msra.mxu1 %v13712_v7  ;;  %v5926_v49 = vrot.slane %v5924_v41, 4  ;;  %v5929_v13 = vrot.slane %v5927_v16, 5  ;;  %v5949_v7 = vrot.slane %v5947_v59, 5  ;;  %v14929_v17 = vld [vmem:[#allocation8 + $0xc0] sm:$0xff]  }
 0x24d   : > { %12685 = vmatprep.subr.bf16.mxu1 %v13714_v43  ;;  %v5940_v27 = vrot.slane %v5938_v56, 4  ;;  %v5943_v1 = vrot.slane %v5941_v10, 5  ;;  %v5961_v44 = vshll.u32 %v14923_v32, 16  ;;  %v5954_v62 = vrot.slane %v5952_v40, 4  ;;  %v2064_v59 = vld [vmem:[#allocation3 + $0x8] sm:$0xe] }
 0x24e   : > { %12302 = vmatpush3.bf16.msra.mxu0 %v13713_v35  ;;  %v5922_v46 = vsel %vm14735_vm8, %v5917_v6, %v5921_v37  ;;  %v5930_v12 = vor.u32 %v5929_v13, %v5926_v49  ;;  %v5753_v35 = vld [vmem:[#allocation3 + $0xe0] sm:$0xf]  ;;  %v5957_v3 = vrot.slane %v5955_v9, 5  ;;  %v5975_v47 = vshll.u32 %v14925_v23, 16  ;;  %v2065_v40 = vld [vmem:[#allocation3 + $0x10] sm:$0xe] }
 0x24f   : > { %12303 = vmatprep.subr.bf16.mxu0 %v14903_v58  ;;  %v11356_v36 = vcombine.low %v5908_v63, %v5922_v46  ;;  %v5944_v53 = vor.u32 %v5943_v1, %v5940_v27  ;;  %v5966_v50 = vshrl.u32 %v5753_v35, 16  ;;  %v5969_v24 = vshll.u32 %v5753_v35, 16  ;;  %v14943_v46 = vld [vmem:[#allocation8 + $0x3c0] sm:$0xff]   ;;  %v2066_v9 = vld [vmem:[#allocation3 + $0x18] sm:$0xe] }
 0x250   : > { %12686 = vmatpush3.bf16.msra.mxu1 %v13714_v43  ;;  %v5931_v37 = vrot.slane %v5930_v12, 4  ;;  %v5963_v19 = vrot.slane %v5961_v44, 5  ;;  %v5958_v41 = vor.u32 %v5957_v3, %v5954_v62  ;;  %v5977_v16 = vrot.slane %v5975_v47, 5  ;;  %v6190_v1 = vld [vmem:[#allocation3 + $0x60] sm:$0xe]  ;;  %v13723_v47 = vld [vmem:[#allocation8 + $0xc8] sm:$0xff]  }
 0x251   : > { %12288 = vmatmul.mubr.bf16.gmra.mrb[44].mxu0 %v11102_v52  ;;  %12668 = vmatmul.mubr.bf16.gmra.mrb[8].mxu1 %v11356_v36  ;;  %v5945_v22 = vrot.slane %v5944_v53, 4  ;;  %v5968_v52 = vrot.slane %v5966_v50, 4  ;;  %v5971_v4 = vrot.slane %v5969_v24, 5  ;;  %v6239_v6 = vrot.slane %v14830_v8, 5  ;;  %v6192_v50 = vld [vmem:[#allocation3 + $0x70] sm:$0xe] }
 0x252   : > { %12687 = vmatprep.subr.bf16.mxu1 %v13718_v26  ;;  %12304 = vmatpush3.bf16.msra.mxu0 %v14903_v58  ;;  %v5936_v43 = vsel %vm14735_vm8, %v5931_v37, %v5935_v29  ;;  %v2063_v58 = vld [vmem:[#allocation3] sm:$0xe]  ;;  %v5959_v49 = vrot.slane %v5958_v41, 4  ;;  %v11112_v29 = vrot.slane %v2064_v59, 9  ;;  %v11367_v36 = vrot.slane %v6189_v31, 9 }
 0x253   : > { %12305 = vmatprep.subr.bf16.mxu0 %v13719_v33  ;;  %v5950_v56 = vsel %vm14735_vm8, %v5945_v22, %v5949_v7  ;;  %v5972_v10 = vor.u32 %v5971_v4, %v5968_v52  ;;  %v11111_v13 = vrot.slane %v2063_v58, 9  ;;  %v6243_v8 = vrot.slane %v14834_v61, 5  ;;  %v2067_v52 = vld [vmem:[#allocation3 + $0x20] sm:$0xe]  ;;  %v2068_v4 = vld [vmem:[#allocation3 + $0x28] sm:$0xe] }
 0x254   : > { %12688 = vmatpush3.bf16.msra.mxu1 %v13718_v26  ;;  %v11357_v63 = vcombine.low %v5936_v43, %v5950_v56  ;;  %v6247_v7 = vrot.slane %v14840_v42, 5  ;;  %v5964_v26 = vsel %vm14735_vm8, %v5959_v49, %v5963_v19  ;;  %v11368_v35 = vrot.slane %v6190_v1, 9  ;;  %v13953_v43 = vld [vmem:[#allocation3 + $0x24] sm:$0x1]  ;;  %v13724_v49 = vld [vmem:[#allocation8 + $0x3c8] sm:$0xff]  }
 0x255   : > { %12689 = vmatprep.subr.bf16.mxu1 %v13720_v54  ;;  %v5973_v27 = vrot.slane %v5972_v10, 4  ;;  %v2117_v12 = vsel %vm14936_vm11, %v11111_v13, %v2116_v55  ;;  %v6240_v28 = vsel %vm14936_vm11, %v11367_v36, %v6239_v6  ;;  %v11113_v53 = vrot.slane %v2065_v40, 9  ;;  %v6193_v6 = vld [vmem:[#allocation3 + $0x78] sm:$0xe]  ;;  %v6194_v10 = vld [vmem:[#allocation3 + $0x80] sm:$0xe] }
 0x256   : > { %12306 = vmatpush3.bf16.msra.mxu0 %v13719_v33  ;;  %12671 = vmatprep.mubr.bf16.mxu1 %v11357_v63  ;;  %v2121_v33 = vsel %vm14936_vm11, %v11112_v29, %v2120_v11  ;;  %v6244_v2 = vsel %vm14936_vm11, %v11368_v35, %v6243_v8  ;;  %v11114_v44 = vrot.slane %v2066_v9, 9  ;;  %v6191_v11 = vld [vmem:[#allocation3 + $0x68] sm:$0xe]  ;;  %v6251_v24 = vrot.slane %v14844_v48, 5  ;;  %v2069_v31 = vld [vmem:[#allocation3 + $0x30] sm:$0xe] }
 0x257   : > { %12323 = vmatprep.subr.bf16.mxu0 %v14929_v17  ;;  %v5978_v61 = vsel %vm14735_vm8, %v5973_v27, %v5977_v16  ;;  %v11127_v42 = vcombine.low %v2117_v12, %v2121_v33  ;;  %v11383_v37 = vcombine.low %v6240_v28, %v6244_v2  ;;  %v11369_v62 = vrot.slane %v6191_v11, 9  ;;  %v2070_v27 = vld [vmem:[#allocation3 + $0x38] sm:$0xe]  ;;  %v13955_v1 = vld [vmem:[#allocation3 + $0x34] sm:$0x1] }
 0x258   : > { %12690 = vmatpush3.bf16.msra.mxu1 %v13720_v54  ;;  %v11358_v55 = vcombine.low %v5964_v26, %v5978_v61  ;;  %v2125_v54 = vsel %vm14936_vm11, %v11113_v53, %v2124_v5  ;;  %v11370_v3 = vrot.slane %v6192_v50, 9  ;;  %v2129_v22 = vsel %vm14936_vm11, %v11114_v44, %v2128_v60  ;;  %v13725_v26 = vld [vmem:[#allocation8 + $0xd0] sm:$0xff]   ;;  %v13956_v33 = vld [vmem:[#allocation3 + $0x3c] sm:$0x1]  ;;  %v6195_v40 = vld [vmem:[#allocation3 + $0x88] sm:$0xe] }
 0x259   : > { %12707 = vmatprep.subr.bf16.mxu1 %v14943_v46  ;;  %12307 = vmatprep.mubr.bf16.mxu0 %v11127_v42  ;;  %v11128_v48 = vcombine.low %v2125_v54, %v2129_v22  ;;  %v6248_v19 = vsel %vm14936_vm11, %v11369_v62, %v6247_v7  ;;  %v11115_v5 = vrot.slane %v2067_v52, 9  ;;  %v2132_v41 = vrot.slane %v13953_v43, 5  ;;  %v6196_v9 = vld [vmem:[#allocation3 + $0x90] sm:$0xe]  ;;  %v13727_v2 = vld [vmem:[#allocation8 + $0xd8] sm:$0xff]  }
 0x25a   : > { %12672 = vmatmul.mubr.bf16.gmra.mrb[12].mxu1 %v11358_v55  ;;  %v6252_v20 = vsel %vm14936_vm11, %v11370_v3, %v6251_v24  ;;  %v11116_v16 = vrot.slane %v2068_v4, 9  ;;  %v2136_v56 = vrot.slane %v13954_v21, 5  ;;  %v11371_v60 = vrot.slane %v6193_v6, 9  ;;  %v13726_v50 = vld [vmem:[#allocation8 + $0x3d0] sm:$0xff]   ;;  %v13728_v43 = vld [vmem:[#allocation8 + $0x3d8] sm:$0xff]  }
 0x25b   : > { %12691 = vmatprep.mubr.bf16.mxu1 %v11383_v37  ;;  %12308 = vmatmul.mubr.bf16.vlgmr.msra.gmra.mrb[32].mxu0 %v11128_v48  ;;  %v6255_v58 = vrot.slane %v14855_v57, 5  ;;  %v6259_v59 = vrot.slane %v14857_v0, 5  ;;  %v11384_v63 = vcombine.low %v6248_v19, %v6252_v20  ;;  %v2133_v13 = vsel %vm14936_vm11, %v11115_v5, %v2132_v41  ;;  %v13957_v24 = vld [vmem:[#allocation3 + $0x54] sm:$0x1]  ;;  %v2071_v62 = vld [vmem:[#allocation3 + $0x50] sm:$0xe] }
 0x25c   : > { %12324 = vmatpush3.bf16.msra.mxu0 %v14929_v17  ;;  %v11372_v29 = vrot.slane %v6194_v10, 9  ;;  %v2140_v36 = vrot.slane %v13955_v1, 5  ;;  %v2137_v8 = vsel %vm14936_vm11, %v11116_v16, %v2136_v56  ;;  %v11117_v0 = vrot.slane %v2069_v31, 9  ;;  %v13958_v48 = vld [vmem:[#allocation3 + $0x5c] sm:$0x1] }
 0x25d   : > { %12325 = vmatprep.subr.bf16.mxu0 %v13723_v47  ;;  %v6256_v57 = vsel %vm14936_vm11, %v11371_v60, %v6255_v58  ;;  %v11118_v7 = vrot.slane %v2070_v27, 9  ;;  %v11129_v17 = vcombine.low %v2133_v13, %v2137_v8  ;;  %v2144_v35 = vrot.slane %v13956_v33, 5  ;;  %v6197_v19 = vld [vmem:[#allocation3 + $0xa8] sm:$0xe]  ;;  %v2073_v21 = vld [vmem:[#allocation3 + $0x60] sm:$0xe] }
 0x25e   : > { %v6260_v12 = vsel %vm14936_vm11, %v11372_v29, %v6259_v59  ;;  %v6263_v61 = vrot.slane %v14868_v34, 5  ;;  %v2141_v28 = vsel %vm14936_vm11, %v11117_v0, %v2140_v36  ;;  %v11373_v53 = vrot.slane %v6195_v40, 9  ;;  %v2074_v56 = vld [vmem:[#allocation3 + $0x68] sm:$0xe]  ;;  %v13959_v58 = vld [vmem:[#allocation3 + $0x64] sm:$0x1] }
 0x25f   : > { %v11385_v42 = vcombine.low %v6256_v57, %v6260_v12  ;;  %v11374_v55 = vrot.slane %v6196_v9, 9  ;;  %v2145_v44 = vsel %vm14936_vm11, %v11118_v7, %v2144_v35  ;;  %v6267_v11 = vrot.slane %v14870_v15, 5  ;;  %12311 = vmatprep.mubr.bf16.mxu0 %v11129_v17  ;;  %v13960_v31 = vld [vmem:[#allocation3 + $0x6c] sm:$0x1]  ;;  %v6200_v1 = vld [vmem:[#allocation3 + $0xc0] sm:$0xe] }
 0x260   : > { %12326 = vmatpush3.bf16.msra.mxu0 %v13723_v47  ;;  %v2148_v37 = vrot.slane %v13957_v24, 5  ;;  %v11130_v34 = vcombine.low %v2141_v28, %v2145_v44  ;;  %v6264_v54 = vsel %vm14936_vm11, %v11373_v53, %v6263_v61  ;;  %v2072_v47 = vld [vmem:[#allocation3 + $0x58] sm:$0xe]  ;;  %v11119_v22 = vrot.slane %v2071_v62, 9  ;;  %v13731_v7 = vld [vmem:[#allocation8 + $0xe8] sm:$0xff]   ;;  %v13730_v9 = vld [vmem:[#allocation8 + $0x3e0] sm:$0xff]  }
 0x261   : > { %v6268_v3 = vsel %vm14936_vm11, %v11374_v55, %v6267_v11  ;;  %v2152_v15 = vrot.slane %v13958_v48, 5  ;;  %12327 = vmatprep.subr.bf16.mxu0 %v13725_v26  ;;  %v11120_v20 = vrot.slane %v2072_v47, 9  ;;  %v11375_v52 = vrot.slane %v6197_v19, 9  ;;  %v2075_v40 = vld [vmem:[#allocation3 + $0x70] sm:$0xe]  ;;  %v13732_v47 = vld [vmem:[#allocation8 + $0x3e8] sm:$0xff]  }
 0x262   : > { %12692 = vmatmul.mubr.bf16.vlgmr.msra.gmra.mrb[0].mxu1 %v11384_v63  ;;  %v6271_v4 = vrot.slane %v14881_v39, 5  ;;  %v11386_v5 = vcombine.low %v6264_v54, %v6268_v3  ;;  %v2149_v41 = vsel %vm14936_vm11, %v11119_v22, %v2148_v37  ;;  %v6275_v6 = vrot.slane %v14887_v18, 5  ;;  %v13729_v63 = vld [vmem:[#allocation8 + $0xe0] sm:$0xff]   ;;  %v2076_v61 = vld [vmem:[#allocation3 + $0x78] sm:$0xe] }
 0x263   : > { %12708 = vmatpush3.bf16.msra.mxu1 %v14943_v46  ;;  %12695 = vmatprep.mubr.bf16.mxu1 %v11385_v42  ;;  %v6198_v46 = vld [vmem:[#allocation3 + $0xb0] sm:$0xe]  ;;  %v2153_v10 = vsel %vm14936_vm11, %v11120_v20, %v2152_v15  ;;  %v11121_v39 = vrot.slane %v2073_v21, 9  ;;  %v2156_v59 = vrot.slane %v13959_v58, 5  ;;  %v11122_v18 = vrot.slane %v2074_v56, 9 }
 0x264   : > { %12709 = vmatprep.subr.bf16.mxu1 %v13724_v49  ;;  %12312 = vmatmul.mubr.bf16.gmra.mrb[36].mxu0 %v11130_v34  ;;  %v11376_v16 = vrot.slane %v6198_v46, 9  ;;  %v6272_v60 = vsel %vm14936_vm11, %v11375_v52, %v6271_v4  ;;  %v11131_v13 = vcombine.low %v2149_v41, %v2153_v10  ;;  %v2160_v27 = vrot.slane %v13960_v31, 5  ;;  %v13961_v28 = vld [vmem:[#allocation3 + $0x74] sm:$0x1]  ;;  %v13962_v55 = vld [vmem:[#allocation3 + $0x7c] sm:$0x1] }
 0x265   : > { %12328 = vmatpush3.bf16.msra.mxu0 %v13725_v26  ;;  %v2157_v8 = vsel %vm14936_vm11, %v11121_v39, %v2156_v59  ;;  %v6279_v0 = vrot.slane %v14895_v14, 5  ;;  %v11378_v17 = vrot.slane %v6200_v1, 9  ;;  %v6283_v12 = vrot.slane %v14897_v30, 5  ;;  %v6201_v11 = vld [vmem:[#allocation3 + $0xc8] sm:$0xe]  ;;  %v13736_v31 = vld [vmem:[#allocation8 + $0x3f8] sm:$0xff]  }
 0x266   : > { %12329 = vmatprep.subr.bf16.mxu0 %v13727_v2  ;;  %v6276_v29 = vsel %vm14936_vm11, %v11376_v16, %v6275_v6  ;;  %v2161_v26 = vsel %vm14936_vm11, %v11122_v18, %v2160_v27  ;;  %12315 = vmatprep.mubr.bf16.mxu0 %v11131_v13  ;;  %v11123_v42 = vrot.slane %v2075_v40, 9  ;;  %v2164_v53 = vrot.slane %v13961_v28, 5  ;;  %v2077_v3 = vld [vmem:[#allocation3 + $0x80] sm:$0xe]  ;;  %v2078_v48 = vld [vmem:[#allocation3 + $0x88] sm:$0xe] }
 0x267   : > { %12710 = vmatpush3.bf16.msra.mxu1 %v13724_v49  ;;  %v6199_v49 = vld [vmem:[#allocation3 + $0xb8] sm:$0xe]  ;;  %v11387_v36 = vcombine.low %v6272_v60, %v6276_v29  ;;  %v11132_v33 = vcombine.low %v2157_v8, %v2161_v26  ;;  %v6284_v14 = vsel %vm14936_vm11, %v11378_v17, %v6283_v12  ;;  %v11124_v44 = vrot.slane %v2076_v61, 9  ;;  %v13963_v19 = vld [vmem:[#allocation3 + $0x84] sm:$0x1]  ;;  %v13748_v17 = vld [vmem:[#allocation8 + $0x110] sm:$0xff]  }
 0x268   : > { %12711 = vmatprep.subr.bf16.mxu1 %v13726_v50  ;;  %v11377_v57 = vrot.slane %v6199_v49, 9  ;;  %v6287_v24 = vrot.slane %v14910_v38, 5  ;;  %v2165_v37 = vsel %vm14936_vm11, %v11123_v42, %v2164_v53  ;;  %v11379_v34 = vrot.slane %v6201_v11, 9  ;;  %v13964_v38 = vld [vmem:[#allocation3 + $0x8c] sm:$0x1]  ;;  %v13735_v60 = vld [vmem:[#allocation8 + $0xf8] sm:$0xff]  }
 0x269   : > { %12330 = vmatpush3.bf16.msra.mxu0 %v13727_v2  ;;  %v2168_v2 = vrot.slane %v13962_v55, 5  ;;  %v6291_v62 = vrot.slane %v14912_v45, 5  ;;  %v11125_v15 = vrot.slane %v2077_v3, 9  ;;  %v2172_v20 = vrot.slane %v13963_v19, 5  ;;  %v6203_v6 = vld [vmem:[#allocation3 + $0xd8] sm:$0xe] }
 0x26a   : > { %12696 = vmatmul.mubr.bf16.gmra.mrb[4].mxu1 %v11386_v5  ;;  %v6280_v35 = vsel %vm14936_vm11, %v11377_v57, %v6279_v0  ;;  %12331 = vmatprep.subr.bf16.mxu0 %v13729_v63  ;;  %v2176_v46 = vrot.slane %v13964_v38, 5  ;;  %v6288_v4 = vsel %vm14936_vm11, %v11379_v34, %v6287_v24  ;;  %v11126_v5 = vrot.slane %v2078_v48, 9  ;;  %v6204_v21 = vld [vmem:[#allocation3 + $0xe0] sm:$0xe]  ;;  %v13745_v8 = vld [vmem:[#allocation3 + $0x28] ss:$8 sps:$4 sm:$0xff]  }
 0x26b   : > { %12712 = vmatpush3.bf16.msra.mxu1 %v13726_v50  ;;  %12699 = vmatprep.mubr.bf16.mxu1 %v11387_v36  ;;  %v11388_v30 = vcombine.low %v6280_v35, %v6284_v14  ;;  %v6202_v50 = vld [vmem:[#allocation3 + $0xd0] sm:$0xe]  ;;  %v2169_v22 = vsel %vm14936_vm11, %v11124_v44, %v2168_v2  ;;  %v2173_v16 = vsel %vm14936_vm11, %v11125_v15, %v2172_v20  ;;  %v6295_v56 = vrot.slane %v14923_v32, 5  ;;  %v13740_v27 = vld [vmem:[#allocation8 + $0x100] sm:$0xff]   ;;  %v13743_v36 = vld [vmem:[#allocation8 + $0x108] sm:$0xff]  }
 0x26c   : > { %12713 = vmatprep.subr.bf16.mxu1 %v13728_v43  ;;  %12316 = vmatmul.mubr.bf16.gmra.mrb[40].mxu0 %v11132_v33  ;;  %v11380_v54 = vrot.slane %v6202_v50, 9  ;;  %v11133_v52 = vcombine.low %v2165_v37, %v2169_v22  ;;  %v6299_v10 = vrot.slane %v14925_v23, 5  ;;  %v2177_v39 = vsel %vm14936_vm11, %v11126_v5, %v2176_v46  ;;  %v13737_v23 = vld [vmem:[#allocation3 + $0x8] ss:$8 sps:$4 sm:$0xff]   ;;  %v13739_v1 = vld [vmem:[#allocation3 + $0x18] ss:$8 sps:$4 sm:$0xff]  }
 0x26d   : > { %12332 = vmatpush3.bf16.msra.mxu0 %v13729_v63  ;;  %v11381_v58 = vrot.slane %v6203_v6, 9  ;;  %v11382_v59 = vrot.slane %v6204_v21, 9  ;;  %v13734_v63 = vld [vmem:[#allocation8 + $0x3f0] sm:$0xff]   ;;  %v11134_v13 = vcombine.low %v2173_v16, %v2177_v39  ;;  %v13738_v49 = vld [vmem:[#allocation3 + $0x60] ss:$8 sps:$4 sm:$0xff]   ;;  %v13751_v33 = vld [vmem:[#allocation8 + $0x118] sm:$0xff]  }
 0x26e   : > { %12333 = vmatprep.subr.bf16.mxu0 %v13731_v7  ;;  %v6292_v45 = vsel %vm14936_vm11, %v11380_v54, %v6291_v62  ;;  %12319 = vmatprep.mubr.bf16.mxu0 %v11133_v52  ;;  %v13742_v57 = vld [vmem:[#allocation8 + $0x400] sm:$0xff]   ;;  %v13741_v0 = vld [vmem:[#allocation3 + $0x70] ss:$8 sps:$4 sm:$0xff]   ;;  %v13759_v53 = vld [vmem:[#allocation8 + $0x128] sm:$0xff]  }
 0x26f   : > { %12714 = vmatpush3.bf16.msra.mxu1 %v13728_v43  ;;  %v13733_v43 = vld [vmem:[#allocation8 + $0xf0] sm:$0xff]   ;;  %v11389_v41 = vcombine.low %v6288_v4, %v6292_v45  ;;  %v6296_v29 = vsel %vm14936_vm11, %v11381_v58, %v6295_v56  ;;  %v6300_v32 = vsel %vm14936_vm11, %v11382_v59, %v6299_v10  ;;  %v13746_v26 = vld [vmem:[#allocation3 + $0x80] ss:$8 sps:$4 sm:$0xff]   ;;  %v13767_v34 = vld [vmem:[#allocation8 + $0x138] sm:$0xff]  }
 0x270   : > { %12715 = vmatprep.subr.bf16.mxu1 %v13730_v9  ;;  %v11390_v18 = vcombine.low %v6296_v29, %v6300_v32  ;;  %v13747_v12 = vld [vmem:[#allocation3 + $0x38] ss:$8 sps:$4 sm:$0xff]   ;;  %v13750_v40 = vld [vmem:[#allocation8 + $0x410] sm:$0xff]   ;;  %v13760_v44 = vld [vmem:[#allocation8 + $0x428] sm:$0xff]  }
 0x271   : > { %12334 = vmatpush3.bf16.msra.mxu0 %v13731_v7  ;;  %v13744_v7 = vld [vmem:[#allocation8 + $0x408] sm:$0xff]   ;;  %v13753_v35 = vld [vmem:[#allocation3 + $0x58] ss:$8 sps:$4 sm:$0xff]   ;;  %v13764_v50 = vld [vmem:[#allocation8 + $0x130] sm:$0xff]  }
 0x272   : > { %12700 = vmatmul.mubr.bf16.gmra.mrb[8].mxu1 %v11388_v30  ;;  %12335 = vmatprep.subr.bf16.mxu0 %v13733_v43  ;;  %v13749_v14 = vld [vmem:[#allocation3 + $0x90] ss:$8 sps:$4 sm:$0xff]   ;;  %v13756_v42 = vld [vmem:[#allocation8 + $0x120] sm:$0xff]   ;;  %v2630_v54 = vld [vmem:[#allocation3 + $0x8] sm:$0xf] }
 0x273   : > { %12716 = vmatpush3.bf16.msra.mxu1 %v13730_v9  ;;  %12703 = vmatprep.mubr.bf16.mxu1 %v11389_v41  ;;  %v13752_v9 = vld [vmem:[#allocation8 + $0x418] sm:$0xff]   ;;  %v13755_v28 = vld [vmem:[#allocation3 + $0x68] ss:$8 sps:$4 sm:$0xff]   ;;  %v13758_v2 = vld [vmem:[#allocation8 + $0x420] sm:$0xff]   ;;  %v2663_v48 = vshrl.u32 %v2630_v54, 16  ;;  %v2666_v15 = vshll.u32 %v2630_v54, 16 }
 0x274   : > { %12717 = vmatprep.subr.bf16.mxu1 %v13732_v47  ;;  %12320 = vmatmul.mubr.bf16.gmra.mrb[44].mxu0 %v11134_v13  ;;  %v13754_v61 = vld [vmem:[#allocation3 + $0xb0] ss:$8 sps:$4 sm:$0xff]   ;;  %v13757_v30 = vld [vmem:[#allocation3 + $0xc0] ss:$8 sps:$4 sm:$0xff]   ;;  %v15040_v62 = vld [vmem:[#allocation3 + $0xc] sm:$0x1] }
 0x275   : > { %12336 = vmatpush3.bf16.msra.mxu0 %v13733_v43  ;;  %12339 = vmatprep.mubr.bf16.mxu0 %v13737_v23  ;;  %v13761_v55 = vld [vmem:[#allocation3 + $0x78] ss:$8 sps:$4 sm:$0xff]   ;;  %v13763_v24 = vld [vmem:[#allocation3 + $0x88] ss:$8 sps:$4 sm:$0xff]   ;;  %v15042_v22 = vld [vmem:[#allocation3 + $0x14] sm:$0x1] }
 0x276   : > { %12337 = vmatprep.subr.bf16.mxu0 %v13735_v60  ;;  %v13762_v11 = vld [vmem:[#allocation3 + $0xd0] ss:$8 sps:$4 sm:$0xff]   ;;  %v2672_v19 = vshll.u32 %v15040_v62, 16  ;;  %v2686_v46 = vshll.u32 %v15042_v22, 16  ;;  %v6754_v52 = vld [vmem:[#allocation3 + $0x60] sm:$0xf] }
 0x277   : > { %12718 = vmatpush3.bf16.msra.mxu1 %v13732_v47  ;;  %v13766_v37 = vld [vmem:[#allocation8 + $0x430] sm:$0xff]   ;;  %v13765_v47 = vld [vmem:[#allocation3 + $0xe0] ss:$8 sps:$4 sm:$0xff]   ;;  %v15046_v4 = vld [vmem:[#allocation3 + $0x64] sm:$0x1]  ;;  %v2665_v5 = vrot.slane %v2663_v48, 4 }
 0x278   : > { %12719 = vmatprep.subr.bf16.mxu1 %v13734_v63  ;;  %v2632_v3 = vld [vmem:[#allocation3 + $0x10] sm:$0xf]  ;;  %v13768_v45 = vld [vmem:[#allocation8 + $0x438] sm:$0xff]   ;;  %v2668_v43 = vrot.slane %v2666_v15, 5  ;;  %v2674_v41 = vrot.slane %v2672_v19, 5  ;;  %v2688_v56 = vrot.slane %v2686_v46, 5 }
 0x279   : > { %12338 = vmatpush3.bf16.msra.mxu0 %v13735_v60  ;;  %v2677_v20 = vshrl.u32 %v2632_v3, 16  ;;  %v2680_v38 = vshll.u32 %v2632_v3, 16  ;;  %v6756_v6 = vld [vmem:[#allocation3 + $0x68] sm:$0xf]  ;;  %v15048_v10 = vld [vmem:[#allocation3 + $0x6c] sm:$0x1] }
 0x27a   : > { %12704 = vmatmul.mubr.bf16.gmra.mrb[12].mxu1 %v11390_v18  ;;  %12355 = vmatprep.subr.bf16.mxu0 %v13740_v27  ;;  %v6787_v60 = vshrl.u32 %v6754_v52, 16  ;;  %v6790_v39 = vshll.u32 %v6754_v52, 16  ;;  %v2669_v58 = vor.u32 %v2668_v43, %v2665_v5  ;;  %v6796_v59 = vshll.u32 %v15046_v4, 16  ;;  %v2634_v29 = vld [vmem:[#allocation3 + $0x18] sm:$0xf]  ;;  %v15051_v32 = vld [vmem:[#allocation8 + $0x140] sm:$0xff]  }
 0x27b   : > { %12720 = vmatpush3.bf16.msra.mxu1 %v13734_v63  ;;  %12723 = vmatprep.mubr.bf16.mxu1 %v13738_v49  ;;  %v2679_v16 = vrot.slane %v2677_v20, 4  ;;  %v2682_v21 = vrot.slane %v2680_v38, 5  ;;  %v6801_v63 = vshrl.u32 %v6756_v6, 16  ;;  %v6804_v13 = vshll.u32 %v6756_v6, 16  ;;  %v15054_v49 = vld [vmem:[#allocation3 + $0x1c] sm:$0x1] }
 0x27c   : > { %12721 = vmatprep.subr.bf16.mxu1 %v13736_v31  ;;  %12340 = vmatmul.mubr.bf16.vlgmr.msra.gmra.mrb[32].mxu0 %v13739_v1  ;;  %v6789_v18 = vrot.slane %v6787_v60, 4  ;;  %v2670_v1 = vrot.slane %v2669_v58, 4  ;;  %v6760_v3 = vld [vmem:[#allocation3 + $0x78] sm:$0xf]  ;;  %v15073_v15 = vld [vmem:[#allocation3 + $0x7c] sm:$0x1] }
 0x27d   : > { %12356 = vmatpush3.bf16.msra.mxu0 %v13740_v27  ;;  %12343 = vmatprep.mubr.bf16.mxu0 %v13745_v8  ;;  %v2683_v23 = vor.u32 %v2682_v21, %v2679_v16  ;;  %v6810_v27 = vshll.u32 %v15048_v10, 16  ;;  %v6803_v8 = vrot.slane %v6801_v63, 4  ;;  %v6829_v16 = vshrl.u32 %v6760_v3, 16 }
 0x27e   : > { %12357 = vmatprep.subr.bf16.mxu0 %v13743_v36  ;;  %v6838_v60 = vshll.u32 %v15073_v15, 16 }
 0x27f   : > { %12722 = vmatpush3.bf16.msra.mxu1 %v13736_v31  ;;  %v6792_v31 = vrot.slane %v6790_v39, 5 }
 0x280   : > { %12739 = vmatprep.subr.bf16.mxu1 %v13742_v57 }
 0x281   : > { %12358 = vmatpush3.bf16.msra.mxu0 %v13743_v36  ;;  %v6798_v36 = vrot.slane %v6796_v59, 5  ;;  %v6831_v59 = vrot.slane %v6829_v16, 4 }
 0x282   : > { %12724 = vmatmul.mubr.bf16.vlgmr.msra.gmra.mrb[0].mxu1 %v13741_v0  ;;  %12359 = vmatprep.subr.bf16.mxu0 %v13748_v17  ;;  %v2636_v0 = vld [vmem:[#allocation3 + $0x20] sm:$0xf] }
 0x283   : > { %12740 = vmatpush3.bf16.msra.mxu1 %v13742_v57  ;;  %12727 = vmatprep.mubr.bf16.mxu1 %v13746_v26  ;;  %v6806_v57 = vrot.slane %v6804_v13, 5  ;;  %v6793_v26 = vor.u32 %v6792_v31, %v6789_v18  ;;  %v2638_v18 = vld [vmem:[#allocation3 + $0x28] sm:$0xf] }
 0x284   : > { %12741 = vmatprep.subr.bf16.mxu1 %v13744_v7  ;;  %12344 = vmatmul.mubr.bf16.gmra.mrb[36].mxu0 %v13747_v12  ;;  %v15056_v12 = vld [vmem:[#allocation3 + $0x24] sm:$0x1] }
 0x285   : > { %12360 = vmatpush3.bf16.msra.mxu0 %v13748_v17  ;;  %12347 = vmatprep.mubr.bf16.mxu0 %v13753_v35  ;;  %v6812_v17 = vrot.slane %v6810_v27, 5  ;;  %v15059_v35 = vld [vmem:[#allocation8 + $0x440] sm:$0xff]   ;;  %v2714_v54 = vshll.u32 %v15056_v12, 16  ;;  %v15080_v27 = vld [vmem:[#allocation3 + $0x2c] sm:$0x1] }
 0x286   : > { %12361 = vmatprep.subr.bf16.mxu0 %v13751_v33 }
 0x287   : > { %12742 = vmatpush3.bf16.msra.mxu1 %v13744_v7  ;;  %v2684_v7 = vrot.slane %v2683_v23, 4  ;;  %v2716_v21 = vrot.slane %v2714_v54, 5  ;;  %v6840_v23 = vrot.slane %v6838_v60, 5 }
 0x288   : > { %12743 = vmatprep.subr.bf16.mxu1 %v13750_v40 }
 0x289   : > { %12362 = vmatpush3.bf16.msra.mxu0 %v13751_v33  ;;  %v2691_v33 = vshrl.u32 %v2634_v29, 16 }
 0x28a   : > { %12728 = vmatmul.mubr.bf16.gmra.mrb[4].mxu1 %v13749_v14  ;;  %12363 = vmatprep.subr.bf16.mxu0 %v13756_v42  ;;  %v6807_v14 = vor.u32 %v6806_v57, %v6803_v8 }
 0x28b   : > { %12744 = vmatpush3.bf16.msra.mxu1 %v13750_v40  ;;  %12731 = vmatprep.mubr.bf16.mxu1 %v13754_v61  ;;  %v2675_v40 = vsel %vm14735_vm8, %v2670_v1, %v2674_v41  ;;  %v2700_v61 = vshll.u32 %v15054_v49, 16  ;;  %v2640_v1 = vld [vmem:[#allocation3 + $0x30] sm:$0xf] }
 0x28c   : > { %12745 = vmatprep.subr.bf16.mxu1 %v13752_v9  ;;  %12348 = vmatmul.mubr.bf16.gmra.mrb[40].mxu0 %v13755_v28  ;;  %v6794_v28 = vrot.slane %v6793_v26, 4  ;;  %v2728_v26 = vshll.u32 %v15080_v27, 16 }
 0x28d   : > { %12364 = vmatpush3.bf16.msra.mxu0 %v13756_v42  ;;  %12351 = vmatprep.mubr.bf16.mxu0 %v13761_v55  ;;  %v2689_v42 = vsel %vm14735_vm8, %v2684_v7, %v2688_v56  ;;  %v2705_v55 = vshrl.u32 %v2636_v0, 16  ;;  %v2702_v46 = vrot.slane %v2700_v61, 5  ;;  %v6832_v56 = vshll.u32 %v6760_v3, 16 }
 0x28e   : > { %12365 = vmatprep.subr.bf16.mxu0 %v13759_v53  ;;  %v2722_v7 = vshll.u32 %v2638_v18, 16  ;;  %v2733_v61 = vshrl.u32 %v2640_v1, 16 }
 0x28f   : > { %12746 = vmatpush3.bf16.msra.mxu1 %v13752_v9  ;;  %v2694_v9 = vshll.u32 %v2634_v29, 16  ;;  %v6834_v29 = vrot.slane %v6832_v56, 5 }
 0x290   : > { %12747 = vmatprep.subr.bf16.mxu1 %v13758_v2 }
 0x291   : > { %12366 = vmatpush3.bf16.msra.mxu0 %v13759_v53  ;;  %v2693_v53 = vrot.slane %v2691_v33, 4  ;;  %v6835_v57 = vor.u32 %v6834_v29, %v6831_v59  ;;  %v15104_v29 = vld [vmem:[#allocation3 + $0x44] sm:$0x1] }
 0x292   : > { %12732 = vmatmul.mubr.bf16.gmra.mrb[8].mxu1 %v13757_v30  ;;  %12367 = vmatprep.subr.bf16.mxu0 %v13764_v50  ;;  %v11159_v30 = vcombine.low %v2675_v40, %v2689_v42  ;;  %v15089_v42 = vld [vmem:[#allocation3 + $0x84] sm:$0x1] }
 0x293   : > { %12748 = vmatpush3.bf16.msra.mxu1 %v13758_v2  ;;  %12735 = vmatprep.mubr.bf16.mxu1 %v13762_v11  ;;  %v6758_v2 = vld [vmem:[#allocation3 + $0x70] sm:$0xf]  ;;  %v2696_v11 = vrot.slane %v2694_v9, 5 }
 0x294   : > { %12749 = vmatprep.subr.bf16.mxu1 %v13760_v44  ;;  %12352 = vmatmul.mubr.bf16.gmra.mrb[44].mxu0 %v13763_v24  ;;  %v6799_v24 = vsel %vm14735_vm8, %v6794_v28, %v6798_v36  ;;  %v6815_v19 = vshrl.u32 %v6758_v2, 16  ;;  %v6818_v20 = vshll.u32 %v6758_v2, 16  ;;  %v2719_v36 = vshrl.u32 %v2638_v18, 16  ;;  %v13774_v18 = vld [vmem:[#allocation8 + $0x450] sm:$0xff]  }
 0x295   : > { %12368 = vmatpush3.bf16.msra.mxu0 %v13764_v50  ;;  %v15066_v50 = vld [vmem:[#allocation3 + $0x74] sm:$0x1]  ;;  %12371 = vmatprep.mubr.bf16.mxu0 %v11159_v30  ;;  %v2697_v48 = vor.u32 %v2696_v11, %v2693_v53  ;;  %v6836_v28 = vrot.slane %v6835_v57, 4  ;;  %v2724_v53 = vrot.slane %v2722_v7, 5  ;;  %v2736_v2 = vshll.u32 %v2640_v1, 16  ;;  %v13772_v30 = vld [vmem:[#allocation8 + $0x448] sm:$0xff]  }
 0x296   : > { %12369 = vmatprep.subr.bf16.mxu0 %v13767_v34  ;;  %v6817_v43 = vrot.slane %v6815_v19, 4  ;;  %v6820_v41 = vrot.slane %v6818_v20, 5  ;;  %v2721_v9 = vrot.slane %v2719_v36, 4  ;;  %v6852_v19 = vshll.u32 %v15089_v42, 16  ;;  %v2642_v20 = vld [vmem:[#allocation3 + $0x38] sm:$0xf] }
 0x297   : > { %12750 = vmatpush3.bf16.msra.mxu1 %v13760_v44  ;;  %v6808_v44 = vrot.slane %v6807_v14, 4  ;;  %v2698_v5 = vrot.slane %v2697_v48, 4  ;;  %v13771_v14 = vld [vmem:[#allocation8 + $0x148] sm:$0xff]   ;;  %v6841_v54 = vsel %vm14735_vm8, %v6836_v28, %v6840_v23  ;;  %v2750_v23 = vshll.u32 %v2642_v20, 16  ;;  %v6766_v57 = vld [vmem:[#allocation3 + $0x90] sm:$0xf] }
 0x298   : > { %12751 = vmatprep.subr.bf16.mxu1 %v13766_v37  ;;  %v6821_v39 = vor.u32 %v6820_v41, %v6817_v43  ;;  %v2725_v3 = vor.u32 %v2724_v53, %v2721_v9  ;;  %v15095_v48 = vld [vmem:[#allocation3 + $0x8c] sm:$0x1]  ;;  %v2644_v43 = vld [vmem:[#allocation3 + $0x40] sm:$0xf]  ;;  %v13773_v41 = vld [vmem:[#allocation8 + $0x150] sm:$0xff]  }
 0x299   : > { %12370 = vmatpush3.bf16.msra.mxu0 %v13767_v34  ;;  %v2708_v34 = vshll.u32 %v2636_v0, 16  ;;  %v2703_v63 = vsel %vm14735_vm8, %v2698_v5, %v2702_v46  ;;  %v15084_v0 = vld [vmem:[#allocation3 + $0x34] sm:$0x1]  ;;  %v15098_v5 = vld [vmem:[#allocation3 + $0x3c] sm:$0x1]  ;;  %v2752_v7 = vrot.slane %v2750_v23, 5 }
 0x29a   : > { %12736 = vmatmul.mubr.bf16.gmra.mrb[12].mxu1 %v13765_v47  ;;  %12387 = vmatprep.subr.bf16.mxu0 %v15051_v32  ;;  %v6813_v47 = vsel %vm14735_vm8, %v6808_v44, %v6812_v17  ;;  %v6822_v31 = vrot.slane %v6821_v39, 4  ;;  %v6762_v17 = vld [vmem:[#allocation3 + $0x80] sm:$0xf]  ;;  %v2735_v44 = vrot.slane %v2733_v61, 4  ;;  %v2742_v11 = vshll.u32 %v15084_v0, 16 }
 0x29b   : > { %12752 = vmatpush3.bf16.msra.mxu1 %v13766_v37  ;;  %v2707_v37 = vrot.slane %v2705_v55, 4  ;;  %v11415_v38 = vcombine.low %v6799_v24, %v6813_v47  ;;  %v2710_v52 = vrot.slane %v2708_v34, 5  ;;  %v2730_v55 = vrot.slane %v2728_v26, 5  ;;  %v6764_v24 = vld [vmem:[#allocation3 + $0x88] sm:$0xf] }
 0x29c   : > { %12753 = vmatprep.subr.bf16.mxu1 %v13768_v45  ;;  %v6846_v34 = vshll.u32 %v6762_v17, 16  ;;  %v2738_v47 = vrot.slane %v2736_v2, 5  ;;  %v2744_v46 = vrot.slane %v2742_v11, 5  ;;  %v2726_v16 = vrot.slane %v2725_v3, 4  ;;  %v6768_v53 = vld [vmem:[#allocation3 + $0x98] sm:$0xf] }
 0x29d   : > { %12755 = vmatprep.mubr.bf16.mxu1 %v11415_v38  ;;  %v2711_v6 = vor.u32 %v2710_v52, %v2707_v37  ;;  %v6843_v37 = vshrl.u32 %v6762_v17, 16  ;;  %v6860_v60 = vshll.u32 %v6764_v24, 16  ;;  %v6866_v39 = vshll.u32 %v15095_v48, 16  ;;  %v2648_v23 = vld [vmem:[#allocation3 + $0x60] sm:$0xf] }
 0x29e   : > { %v2731_v59 = vsel %vm14735_vm8, %v2726_v16, %v2730_v55  ;;  %v2756_v26 = vshll.u32 %v15098_v5, 16  ;;  %v2761_v17 = vshrl.u32 %v2644_v43, 16  ;;  %v2764_v28 = vshll.u32 %v2644_v43, 16  ;;  %v13776_v55 = vld [vmem:[#allocation8 + $0x458] sm:$0xff]  }
 0x29f   : > { %12754 = vmatpush3.bf16.msra.mxu1 %v13768_v45  ;;  %v6824_v45 = vshll.u32 %v15066_v50, 16  ;;  %v2712_v13 = vrot.slane %v2711_v6, 4  ;;  %v6845_v52 = vrot.slane %v6843_v37, 4  ;;  %v2739_v6 = vor.u32 %v2738_v47, %v2735_v44  ;;  %v15114_v37 = vld [vmem:[#allocation3 + $0x9c] sm:$0x1] }
 0x2a0   : > { %12771 = vmatprep.subr.bf16.mxu1 %v15059_v35  ;;  %v6862_v1 = vrot.slane %v6860_v60, 5  ;;  %v6868_v36 = vrot.slane %v6866_v39, 5  ;;  %v2758_v44 = vrot.slane %v2756_v26, 5  ;;  %v2763_v11 = vrot.slane %v2761_v17, 4  ;;  %v2646_v60 = vld [vmem:[#allocation3 + $0x58] sm:$0xf] }
 0x2a1   : > { %v6826_v58 = vrot.slane %v6824_v45, 5  ;;  %v2717_v8 = vsel %vm14735_vm8, %v2712_v13, %v2716_v21  ;;  %v6848_v45 = vrot.slane %v6846_v34, 5  ;;  %v6854_v21 = vrot.slane %v6852_v19, 5  ;;  %v13777_v34 = vld [vmem:[#allocation8 + $0x160] sm:$0xff]   ;;  %v15123_v39 = vld [vmem:[#allocation3 + $0x5c] sm:$0x1] }
 0x2a2   : > { %v11160_v33 = vcombine.low %v2703_v63, %v2717_v8  ;;  %v2740_v63 = vrot.slane %v2739_v6, 4  ;;  %v2766_v3 = vrot.slane %v2764_v28, 5  ;;  %v6871_v47 = vshrl.u32 %v6766_v57, 16 }
 0x2a3   : > { %v6827_v40 = vsel %vm14735_vm8, %v6822_v31, %v6826_v58  ;;  %v6849_v56 = vor.u32 %v6848_v45, %v6845_v52  ;;  %v2747_v58 = vshrl.u32 %v2642_v20, 16  ;;  %v6874_v19 = vshll.u32 %v6766_v57, 16 }
 0x2a4   : > { %12372 = vmatmul.mubr.bf16.vlgmr.msra.gmra.mrb[32].mxu0 %v11160_v33  ;;  %v11416_v38 = vcombine.low %v6827_v40, %v6841_v54  ;;  %v15109_v33 = vld [vmem:[#allocation3 + $0x94] sm:$0x1]  ;;  %v13775_v40 = vld [vmem:[#allocation8 + $0x158] sm:$0xff]   ;;  %v2767_v45 = vor.u32 %v2766_v3, %v2763_v11  ;;  %v6873_v43 = vrot.slane %v6871_v47, 4  ;;  %v2789_v57 = vshrl.u32 %v2648_v23, 16  ;;  %v13780_v3 = vld [vmem:[#allocation8 + $0x468] sm:$0xff]  }
 0x2a5   : > { %12388 = vmatpush3.bf16.msra.mxu0 %v15051_v32  ;;  %v6857_v32 = vshrl.u32 %v6764_v24, 16  ;;  %v6850_v31 = vrot.slane %v6849_v56, 4  ;;  %v2749_v8 = vrot.slane %v2747_v58, 4  ;;  %v2770_v24 = vshll.u32 %v15104_v29, 16  ;;  %v13781_v47 = vld [vmem:[#allocation8 + $0x170] sm:$0xff]  }
 0x2a6   : > { %12389 = vmatprep.subr.bf16.mxu0 %v13771_v14  ;;  %12756 = vmatmul.mubr.bf16.vlgmr.msra.gmra.mrb[0].mxu1 %v11416_v38  ;;  %v6876_v16 = vrot.slane %v6874_v19, 5  ;;  %v2768_v58 = vrot.slane %v2767_v45, 4  ;;  %v2791_v11 = vrot.slane %v2789_v57, 4 }
 0x2a7   : > { %12772 = vmatpush3.bf16.msra.mxu1 %v15059_v35  ;;  %v6859_v13 = vrot.slane %v6857_v32, 4  ;;  %v2745_v35 = vsel %vm14735_vm8, %v2740_v63, %v2744_v46  ;;  %v6855_v9 = vsel %vm14735_vm8, %v6850_v31, %v6854_v21  ;;  %v2753_v2 = vor.u32 %v2752_v7, %v2749_v8  ;;  %v13779_v31 = vld [vmem:[#allocation8 + $0x168] sm:$0xff]  }
 0x2a8   : > { %12773 = vmatprep.subr.bf16.mxu1 %v13772_v30  ;;  %v2772_v38 = vrot.slane %v2770_v24, 5  ;;  %v6880_v46 = vshll.u32 %v15109_v33, 16  ;;  %v6888_v63 = vshll.u32 %v6768_v53, 16  ;;  %v2778_v8 = vshll.u32 %v2646_v60, 16 }
 0x2a9   : > { %12390 = vmatpush3.bf16.msra.mxu0 %v13771_v14  ;;  %v11161_v14 = vcombine.low %v2731_v59, %v2745_v35  ;;  %v6863_v61 = vor.u32 %v6862_v1, %v6859_v13  ;;  %v2754_v20 = vrot.slane %v2753_v2, 4  ;;  %v6877_v59 = vor.u32 %v6876_v16, %v6873_v43  ;;  %v15126_v1 = vld [vmem:[#allocation3 + $0x64] sm:$0x1]  ;;  %v2650_v43 = vld [vmem:[#allocation3 + $0x68] sm:$0xf]  ;;  %v13783_v16 = vld [vmem:[#allocation8 + $0x178] sm:$0xff]  }
 0x2aa   : > { %12391 = vmatprep.subr.bf16.mxu0 %v13773_v41  ;;  %v15121_v32 = vrot.slane %v6880_v46, 5  ;;  %v6894_v13 = vshll.u32 %v15114_v37, 16  ;;  %v2773_v35 = vsel %vm14735_vm8, %v2768_v58, %v2772_v38  ;;  %v6890_v26 = vrot.slane %v6888_v63, 5 }
 0x2ab   : > { %12774 = vmatpush3.bf16.msra.mxu1 %v13772_v30  ;;  %12375 = vmatprep.mubr.bf16.mxu0 %v11161_v14  ;;  %v6864_v54 = vrot.slane %v6863_v61, 4  ;;  %v6885_v30 = vshrl.u32 %v6768_v53, 16  ;;  %v2759_v21 = vsel %vm14735_vm8, %v2754_v20, %v2758_v44  ;;  %v6878_v7 = vrot.slane %v6877_v59, 4  ;;  %v15133_v53 = vld [vmem:[#allocation3 + $0xb4] sm:$0x1] }
 0x2ac   : > { %12775 = vmatprep.subr.bf16.mxu1 %v13774_v18  ;;  %v6896_v17 = vrot.slane %v6894_v13, 5  ;;  %v11162_v14 = vcombine.low %v2759_v21, %v2773_v35  ;;  %v2780_v61 = vrot.slane %v2778_v8, 5  ;;  %v2792_v24 = vshll.u32 %v2648_v23, 16  ;;  %v15139_v20 = vld [vmem:[#allocation3 + $0xbc] sm:$0x1] }
 0x2ad   : > { %12392 = vmatpush3.bf16.msra.mxu0 %v13773_v41  ;;  %v6869_v52 = vsel %vm14735_vm8, %v6864_v54, %v6868_v36  ;;  %v13778_v41 = vld [vmem:[#allocation8 + $0x460] sm:$0xff]   ;;  %v6887_v56 = vrot.slane %v6885_v30, 4  ;;  %v2775_v36 = vshrl.u32 %v2646_v60, 16  ;;  %v6883_v2 = vsel %vm14735_vm8, %v6878_v7, %v15121_v32  ;;  %v6772_v54 = vld [vmem:[#allocation3 + $0xb8] sm:$0xf] }
 0x2ae   : > { %12393 = vmatprep.subr.bf16.mxu0 %v13775_v40  ;;  %v11417_v6 = vcombine.low %v6855_v9, %v6869_v52  ;;  %12376 = vmatmul.mubr.bf16.gmra.mrb[36].mxu0 %v11162_v14  ;;  %v2798_v19 = vshll.u32 %v15126_v1, 16  ;;  %v2794_v30 = vrot.slane %v2792_v24, 5  ;;  %v6908_v52 = vshll.u32 %v15133_v53, 16  ;;  %v15142_v60 = vld [vmem:[#allocation3 + $0x6c] sm:$0x1] }
 0x2af   : > { %12776 = vmatpush3.bf16.msra.mxu1 %v13774_v18  ;;  %v2784_v18 = vshll.u32 %v15123_v39, 16  ;;  %v2777_v9 = vrot.slane %v2775_v36, 4  ;;  %v6891_v44 = vor.u32 %v6890_v26, %v6887_v56  ;;  %v6913_v45 = vshrl.u32 %v6772_v54, 16  ;;  %v2652_v23 = vld [vmem:[#allocation3 + $0x70] sm:$0xf] }
 0x2b0   : > { %12777 = vmatprep.subr.bf16.mxu1 %v13776_v55  ;;  %12759 = vmatprep.mubr.bf16.mxu1 %v11417_v6  ;;  %v2800_v21 = vrot.slane %v2798_v19, 5  ;;  %v2795_v59 = vor.u32 %v2794_v30, %v2791_v11  ;;  %v6910_v63 = vrot.slane %v6908_v52, 5  ;;  %v6916_v57 = vshll.u32 %v6772_v54, 16  ;;  %v15149_v35 = vld [vmem:[#allocation3 + $0x74] sm:$0x1]  ;;  %v15157_v19 = vld [vmem:[#allocation8 + $0x180] sm:$0xff]  }
 0x2b1   : > { %12394 = vmatpush3.bf16.msra.mxu0 %v13775_v40  ;;  %v6770_v40 = vld [vmem:[#allocation3 + $0xb0] sm:$0xf]  ;;  %v15131_v28 = vrot.slane %v2784_v18, 5  ;;  %v6892_v46 = vrot.slane %v6891_v44, 4  ;;  %v6915_v13 = vrot.slane %v6913_v45, 4  ;;  %v6922_v7 = vshll.u32 %v15139_v20, 16 }
 0x2b2   : > { %12395 = vmatprep.subr.bf16.mxu0 %v13777_v34  ;;  %v6899_v38 = vshrl.u32 %v6770_v40, 16  ;;  %v2803_v26 = vshrl.u32 %v2650_v43, 16  ;;  %v15153_v44 = vld [vmem:[#allocation3 + $0xc4] sm:$0x1]  ;;  %v13784_v52 = vld [vmem:[#allocation8 + $0x478] sm:$0xff]  }
 0x2b3   : > { %12778 = vmatpush3.bf16.msra.mxu1 %v13776_v55  ;;  %v2781_v55 = vor.u32 %v2780_v61, %v2777_v9  ;;  %v6897_v58 = vsel %vm14735_vm8, %v6892_v46, %v6896_v17  ;;  %v2806_v17 = vshll.u32 %v2650_v43, 16  ;;  %v6918_v9 = vrot.slane %v6916_v57, 5  ;;  %v15168_v57 = vld [vmem:[#allocation8 + $0x480] sm:$0xff]  }
 0x2b4   : > { %12779 = vmatprep.subr.bf16.mxu1 %v13778_v41  ;;  %v6901_v32 = vrot.slane %v6899_v38, 4  ;;  %v11418_v36 = vcombine.low %v6883_v2, %v6897_v58  ;;  %v2812_v61 = vshll.u32 %v15142_v60, 16  ;;  %v2817_v2 = vshrl.u32 %v2652_v23, 16 }
 0x2b5   : > { %12396 = vmatpush3.bf16.msra.mxu0 %v13777_v34  ;;  %v6902_v34 = vshll.u32 %v6770_v40, 16  ;;  %v2782_v6 = vrot.slane %v2781_v55, 4  ;;  %v6774_v40 = vld [vmem:[#allocation3 + $0xc0] sm:$0xf]  ;;  %v6924_v11 = vrot.slane %v6922_v7, 5  ;;  %v2805_v24 = vrot.slane %v2803_v26, 4 }
 0x2b6   : > { %12397 = vmatprep.subr.bf16.mxu0 %v13779_v31  ;;  %12760 = vmatmul.mubr.bf16.gmra.mrb[4].mxu1 %v11418_v36  ;;  %v2808_v54 = vrot.slane %v2806_v17, 5  ;;  %v6776_v55 = vld [vmem:[#allocation3 + $0xc8] sm:$0xf]  ;;  %v6919_v46 = vor.u32 %v6918_v9, %v6915_v13  ;;  %v2814_v30 = vrot.slane %v2812_v61, 5  ;;  %v2819_v45 = vrot.slane %v2817_v2, 4 }
 0x2b7   : > { %v6904_v56 = vrot.slane %v6902_v34, 5  ;;  %12780 = vmatpush3.bf16.msra.mxu1 %v13778_v41  ;;  %v2787_v8 = vsel %vm14735_vm8, %v2782_v6, %v15131_v28  ;;  %v13782_v41 = vld [vmem:[#allocation8 + $0x470] sm:$0xff]   ;;  %v2820_v43 = vshll.u32 %v2652_v23, 16  ;;  %v2826_v6 = vshll.u32 %v15149_v35, 16  ;;  %v2656_v2 = vld [vmem:[#allocation3 + $0x80] sm:$0xf] }
 0x2b8   : > { %12781 = vmatprep.subr.bf16.mxu1 %v13780_v3  ;;  %v6936_v58 = vshll.u32 %v15153_v44, 16  ;;  %v6941_v13 = vshrl.u32 %v6776_v55, 16  ;;  %v6944_v9 = vshll.u32 %v6776_v55, 16 }
 0x2b9   : > { %12398 = vmatpush3.bf16.msra.mxu0 %v13779_v31  ;;  %v6905_v18 = vor.u32 %v6904_v56, %v6901_v32  ;;  %v2796_v31 = vrot.slane %v2795_v59, 4  ;;  %v6927_v32 = vshrl.u32 %v6774_v40, 16  ;;  %v6930_v56 = vshll.u32 %v6774_v40, 16  ;;  %v15170_v40 = vld [vmem:[#allocation3 + $0x7c] sm:$0x1] }
 0x2ba   : > { %12399 = vmatprep.subr.bf16.mxu0 %v13781_v47  ;;  %v2828_v36 = vrot.slane %v2826_v6, 5  ;;  %v6938_v26 = vrot.slane %v6936_v58, 5  ;;  %v6943_v17 = vrot.slane %v6941_v13, 4 }
 0x2bb   : > { %v6906_v14 = vrot.slane %v6905_v18, 4  ;;  %v2801_v28 = vsel %vm14735_vm8, %v2796_v31, %v2800_v21  ;;  %12782 = vmatpush3.bf16.msra.mxu1 %v13780_v3  ;;  %v15162_v21 = vld [vmem:[#allocation3 + $0xcc] sm:$0x1]  ;;  %v6920_v3 = vrot.slane %v6919_v46, 4  ;;  %v6932_v18 = vrot.slane %v6930_v56, 5 }
 0x2bc   : > { %v11163_v38 = vcombine.low %v2787_v8, %v2801_v28  ;;  %12783 = vmatprep.subr.bf16.mxu1 %v13782_v41  ;;  %v6929_v8 = vrot.slane %v6927_v32, 4  ;;  %v6950_v61 = vshll.u32 %v15162_v21, 16  ;;  %v15175_v28 = vld [vmem:[#allocation3 + $0x84] sm:$0x1]  ;;  %v6780_v56 = vld [vmem:[#allocation3 + $0xd8] sm:$0xf] }
 0x2bd   : > { %12400 = vmatpush3.bf16.msra.mxu0 %v13781_v47  ;;  %v6911_v34 = vsel %vm14735_vm8, %v6906_v14, %v6910_v63  ;;  %v2809_v47 = vor.u32 %v2808_v54, %v2805_v24  ;;  %v2822_v63 = vrot.slane %v2820_v43, 5  ;;  %v6925_v23 = vsel %vm14735_vm8, %v6920_v3, %v6924_v11 }
 0x2be   : > { %12401 = vmatprep.subr.bf16.mxu0 %v13783_v16  ;;  %12379 = vmatprep.mubr.bf16.mxu0 %v11163_v38  ;;  %v11419_v31 = vcombine.low %v6911_v34, %v6925_v23  ;;  %v6933_v14 = vor.u32 %v6932_v18, %v6929_v8  ;;  %v2840_v38 = vshll.u32 %v15170_v40, 16  ;;  %v6778_v34 = vld [vmem:[#allocation3 + $0xd0] sm:$0xf]  ;;  %v2845_v43 = vshrl.u32 %v2656_v2, 16  ;;  %v15186_v18 = vld [vmem:[#allocation3 + $0xdc] sm:$0x1] }
 0x2bf   : > { %v2810_v59 = vrot.slane %v2809_v47, 4  ;;  %12784 = vmatpush3.bf16.msra.mxu1 %v13782_v41  ;;  %v2823_v7 = vor.u32 %v2822_v63, %v2819_v45  ;;  %v6946_v47 = vrot.slane %v6944_v9, 5  ;;  %v6952_v45 = vrot.slane %v6950_v61, 5 }
 0x2c0   : > { %12785 = vmatprep.subr.bf16.mxu1 %v13784_v52  ;;  %12763 = vmatprep.mubr.bf16.mxu1 %v11419_v31  ;;  %v6934_v46 = vrot.slane %v6933_v14, 4  ;;  %v2842_v32 = vrot.slane %v2840_v38, 5  ;;  %v2847_v63 = vrot.slane %v2845_v43, 4  ;;  %v2848_v23 = vshll.u32 %v2656_v2, 16 }
 0x2c1   : > { %12402 = vmatpush3.bf16.msra.mxu0 %v13783_v16  ;;  %v2654_v16 = vld [vmem:[#allocation3 + $0x78] sm:$0xf]  ;;  %v2815_v41 = vsel %vm14735_vm8, %v2810_v59, %v2814_v30  ;;  %v2824_v11 = vrot.slane %v2823_v7, 4  ;;  %v15178_v30 = vld [vmem:[#allocation3 + $0xd4] sm:$0x1]  ;;  %v2854_v8 = vshll.u32 %v15175_v28, 16 }
 0x2c2   : > { %12419 = vmatprep.subr.bf16.mxu0 %v15157_v19  ;;  %v2831_v24 = vshrl.u32 %v2654_v16, 16  ;;  %v2834_v54 = vshll.u32 %v2654_v16, 16  ;;  %v6939_v59 = vsel %vm14735_vm8, %v6934_v46, %v6938_v26  ;;  %v6955_v31 = vshrl.u32 %v6778_v34, 16  ;;  %v2658_v7 = vld [vmem:[#allocation3 + $0x88] sm:$0xf] }
 0x2c3   : > { %12786 = vmatpush3.bf16.msra.mxu1 %v13784_v52  ;;  %v2829_v55 = vsel %vm14735_vm8, %v2824_v11, %v2828_v36  ;;  %v6947_v52 = vor.u32 %v6946_v47, %v6943_v17  ;;  %v6958_v16 = vshll.u32 %v6778_v34, 16  ;;  %v6964_v14 = vshll.u32 %v15178_v30, 16 }
 0x2c4   : > { %12803 = vmatprep.subr.bf16.mxu1 %v15168_v57  ;;  %v2833_v6 = vrot.slane %v2831_v24, 4  ;;  %v2836_v3 = vrot.slane %v2834_v54, 5  ;;  %v11164_v58 = vcombine.low %v2815_v41, %v2829_v55  ;;  %v6969_v9 = vshrl.u32 %v6780_v56, 16  ;;  %v15189_v41 = vld [vmem:[#allocation3 + $0x8c] sm:$0x1] }
 0x2c5   : > { %v6948_v36 = vrot.slane %v6947_v52, 4  ;;  %16178 = vst [vmem:[#allocation28_spill] sm:$0xff] %v15189_v41  ;;  %v2850_v26 = vrot.slane %v2848_v23, 5  ;;  %v2856_v17 = vrot.slane %v2854_v8, 5  ;;  %v6957_v11 = vrot.slane %v6955_v31, 4 }
 0x2c6   : > { %v2837_v13 = vor.u32 %v2836_v3, %v2833_v6  ;;  %12380 = vmatmul.mubr.bf16.gmra.mrb[40].mxu0 %v11164_v58  ;;  %v2660_v24 = vld [vmem:[#allocation3 + $0x90] sm:$0xf]  ;;  %v6960_v54 = vrot.slane %v6958_v16, 5  ;;  %v6966_v38 = vrot.slane %v6964_v14, 5  ;;  %v6971_v46 = vrot.slane %v6969_v9, 4 }
 0x2c7   : > { %v6953_v2 = vsel %vm14735_vm8, %v6948_v36, %v6952_v45  ;;  %v2851_v43 = vor.u32 %v2850_v26, %v2847_v63  ;;  %v6972_v55 = vshll.u32 %v6780_v56, 16  ;;  %v6978_v3 = vshll.u32 %v15186_v18, 16  ;;  %v15196_v58 = vld [vmem:[#allocation3 + $0x94] sm:$0x1]  ;;  %v6782_v23 = vld [vmem:[#allocation3 + $0xe0] sm:$0xf] }
 0x2c8   : > { %v2838_v61 = vrot.slane %v2837_v13, 4  ;;  %v11420_v47 = vcombine.low %v6939_v59, %v6953_v2  ;;  %v6961_v6 = vor.u32 %v6960_v54, %v6957_v11  ;;  %v2859_v52 = vshrl.u32 %v2658_v7, 16  ;;  %v15199_v59 = vld [vmem:[#allocation3 + $0xe4] sm:$0x1]  ;;  %v6784_v14 = vld [vmem:[#allocation3 + $0xe8] sm:$0xf] }
 0x2c9   : > { %v2862_v13 = vshll.u32 %v2658_v7, 16  ;;  %v2852_v8 = vrot.slane %v2851_v43, 4  ;;  %v6974_v45 = vrot.slane %v6972_v55, 5  ;;  %v2868_v31 = vshll.u32 %v15189_v41, 16  ;;  %v15205_v43 = vld [vmem:[#allocation3 + $0xec] sm:$0x1] }
 0x2ca   : > { %v2843_v34 = vsel %vm14735_vm8, %v2838_v61, %v2842_v32  ;;  %12764 = vmatmul.mubr.bf16.gmra.mrb[8].mxu1 %v11420_v47  ;;  %v2873_v36 = vshrl.u32 %v2660_v24, 16  ;;  %v6962_v16 = vrot.slane %v6961_v6, 4  ;;  %v6980_v32 = vrot.slane %v6978_v3, 5 }
 0x2cb   : > { %v2861_v63 = vrot.slane %v2859_v52, 4  ;;  %v2864_v56 = vrot.slane %v2862_v13, 5  ;;  %v2857_v9 = vsel %vm14735_vm8, %v2852_v8, %v2856_v17  ;;  %v6975_v61 = vor.u32 %v6974_v45, %v6971_v46 }
 0x2cc   : > { %v2870_v26 = vrot.slane %v2868_v31, 5  ;;  %v2875_v7 = vrot.slane %v2873_v36, 4  ;;  %v11165_v11 = vcombine.low %v2843_v34, %v2857_v9  ;;  %v6967_v2 = vsel %vm14735_vm8, %v6962_v16, %v6966_v38 }
 0x2cd   : > { %v2865_v54 = vor.u32 %v2864_v56, %v2861_v63  ;;  %v2876_v47 = vshll.u32 %v2660_v24, 16  ;;  %v6976_v55 = vrot.slane %v6975_v61, 4  ;;  %v2882_v6 = vshll.u32 %v15196_v58, 16  ;;  %v3096_v24 = vld [vmem:[#allocation3 + $0x8] sm:$0xe] }
 0x2ce   : > { %v6983_v3 = vshrl.u32 %v6782_v23, 16  ;;  %v6986_v52 = vshll.u32 %v6782_v23, 16  ;;  %12383 = vmatprep.mubr.bf16.mxu0 %v11165_v11  ;;  %v6992_v17 = vshll.u32 %v15199_v59, 16  ;;  %v6997_v46 = vshrl.u32 %v6784_v14, 16  ;;  %v3097_v23 = vld [vmem:[#allocation3 + $0x10] sm:$0xe] }
 0x2cf   : > { %v2866_v13 = vrot.slane %v2865_v54, 4  ;;  %v2878_v41 = vrot.slane %v2876_v47, 5  ;;  %v6981_v34 = vsel %vm14735_vm8, %v6976_v55, %v6980_v32  ;;  %v2884_v8 = vrot.slane %v2882_v6, 5  ;;  %v7220_v56 = vld [vmem:[#allocation3 + $0x60] sm:$0xe] }
 0x2d0   : > { %v6985_v38 = vrot.slane %v6983_v3, 4  ;;  %v6988_v45 = vrot.slane %v6986_v52, 5  ;;  %v11421_v31 = vcombine.low %v6967_v2, %v6981_v34  ;;  %v6994_v63 = vrot.slane %v6992_v17, 5  ;;  %v7221_v47 = vld [vmem:[#allocation3 + $0x68] sm:$0xe] }
 0x2d1   : > { %v2871_v36 = vsel %vm14735_vm8, %v2866_v13, %v2870_v26  ;;  %v2879_v16 = vor.u32 %v2878_v41, %v2875_v7  ;;  %v6999_v61 = vrot.slane %v6997_v46, 4  ;;  %v7000_v11 = vshll.u32 %v6784_v14, 16  ;;  %v3098_v2 = vld [vmem:[#allocation3 + $0x18] sm:$0xe]  ;;  %v3099_v7 = vld [vmem:[#allocation3 + $0x20] sm:$0xe] }
 0x2d2   : > { %v6989_v9 = vor.u32 %v6988_v45, %v6985_v38  ;;  %v7006_v54 = vshll.u32 %v15205_v43, 16  ;;  %12767 = vmatprep.mubr.bf16.mxu1 %v11421_v31  ;;  %v11175_v55 = vrot.slane %v3096_v24, 9  ;;  %v3146_v6 = vrot.slane %v15040_v62, 5  ;;  %v7222_v31 = vld [vmem:[#allocation3 + $0x70] sm:$0xe] }
 0x2d3   : > { %v2880_v32 = vrot.slane %v2879_v16, 4  ;;  %v11176_v3 = vrot.slane %v3097_v23, 9  ;;  %v7002_v34 = vrot.slane %v7000_v11, 5  ;;  %v3150_v41 = vrot.slane %v15042_v22, 5  ;;  %v7223_v22 = vld [vmem:[#allocation3 + $0x78] sm:$0xe] }
 0x2d4   : > { %v6990_v52 = vrot.slane %v6989_v9, 4  ;;  %v7008_v26 = vrot.slane %v7006_v54, 5  ;;  %v3147_v14 = vsel %vm14936_vm11, %v11175_v55, %v3146_v6  ;;  %v11431_v17 = vrot.slane %v7220_v56, 9 }
 0x2d5   : > { %v2885_v13 = vsel %vm14735_vm8, %v2880_v32, %v2884_v8  ;;  %v7270_v46 = vrot.slane %v15046_v4, 5  ;;  %v7003_v45 = vor.u32 %v7002_v34, %v6999_v61  ;;  %v3151_v24 = vsel %vm14936_vm11, %v11176_v3, %v3150_v41  ;;  %v3100_v3 = vld [vmem:[#allocation3 + $0x28] sm:$0xe]  ;;  %v3101_v34 = vld [vmem:[#allocation3 + $0x30] sm:$0xe] }
 0x2d6   : > { %v11166_v38 = vcombine.low %v2871_v36, %v2885_v13  ;;  %v6995_v62 = vsel %vm14735_vm8, %v6990_v52, %v6994_v63  ;;  %v11191_v16 = vcombine.low %v3147_v14, %v3151_v24  ;;  %v11432_v23 = vrot.slane %v7221_v47, 9 }
 0x2d7   : > { %v7271_v8 = vsel %vm14936_vm11, %v11431_v17, %v7270_v46  ;;  %v7274_v9 = vrot.slane %v15048_v10, 5  ;;  %v7004_v56 = vrot.slane %v7003_v45, 4  ;;  %v11177_v4 = vrot.slane %v3098_v2, 9  ;;  %v13787_v17 = vld [vmem:[#allocation8 + $0x188] sm:$0xff]   ;;  %v3102_v45 = vld [vmem:[#allocation3 + $0x38] sm:$0xe] }
 0x2d8   : > { %12384 = vmatmul.mubr.bf16.gmra.mrb[44].mxu0 %v11166_v38  ;;  %v3154_v36 = vrot.slane %v15054_v49, 5  ;;  %v11178_v11 = vrot.slane %v3099_v7, 9  ;;  %v3158_v61 = vrot.slane %v15056_v12, 5  ;;  %v11433_v54 = vrot.slane %v7222_v31, 9  ;;  %v7224_v12 = vld [vmem:[#allocation3 + $0x80] sm:$0xe] }
 0x2d9   : > { %12403 = vmatprep.mubr.bf16.mxu0 %v11191_v16  ;;  %v7275_v63 = vsel %vm14936_vm11, %v11432_v23, %v7274_v9  ;;  %v7278_v32 = vrot.slane %v15066_v50, 5  ;;  %v7009_v47 = vsel %vm14735_vm8, %v7004_v56, %v7008_v26  ;;  %v11434_v6 = vrot.slane %v7223_v22, 9  ;;  %v7225_v26 = vld [vmem:[#allocation3 + $0x88] sm:$0xe]  ;;  %v3103_v22 = vld [vmem:[#allocation3 + $0x40] sm:$0xe] }
 0x2da   : > { %v11447_v55 = vcombine.low %v7271_v8, %v7275_v63  ;;  %v3155_v10 = vsel %vm14936_vm11, %v11177_v4, %v3154_v36  ;;  %v11422_v49 = vcombine.low %v6995_v62, %v7009_v47  ;;  %v3159_v2 = vsel %vm14936_vm11, %v11178_v11, %v3158_v61  ;;  %v7226_v23 = vld [vmem:[#allocation3 + $0x90] sm:$0xe]  ;;  %v13788_v63 = vld [vmem:[#allocation8 + $0x488] sm:$0xff]  }
 0x2db   : > { %v7282_v52 = vrot.slane %v15073_v15, 5  ;;  %v11192_v41 = vcombine.low %v3155_v10, %v3159_v2  ;;  %v11179_v7 = vrot.slane %v3100_v3, 9  ;;  %v3162_v50 = vrot.slane %v15080_v27, 5  ;;  %v3105_v3 = vld [vmem:[#allocation3 + $0x60] sm:$0xe] }
 0x2dc   : > { %v11180_v13 = vrot.slane %v3101_v34, 9  ;;  %12768 = vmatmul.mubr.bf16.gmra.mrb[12].mxu1 %v11422_v49  ;;  %v7279_v14 = vsel %vm14936_vm11, %v11433_v54, %v7278_v32  ;;  %v3166_v46 = vrot.slane %v15084_v0, 5  ;;  %v11435_v38 = vrot.slane %v7224_v12, 9  ;;  %v13789_v54 = vld [vmem:[#allocation8 + $0x190] sm:$0xff]  }
 0x2dd   : > { %v7286_v62 = vrot.slane %v15089_v42, 5  ;;  %12787 = vmatprep.mubr.bf16.mxu1 %v11447_v55  ;;  %v7283_v15 = vsel %vm14936_vm11, %v11434_v6, %v7282_v52  ;;  %v3163_v27 = vsel %vm14936_vm11, %v11179_v7, %v3162_v50  ;;  %v11436_v24 = vrot.slane %v7225_v26, 9  ;;  %v3104_v6 = vld [vmem:[#allocation3 + $0x58] sm:$0xe]  ;;  %v7228_v34 = vld [vmem:[#allocation3 + $0xb0] sm:$0xe] }
 0x2de   : > { %v7290_v31 = vrot.slane %v15095_v48, 5  ;;  %v3167_v16 = vsel %vm14936_vm11, %v11180_v13, %v3166_v46  ;;  %v11181_v8 = vrot.slane %v3102_v45, 9  ;;  %v3170_v42 = vrot.slane %v15098_v5, 5  ;;  %v7227_v48 = vld [vmem:[#allocation3 + $0x98] sm:$0xe]  ;;  %v13790_v12 = vld [vmem:[#allocation8 + $0x490] sm:$0xff]  }
 0x2df   : > { %v7287_v0 = vsel %vm14936_vm11, %v11435_v38, %v7286_v62  ;;  %v11193_v9 = vcombine.low %v3163_v27, %v3167_v16  ;;  %v11182_v4 = vrot.slane %v3103_v22, 9  ;;  %v3174_v36 = vrot.slane %v15104_v29, 5  ;;  %v7229_v50 = vld [vmem:[#allocation3 + $0xb8] sm:$0xe]  ;;  %v3106_v46 = vld [vmem:[#allocation3 + $0x68] sm:$0xe] }
 0x2e0   : > { %12404 = vmatmul.mubr.bf16.vlgmr.msra.gmra.mrb[32].mxu0 %v11192_v41  ;;  %v7291_v56 = vsel %vm14936_vm11, %v11436_v24, %v7290_v31  ;;  %v11448_v11 = vcombine.low %v7279_v14, %v7283_v15  ;;  %v3171_v61 = vsel %vm14936_vm11, %v11181_v8, %v3170_v42  ;;  %v11437_v32 = vrot.slane %v7226_v23, 9  ;;  %v13791_v41 = vld [vmem:[#allocation8 + $0x198] sm:$0xff]   ;;  %v3107_v38 = vld [vmem:[#allocation3 + $0x70] sm:$0xe]  ;;  %v7230_v24 = vld [vmem:[#allocation3 + $0xc0] sm:$0xe] }
 0x2e1   : > { %12420 = vmatpush3.bf16.msra.mxu0 %v15157_v19  ;;  %v7294_v5 = vrot.slane %v15109_v33, 5  ;;  %12407 = vmatprep.mubr.bf16.mxu0 %v11193_v9  ;;  %v11449_v47 = vcombine.low %v7287_v0, %v7291_v56  ;;  %v3175_v55 = vsel %vm14936_vm11, %v11182_v4, %v3174_v36  ;;  %v11438_v10 = vrot.slane %v7227_v48, 9  ;;  %v7231_v31 = vld [vmem:[#allocation3 + $0xc8] sm:$0xe]  ;;  %v13792_v16 = vld [vmem:[#allocation8 + $0x498] sm:$0xff]   ;;  %v13793_v8 = vld [vmem:[#allocation8 + $0x1a0] sm:$0xff]  }
 0x2e2   : > { %12421 = vmatprep.subr.bf16.mxu0 %v13787_v17  ;;  %v7298_v29 = vrot.slane %v15114_v37, 5  ;;  %v11194_v19 = vcombine.low %v3171_v61, %v3175_v55  ;;  %v11183_v49 = vrot.slane %v3104_v6, 9  ;;  %v3178_v2 = vrot.slane %v15123_v39, 5  ;;  %v3108_v4 = vld [vmem:[#allocation3 + $0x78] sm:$0xe]  ;;  %v13795_v55 = vld [vmem:[#allocation8 + $0x1a8] sm:$0xff]  }
 0x2e3   : > { %v11184_v52 = vrot.slane %v3105_v3, 9  ;;  %v7295_v33 = vsel %vm14936_vm11, %v11437_v32, %v7294_v5  ;;  %v3182_v7 = vrot.slane %v15126_v1, 5  ;;  %v11439_v13 = vrot.slane %v7228_v34, 9  ;;  %v3109_v48 = vld [vmem:[#allocation3 + $0x80] sm:$0xe] }
 0x2e4   : > { %12788 = vmatmul.mubr.bf16.vlgmr.msra.gmra.mrb[0].mxu1 %v11448_v11  ;;  %v7302_v37 = vrot.slane %v15133_v53, 5  ;;  %v7299_v39 = vsel %vm14936_vm11, %v11438_v10, %v7298_v29  ;;  %v3179_v26 = vsel %vm14936_vm11, %v11183_v49, %v3178_v2  ;;  %v11440_v14 = vrot.slane %v7229_v50, 9  ;;  %v7233_v5 = vld [vmem:[#allocation3 + $0xd8] sm:$0xe]  ;;  %v3110_v6 = vld [vmem:[#allocation3 + $0x88] sm:$0xe] }
 0x2e5   : > { %12422 = vmatpush3.bf16.msra.mxu0 %v13787_v17  ;;  %12804 = vmatpush3.bf16.msra.mxu1 %v15168_v57  ;;  %v7306_v17 = vrot.slane %v15139_v20, 5  ;;  %v3183_v1 = vsel %vm14936_vm11, %v11184_v52, %v3182_v7  ;;  %v11185_v57 = vrot.slane %v3106_v46, 9  ;;  %v3186_v62 = vrot.slane %v15142_v60, 5  ;;  %v13794_v3 = vld [vmem:[#allocation8 + $0x4a0] sm:$0xff]   ;;  %v3111_v49 = vld [vmem:[#allocation3 + $0x90] sm:$0xe] }
 0x2e6   : > { %12791 = vmatprep.mubr.bf16.mxu1 %v11449_v47  ;;  %12805 = vmatprep.subr.bf16.mxu1 %v13788_v63  ;;  %v7303_v53 = vsel %vm14936_vm11, %v11439_v13, %v7302_v37  ;;  %v11195_v45 = vcombine.low %v3179_v26, %v3183_v1  ;;  %v11186_v27 = vrot.slane %v3107_v38, 9  ;;  %v3190_v20 = vrot.slane %v15149_v35, 5  ;;  %v13796_v50 = vld [vmem:[#allocation8 + $0x4a8] sm:$0xff]   ;;  %v13797_v37 = vld [vmem:[#allocation8 + $0x1b0] sm:$0xff]  }
 0x2e7   : > { %12423 = vmatprep.subr.bf16.mxu0 %v13789_v54  ;;  %v7307_v15 = vsel %vm14936_vm11, %v11440_v14, %v7306_v17  ;;  %v11450_v22 = vcombine.low %v7295_v33, %v7299_v39  ;;  %v3187_v0 = vsel %vm14936_vm11, %v11185_v57, %v3186_v62  ;;  %v11441_v42 = vrot.slane %v7230_v24, 9  ;;  %v7234_v39 = vld [vmem:[#allocation3 + $0xe0] sm:$0xe]  ;;  %v7235_v26 = vld [vmem:[#allocation3 + $0xe8] sm:$0xe]  ;;  %v13799_v62 = vld [vmem:[#allocation8 + $0x1b8] sm:$0xff]  }
 0x2e8   : > { %12408 = vmatmul.mubr.bf16.gmra.mrb[36].mxu0 %v11194_v19  ;;  %v7310_v60 = vrot.slane %v15153_v44, 5  ;;  %v11451_v23 = vcombine.low %v7303_v53, %v7307_v15  ;;  %v3191_v9 = vsel %vm14936_vm11, %v11186_v27, %v3190_v20  ;;  %v11442_v56 = vrot.slane %v7231_v31, 9  ;;  %v13801_v57 = vld [vmem:[#allocation3 + $0x10] ss:$8 sps:$4 sm:$0xff]   ;;  %v13802_v15 = vld [vmem:[#allocation3 + $0xa0] ss:$8 sps:$4 sm:$0xff]  }
 0x2e9   : > { %12424 = vmatpush3.bf16.msra.mxu0 %v13789_v54  ;;  %12806 = vmatpush3.bf16.msra.mxu1 %v13788_v63  ;;  %v7314_v35 = vrot.slane %v15162_v21, 5  ;;  %v11196_v36 = vcombine.low %v3187_v0, %v3191_v9  ;;  %v11187_v11 = vrot.slane %v3108_v4, 9  ;;  %v3194_v61 = vrot.slane %v15170_v40, 5  ;;  %v7232_v21 = vld [vmem:[#allocation3 + $0xd0] sm:$0xe]  ;;  %v13800_v20 = vld [vmem:[#allocation8 + $0x4b8] sm:$0xff]  }
 0x2ea   : > { %12425 = vmatprep.subr.bf16.mxu0 %v13791_v41  ;;  %12807 = vmatprep.subr.bf16.mxu1 %v13790_v12  ;;  %v3198_v54 = vrot.slane %v15175_v28, 5  ;;  %v7311_v44 = vsel %vm14936_vm11, %v11441_v42, %v7310_v60  ;;  %v11188_v32 = vrot.slane %v3109_v48, 9  ;;  %v7318_v47 = vrot.slane %v15178_v30, 5  ;;  %v16179_v30 = vld [vmem:[#allocation28_spill] sm:$0xff]  ;;  %v13809_v0 = vld [vmem:[#allocation3 + $0x30] ss:$8 sps:$4 sm:$0xff]  }
 0x2eb   : > { %12411 = vmatprep.mubr.bf16.mxu0 %v11195_v45  ;;  %v7315_v63 = vsel %vm14936_vm11, %v11442_v56, %v7314_v35  ;;  %v3195_v40 = vsel %vm14936_vm11, %v11187_v11, %v3194_v61  ;;  %v11443_v28 = vrot.slane %v7232_v21, 9  ;;  %v11444_v10 = vrot.slane %v7233_v5, 9  ;;  %v13798_v45 = vld [vmem:[#allocation8 + $0x4b0] sm:$0xff]   ;;  %v13804_v24 = vld [vmem:[#allocation8 + $0x1c0] sm:$0xff]   ;;  %v13808_v42 = vld [vmem:[#allocation8 + $0x4c8] sm:$0xff]  }
 0x2ec   : > { %12792 = vmatmul.mubr.bf16.gmra.mrb[4].mxu1 %v11450_v22  ;;  %v7322_v29 = vrot.slane %v15186_v18, 5  ;;  %v3199_v19 = vsel %vm14936_vm11, %v11188_v32, %v3198_v54  ;;  %v11189_v2 = vrot.slane %v3110_v6, 9  ;;  %v3202_v52 = vrot.slane %v16179_v30, 5  ;;  %v13803_v31 = vld [vmem:[#allocation3 + $0x20] ss:$8 sps:$4 sm:$0xff]   ;;  %v13812_v60 = vld [vmem:[#allocation8 + $0x1d0] sm:$0xff]  }
 0x2ed   : > { %12426 = vmatpush3.bf16.msra.mxu0 %v13791_v41  ;;  %12808 = vmatpush3.bf16.msra.mxu1 %v13790_v12  ;;  %v3206_v34 = vrot.slane %v15196_v58, 5  ;;  %v11197_v33 = vcombine.low %v3195_v40, %v3199_v19  ;;  %v7319_v12 = vsel %vm14936_vm11, %v11443_v28, %v7318_v47  ;;  %v11190_v41 = vrot.slane %v3111_v49, 9  ;;  %v13807_v22 = vld [vmem:[#allocation8 + $0x1c8] sm:$0xff]   ;;  %v13814_v35 = vld [vmem:[#allocation8 + $0x4d0] sm:$0xff]   ;;  %v13815_v4 = vld [vmem:[#allocation8 + $0x1d8] sm:$0xff]  }
 0x2ee   : > { %12795 = vmatprep.mubr.bf16.mxu1 %v11451_v23  ;;  %12809 = vmatprep.subr.bf16.mxu1 %v13792_v16  ;;  %v7323_v18 = vsel %vm14936_vm11, %v11444_v10, %v7322_v29  ;;  %v11452_v7 = vcombine.low %v7311_v44, %v7315_v63  ;;  %v3203_v13 = vsel %vm14936_vm11, %v11189_v2, %v3202_v52  ;;  %v7326_v58 = vrot.slane %v15199_v59, 5  ;;  %v13810_v23 = vld [vmem:[#allocation3 + $0xc0] ss:$8 sps:$4 sm:$0xff]   ;;  %v13816_v48 = vld [vmem:[#allocation8 + $0x4d8] sm:$0xff]   ;;  %v3661_v5 = vld [vmem:[#allocation3 + $0x10] sm:$0xf] }
 0x2ef   : > { %12427 = vmatprep.subr.bf16.mxu0 %v13793_v8  ;;  %v7330_v14 = vrot.slane %v15205_v43, 5  ;;  %v11453_v17 = vcombine.low %v7319_v12, %v7323_v18  ;;  %v3207_v46 = vsel %vm14936_vm11, %v11190_v41, %v3206_v34  ;;  %v11445_v38 = vrot.slane %v7234_v39, 9  ;;  %v13811_v9 = vld [vmem:[#allocation3 + $0x40] ss:$8 sps:$4 sm:$0xff]   ;;  %v13818_v61 = vld [vmem:[#allocation3 + $0xf0] ss:$8 sps:$4 sm:$0xff]  }
 0x2f0   : > { %12412 = vmatmul.mubr.bf16.gmra.mrb[40].mxu0 %v11196_v36  ;;  %v11446_v1 = vrot.slane %v7235_v26, 9  ;;  %v11198_v53 = vcombine.low %v3203_v13, %v3207_v46  ;;  %v13817_v56 = vld [vmem:[#allocation3 + $0x60] ss:$8 sps:$4 sm:$0xff]   ;;  %v13813_v36 = vld [vmem:[#allocation3 + $0xd0] ss:$8 sps:$4 sm:$0xff]   ;;  %v3694_v10 = vshrl.u32 %v3661_v5, 16 }
 0x2f1   : > { %12428 = vmatpush3.bf16.msra.mxu0 %v13793_v8  ;;  %12810 = vmatpush3.bf16.msra.mxu1 %v13792_v16  ;;  %v7327_v59 = vsel %vm14936_vm11, %v11445_v38, %v7326_v58  ;;  %v13806_v16 = vld [vmem:[#allocation8 + $0x4c0] sm:$0xff]   ;;  %v13805_v8 = vld [vmem:[#allocation3 + $0xb0] ss:$8 sps:$4 sm:$0xff]   ;;  %v13823_v44 = vld [vmem:[#allocation8 + $0x1e8] sm:$0xff]   ;;  %v3697_v29 = vshll.u32 %v3661_v5, 16 }
 0x2f2   : > { %12429 = vmatprep.subr.bf16.mxu0 %v13795_v55  ;;  %12811 = vmatprep.subr.bf16.mxu1 %v13794_v3  ;;  %v7331_v43 = vsel %vm14936_vm11, %v11446_v1, %v7330_v14  ;;  %v13820_v11 = vld [vmem:[#allocation8 + $0x1e0] sm:$0xff]   ;;  %v13819_v54 = vld [vmem:[#allocation3 + $0x70] ss:$8 sps:$4 sm:$0xff]   ;;  %v15318_v47 = vld [vmem:[#allocation3 + $0x14] sm:$0x1]  ;;  %v3696_v12 = vrot.slane %v3694_v10, 4 }
 0x2f3   : > { %12415 = vmatprep.mubr.bf16.mxu0 %v11197_v33  ;;  %v11454_v27 = vcombine.low %v7327_v59, %v7331_v43  ;;  %v13825_v63 = vld [vmem:[#allocation3 + $0x80] ss:$8 sps:$4 sm:$0xff]   ;;  %v13826_v40 = vld [vmem:[#allocation3 + $0x110] ss:$8 sps:$4 sm:$0xff]   ;;  %v15320_v28 = vld [vmem:[#allocation3 + $0x1c] sm:$0x1] }
 0x2f4   : > { %12796 = vmatmul.mubr.bf16.gmra.mrb[8].mxu1 %v11452_v7  ;;  %v13822_v32 = vld [vmem:[#allocation8 + $0x4e0] sm:$0xff]   ;;  %v3703_v6 = vshll.u32 %v15318_v47, 16  ;;  %v13824_v19 = vld [vmem:[#allocation8 + $0x4e8] sm:$0xff]   ;;  %v13828_v49 = vld [vmem:[#allocation8 + $0x1f0] sm:$0xff]   ;;  %v3717_v30 = vshll.u32 %v15320_v28, 16  ;;  %v3699_v18 = vrot.slane %v3697_v29, 5 }
 0x2f5   : > { %12430 = vmatpush3.bf16.msra.mxu0 %v13795_v55  ;;  %12812 = vmatpush3.bf16.msra.mxu1 %v13794_v3  ;;  %v13821_v21 = vld [vmem:[#allocation3 + $0x100] ss:$8 sps:$4 sm:$0xff]   ;;  %v3663_v55 = vld [vmem:[#allocation3 + $0x18] sm:$0xf]  ;;  %v15324_v34 = vld [vmem:[#allocation3 + $0xa4] sm:$0x1] }
 0x2f6   : > { %12799 = vmatprep.mubr.bf16.mxu1 %v11453_v17  ;;  %12813 = vmatprep.subr.bf16.mxu1 %v13796_v50  ;;  %v3708_v3 = vshrl.u32 %v3663_v55, 16  ;;  %v3711_v2 = vshll.u32 %v3663_v55, 16  ;;  %v7785_v52 = vld [vmem:[#allocation3 + $0xa0] sm:$0xf]  ;;  %v13827_v33 = vld [vmem:[#allocation3 + $0x90] ss:$8 sps:$4 sm:$0xff]   ;;  %v3700_v14 = vor.u32 %v3699_v18, %v3696_v12 }
 0x2f7   : > { %12431 = vmatprep.subr.bf16.mxu0 %v13797_v37  ;;  %v3705_v41 = vrot.slane %v3703_v6, 5  ;;  %v15326_v39 = vld [vmem:[#allocation3 + $0xac] sm:$0x1]  ;;  %v7818_v26 = vshrl.u32 %v7785_v52, 16  ;;  %v7821_v58 = vshll.u32 %v7785_v52, 16  ;;  %v7827_v17 = vshll.u32 %v15324_v34, 16 }
 0x2f8   : > { %12416 = vmatmul.mubr.bf16.gmra.mrb[44].mxu0 %v11198_v53  ;;  %v3710_v7 = vrot.slane %v3708_v3, 4  ;;  %v3713_v13 = vrot.slane %v3711_v2, 5  ;;  %v3665_v1 = vld [vmem:[#allocation3 + $0x20] sm:$0xf]  ;;  %v13831_v53 = vld [vmem:[#allocation8 + $0x1f8] sm:$0xff]  }
 0x2f9   : > { %12432 = vmatpush3.bf16.msra.mxu0 %v13797_v37  ;;  %12435 = vmatprep.mubr.bf16.mxu0 %v13801_v57  ;;  %v3719_v37 = vrot.slane %v3717_v30, 5  ;;  %v7820_v59 = vrot.slane %v7818_v26, 4  ;;  %v7823_v43 = vrot.slane %v7821_v58, 5  ;;  %v15341_v5 = vld [vmem:[#allocation3 + $0xb4] sm:$0x1]  ;;  %v13832_v55 = vld [vmem:[#allocation8 + $0x4f8] sm:$0xff]  }
 0x2fa   : > { %12814 = vmatpush3.bf16.msra.mxu1 %v13796_v50  ;;  %12433 = vmatprep.subr.bf16.mxu0 %v13799_v62  ;;  %v7787_v50 = vld [vmem:[#allocation3 + $0xa8] sm:$0xf]  ;;  %v3714_v57 = vor.u32 %v3713_v13, %v3710_v7  ;;  %v7791_v3 = vld [vmem:[#allocation3 + $0xb8] sm:$0xf]  ;;  %v15348_v2 = vld [vmem:[#allocation3 + $0xbc] sm:$0x1] }
 0x2fb   : > { %12815 = vmatprep.subr.bf16.mxu1 %v13798_v45  ;;  %v7832_v46 = vshrl.u32 %v7787_v50, 16  ;;  %v7835_v38 = vshll.u32 %v7787_v50, 16 }
 0x2fc   : > { %12800 = vmatmul.mubr.bf16.gmra.mrb[12].mxu1 %v11454_v27  ;;  %v7829_v27 = vrot.slane %v7827_v17, 5  ;;  %v7869_v17 = vshll.u32 %v15348_v2, 16 }
 0x2fd   : > { %12434 = vmatpush3.bf16.msra.mxu0 %v13799_v62  ;;  %12819 = vmatprep.mubr.bf16.mxu1 %v13802_v15  ;;  %v7841_v62 = vshll.u32 %v15326_v39, 16  ;;  %v3701_v15 = vrot.slane %v3700_v14, 4  ;;  %v7863_v14 = vshll.u32 %v7791_v3, 16 }
 0x2fe   : > { %12816 = vmatpush3.bf16.msra.mxu1 %v13798_v45  ;;  %12451 = vmatprep.subr.bf16.mxu0 %v13804_v24  ;;  %v15330_v45 = vld [vmem:[#allocation3 + $0x24] sm:$0x1] }
 0x2ff   : > { %12817 = vmatprep.subr.bf16.mxu1 %v13800_v20 }
 0x300   : > { %12436 = vmatmul.mubr.bf16.vlgmr.msra.gmra.mrb[32].mxu0 %v13803_v31  ;;  %v3667_v31 = vld [vmem:[#allocation3 + $0x28] sm:$0xf] }
 0x301   : > { %12452 = vmatpush3.bf16.msra.mxu0 %v13804_v24  ;;  %12439 = vmatprep.mubr.bf16.mxu0 %v13809_v0  ;;  %v7837_v24 = vrot.slane %v7835_v38, 5  ;;  %v3715_v0 = vrot.slane %v3714_v57, 4  ;;  %v3739_v29 = vshll.u32 %v3667_v31, 16 }
 0x302   : > { %12818 = vmatpush3.bf16.msra.mxu1 %v13800_v20  ;;  %12453 = vmatprep.subr.bf16.mxu0 %v13807_v22  ;;  %v7834_v20 = vrot.slane %v7832_v46, 4  ;;  %v13834_v46 = vld [vmem:[#allocation8 + $0x500] sm:$0xff]  }
 0x303   : > { %12835 = vmatprep.subr.bf16.mxu1 %v13806_v16  ;;  %v3741_v18 = vrot.slane %v3739_v29, 5 }
 0x305   : > { %12820 = vmatmul.mubr.bf16.vlgmr.msra.gmra.mrb[0].mxu1 %v13805_v8  ;;  %12454 = vmatpush3.bf16.msra.mxu0 %v13807_v22  ;;  %v13829_v22 = vld [vmem:[#allocation3 + $0x120] ss:$8 sps:$4 sm:$0xff]   ;;  %v7824_v8 = vor.u32 %v7823_v43, %v7820_v59  ;;  %v7865_v43 = vrot.slane %v7863_v14, 5 }
 0x306   : > { %12836 = vmatpush3.bf16.msra.mxu1 %v13806_v16  ;;  %12823 = vmatprep.mubr.bf16.mxu1 %v13810_v23  ;;  %v13830_v16 = vld [vmem:[#allocation8 + $0x4f0] sm:$0xff]   ;;  %v3722_v23 = vshrl.u32 %v3665_v1, 16 }
 0x307   : > { %12837 = vmatprep.subr.bf16.mxu1 %v13808_v42  ;;  %12455 = vmatprep.subr.bf16.mxu0 %v13812_v60 }
 0x308   : > { %12440 = vmatmul.mubr.bf16.gmra.mrb[36].mxu0 %v13811_v9  ;;  %v3706_v9 = vsel %vm14735_vm8, %v3701_v15, %v3705_v41  ;;  %v7855_v41 = vshll.u32 %v15341_v5, 16  ;;  %v3669_v15 = vld [vmem:[#allocation3 + $0x30] sm:$0xf] }
 0x309   : > { %12456 = vmatpush3.bf16.msra.mxu0 %v13812_v60  ;;  %12443 = vmatprep.mubr.bf16.mxu0 %v13817_v56  ;;  %v15332_v60 = vld [vmem:[#allocation3 + $0x2c] sm:$0x1]  ;;  %v7838_v56 = vor.u32 %v7837_v24, %v7834_v20  ;;  %v15355_v20 = vld [vmem:[#allocation3 + $0x34] sm:$0x1]  ;;  %v3671_v24 = vld [vmem:[#allocation3 + $0x38] sm:$0xf] }
 0x30a   : > { %12838 = vmatpush3.bf16.msra.mxu1 %v13808_v42  ;;  %12457 = vmatprep.subr.bf16.mxu0 %v13815_v4  ;;  %v7843_v42 = vrot.slane %v7841_v62, 5  ;;  %v3745_v6 = vshll.u32 %v15332_v60, 16  ;;  %v7871_v62 = vrot.slane %v7869_v17, 5 }
 0x30b   : > { %12839 = vmatprep.subr.bf16.mxu1 %v13814_v35 }
 0x30c   : > { %v3747_v58 = vrot.slane %v3745_v6, 5 }
 0x30d   : > { %12824 = vmatmul.mubr.bf16.gmra.mrb[4].mxu1 %v13813_v36  ;;  %12458 = vmatpush3.bf16.msra.mxu0 %v13815_v4  ;;  %v3731_v4 = vshll.u32 %v15330_v45, 16  ;;  %v3720_v36 = vsel %vm14735_vm8, %v3715_v0, %v3719_v37  ;;  %v7860_v37 = vshrl.u32 %v7791_v3, 16  ;;  %v15359_v0 = vld [vmem:[#allocation3 + $0x3c] sm:$0x1] }
 0x30e   : > { %12840 = vmatpush3.bf16.msra.mxu1 %v13814_v35  ;;  %12827 = vmatprep.mubr.bf16.mxu1 %v13818_v61  ;;  %v3725_v35 = vshll.u32 %v3665_v1, 16  ;;  %v3736_v61 = vshrl.u32 %v3667_v31, 16  ;;  %v7857_v1 = vrot.slane %v7855_v41, 5  ;;  %v3750_v31 = vshrl.u32 %v3669_v15, 16 }
 0x30f   : > { %12841 = vmatprep.subr.bf16.mxu1 %v13816_v48  ;;  %12459 = vmatprep.subr.bf16.mxu0 %v13820_v11  ;;  %v3733_v12 = vrot.slane %v3731_v4, 5 }
 0x310   : > { %12444 = vmatmul.mubr.bf16.gmra.mrb[40].mxu0 %v13819_v54  ;;  %v7789_v54 = vld [vmem:[#allocation3 + $0xb0] sm:$0xf]  ;;  %v3738_v10 = vrot.slane %v3736_v61, 4  ;;  %v3752_v4 = vrot.slane %v3750_v31, 4 }
 0x311   : > { %12460 = vmatpush3.bf16.msra.mxu0 %v13820_v11  ;;  %12447 = vmatprep.mubr.bf16.mxu0 %v13825_v63  ;;  %v3724_v11 = vrot.slane %v3722_v23, 4  ;;  %v7839_v63 = vrot.slane %v7838_v56, 4  ;;  %v7846_v30 = vshrl.u32 %v7789_v54, 16  ;;  %v7849_v52 = vshll.u32 %v7789_v54, 16  ;;  %v7793_v23 = vld [vmem:[#allocation3 + $0xc0] sm:$0xf] }
 0x312   : > { %12842 = vmatpush3.bf16.msra.mxu1 %v13816_v48  ;;  %12461 = vmatprep.subr.bf16.mxu0 %v13823_v44  ;;  %v7825_v48 = vrot.slane %v7824_v8, 4  ;;  %v3742_v26 = vor.u32 %v3741_v18, %v3738_v10  ;;  %v3753_v8 = vshll.u32 %v3669_v15, 16  ;;  %v7874_v10 = vshrl.u32 %v7793_v23, 16  ;;  %v13838_v15 = vld [vmem:[#allocation8 + $0x510] sm:$0xff]  }
 0x313   : > { %12843 = vmatprep.subr.bf16.mxu1 %v13822_v32  ;;  %v7848_v50 = vrot.slane %v7846_v30, 4  ;;  %v7851_v13 = vrot.slane %v7849_v52, 5  ;;  %v7877_v29 = vshll.u32 %v7793_v23, 16  ;;  %v3673_v52 = vld [vmem:[#allocation3 + $0x40] sm:$0xf] }
 0x314   : > { %v3743_v59 = vrot.slane %v3742_v26, 4  ;;  %v3755_v61 = vrot.slane %v3753_v8, 5  ;;  %v7876_v18 = vrot.slane %v7874_v10, 4  ;;  %v15388_v10 = vld [vmem:[#allocation3 + $0xdc] sm:$0x1] }
 0x315   : > { %12828 = vmatmul.mubr.bf16.gmra.mrb[8].mxu1 %v13821_v21  ;;  %12462 = vmatpush3.bf16.msra.mxu0 %v13823_v44  ;;  %v11223_v44 = vcombine.low %v3706_v9, %v3720_v36  ;;  %v15339_v21 = vld [vmem:[#allocation8 + $0x200] sm:$0xff]   ;;  %v7852_v38 = vor.u32 %v7851_v13, %v7848_v50  ;;  %v3764_v36 = vshrl.u32 %v3671_v24, 16  ;;  %v7879_v41 = vrot.slane %v7877_v29, 5  ;;  %v3675_v50 = vld [vmem:[#allocation3 + $0x48] sm:$0xf]  ;;  %v13837_v13 = vld [vmem:[#allocation8 + $0x210] sm:$0xff]  }
 0x316   : > { %12844 = vmatpush3.bf16.msra.mxu1 %v13822_v32  ;;  %12831 = vmatprep.mubr.bf16.mxu1 %v13826_v40  ;;  %v3727_v32 = vrot.slane %v3725_v35, 5  ;;  %v7830_v40 = vsel %vm14735_vm8, %v7825_v48, %v7829_v27  ;;  %v13835_v35 = vld [vmem:[#allocation8 + $0x208] sm:$0xff]   ;;  %v15364_v48 = vld [vmem:[#allocation3 + $0xc4] sm:$0x1]  ;;  %v3756_v3 = vor.u32 %v3755_v61, %v3752_v4  ;;  %v3792_v23 = vshrl.u32 %v3675_v50, 16 }
 0x317   : > { %12845 = vmatprep.subr.bf16.mxu1 %v13824_v19  ;;  %12463 = vmatprep.subr.bf16.mxu0 %v13828_v49  ;;  %v7853_v27 = vrot.slane %v7852_v38, 4  ;;  %v7883_v30 = vshll.u32 %v15364_v48, 16  ;;  %v7880_v14 = vor.u32 %v7879_v41, %v7876_v18  ;;  %v7799_v61 = vld [vmem:[#allocation3 + $0xd8] sm:$0xf]  ;;  %v13841_v29 = vld [vmem:[#allocation8 + $0x220] sm:$0xff]  }
 0x318   : > { %12448 = vmatmul.mubr.bf16.gmra.mrb[44].mxu0 %v13827_v33 }
 0x319   : > { %12464 = vmatpush3.bf16.msra.mxu0 %v13828_v49  ;;  %12467 = vmatprep.mubr.bf16.mxu0 %v11223_v44  ;;  %v3728_v49 = vor.u32 %v3727_v32, %v3724_v11  ;;  %v7858_v56 = vsel %vm14735_vm8, %v7853_v27, %v7857_v1  ;;  %v3767_v44 = vshll.u32 %v3671_v24, 16  ;;  %v3766_v32 = vrot.slane %v3764_v36, 4 }
 0x31a   : > { %12846 = vmatpush3.bf16.msra.mxu1 %v13824_v19  ;;  %12465 = vmatprep.subr.bf16.mxu0 %v13831_v53  ;;  %v7844_v19 = vsel %vm14735_vm8, %v7839_v63, %v7843_v42  ;;  %v3759_v42 = vshll.u32 %v15355_v20, 16  ;;  %v13836_v63 = vld [vmem:[#allocation8 + $0x508] sm:$0xff]   ;;  %v3778_v1 = vshrl.u32 %v3673_v52, 16  ;;  %v7881_v27 = vrot.slane %v7880_v14, 4 }
 0x31b   : > { %12847 = vmatprep.subr.bf16.mxu1 %v13830_v16  ;;  %v11479_v33 = vcombine.low %v7830_v40, %v7844_v19  ;;  %v3729_v7 = vrot.slane %v3728_v49, 4  ;;  %v7795_v40 = vld [vmem:[#allocation3 + $0xc8] sm:$0xf]  ;;  %v3769_v19 = vrot.slane %v3767_v44, 5  ;;  %v15370_v49 = vld [vmem:[#allocation3 + $0xcc] sm:$0x1] }
 0x31c   : > { %v3761_v54 = vrot.slane %v3759_v42, 5  ;;  %v7891_v17 = vshll.u32 %v7795_v40, 16  ;;  %v7897_v38 = vshll.u32 %v15370_v49, 16 }
 0x31d   : > { %12832 = vmatmul.mubr.bf16.gmra.mrb[12].mxu1 %v13829_v22  ;;  %12466 = vmatpush3.bf16.msra.mxu0 %v13831_v53  ;;  %v7862_v53 = vrot.slane %v7860_v37, 4  ;;  %v3734_v57 = vsel %vm14735_vm8, %v3729_v7, %v3733_v12  ;;  %v3748_v22 = vsel %vm14735_vm8, %v3743_v59, %v3747_v58  ;;  %v15373_v7 = vld [vmem:[#allocation3 + $0x44] sm:$0x1]  ;;  %v3757_v37 = vrot.slane %v3756_v3, 4 }
 0x31e   : > { %12848 = vmatpush3.bf16.msra.mxu1 %v13830_v16  ;;  %12483 = vmatprep.subr.bf16.mxu0 %v15339_v21  ;;  %v11224_v9 = vcombine.low %v3734_v57, %v3748_v22  ;;  %v3770_v26 = vor.u32 %v3769_v19, %v3766_v32  ;;  %v7885_v58 = vrot.slane %v7883_v30, 5  ;;  %v7893_v24 = vrot.slane %v7891_v17, 5  ;;  %v3677_v17 = vld [vmem:[#allocation3 + $0x60] sm:$0xf] }
 0x31f   : > { %12849 = vmatprep.subr.bf16.mxu1 %v13832_v55  ;;  %12851 = vmatprep.mubr.bf16.mxu1 %v11479_v33  ;;  %v7866_v16 = vor.u32 %v7865_v43, %v7862_v53  ;;  %v3762_v53 = vsel %vm14735_vm8, %v3757_v37, %v3761_v54  ;;  %v15378_v43 = vld [vmem:[#allocation3 + $0x4c] sm:$0x1]  ;;  %v7899_v31 = vrot.slane %v7897_v38, 5  ;;  %v3780_v22 = vrot.slane %v3778_v1, 4  ;;  %v13840_v54 = vld [vmem:[#allocation8 + $0x518] sm:$0xff]  }
 0x320   : > { %12468 = vmatmul.mubr.bf16.vlgmr.msra.gmra.mrb[32].mxu0 %v11224_v9  ;;  %v3771_v57 = vrot.slane %v3770_v26, 4  ;;  %v3787_v42 = vshll.u32 %v15373_v7, 16  ;;  %v15383_v9 = vld [vmem:[#allocation3 + $0xd4] sm:$0x1]  ;;  %v7886_v4 = vsel %vm14735_vm8, %v7881_v27, %v7885_v58  ;;  %v15397_v38 = vld [vmem:[#allocation3 + $0x64] sm:$0x1] }
 0x321   : > { %v7867_v11 = vrot.slane %v7866_v16, 4  ;;  %12484 = vmatpush3.bf16.msra.mxu0 %v15339_v21  ;;  %v7888_v21 = vshrl.u32 %v7795_v40, 16  ;;  %v7797_v16 = vld [vmem:[#allocation3 + $0xd0] sm:$0xf]  ;;  %v3801_v40 = vshll.u32 %v15378_v43, 16  ;;  %v13843_v27 = vld [vmem:[#allocation8 + $0x228] sm:$0xff]  }
 0x322   : > { %12850 = vmatpush3.bf16.msra.mxu1 %v13832_v55  ;;  %v3773_v55 = vshll.u32 %v15359_v0, 16  ;;  %12485 = vmatprep.subr.bf16.mxu0 %v13835_v35  ;;  %v3789_v32 = vrot.slane %v3787_v42, 5  ;;  %v7902_v19 = vshrl.u32 %v7797_v16, 16  ;;  %v7905_v30 = vshll.u32 %v7797_v16, 16 }
 0x323   : > { %12867 = vmatprep.subr.bf16.mxu1 %v13834_v46  ;;  %v7872_v6 = vsel %vm14735_vm8, %v7867_v11, %v7871_v62  ;;  %v7890_v59 = vrot.slane %v7888_v21, 4  ;;  %v3781_v62 = vshll.u32 %v3673_v52, 16  ;;  %v3795_v11 = vshll.u32 %v3675_v50, 16 }
 0x324   : > { %v11480_v33 = vcombine.low %v7858_v56, %v7872_v6  ;;  %v3775_v12 = vrot.slane %v3773_v55, 5  ;;  %v13839_v56 = vld [vmem:[#allocation8 + $0x218] sm:$0xff]   ;;  %v3794_v55 = vrot.slane %v3792_v23, 4  ;;  %v7904_v50 = vrot.slane %v7902_v19, 4  ;;  %v13845_v19 = vld [vmem:[#allocation8 + $0x230] sm:$0xff]  }
 0x325   : > { %12486 = vmatpush3.bf16.msra.mxu0 %v13835_v35  ;;  %v3783_v8 = vrot.slane %v3781_v62, 5  ;;  %v7894_v36 = vor.u32 %v7893_v24, %v7890_v59  ;;  %v3797_v3 = vrot.slane %v3795_v11, 5  ;;  %v7907_v37 = vrot.slane %v7905_v30, 5  ;;  %v3679_v62 = vld [vmem:[#allocation3 + $0x68] sm:$0xf] }
 0x326   : > { %12852 = vmatmul.mubr.bf16.vlgmr.msra.gmra.mrb[0].mxu1 %v11480_v33  ;;  %12487 = vmatprep.subr.bf16.mxu0 %v13837_v13  ;;  %v3803_v33 = vrot.slane %v3801_v40, 5  ;;  %v7925_v59 = vshll.u32 %v15388_v10, 16  ;;  %v15400_v24 = vld [vmem:[#allocation3 + $0x6c] sm:$0x1]  ;;  %v3820_v16 = vshrl.u32 %v3679_v62, 16  ;;  %v3823_v40 = vshll.u32 %v3679_v62, 16 }
 0x327   : > { %12868 = vmatpush3.bf16.msra.mxu1 %v13834_v46  ;;  %v3776_v46 = vsel %vm14735_vm8, %v3771_v57, %v3775_v12  ;;  %v3784_v44 = vor.u32 %v3783_v8, %v3780_v22  ;;  %v7895_v6 = vrot.slane %v7894_v36, 4  ;;  %v7911_v12 = vshll.u32 %v15383_v9, 16  ;;  %v3683_v62 = vld [vmem:[#allocation3 + $0x78] sm:$0xf] }
 0x328   : > { %12869 = vmatprep.subr.bf16.mxu1 %v13836_v63  ;;  %v11225_v35 = vcombine.low %v3762_v53, %v3776_v46  ;;  %v3798_v41 = vor.u32 %v3797_v3, %v3794_v55  ;;  %v7908_v53 = vor.u32 %v7907_v37, %v7904_v50  ;;  %v7919_v57 = vshll.u32 %v7799_v61, 16  ;;  %v13844_v3 = vld [vmem:[#allocation8 + $0x528] sm:$0xff]   ;;  %v3681_v50 = vld [vmem:[#allocation3 + $0x70] sm:$0xf]  ;;  %v13847_v37 = vld [vmem:[#allocation8 + $0x238] sm:$0xff]  }
 0x329   : > { %12488 = vmatpush3.bf16.msra.mxu0 %v13837_v13  ;;  %v3785_v52 = vrot.slane %v3784_v44, 4  ;;  %v7900_v18 = vsel %vm14735_vm8, %v7895_v6, %v7899_v31  ;;  %v13842_v13 = vld [vmem:[#allocation8 + $0x520] sm:$0xff]   ;;  %v15395_v21 = vrot.slane %v7911_v12, 5  ;;  %v3806_v31 = vshrl.u32 %v3677_v17, 16  ;;  %v7803_v6 = vld [vmem:[#allocation3 + $0xf8] sm:$0xf] }
 0x32a   : > { %12471 = vmatprep.mubr.bf16.mxu0 %v11225_v35  ;;  %12489 = vmatprep.subr.bf16.mxu0 %v13839_v56  ;;  %v11481_v26 = vcombine.low %v7886_v4, %v7900_v18  ;;  %v3799_v1 = vrot.slane %v3798_v41, 4  ;;  %v3809_v22 = vshll.u32 %v3677_v17, 16  ;;  %v7909_v8 = vrot.slane %v7908_v53, 4  ;;  %v15416_v17 = vld [vmem:[#allocation3 + $0x74] sm:$0x1] }
 0x32b   : > { %12870 = vmatpush3.bf16.msra.mxu1 %v13836_v63  ;;  %v7916_v63 = vshrl.u32 %v7799_v61, 16  ;;  %v3790_v58 = vsel %vm14735_vm8, %v3785_v52, %v3789_v32  ;;  %v7921_v42 = vrot.slane %v7919_v57, 5  ;;  %v7927_v23 = vrot.slane %v7925_v59, 5  ;;  %v15407_v61 = vld [vmem:[#allocation3 + $0xf4] sm:$0x1] }
 0x32c   : > { %12871 = vmatprep.subr.bf16.mxu1 %v13838_v15  ;;  %12855 = vmatprep.mubr.bf16.mxu1 %v11481_v26  ;;  %v3804_v46 = vsel %vm14735_vm8, %v3799_v1, %v3803_v33  ;;  %v3808_v4 = vrot.slane %v3806_v31, 4  ;;  %v3811_v36 = vrot.slane %v3809_v22, 5  ;;  %v7914_v44 = vsel %vm14735_vm8, %v7909_v8, %v15395_v21  ;;  %v15413_v52 = vld [vmem:[#allocation3 + $0xfc] sm:$0x1] }
 0x32d   : > { %v7918_v14 = vrot.slane %v7916_v63, 4  ;;  %12490 = vmatpush3.bf16.msra.mxu0 %v13839_v56  ;;  %v7801_v56 = vld [vmem:[#allocation3 + $0xf0] sm:$0xf]  ;;  %v11226_v35 = vcombine.low %v3790_v58, %v3804_v46  ;;  %v3822_v55 = vrot.slane %v3820_v16, 4  ;;  %v3829_v30 = vshll.u32 %v15400_v24, 16 }
 0x32e   : > { %12491 = vmatprep.subr.bf16.mxu0 %v13841_v29  ;;  %v7930_v33 = vshrl.u32 %v7801_v56, 16  ;;  %v3825_v63 = vrot.slane %v3823_v40, 5  ;;  %v7939_v18 = vshll.u32 %v15407_v61, 16  ;;  %v7944_v41 = vshrl.u32 %v7803_v6, 16  ;;  %v15423_v46 = vld [vmem:[#allocation3 + $0x7c] sm:$0x1] }
 0x32f   : > { %12872 = vmatpush3.bf16.msra.mxu1 %v13838_v15  ;;  %v3815_v15 = vshll.u32 %v15397_v38, 16  ;;  %v7922_v32 = vor.u32 %v7921_v42, %v7918_v14  ;;  %12472 = vmatmul.mubr.bf16.gmra.mrb[36].mxu0 %v11226_v35  ;;  %v3831_v58 = vrot.slane %v3829_v30, 5  ;;  %v7947_v16 = vshll.u32 %v7803_v6, 16  ;;  %v15431_v30 = vld [vmem:[#allocation8 + $0x240] sm:$0xff]  }
 0x330   : > { %12873 = vmatprep.subr.bf16.mxu1 %v13840_v54  ;;  %v7932_v21 = vrot.slane %v7930_v33, 4  ;;  %v3826_v53 = vor.u32 %v3825_v63, %v3822_v55  ;;  %v7941_v57 = vrot.slane %v7939_v18, 5  ;;  %v7946_v59 = vrot.slane %v7944_v41, 4  ;;  %v13848_v18 = vld [vmem:[#allocation8 + $0x538] sm:$0xff]  }
 0x331   : > { %v15405_v11 = vrot.slane %v3815_v15, 5  ;;  %12492 = vmatpush3.bf16.msra.mxu0 %v13841_v29  ;;  %v7933_v29 = vshll.u32 %v7801_v56, 16  ;;  %v7923_v12 = vrot.slane %v7922_v32, 4  ;;  %v7953_v8 = vshll.u32 %v15413_v52, 16  ;;  %v7805_v56 = vld [vmem:[#allocation3 + $0x100] sm:$0xf] }
 0x332   : > { %12493 = vmatprep.subr.bf16.mxu0 %v13843_v27  ;;  %v3834_v42 = vshrl.u32 %v3681_v50, 16  ;;  %v15427_v32 = vld [vmem:[#allocation3 + $0x104] sm:$0x1] }
 0x333   : > { %12874 = vmatpush3.bf16.msra.mxu1 %v13840_v54  ;;  %v3812_v54 = vor.u32 %v3811_v36, %v3808_v4  ;;  %v7935_v14 = vrot.slane %v7933_v29, 5  ;;  %v7928_v1 = vsel %vm14735_vm8, %v7923_v12, %v7927_v23  ;;  %v3837_v23 = vshll.u32 %v3681_v50, 16 }
 0x334   : > { %12875 = vmatprep.subr.bf16.mxu1 %v13842_v13  ;;  %v11482_v31 = vcombine.low %v7914_v44, %v7928_v1  ;;  %v7949_v4 = vrot.slane %v7947_v16, 5  ;;  %v3843_v36 = vshll.u32 %v15416_v17, 16  ;;  %v3848_v44 = vshrl.u32 %v3683_v62, 16  ;;  %v15442_v16 = vld [vmem:[#allocation8 + $0x540] sm:$0xff]  }
 0x335   : > { %v3813_v26 = vrot.slane %v3812_v54, 4  ;;  %12494 = vmatpush3.bf16.msra.mxu0 %v13843_v27  ;;  %v7936_v15 = vor.u32 %v7935_v14, %v7932_v21  ;;  %v3827_v27 = vrot.slane %v3826_v53, 4  ;;  %v7955_v55 = vrot.slane %v7953_v8, 5  ;;  %v7807_v54 = vld [vmem:[#allocation3 + $0x108] sm:$0xf] }
 0x336   : > { %12495 = vmatprep.subr.bf16.mxu0 %v13845_v19  ;;  %12856 = vmatmul.mubr.bf16.gmra.mrb[4].mxu1 %v11482_v31  ;;  %v3836_v40 = vrot.slane %v3834_v42, 4  ;;  %v3839_v6 = vrot.slane %v3837_v23, 5  ;;  %v7950_v12 = vor.u32 %v7949_v4, %v7946_v59  ;;  %v3845_v63 = vrot.slane %v3843_v36, 5 }
 0x337   : > { %12876 = vmatpush3.bf16.msra.mxu1 %v13842_v13  ;;  %v3818_v22 = vsel %vm14735_vm8, %v3813_v26, %v15405_v11  ;;  %v13846_v13 = vld [vmem:[#allocation8 + $0x530] sm:$0xff]   ;;  %v7937_v35 = vrot.slane %v7936_v15, 4  ;;  %v3832_v11 = vsel %vm14735_vm8, %v3827_v27, %v3831_v58  ;;  %v3850_v41 = vrot.slane %v3848_v44, 4  ;;  %v15436_v58 = vld [vmem:[#allocation3 + $0x10c] sm:$0x1] }
 0x338   : > { %12877 = vmatprep.subr.bf16.mxu1 %v13844_v3  ;;  %v11227_v33 = vcombine.low %v3818_v22, %v3832_v11  ;;  %v3851_v50 = vshll.u32 %v3683_v62, 16  ;;  %v3857_v26 = vshll.u32 %v15423_v46, 16  ;;  %v7958_v21 = vshrl.u32 %v7805_v56, 16  ;;  %v3687_v44 = vld [vmem:[#allocation3 + $0x88] sm:$0xf] }
 0x339   : > { %12496 = vmatpush3.bf16.msra.mxu0 %v13845_v19  ;;  %v7942_v29 = vsel %vm14735_vm8, %v7937_v35, %v7941_v57  ;;  %v3840_v19 = vor.u32 %v3839_v6, %v3836_v40  ;;  %v7961_v14 = vshll.u32 %v7805_v56, 16  ;;  %v7967_v1 = vshll.u32 %v15427_v32, 16  ;;  %v15444_v56 = vld [vmem:[#allocation3 + $0x84] sm:$0x1]  ;;  %v15449_v11 = vld [vmem:[#allocation3 + $0x8c] sm:$0x1] }
 0x33a   : > { %12497 = vmatprep.subr.bf16.mxu0 %v13847_v37  ;;  %12475 = vmatprep.mubr.bf16.mxu0 %v11227_v33  ;;  %v3853_v57 = vrot.slane %v3851_v50, 5  ;;  %v7972_v59 = vshrl.u32 %v7807_v54, 16  ;;  %v3859_v31 = vrot.slane %v3857_v26, 5  ;;  %v7960_v22 = vrot.slane %v7958_v21, 4 }
 0x33b   : > { %12878 = vmatpush3.bf16.msra.mxu1 %v13844_v3  ;;  %v7951_v3 = vrot.slane %v7950_v12, 4  ;;  %v3841_v53 = vrot.slane %v3840_v19, 4  ;;  %v7963_v15 = vrot.slane %v7961_v14, 5  ;;  %v7969_v42 = vrot.slane %v7967_v1, 5  ;;  %v7811_v14 = vld [vmem:[#allocation3 + $0x118] sm:$0xf] }
 0x33c   : > { %12879 = vmatprep.subr.bf16.mxu1 %v13846_v13  ;;  %v3854_v8 = vor.u32 %v3853_v57, %v3850_v41  ;;  %v7974_v23 = vrot.slane %v7972_v59, 4  ;;  %v7975_v4 = vshll.u32 %v7807_v54, 16  ;;  %v7981_v36 = vshll.u32 %v15436_v58, 16 }
 0x33d   : > { %12498 = vmatpush3.bf16.msra.mxu0 %v13847_v37  ;;  %v7956_v62 = vsel %vm14735_vm8, %v7951_v3, %v7955_v55  ;;  %v3685_v37 = vld [vmem:[#allocation3 + $0x80] sm:$0xf]  ;;  %v7964_v35 = vor.u32 %v7963_v15, %v7960_v22  ;;  %v3871_v33 = vshll.u32 %v15444_v56, 16  ;;  %v3876_v50 = vshrl.u32 %v3687_v44, 16  ;;  %v15460_v15 = vld [vmem:[#allocation3 + $0x11c] sm:$0x1] }
 0x33e   : > { %12515 = vmatprep.subr.bf16.mxu0 %v15431_v30  ;;  %v11483_v27 = vcombine.low %v7942_v29, %v7956_v62  ;;  %v3855_v55 = vrot.slane %v3854_v8, 4  ;;  %v3862_v40 = vshrl.u32 %v3685_v37, 16  ;;  %v3865_v6 = vshll.u32 %v3685_v37, 16  ;;  %v7809_v29 = vld [vmem:[#allocation3 + $0x110] sm:$0xf] }
 0x33f   : > { %12880 = vmatpush3.bf16.msra.mxu1 %v13846_v13  ;;  %v3846_v13 = vsel %vm14735_vm8, %v3841_v53, %v3845_v63  ;;  %v7965_v12 = vrot.slane %v7964_v35, 4  ;;  %v7977_v19 = vrot.slane %v7975_v4, 5  ;;  %v7983_v41 = vrot.slane %v7981_v36, 5  ;;  %v15452_v63 = vld [vmem:[#allocation3 + $0x114] sm:$0x1] }
 0x340   : > { %12881 = vmatprep.subr.bf16.mxu1 %v13848_v18  ;;  %12859 = vmatprep.mubr.bf16.mxu1 %v11483_v27  ;;  %v3860_v54 = vsel %vm14735_vm8, %v3855_v55, %v3859_v31  ;;  %v3864_v26 = vrot.slane %v3862_v40, 4  ;;  %v3867_v3 = vrot.slane %v3865_v6, 5  ;;  %v3873_v21 = vrot.slane %v3871_v33, 5  ;;  %v3689_v8 = vld [vmem:[#allocation3 + $0x90] sm:$0xf] }
 0x341   : > { %v11228_v1 = vcombine.low %v3846_v13, %v3860_v54  ;;  %v7970_v53 = vsel %vm14735_vm8, %v7965_v12, %v7969_v42  ;;  %v3878_v57 = vrot.slane %v3876_v50, 4  ;;  %v3879_v62 = vshll.u32 %v3687_v44, 16  ;;  %v15463_v13 = vld [vmem:[#allocation3 + $0x94] sm:$0x1]  ;;  %v3691_v40 = vld [vmem:[#allocation3 + $0x98] sm:$0xf] }
 0x342   : > { %v3868_v59 = vor.u32 %v3867_v3, %v3864_v26  ;;  %v3885_v22 = vshll.u32 %v15449_v11, 16  ;;  %v7986_v27 = vshrl.u32 %v7809_v29, 16  ;;  %v7989_v37 = vshll.u32 %v7809_v29, 16  ;;  %16180 = vst [vmem:[#allocation28_spill] sm:$0xff] %v15463_v13 }
 0x343   : > { %12882 = vmatpush3.bf16.msra.mxu1 %v13848_v18  ;;  %v7978_v18 = vor.u32 %v7977_v19, %v7974_v23  ;;  %12476 = vmatmul.mubr.bf16.gmra.mrb[40].mxu0 %v11228_v1  ;;  %v7995_v35 = vshll.u32 %v15452_v63, 16  ;;  %v8000_v4 = vshrl.u32 %v7811_v14, 16  ;;  %v3881_v42 = vrot.slane %v3879_v62, 5  ;;  %v15470_v1 = vld [vmem:[#allocation3 + $0x9c] sm:$0x1] }
 0x344   : > { %12899 = vmatprep.subr.bf16.mxu1 %v15442_v16  ;;  %v3869_v36 = vrot.slane %v3868_v59, 4  ;;  %v3887_v23 = vrot.slane %v3885_v22, 5  ;;  %v7988_v55 = vrot.slane %v7986_v27, 4  ;;  %v7991_v6 = vrot.slane %v7989_v37, 5  ;;  %v7813_v62 = vld [vmem:[#allocation3 + $0x120] sm:$0xf] }
 0x345   : > { %v7979_v31 = vrot.slane %v7978_v18, 4  ;;  %v7997_v33 = vrot.slane %v7995_v35, 5  ;;  %v8002_v12 = vrot.slane %v8000_v4, 4  ;;  %v3882_v50 = vor.u32 %v3881_v42, %v3878_v57  ;;  %v7815_v35 = vld [vmem:[#allocation3 + $0x128] sm:$0xf] }
 0x346   : > { %v3874_v29 = vsel %vm14735_vm8, %v3869_v36, %v3873_v21  ;;  %v8003_v54 = vshll.u32 %v7811_v14, 16  ;;  %v7992_v26 = vor.u32 %v7991_v6, %v7988_v55  ;;  %v8009_v3 = vshll.u32 %v15460_v15, 16 }
 0x347   : > { %v7984_v44 = vsel %vm14735_vm8, %v7979_v31, %v7983_v41  ;;  %v3890_v18 = vshrl.u32 %v3689_v8, 16  ;;  %v3893_v59 = vshll.u32 %v3689_v8, 16  ;;  %v3883_v22 = vrot.slane %v3882_v50, 4  ;;  %v15479_v50 = vld [vmem:[#allocation3 + $0x12c] sm:$0x1] }
 0x348   : > { %v11484_v19 = vcombine.low %v7970_v53, %v7984_v44  ;;  %v8005_v41 = vrot.slane %v8003_v54, 5  ;;  %v3899_v27 = vshll.u32 %v15463_v13, 16  ;;  %v3904_v31 = vshrl.u32 %v3691_v40, 16  ;;  %v15473_v53 = vld [vmem:[#allocation3 + $0x124] sm:$0x1] }
 0x349   : > { %v7993_v37 = vrot.slane %v7992_v26, 4  ;;  %v8011_v21 = vrot.slane %v8009_v3, 5  ;;  %v3892_v57 = vrot.slane %v3890_v18, 4  ;;  %v3895_v14 = vrot.slane %v3893_v59, 5 }
 0x34a   : > { %12860 = vmatmul.mubr.bf16.gmra.mrb[8].mxu1 %v11484_v19  ;;  %v3888_v4 = vsel %vm14735_vm8, %v3883_v22, %v3887_v23  ;;  %v8006_v36 = vor.u32 %v8005_v41, %v8002_v12  ;;  %v3901_v42 = vrot.slane %v3899_v27, 5  ;;  %v3906_v8 = vrot.slane %v3904_v31, 4 }
 0x34b   : > { %v11229_v55 = vcombine.low %v3874_v29, %v3888_v4  ;;  %v7998_v44 = vsel %vm14735_vm8, %v7993_v37, %v7997_v33  ;;  %v3896_v6 = vor.u32 %v3895_v14, %v3892_v57  ;;  %v3907_v19 = vshll.u32 %v3691_v40, 16  ;;  %v4127_v40 = vld [vmem:[#allocation3 + $0x10] sm:$0xe]  ;;  %v8251_v14 = vld [vmem:[#allocation3 + $0xa0] sm:$0xe] }
 0x34c   : > { %v8007_v54 = vrot.slane %v8006_v36, 4  ;;  %v3913_v26 = vshll.u32 %v15470_v1, 16  ;;  %v8014_v3 = vshrl.u32 %v7813_v62, 16  ;;  %v8017_v18 = vshll.u32 %v7813_v62, 16  ;;  %v4128_v62 = vld [vmem:[#allocation3 + $0x18] sm:$0xe] }
 0x34d   : > { %12479 = vmatprep.mubr.bf16.mxu0 %v11229_v55  ;;  %v3897_v59 = vrot.slane %v3896_v6, 4  ;;  %v3909_v13 = vrot.slane %v3907_v19, 5  ;;  %v8023_v23 = vshll.u32 %v15473_v53, 16  ;;  %v8028_v12 = vshrl.u32 %v7815_v35, 16  ;;  %v8252_v19 = vld [vmem:[#allocation3 + $0xa8] sm:$0xe] }
 0x34e   : > { %v8012_v29 = vsel %vm14735_vm8, %v8007_v54, %v8011_v21  ;;  %v3915_v22 = vrot.slane %v3913_v26, 5  ;;  %v8016_v33 = vrot.slane %v8014_v3, 4  ;;  %v8019_v41 = vrot.slane %v8017_v18, 5 }
 0x34f   : > { %v11485_v27 = vcombine.low %v7998_v44, %v8012_v29  ;;  %v3902_v31 = vsel %vm14735_vm8, %v3897_v59, %v3901_v42  ;;  %v3910_v37 = vor.u32 %v3909_v13, %v3906_v8  ;;  %v8025_v57 = vrot.slane %v8023_v23, 5  ;;  %v4129_v44 = vld [vmem:[#allocation3 + $0x20] sm:$0xe]  ;;  %v4130_v8 = vld [vmem:[#allocation3 + $0x28] sm:$0xe] }
 0x350   : > { %v8020_v4 = vor.u32 %v8019_v41, %v8016_v33  ;;  %v8030_v36 = vrot.slane %v8028_v12, 4  ;;  %v8031_v55 = vshll.u32 %v7815_v35, 16  ;;  %v8037_v6 = vshll.u32 %v15479_v50, 16 }
 0x351   : > { %12863 = vmatprep.mubr.bf16.mxu1 %v11485_v27  ;;  %v3911_v21 = vrot.slane %v3910_v37, 4  ;;  %v11239_v54 = vrot.slane %v4127_v40, 9  ;;  %v4177_v26 = vrot.slane %v15318_v47, 5  ;;  %v11240_v3 = vrot.slane %v4128_v62, 9  ;;  %v8253_v27 = vld [vmem:[#allocation3 + $0xb0] sm:$0xe] }
 0x352   : > { %v8021_v18 = vrot.slane %v8020_v4, 4  ;;  %v8033_v29 = vrot.slane %v8031_v55, 5  ;;  %v8039_v42 = vrot.slane %v8037_v6, 5  ;;  %v4181_v13 = vrot.slane %v15320_v28, 5  ;;  %v8254_v28 = vld [vmem:[#allocation3 + $0xb8] sm:$0xe] }
 0x353   : > { %v3916_v59 = vsel %vm14735_vm8, %v3911_v21, %v3915_v22  ;;  %v4178_v35 = vsel %vm14936_vm11, %v11239_v54, %v4177_v26  ;;  %v11495_v23 = vrot.slane %v8251_v14, 9  ;;  %v8301_v12 = vrot.slane %v15324_v34, 5 }
 0x354   : > { %v11230_v33 = vcombine.low %v3902_v31, %v3916_v59  ;;  %v8026_v47 = vsel %vm14735_vm8, %v8021_v18, %v8025_v57  ;;  %v8034_v41 = vor.u32 %v8033_v29, %v8030_v36  ;;  %v4182_v40 = vsel %vm14936_vm11, %v11240_v3, %v4181_v13  ;;  %v4131_v3 = vld [vmem:[#allocation3 + $0x30] sm:$0xe]  ;;  %v4132_v29 = vld [vmem:[#allocation3 + $0x38] sm:$0xe] }
 0x355   : > { %v11255_v37 = vcombine.low %v4178_v35, %v4182_v40  ;;  %v8302_v22 = vsel %vm14936_vm11, %v11495_v23, %v8301_v12  ;;  %v11496_v62 = vrot.slane %v8252_v19, 9  ;;  %v8305_v4 = vrot.slane %v15326_v39, 5  ;;  %v13851_v23 = vld [vmem:[#allocation8 + $0x248] sm:$0xff]  }
 0x356   : > { %12480 = vmatmul.mubr.bf16.gmra.mrb[44].mxu0 %v11230_v33  ;;  %v8035_v14 = vrot.slane %v8034_v41, 4  ;;  %v11241_v34 = vrot.slane %v4129_v44, 9  ;;  %v4185_v31 = vrot.slane %v15330_v45, 5  ;;  %v11242_v55 = vrot.slane %v4130_v8, 9  ;;  %v4133_v41 = vld [vmem:[#allocation3 + $0x40] sm:$0xe] }
 0x357   : > { %12499 = vmatprep.mubr.bf16.mxu0 %v11255_v37  ;;  %v8306_v57 = vsel %vm14936_vm11, %v11496_v62, %v8305_v4  ;;  %v4189_v36 = vrot.slane %v15332_v60, 5  ;;  %v11497_v6 = vrot.slane %v8253_v27, 9  ;;  %v8309_v21 = vrot.slane %v15341_v5, 5  ;;  %v8255_v60 = vld [vmem:[#allocation3 + $0xc0] sm:$0xe] }
 0x358   : > { %v8040_v19 = vsel %vm14735_vm8, %v8035_v14, %v8039_v42  ;;  %v11511_v54 = vcombine.low %v8302_v22, %v8306_v57  ;;  %v4186_v39 = vsel %vm14936_vm11, %v11241_v34, %v4185_v31  ;;  %v11498_v26 = vrot.slane %v8254_v28, 9  ;;  %v8256_v42 = vld [vmem:[#allocation3 + $0xc8] sm:$0xe]  ;;  %v8257_v62 = vld [vmem:[#allocation3 + $0xd0] sm:$0xe] }
 0x359   : > { %v11486_v45 = vcombine.low %v8026_v47, %v8040_v19  ;;  %v4190_v44 = vsel %vm14936_vm11, %v11242_v55, %v4189_v36  ;;  %v8313_v18 = vrot.slane %v15348_v2, 5  ;;  %v11243_v8 = vrot.slane %v4131_v3, 9  ;;  %v4134_v28 = vld [vmem:[#allocation3 + $0x48] sm:$0xe] }
 0x35a   : > { %v11256_v13 = vcombine.low %v4186_v39, %v4190_v44  ;;  %v4193_v5 = vrot.slane %v15355_v20, 5  ;;  %v11244_v59 = vrot.slane %v4132_v29, 9  ;;  %v8310_v35 = vsel %vm14936_vm11, %v11497_v6, %v8309_v21  ;;  %v13852_v57 = vld [vmem:[#allocation8 + $0x548] sm:$0xff]   ;;  %v13853_v6 = vld [vmem:[#allocation8 + $0x250] sm:$0xff]  }
 0x35b   : > { %12864 = vmatmul.mubr.bf16.gmra.mrb[12].mxu1 %v11486_v45  ;;  %v4197_v12 = vrot.slane %v15359_v0, 5  ;;  %v11499_v33 = vrot.slane %v8255_v60, 9  ;;  %v8317_v47 = vrot.slane %v15364_v48, 5  ;;  %v8314_v2 = vsel %vm14936_vm11, %v11498_v26, %v8313_v18  ;;  %v4135_v26 = vld [vmem:[#allocation3 + $0x60] sm:$0xe]  ;;  %v13854_v60 = vld [vmem:[#allocation8 + $0x550] sm:$0xff]  }
 0x35c   : > { %12883 = vmatprep.mubr.bf16.mxu1 %v11511_v54  ;;  %v4194_v20 = vsel %vm14936_vm11, %v11243_v8, %v4193_v5  ;;  %v11500_v40 = vrot.slane %v8256_v42, 9  ;;  %v8321_v27 = vrot.slane %v15370_v49, 5  ;;  %v11245_v22 = vrot.slane %v4133_v41, 9  ;;  %v8258_v49 = vld [vmem:[#allocation3 + $0xd8] sm:$0xe] }
 0x35d   : > { %v4198_v37 = vsel %vm14936_vm11, %v11244_v59, %v4197_v12  ;;  %v8318_v0 = vsel %vm14936_vm11, %v11499_v33, %v8317_v47  ;;  %v4201_v48 = vrot.slane %v15373_v7, 5  ;;  %v11246_v34 = vrot.slane %v4134_v28, 9  ;;  %v4136_v3 = vld [vmem:[#allocation3 + $0x68] sm:$0xe]  ;;  %v8259_v29 = vld [vmem:[#allocation3 + $0xf0] sm:$0xe] }
 0x35e   : > { %12500 = vmatmul.mubr.bf16.vlgmr.msra.gmra.mrb[32].mxu0 %v11256_v13  ;;  %v11257_v4 = vcombine.low %v4194_v20, %v4198_v37  ;;  %v8322_v14 = vsel %vm14936_vm11, %v11500_v40, %v8321_v27  ;;  %v4205_v31 = vrot.slane %v15378_v43, 5  ;;  %v11512_v55 = vcombine.low %v8310_v35, %v8314_v2  ;;  %v13855_v13 = vld [vmem:[#allocation8 + $0x258] sm:$0xff]   ;;  %v4137_v12 = vld [vmem:[#allocation3 + $0x70] sm:$0xe]  ;;  %v8261_v40 = vld [vmem:[#allocation3 + $0x100] sm:$0xe] }
 0x35f   : > { %12516 = vmatpush3.bf16.msra.mxu0 %v15431_v30  ;;  %v4202_v36 = vsel %vm14936_vm11, %v11245_v22, %v4201_v48  ;;  %v11501_v21 = vrot.slane %v8257_v62, 9  ;;  %v8325_v7 = vrot.slane %v15383_v9, 5  ;;  %v11513_v19 = vcombine.low %v8318_v0, %v8322_v14  ;;  %v8260_v5 = vld [vmem:[#allocation3 + $0xf8] sm:$0xe]  ;;  %v8262_v27 = vld [vmem:[#allocation3 + $0x108] sm:$0xe] }
 0x360   : > { %12517 = vmatprep.subr.bf16.mxu0 %v13851_v23  ;;  %12503 = vmatprep.mubr.bf16.mxu0 %v11257_v4  ;;  %v4206_v54 = vsel %vm14936_vm11, %v11246_v34, %v4205_v31  ;;  %v11502_v39 = vrot.slane %v8258_v49, 9  ;;  %v8329_v43 = vrot.slane %v15388_v10, 5  ;;  %v11247_v45 = vrot.slane %v4135_v26, 9  ;;  %v4138_v33 = vld [vmem:[#allocation3 + $0x78] sm:$0xe]  ;;  %v13857_v22 = vld [vmem:[#allocation8 + $0x260] sm:$0xff]  }
 0x361   : > { %v11258_v30 = vcombine.low %v4202_v36, %v4206_v54  ;;  %v4209_v44 = vrot.slane %v15397_v38, 5  ;;  %v11248_v18 = vrot.slane %v4136_v3, 9  ;;  %v8326_v9 = vsel %vm14936_vm11, %v11501_v21, %v8325_v7  ;;  %v13856_v37 = vld [vmem:[#allocation8 + $0x558] sm:$0xff]   ;;  %v4139_v34 = vld [vmem:[#allocation3 + $0x80] sm:$0xe]  ;;  %v13859_v54 = vld [vmem:[#allocation8 + $0x268] sm:$0xff]  }
 0x362   : > { %v4213_v8 = vrot.slane %v15400_v24, 5  ;;  %v11503_v59 = vrot.slane %v8259_v29, 9  ;;  %v8333_v10 = vrot.slane %v15407_v61, 5  ;;  %v8330_v38 = vsel %vm14936_vm11, %v11502_v39, %v8329_v43  ;;  %v4140_v49 = vld [vmem:[#allocation3 + $0x88] sm:$0xe]  ;;  %v13858_v3 = vld [vmem:[#allocation8 + $0x560] sm:$0xff]  }
 0x363   : > { %12884 = vmatmul.mubr.bf16.vlgmr.msra.gmra.mrb[0].mxu1 %v11512_v55  ;;  %12518 = vmatpush3.bf16.msra.mxu0 %v13851_v23  ;;  %v4210_v42 = vsel %vm14936_vm11, %v11247_v45, %v4209_v44  ;;  %v11504_v35 = vrot.slane %v8260_v5, 9  ;;  %v8337_v23 = vrot.slane %v15413_v52, 5  ;;  %v4217_v47 = vrot.slane %v15416_v17, 5  ;;  %v8264_v7 = vld [vmem:[#allocation3 + $0x118] sm:$0xe]  ;;  %v13860_v5 = vld [vmem:[#allocation8 + $0x568] sm:$0xff]  }
 0x364   : > { %12900 = vmatpush3.bf16.msra.mxu1 %v15442_v16  ;;  %12887 = vmatprep.mubr.bf16.mxu1 %v11513_v19  ;;  %v4214_v24 = vsel %vm14936_vm11, %v11248_v18, %v4213_v8  ;;  %v8334_v61 = vsel %vm14936_vm11, %v11503_v59, %v8333_v10  ;;  %v11249_v16 = vrot.slane %v4137_v12, 9  ;;  %v11250_v20 = vrot.slane %v4138_v33, 9  ;;  %v4141_v26 = vld [vmem:[#allocation3 + $0x90] sm:$0xe]  ;;  %v4142_v45 = vld [vmem:[#allocation3 + $0x98] sm:$0xe] }
 0x365   : > { %12901 = vmatprep.subr.bf16.mxu1 %v13852_v57  ;;  %12519 = vmatprep.subr.bf16.mxu0 %v13853_v6  ;;  %v11259_v41 = vcombine.low %v4210_v42, %v4214_v24  ;;  %v8338_v2 = vsel %vm14936_vm11, %v11504_v35, %v8337_v23  ;;  %v4221_v52 = vrot.slane %v15423_v46, 5  ;;  %v11514_v28 = vcombine.low %v8326_v9, %v8330_v38  ;;  %v13861_v10 = vld [vmem:[#allocation8 + $0x270] sm:$0xff]   ;;  %v8265_v38 = vld [vmem:[#allocation3 + $0x120] sm:$0xe]  ;;  %v8266_v42 = vld [vmem:[#allocation3 + $0x128] sm:$0xe] }
 0x366   : > { %12504 = vmatmul.mubr.bf16.gmra.mrb[36].mxu0 %v11258_v30  ;;  %v4218_v0 = vsel %vm14936_vm11, %v11249_v16, %v4217_v47  ;;  %v11505_v48 = vrot.slane %v8261_v40, 9  ;;  %v8341_v17 = vrot.slane %v15427_v32, 5  ;;  %v11515_v62 = vcombine.low %v8334_v61, %v8338_v2  ;;  %v13865_v16 = vld [vmem:[#allocation3 + $0x50] ss:$8 sps:$4 sm:$0xff]   ;;  %v13868_v40 = vld [vmem:[#allocation8 + $0x280] sm:$0xff]  }
 0x367   : > { %12520 = vmatpush3.bf16.msra.mxu0 %v13853_v6  ;;  %v4222_v4 = vsel %vm14936_vm11, %v11250_v20, %v4221_v52  ;;  %v11506_v14 = vrot.slane %v8262_v27, 9  ;;  %v8345_v46 = vrot.slane %v15436_v58, 5  ;;  %12507 = vmatprep.mubr.bf16.mxu0 %v11259_v41  ;;  %v11251_v55 = vrot.slane %v4139_v34, 9  ;;  %v8263_v58 = vld [vmem:[#allocation3 + $0x110] sm:$0xe]  ;;  %v13863_v47 = vld [vmem:[#allocation8 + $0x278] sm:$0xff]  }
 0x368   : > { %12902 = vmatpush3.bf16.msra.mxu1 %v13852_v57  ;;  %12521 = vmatprep.subr.bf16.mxu0 %v13855_v13  ;;  %v11260_v31 = vcombine.low %v4218_v0, %v4222_v4  ;;  %v4225_v36 = vrot.slane %v15444_v56, 5  ;;  %v4229_v6 = vrot.slane %v15449_v11, 5  ;;  %v8342_v32 = vsel %vm14936_vm11, %v11505_v48, %v8341_v17  ;;  %v13862_v41 = vld [vmem:[#allocation8 + $0x570] sm:$0xff]   ;;  %v13864_v52 = vld [vmem:[#allocation8 + $0x578] sm:$0xff]   ;;  %v13867_v27 = vld [vmem:[#allocation3 + $0x60] ss:$8 sps:$4 sm:$0xff]  }
 0x369   : > { %12903 = vmatprep.subr.bf16.mxu1 %v13854_v60  ;;  %v8346_v57 = vsel %vm14936_vm11, %v11506_v14, %v8345_v46  ;;  %v11252_v21 = vrot.slane %v4140_v49, 9  ;;  %v8349_v19 = vrot.slane %v15452_v63, 5  ;;  %v11507_v11 = vrot.slane %v8263_v58, 9  ;;  %v16181_v63 = vld [vmem:[#allocation28_spill] sm:$0xff]  ;;  %v13866_v2 = vld [vmem:[#allocation3 + $0xa8] ss:$8 sps:$4 sm:$0xff]  }
 0x36a   : > { %v4226_v56 = vsel %vm14936_vm11, %v11251_v55, %v4225_v36  ;;  %v11508_v39 = vrot.slane %v8264_v7, 9  ;;  %v8353_v43 = vrot.slane %v15460_v15, 5  ;;  %v11253_v44 = vrot.slane %v4141_v26, 9  ;;  %v13873_v0 = vld [vmem:[#allocation3 + $0x70] ss:$8 sps:$4 sm:$0xff]   ;;  %v13872_v48 = vld [vmem:[#allocation8 + $0x588] sm:$0xff]  }
 0x36b   : > { %12888 = vmatmul.mubr.bf16.gmra.mrb[4].mxu1 %v11514_v28  ;;  %12522 = vmatpush3.bf16.msra.mxu0 %v13855_v13  ;;  %v4230_v30 = vsel %vm14936_vm11, %v11252_v21, %v4229_v6  ;;  %v4233_v18 = vrot.slane %v16181_v63, 5  ;;  %v4237_v29 = vrot.slane %v15470_v1, 5  ;;  %v11254_v13 = vrot.slane %v4142_v45, 9  ;;  %v13871_v28 = vld [vmem:[#allocation8 + $0x288] sm:$0xff]   ;;  %v13876_v17 = vld [vmem:[#allocation8 + $0x290] sm:$0xff]   ;;  %v13879_v34 = vld [vmem:[#allocation8 + $0x298] sm:$0xff]  }
 0x36c   : > { %12904 = vmatpush3.bf16.msra.mxu1 %v13854_v60  ;;  %12891 = vmatprep.mubr.bf16.mxu1 %v11515_v62  ;;  %v11261_v9 = vcombine.low %v4226_v56, %v4230_v30  ;;  %v8350_v60 = vsel %vm14936_vm11, %v11507_v11, %v8349_v19  ;;  %v8354_v15 = vsel %vm14936_vm11, %v11508_v39, %v8353_v43  ;;  %v8357_v1 = vrot.slane %v15473_v53, 5  ;;  %v13874_v62 = vld [vmem:[#allocation3 + $0xc8] ss:$8 sps:$4 sm:$0xff]   ;;  %v13880_v49 = vld [vmem:[#allocation8 + $0x598] sm:$0xff]   ;;  %v13884_v55 = vld [vmem:[#allocation8 + $0x2a0] sm:$0xff]  }
 0x36d   : > { %12905 = vmatprep.subr.bf16.mxu1 %v13856_v37  ;;  %12523 = vmatprep.subr.bf16.mxu0 %v13857_v22  ;;  %v11516_v8 = vcombine.low %v8342_v32, %v8346_v57  ;;  %v4234_v59 = vsel %vm14936_vm11, %v11253_v44, %v4233_v18  ;;  %v8361_v35 = vrot.slane %v15479_v50, 5  ;;  %v11517_v23 = vcombine.low %v8350_v60, %v8354_v15  ;;  %v13875_v4 = vld [vmem:[#allocation3 + $0x80] ss:$8 sps:$4 sm:$0xff]   ;;  %v13878_v46 = vld [vmem:[#allocation8 + $0x590] sm:$0xff]   ;;  %v15594_v11 = vld [vmem:[#allocation3 + $0x5c] sm:$0x1] }
 0x36e   : > { %12508 = vmatmul.mubr.bf16.gmra.mrb[40].mxu0 %v11260_v31  ;;  %v4238_v12 = vsel %vm14936_vm11, %v11254_v13, %v4237_v29  ;;  %v11509_v33 = vrot.slane %v8265_v38, 9  ;;  %v11510_v24 = vrot.slane %v8266_v42, 9  ;;  %v13881_v14 = vld [vmem:[#allocation3 + $0xa0] ss:$8 sps:$4 sm:$0xff]   ;;  %v13883_v6 = vld [vmem:[#allocation3 + $0xb0] ss:$8 sps:$4 sm:$0xff]  }
 0x36f   : > { %12524 = vmatpush3.bf16.msra.mxu0 %v13857_v22  ;;  %12511 = vmatprep.mubr.bf16.mxu0 %v11261_v9  ;;  %v11262_v61 = vcombine.low %v4234_v59, %v4238_v12  ;;  %v13869_v22 = vld [vmem:[#allocation3 + $0xb8] ss:$8 sps:$4 sm:$0xff]   ;;  %v13887_v32 = vld [vmem:[#allocation8 + $0x2a8] sm:$0xff]   ;;  %v4692_v7 = vld [vmem:[#allocation3 + $0x50] sm:$0xf]  ;;  %v4748_v63 = vshll.u32 %v15594_v11, 16 }
 0x370   : > { %12906 = vmatpush3.bf16.msra.mxu1 %v13856_v37  ;;  %12525 = vmatprep.subr.bf16.mxu0 %v13859_v54  ;;  %v8358_v53 = vsel %vm14936_vm11, %v11509_v33, %v8357_v1  ;;  %v8362_v50 = vsel %vm14936_vm11, %v11510_v24, %v8361_v35  ;;  %v13870_v37 = vld [vmem:[#allocation8 + $0x580] sm:$0xff]   ;;  %v13885_v58 = vld [vmem:[#allocation3 + $0x108] ss:$8 sps:$4 sm:$0xff]   ;;  %v15592_v19 = vld [vmem:[#allocation3 + $0x54] sm:$0x1]  ;;  %v4725_v39 = vshrl.u32 %v4692_v7, 16 }
 0x371   : > { %12907 = vmatprep.subr.bf16.mxu1 %v13858_v3  ;;  %v11518_v20 = vcombine.low %v8358_v53, %v8362_v50  ;;  %v13877_v31 = vld [vmem:[#allocation3 + $0xd8] ss:$8 sps:$4 sm:$0xff]   ;;  %v4728_v43 = vshll.u32 %v4692_v7, 16  ;;  %v4734_v26 = vshll.u32 %v15592_v19, 16  ;;  %v13888_v30 = vld [vmem:[#allocation8 + $0x5a8] sm:$0xff]   ;;  %v13892_v45 = vld [vmem:[#allocation8 + $0x2b0] sm:$0xff]  }
 0x372   : > { %v13882_v36 = vld [vmem:[#allocation3 + $0xf8] ss:$8 sps:$4 sm:$0xff]   ;;  %v8816_v18 = vld [vmem:[#allocation3 + $0xa8] sm:$0xf]  ;;  %v15598_v29 = vld [vmem:[#allocation3 + $0xac] sm:$0x1] }
 0x373   : > { %12892 = vmatmul.mubr.bf16.gmra.mrb[8].mxu1 %v11516_v8  ;;  %12526 = vmatpush3.bf16.msra.mxu0 %v13859_v54  ;;  %v13889_v57 = vld [vmem:[#allocation3 + $0xc0] ss:$8 sps:$4 sm:$0xff]   ;;  %v4694_v54 = vld [vmem:[#allocation3 + $0x58] sm:$0xf]  ;;  %v4727_v60 = vrot.slane %v4725_v39, 4  ;;  %v4730_v15 = vrot.slane %v4728_v43, 5 }
 0x374   : > { %12908 = vmatpush3.bf16.msra.mxu1 %v13858_v3  ;;  %12895 = vmatprep.mubr.bf16.mxu1 %v11517_v23  ;;  %v13886_v21 = vld [vmem:[#allocation8 + $0x5a0] sm:$0xff]   ;;  %v4739_v3 = vshrl.u32 %v4694_v54, 16  ;;  %v4742_v44 = vshll.u32 %v4694_v54, 16  ;;  %v13891_v9 = vld [vmem:[#allocation3 + $0xd0] ss:$8 sps:$4 sm:$0xff]   ;;  %v4736_v13 = vrot.slane %v4734_v26, 5 }
 0x375   : > { %12909 = vmatprep.subr.bf16.mxu1 %v13860_v5  ;;  %12527 = vmatprep.subr.bf16.mxu0 %v13861_v10  ;;  %v13890_v56 = vld [vmem:[#allocation3 + $0x118] ss:$8 sps:$4 sm:$0xff]   ;;  %v15600_v38 = vld [vmem:[#allocation3 + $0xb4] sm:$0x1]  ;;  %v8849_v42 = vshrl.u32 %v8816_v18, 16  ;;  %v8852_v1 = vshll.u32 %v8816_v18, 16  ;;  %v4731_v35 = vor.u32 %v4730_v15, %v4727_v60 }
 0x376   : > { %12512 = vmatmul.mubr.bf16.gmra.mrb[44].mxu0 %v11262_v61  ;;  %v4741_v8 = vrot.slane %v4739_v3, 4  ;;  %v4744_v59 = vrot.slane %v4742_v44, 5  ;;  %v8858_v23 = vshll.u32 %v15598_v29, 16  ;;  %v4696_v24 = vld [vmem:[#allocation3 + $0x60] sm:$0xf]  ;;  %v13895_v61 = vld [vmem:[#allocation8 + $0x2b8] sm:$0xff]  }
 0x377   : > { %12528 = vmatpush3.bf16.msra.mxu0 %v13861_v10  ;;  %12531 = vmatprep.mubr.bf16.mxu0 %v13865_v16  ;;  %v4750_v10 = vrot.slane %v4748_v63, 5  ;;  %v8851_v53 = vrot.slane %v8849_v42, 4  ;;  %v8854_v50 = vrot.slane %v8852_v1, 5  ;;  %v15615_v7 = vld [vmem:[#allocation3 + $0xbc] sm:$0x1] }
 0x378   : > { %12910 = vmatpush3.bf16.msra.mxu1 %v13860_v5  ;;  %12529 = vmatprep.subr.bf16.mxu0 %v13863_v47  ;;  %v8818_v5 = vld [vmem:[#allocation3 + $0xb0] sm:$0xf]  ;;  %v4745_v16 = vor.u32 %v4744_v59, %v4741_v8  ;;  %v13896_v54 = vld [vmem:[#allocation8 + $0x5b8] sm:$0xff]   ;;  %v8822_v3 = vld [vmem:[#allocation3 + $0xc0] sm:$0xf] }
 0x379   : > { %12911 = vmatprep.subr.bf16.mxu1 %v13862_v41  ;;  %v8863_v12 = vshrl.u32 %v8818_v5, 16  ;;  %v8866_v33 = vshll.u32 %v8818_v5, 16  ;;  %v15622_v44 = vld [vmem:[#allocation3 + $0xc4] sm:$0x1] }
 0x37b   : > { %12896 = vmatmul.mubr.bf16.gmra.mrb[12].mxu1 %v11518_v20  ;;  %12530 = vmatpush3.bf16.msra.mxu0 %v13863_v47  ;;  %v8872_v47 = vshll.u32 %v15600_v38, 16  ;;  %v8860_v20 = vrot.slane %v8858_v23, 5  ;;  %v8900_v23 = vshll.u32 %v15622_v44, 16 }
 0x37c   : > { %12912 = vmatpush3.bf16.msra.mxu1 %v13862_v41  ;;  %12915 = vmatprep.mubr.bf16.mxu1 %v13866_v2  ;;  %v15604_v41 = vld [vmem:[#allocation3 + $0x64] sm:$0x1]  ;;  %v4732_v2 = vrot.slane %v4731_v35, 4  ;;  %v8894_v35 = vshll.u32 %v8822_v3, 16 }
 0x37d   : > { %12913 = vmatprep.subr.bf16.mxu1 %v13864_v52  ;;  %12547 = vmatprep.subr.bf16.mxu0 %v13868_v40 }
 0x37e   : > { %12532 = vmatmul.mubr.bf16.vlgmr.msra.gmra.mrb[32].mxu0 %v13867_v27  ;;  %v4698_v27 = vld [vmem:[#allocation3 + $0x68] sm:$0xf] }
 0x37f   : > { %12548 = vmatpush3.bf16.msra.mxu0 %v13868_v40  ;;  %12535 = vmatprep.mubr.bf16.mxu0 %v13873_v0  ;;  %v8868_v40 = vrot.slane %v8866_v33, 5  ;;  %v4746_v0 = vrot.slane %v4745_v16, 4  ;;  %v4770_v43 = vshll.u32 %v4698_v27, 16 }
 0x380   : > { %12914 = vmatpush3.bf16.msra.mxu1 %v13864_v52  ;;  %12549 = vmatprep.subr.bf16.mxu0 %v13871_v28  ;;  %v8865_v52 = vrot.slane %v8863_v12, 4  ;;  %v13898_v12 = vld [vmem:[#allocation8 + $0x5c0] sm:$0xff]  }
 0x381   : > { %12931 = vmatprep.subr.bf16.mxu1 %v13870_v37  ;;  %v4772_v15 = vrot.slane %v4770_v43, 5 }
 0x383   : > { %12916 = vmatmul.mubr.bf16.vlgmr.msra.gmra.mrb[0].mxu1 %v13869_v22  ;;  %12550 = vmatpush3.bf16.msra.mxu0 %v13871_v28  ;;  %v13893_v28 = vld [vmem:[#allocation3 + $0x128] ss:$8 sps:$4 sm:$0xff]   ;;  %v8855_v22 = vor.u32 %v8854_v50, %v8851_v53  ;;  %v8896_v50 = vrot.slane %v8894_v35, 5 }
 0x384   : > { %12932 = vmatpush3.bf16.msra.mxu1 %v13870_v37  ;;  %12919 = vmatprep.mubr.bf16.mxu1 %v13874_v62  ;;  %v13894_v37 = vld [vmem:[#allocation8 + $0x5b0] sm:$0xff]   ;;  %v4753_v62 = vshrl.u32 %v4696_v24, 16 }
 0x385   : > { %12933 = vmatprep.subr.bf16.mxu1 %v13872_v48  ;;  %12551 = vmatprep.subr.bf16.mxu0 %v13876_v17 }
 0x386   : > { %12536 = vmatmul.mubr.bf16.gmra.mrb[36].mxu0 %v13875_v4  ;;  %v4737_v4 = vsel %vm14735_vm8, %v4732_v2, %v4736_v13  ;;  %v8886_v13 = vshll.u32 %v15615_v7, 16  ;;  %v4700_v2 = vld [vmem:[#allocation3 + $0x70] sm:$0xf] }
 0x387   : > { %12552 = vmatpush3.bf16.msra.mxu0 %v13876_v17  ;;  %12539 = vmatprep.mubr.bf16.mxu0 %v13881_v14  ;;  %v15606_v17 = vld [vmem:[#allocation3 + $0x6c] sm:$0x1]  ;;  %v8869_v14 = vor.u32 %v8868_v40, %v8865_v52  ;;  %v15629_v52 = vld [vmem:[#allocation3 + $0x74] sm:$0x1]  ;;  %v4702_v40 = vld [vmem:[#allocation3 + $0x78] sm:$0xf] }
 0x388   : > { %12934 = vmatpush3.bf16.msra.mxu1 %v13872_v48  ;;  %12553 = vmatprep.subr.bf16.mxu0 %v13879_v34  ;;  %v8874_v48 = vrot.slane %v8872_v47, 5  ;;  %v4776_v26 = vshll.u32 %v15606_v17, 16  ;;  %v8902_v47 = vrot.slane %v8900_v23, 5 }
 0x389   : > { %12935 = vmatprep.subr.bf16.mxu1 %v13878_v46 }
 0x38a   : > { %v4778_v1 = vrot.slane %v4776_v26, 5 }
 0x38b   : > { %12920 = vmatmul.mubr.bf16.gmra.mrb[4].mxu1 %v13877_v31  ;;  %12554 = vmatpush3.bf16.msra.mxu0 %v13879_v34  ;;  %v4762_v34 = vshll.u32 %v15604_v41, 16  ;;  %v4751_v31 = vsel %vm14735_vm8, %v4746_v0, %v4750_v10  ;;  %v8891_v10 = vshrl.u32 %v8822_v3, 16  ;;  %v15633_v0 = vld [vmem:[#allocation3 + $0x7c] sm:$0x1] }
 0x38c   : > { %12936 = vmatpush3.bf16.msra.mxu1 %v13878_v46  ;;  %12923 = vmatprep.mubr.bf16.mxu1 %v13882_v36  ;;  %v4756_v46 = vshll.u32 %v4696_v24, 16  ;;  %v4767_v36 = vshrl.u32 %v4698_v27, 16  ;;  %v8888_v24 = vrot.slane %v8886_v13, 5  ;;  %v4781_v27 = vshrl.u32 %v4700_v2, 16 }
 0x38d   : > { %12937 = vmatprep.subr.bf16.mxu1 %v13880_v49  ;;  %12555 = vmatprep.subr.bf16.mxu0 %v13884_v55  ;;  %v4764_v60 = vrot.slane %v4762_v34, 5 }
 0x38e   : > { %12540 = vmatmul.mubr.bf16.gmra.mrb[40].mxu0 %v13883_v6  ;;  %v8820_v6 = vld [vmem:[#allocation3 + $0xb8] sm:$0xf]  ;;  %v4769_v39 = vrot.slane %v4767_v36, 4  ;;  %v4783_v34 = vrot.slane %v4781_v27, 4 }
 0x38f   : > { %12556 = vmatpush3.bf16.msra.mxu0 %v13884_v55  ;;  %12543 = vmatprep.mubr.bf16.mxu0 %v13889_v57  ;;  %v4755_v55 = vrot.slane %v4753_v62, 4  ;;  %v8870_v57 = vrot.slane %v8869_v14, 4  ;;  %v8877_v63 = vshrl.u32 %v8820_v6, 16  ;;  %v8880_v18 = vshll.u32 %v8820_v6, 16  ;;  %v8824_v62 = vld [vmem:[#allocation3 + $0xc8] sm:$0xf] }
 0x390   : > { %12938 = vmatpush3.bf16.msra.mxu1 %v13880_v49  ;;  %12557 = vmatprep.subr.bf16.mxu0 %v13887_v32  ;;  %v8856_v49 = vrot.slane %v8855_v22, 4  ;;  %v4773_v42 = vor.u32 %v4772_v15, %v4769_v39  ;;  %v4784_v22 = vshll.u32 %v4700_v2, 16  ;;  %v8905_v39 = vshrl.u32 %v8824_v62, 16  ;;  %v13902_v2 = vld [vmem:[#allocation8 + $0x5d0] sm:$0xff]  }
 0x391   : > { %12939 = vmatprep.subr.bf16.mxu1 %v13886_v21  ;;  %v8879_v5 = vrot.slane %v8877_v63, 4  ;;  %v8882_v59 = vrot.slane %v8880_v18, 5  ;;  %v8908_v43 = vshll.u32 %v8824_v62, 16  ;;  %v4704_v18 = vld [vmem:[#allocation3 + $0x80] sm:$0xf] }
 0x392   : > { %v4774_v53 = vrot.slane %v4773_v42, 4  ;;  %v4786_v36 = vrot.slane %v4784_v22, 5  ;;  %v8907_v15 = vrot.slane %v8905_v39, 4  ;;  %v15662_v39 = vld [vmem:[#allocation3 + $0xe4] sm:$0x1] }
 0x393   : > { %12924 = vmatmul.mubr.bf16.gmra.mrb[8].mxu1 %v13885_v58  ;;  %12558 = vmatpush3.bf16.msra.mxu0 %v13887_v32  ;;  %v11287_v32 = vcombine.low %v4737_v4, %v4751_v31  ;;  %v15613_v58 = vld [vmem:[#allocation8 + $0x2c0] sm:$0xff]   ;;  %v8883_v33 = vor.u32 %v8882_v59, %v8879_v5  ;;  %v4795_v31 = vshrl.u32 %v4702_v40, 16  ;;  %v8910_v13 = vrot.slane %v8908_v43, 5  ;;  %v4706_v5 = vld [vmem:[#allocation3 + $0x88] sm:$0xf]  ;;  %v13901_v59 = vld [vmem:[#allocation8 + $0x2d0] sm:$0xff]  }
 0x394   : > { %12940 = vmatpush3.bf16.msra.mxu1 %v13886_v21  ;;  %12927 = vmatprep.mubr.bf16.mxu1 %v13890_v56  ;;  %v4758_v21 = vrot.slane %v4756_v46, 5  ;;  %v8861_v56 = vsel %vm14735_vm8, %v8856_v49, %v8860_v20  ;;  %v13899_v46 = vld [vmem:[#allocation8 + $0x2c8] sm:$0xff]   ;;  %v4787_v3 = vor.u32 %v4786_v36, %v4783_v34  ;;  %v4823_v62 = vshrl.u32 %v4706_v5, 16  ;;  %v8830_v36 = vld [vmem:[#allocation3 + $0xe0] sm:$0xf] }
 0x395   : > { %12941 = vmatprep.subr.bf16.mxu1 %v13888_v30  ;;  %12559 = vmatprep.subr.bf16.mxu0 %v13892_v45  ;;  %v8884_v20 = vrot.slane %v8883_v33, 4  ;;  %v15638_v49 = vld [vmem:[#allocation3 + $0xcc] sm:$0x1]  ;;  %v8911_v35 = vor.u32 %v8910_v13, %v8907_v15  ;;  %v13905_v43 = vld [vmem:[#allocation8 + $0x2e0] sm:$0xff]  }
 0x396   : > { %12544 = vmatmul.mubr.bf16.gmra.mrb[44].mxu0 %v13891_v9  ;;  %v8914_v63 = vshll.u32 %v15638_v49, 16 }
 0x397   : > { %12560 = vmatpush3.bf16.msra.mxu0 %v13892_v45  ;;  %12563 = vmatprep.mubr.bf16.mxu0 %v11287_v32  ;;  %v4759_v45 = vor.u32 %v4758_v21, %v4755_v55  ;;  %v8889_v14 = vsel %vm14735_vm8, %v8884_v20, %v8888_v24  ;;  %v4798_v32 = vshll.u32 %v4702_v40, 16  ;;  %v4797_v21 = vrot.slane %v4795_v31, 4 }
 0x398   : > { %12942 = vmatpush3.bf16.msra.mxu1 %v13888_v30  ;;  %12561 = vmatprep.subr.bf16.mxu0 %v13895_v61  ;;  %v8875_v30 = vsel %vm14735_vm8, %v8870_v57, %v8874_v48  ;;  %v4790_v48 = vshll.u32 %v15629_v52, 16  ;;  %v13900_v57 = vld [vmem:[#allocation8 + $0x5c8] sm:$0xff]   ;;  %v4809_v24 = vshrl.u32 %v4704_v18, 16  ;;  %v8912_v20 = vrot.slane %v8911_v35, 4 }
 0x399   : > { %12943 = vmatprep.subr.bf16.mxu1 %v13894_v37  ;;  %v11543_v9 = vcombine.low %v8861_v56, %v8875_v30  ;;  %v4760_v8 = vrot.slane %v4759_v45, 4  ;;  %v8826_v56 = vld [vmem:[#allocation3 + $0xd0] sm:$0xf]  ;;  %v4800_v30 = vrot.slane %v4798_v32, 5  ;;  %v15644_v45 = vld [vmem:[#allocation3 + $0xd4] sm:$0x1] }
 0x39a   : > { %v4792_v6 = vrot.slane %v4790_v48, 5  ;;  %v8922_v23 = vshll.u32 %v8826_v56, 16  ;;  %v8928_v33 = vshll.u32 %v15644_v45, 16 }
 0x39b   : > { %12928 = vmatmul.mubr.bf16.gmra.mrb[12].mxu1 %v13893_v28  ;;  %12562 = vmatpush3.bf16.msra.mxu0 %v13895_v61  ;;  %v8893_v61 = vrot.slane %v8891_v10, 4  ;;  %v4765_v16 = vsel %vm14735_vm8, %v4760_v8, %v4764_v60  ;;  %v4779_v28 = vsel %vm14735_vm8, %v4774_v53, %v4778_v1  ;;  %v15647_v8 = vld [vmem:[#allocation3 + $0x84] sm:$0x1]  ;;  %v4788_v10 = vrot.slane %v4787_v3, 4 }
 0x39c   : > { %12944 = vmatpush3.bf16.msra.mxu1 %v13894_v37  ;;  %12579 = vmatprep.subr.bf16.mxu0 %v15613_v58  ;;  %v11288_v4 = vcombine.low %v4765_v16, %v4779_v28  ;;  %v4801_v42 = vor.u32 %v4800_v30, %v4797_v21  ;;  %v8916_v1 = vrot.slane %v8914_v63, 5  ;;  %v8924_v40 = vrot.slane %v8922_v23, 5  ;;  %v4708_v23 = vld [vmem:[#allocation3 + $0xa0] sm:$0xf] }
 0x39d   : > { %12945 = vmatprep.subr.bf16.mxu1 %v13896_v54  ;;  %12947 = vmatprep.mubr.bf16.mxu1 %v11543_v9  ;;  %v8897_v37 = vor.u32 %v8896_v50, %v8893_v61  ;;  %v4793_v61 = vsel %vm14735_vm8, %v4788_v10, %v4792_v6  ;;  %v15652_v50 = vld [vmem:[#allocation3 + $0x8c] sm:$0x1]  ;;  %v8930_v27 = vrot.slane %v8928_v33, 5  ;;  %v4811_v28 = vrot.slane %v4809_v24, 4  ;;  %v13904_v6 = vld [vmem:[#allocation8 + $0x5d8] sm:$0xff]  }
 0x39e   : > { %12564 = vmatmul.mubr.bf16.vlgmr.msra.gmra.mrb[32].mxu0 %v11288_v4  ;;  %v4802_v16 = vrot.slane %v4801_v42, 4  ;;  %v4818_v48 = vshll.u32 %v15647_v8, 16  ;;  %v15657_v4 = vld [vmem:[#allocation3 + $0xdc] sm:$0x1]  ;;  %v8917_v34 = vsel %vm14735_vm8, %v8912_v20, %v8916_v1  ;;  %v15671_v33 = vld [vmem:[#allocation3 + $0xa4] sm:$0x1] }
 0x39f   : > { %v8898_v55 = vrot.slane %v8897_v37, 4  ;;  %12580 = vmatpush3.bf16.msra.mxu0 %v15613_v58  ;;  %v8919_v58 = vshrl.u32 %v8826_v56, 16  ;;  %v8828_v37 = vld [vmem:[#allocation3 + $0xd8] sm:$0xf]  ;;  %v4832_v56 = vshll.u32 %v15652_v50, 16  ;;  %v13907_v20 = vld [vmem:[#allocation8 + $0x2e8] sm:$0xff]  }
 0x3a0   : > { %12946 = vmatpush3.bf16.msra.mxu1 %v13896_v54  ;;  %v4804_v54 = vshll.u32 %v15633_v0, 16  ;;  %12581 = vmatprep.subr.bf16.mxu0 %v13899_v46  ;;  %v4820_v21 = vrot.slane %v4818_v48, 5  ;;  %v8933_v30 = vshrl.u32 %v8828_v37, 16  ;;  %v8936_v63 = vshll.u32 %v8828_v37, 16 }
 0x3a1   : > { %12963 = vmatprep.subr.bf16.mxu1 %v13898_v12  ;;  %v8903_v26 = vsel %vm14735_vm8, %v8898_v55, %v8902_v47  ;;  %v8921_v53 = vrot.slane %v8919_v58, 4  ;;  %v4812_v47 = vshll.u32 %v4704_v18, 16  ;;  %v4826_v55 = vshll.u32 %v4706_v5, 16 }
 0x3a2   : > { %v11544_v9 = vcombine.low %v8889_v14, %v8903_v26  ;;  %v4806_v60 = vrot.slane %v4804_v54, 5  ;;  %v13903_v14 = vld [vmem:[#allocation8 + $0x2d8] sm:$0xff]   ;;  %v4825_v54 = vrot.slane %v4823_v62, 4  ;;  %v8935_v5 = vrot.slane %v8933_v30, 4  ;;  %v13909_v30 = vld [vmem:[#allocation8 + $0x2f0] sm:$0xff]  }
 0x3a3   : > { %12582 = vmatpush3.bf16.msra.mxu0 %v13899_v46  ;;  %v4814_v22 = vrot.slane %v4812_v47, 5  ;;  %v8925_v31 = vor.u32 %v8924_v40, %v8921_v53  ;;  %v4828_v3 = vrot.slane %v4826_v55, 5  ;;  %v8938_v10 = vrot.slane %v8936_v63, 5  ;;  %v4710_v47 = vld [vmem:[#allocation3 + $0xa8] sm:$0xf] }
 0x3a4   : > { %12948 = vmatmul.mubr.bf16.vlgmr.msra.gmra.mrb[0].mxu1 %v11544_v9  ;;  %12583 = vmatprep.subr.bf16.mxu0 %v13901_v59  ;;  %v4834_v9 = vrot.slane %v4832_v56, 5  ;;  %v8956_v53 = vshll.u32 %v15662_v39, 16  ;;  %v15674_v40 = vld [vmem:[#allocation3 + $0xac] sm:$0x1]  ;;  %v4851_v37 = vshrl.u32 %v4710_v47, 16  ;;  %v4854_v56 = vshll.u32 %v4710_v47, 16 }
 0x3a5   : > { %12964 = vmatpush3.bf16.msra.mxu1 %v13898_v12  ;;  %v4807_v12 = vsel %vm14735_vm8, %v4802_v16, %v4806_v60  ;;  %v4815_v32 = vor.u32 %v4814_v22, %v4811_v28  ;;  %v8926_v26 = vrot.slane %v8925_v31, 4  ;;  %v8942_v60 = vshll.u32 %v15657_v4, 16  ;;  %v4714_v47 = vld [vmem:[#allocation3 + $0xb8] sm:$0xf] }
 0x3a6   : > { %12965 = vmatprep.subr.bf16.mxu1 %v13900_v57  ;;  %v11289_v46 = vcombine.low %v4793_v61, %v4807_v12  ;;  %v4829_v13 = vor.u32 %v4828_v3, %v4825_v54  ;;  %v8939_v61 = vor.u32 %v8938_v10, %v8935_v5  ;;  %v8950_v16 = vshll.u32 %v8830_v36, 16  ;;  %v13908_v3 = vld [vmem:[#allocation8 + $0x5e8] sm:$0xff]   ;;  %v4712_v5 = vld [vmem:[#allocation3 + $0xb0] sm:$0xf]  ;;  %v13911_v10 = vld [vmem:[#allocation8 + $0x2f8] sm:$0xff]  }
 0x3a7   : > { %12584 = vmatpush3.bf16.msra.mxu0 %v13901_v59  ;;  %v4816_v18 = vrot.slane %v4815_v32, 4  ;;  %v8931_v15 = vsel %vm14735_vm8, %v8926_v26, %v8930_v27  ;;  %v13906_v59 = vld [vmem:[#allocation8 + $0x5e0] sm:$0xff]   ;;  %v15669_v58 = vrot.slane %v8942_v60, 5  ;;  %v4837_v27 = vshrl.u32 %v4708_v23, 16 }
 0x3a8   : > { %12567 = vmatprep.mubr.bf16.mxu0 %v11289_v46  ;;  %12585 = vmatprep.subr.bf16.mxu0 %v13903_v14  ;;  %v11545_v42 = vcombine.low %v8917_v34, %v8931_v15  ;;  %v4830_v24 = vrot.slane %v4829_v13, 4  ;;  %v4840_v28 = vshll.u32 %v4708_v23, 16  ;;  %v8940_v22 = vrot.slane %v8939_v61, 4  ;;  %v8834_v26 = vld [vmem:[#allocation3 + $0x100] sm:$0xf] }
 0x3a9   : > { %12966 = vmatpush3.bf16.msra.mxu1 %v13900_v57  ;;  %v8947_v57 = vshrl.u32 %v8830_v36, 16  ;;  %v4821_v1 = vsel %vm14735_vm8, %v4816_v18, %v4820_v21  ;;  %v8952_v48 = vrot.slane %v8950_v16, 5  ;;  %v8958_v62 = vrot.slane %v8956_v53, 5  ;;  %v15681_v36 = vld [vmem:[#allocation3 + $0xfc] sm:$0x1] }
 0x3aa   : > { %12967 = vmatprep.subr.bf16.mxu1 %v13902_v2  ;;  %12951 = vmatprep.mubr.bf16.mxu1 %v11545_v42  ;;  %v4835_v12 = vsel %vm14735_vm8, %v4830_v24, %v4834_v9  ;;  %v4839_v34 = vrot.slane %v4837_v27, 4  ;;  %v4842_v31 = vrot.slane %v4840_v28, 5  ;;  %v8945_v32 = vsel %vm14735_vm8, %v8940_v22, %v15669_v58  ;;  %v15687_v18 = vld [vmem:[#allocation3 + $0x104] sm:$0x1]  ;;  %v15690_v23 = vld [vmem:[#allocation3 + $0xb4] sm:$0x1] }
 0x3ab   : > { %v8949_v35 = vrot.slane %v8947_v57, 4  ;;  %12586 = vmatpush3.bf16.msra.mxu0 %v13903_v14  ;;  %v8832_v14 = vld [vmem:[#allocation3 + $0xf8] sm:$0xf]  ;;  %v11290_v46 = vcombine.low %v4821_v1, %v4835_v12  ;;  %v4853_v54 = vrot.slane %v4851_v37, 4  ;;  %v4860_v63 = vshll.u32 %v15674_v40, 16 }
 0x3ac   : > { %12587 = vmatprep.subr.bf16.mxu0 %v13905_v43  ;;  %v8961_v9 = vshrl.u32 %v8832_v14, 16  ;;  %v4856_v57 = vrot.slane %v4854_v56, 5  ;;  %v8970_v15 = vshll.u32 %v15681_v36, 16  ;;  %v8975_v13 = vshrl.u32 %v8834_v26, 16  ;;  %v15697_v12 = vld [vmem:[#allocation3 + $0xbc] sm:$0x1] }
 0x3ad   : > { %12968 = vmatpush3.bf16.msra.mxu1 %v13902_v2  ;;  %v4846_v2 = vshll.u32 %v15671_v33, 16  ;;  %v8953_v21 = vor.u32 %v8952_v48, %v8949_v35  ;;  %12568 = vmatmul.mubr.bf16.gmra.mrb[36].mxu0 %v11290_v46  ;;  %v4862_v1 = vrot.slane %v4860_v63, 5  ;;  %v8978_v37 = vshll.u32 %v8834_v26, 16 }
 0x3ae   : > { %12969 = vmatprep.subr.bf16.mxu1 %v13904_v6  ;;  %v8963_v58 = vrot.slane %v8961_v9, 4  ;;  %v4857_v61 = vor.u32 %v4856_v57, %v4853_v54  ;;  %v8972_v16 = vrot.slane %v8970_v15, 5  ;;  %v8977_v53 = vrot.slane %v8975_v13, 4  ;;  %v13912_v57 = vld [vmem:[#allocation8 + $0x5f8] sm:$0xff]  }
 0x3af   : > { %v15679_v55 = vrot.slane %v4846_v2, 5  ;;  %12588 = vmatpush3.bf16.msra.mxu0 %v13905_v43  ;;  %v8964_v43 = vshll.u32 %v8832_v14, 16  ;;  %v8954_v60 = vrot.slane %v8953_v21, 4  ;;  %v8984_v22 = vshll.u32 %v15687_v18, 16  ;;  %v8836_v14 = vld [vmem:[#allocation3 + $0x108] sm:$0xf] }
 0x3b0   : > { %12589 = vmatprep.subr.bf16.mxu0 %v13907_v20  ;;  %v4865_v48 = vshrl.u32 %v4712_v5, 16  ;;  %v15701_v21 = vld [vmem:[#allocation3 + $0x10c] sm:$0x1] }
 0x3b1   : > { %12970 = vmatpush3.bf16.msra.mxu1 %v13904_v6  ;;  %v4843_v6 = vor.u32 %v4842_v31, %v4839_v34  ;;  %v8966_v35 = vrot.slane %v8964_v43, 5  ;;  %v8959_v24 = vsel %vm14735_vm8, %v8954_v60, %v8958_v62  ;;  %v4868_v62 = vshll.u32 %v4712_v5, 16 }
 0x3b2   : > { %12971 = vmatprep.subr.bf16.mxu1 %v13906_v59  ;;  %v11546_v27 = vcombine.low %v8945_v32, %v8959_v24  ;;  %v8980_v34 = vrot.slane %v8978_v37, 5  ;;  %v4874_v31 = vshll.u32 %v15690_v23, 16  ;;  %v4879_v32 = vshrl.u32 %v4714_v47, 16 }
 0x3b3   : > { %v4844_v42 = vrot.slane %v4843_v6, 4  ;;  %12590 = vmatpush3.bf16.msra.mxu0 %v13907_v20  ;;  %v8967_v2 = vor.u32 %v8966_v35, %v8963_v58  ;;  %v4858_v20 = vrot.slane %v4857_v61, 4  ;;  %v8986_v54 = vrot.slane %v8984_v22, 5  ;;  %v8838_v6 = vld [vmem:[#allocation3 + $0x110] sm:$0xf] }
 0x3b4   : > { %12591 = vmatprep.subr.bf16.mxu0 %v13909_v30  ;;  %12952 = vmatmul.mubr.bf16.gmra.mrb[4].mxu1 %v11546_v27  ;;  %v4867_v56 = vrot.slane %v4865_v48, 4  ;;  %v4870_v26 = vrot.slane %v4868_v62, 5  ;;  %v8981_v43 = vor.u32 %v8980_v34, %v8977_v53  ;;  %v4876_v60 = vrot.slane %v4874_v31, 5  ;;  %v4716_v62 = vld [vmem:[#allocation3 + $0xc0] sm:$0xf] }
 0x3b5   : > { %12972 = vmatpush3.bf16.msra.mxu1 %v13906_v59  ;;  %v4849_v28 = vsel %vm14735_vm8, %v4844_v42, %v15679_v55  ;;  %v13910_v59 = vld [vmem:[#allocation8 + $0x5f0] sm:$0xff]   ;;  %v8968_v46 = vrot.slane %v8967_v2, 4  ;;  %v4863_v55 = vsel %vm14735_vm8, %v4858_v20, %v4862_v1  ;;  %v4881_v13 = vrot.slane %v4879_v32, 4  ;;  %v15713_v2 = vld [vmem:[#allocation8 + $0x600] sm:$0xff]   ;;  %v4718_v31 = vld [vmem:[#allocation3 + $0xc8] sm:$0xf] }
 0x3b6   : > { %12973 = vmatprep.subr.bf16.mxu1 %v13908_v3  ;;  %v11291_v63 = vcombine.low %v4849_v28, %v4863_v55  ;;  %v4871_v15 = vor.u32 %v4870_v26, %v4867_v56  ;;  %v4888_v5 = vshll.u32 %v15697_v12, 16  ;;  %v15708_v42 = vld [vmem:[#allocation3 + $0x114] sm:$0x1]  ;;  %v8982_v1 = vrot.slane %v8981_v43, 4  ;;  %v15720_v32 = vld [vmem:[#allocation3 + $0xcc] sm:$0x1] }
 0x3b7   : > { %12592 = vmatpush3.bf16.msra.mxu0 %v13909_v30  ;;  %v8973_v9 = vsel %vm14735_vm8, %v8968_v46, %v8972_v16  ;;  %v4882_v30 = vshll.u32 %v4714_v47, 16  ;;  %v8989_v58 = vshrl.u32 %v8836_v14, 16  ;;  %v8998_v35 = vshll.u32 %v15701_v21, 16 }
 0x3b8   : > { %12593 = vmatprep.subr.bf16.mxu0 %v13911_v10  ;;  %12571 = vmatprep.mubr.bf16.mxu0 %v11291_v63  ;;  %v4872_v24 = vrot.slane %v4871_v15, 4  ;;  %v9003_v16 = vshrl.u32 %v8838_v6, 16  ;;  %v8987_v53 = vsel %vm14735_vm8, %v8982_v1, %v8986_v54  ;;  %v4890_v27 = vrot.slane %v4888_v5, 5  ;;  %v8840_v63 = vld [vmem:[#allocation3 + $0x118] sm:$0xf] }
 0x3b9   : > { %12974 = vmatpush3.bf16.msra.mxu1 %v13908_v3  ;;  %v8992_v3 = vshll.u32 %v8836_v14, 16  ;;  %v4884_v61 = vrot.slane %v4882_v30, 5  ;;  %v8991_v47 = vrot.slane %v8989_v58, 4  ;;  %v11547_v37 = vcombine.low %v8973_v9, %v8987_v53  ;;  %v15715_v14 = vld [vmem:[#allocation3 + $0xc4] sm:$0x1] }
 0x3ba   : > { %12975 = vmatprep.subr.bf16.mxu1 %v13910_v59  ;;  %v9000_v22 = vrot.slane %v8998_v35, 5  ;;  %v9005_v48 = vrot.slane %v9003_v16, 4  ;;  %v9006_v46 = vshll.u32 %v8838_v6, 16  ;;  %v9012_v34 = vshll.u32 %v15708_v42, 16  ;;  %v8842_v58 = vld [vmem:[#allocation3 + $0x120] sm:$0xf] }
 0x3bb   : > { %12594 = vmatpush3.bf16.msra.mxu0 %v13911_v10  ;;  %v8994_v28 = vrot.slane %v8992_v3, 5  ;;  %v4885_v20 = vor.u32 %v4884_v61, %v4881_v13  ;;  %v4877_v10 = vsel %vm14735_vm8, %v4872_v24, %v4876_v60  ;;  %12955 = vmatprep.mubr.bf16.mxu1 %v11547_v37  ;;  %v4893_v54 = vshrl.u32 %v4716_v62, 16  ;;  %v15723_v60 = vld [vmem:[#allocation3 + $0x11c] sm:$0x1]  ;;  %v4720_v37 = vld [vmem:[#allocation3 + $0xd0] sm:$0xf] }
 0x3bc   : > { %v4896_v56 = vshll.u32 %v4716_v62, 16  ;;  %v4902_v26 = vshll.u32 %v15715_v14, 16  ;;  %v9008_v43 = vrot.slane %v9006_v46, 5  ;;  %v9014_v15 = vrot.slane %v9012_v34, 5 }
 0x3bd   : > { %12976 = vmatpush3.bf16.msra.mxu1 %v13910_v59  ;;  %v8995_v59 = vor.u32 %v8994_v28, %v8991_v47  ;;  %v4886_v55 = vrot.slane %v4885_v20, 4  ;;  %v4907_v13 = vshrl.u32 %v4718_v31, 16  ;;  %v4895_v30 = vrot.slane %v4893_v54, 4  ;;  %v15731_v47 = vld [vmem:[#allocation3 + $0x124] sm:$0x1] }
 0x3be   : > { %12977 = vmatprep.subr.bf16.mxu1 %v13912_v57  ;;  %v4898_v5 = vrot.slane %v4896_v56, 5  ;;  %v4904_v1 = vrot.slane %v4902_v26, 5  ;;  %v4910_v16 = vshll.u32 %v4718_v31, 16  ;;  %v4916_v53 = vshll.u32 %v15720_v32, 16 }
 0x3bf   : > { %v8996_v9 = vrot.slane %v8995_v59, 4  ;;  %v4891_v6 = vsel %vm14735_vm8, %v4886_v55, %v4890_v27  ;;  %v4909_v24 = vrot.slane %v4907_v13, 4  ;;  %v9017_v28 = vshrl.u32 %v8840_v63, 16  ;;  %v4722_v55 = vld [vmem:[#allocation3 + $0xd8] sm:$0xf] }
 0x3c0   : > { %v11292_v3 = vcombine.low %v4877_v10, %v4891_v6  ;;  %v4899_v61 = vor.u32 %v4898_v5, %v4895_v30  ;;  %v9020_v20 = vshll.u32 %v8840_v63, 16  ;;  %v9026_v62 = vshll.u32 %v15723_v60, 16  ;;  %v15734_v10 = vld [vmem:[#allocation3 + $0xd4] sm:$0x1]  ;;  %v15741_v5 = vld [vmem:[#allocation3 + $0xdc] sm:$0x1] }
 0x3c1   : > { %12978 = vmatpush3.bf16.msra.mxu1 %v13912_v57  ;;  %v9001_v35 = vsel %vm14735_vm8, %v8996_v9, %v9000_v22  ;;  %v9009_v57 = vor.u32 %v9008_v43, %v9005_v48  ;;  %v9031_v59 = vshrl.u32 %v8842_v58, 16  ;;  %v4912_v22 = vrot.slane %v4910_v16, 5 }
 0x3c2   : > { %12995 = vmatprep.subr.bf16.mxu1 %v15713_v2  ;;  %12572 = vmatmul.mubr.bf16.gmra.mrb[40].mxu0 %v11292_v3  ;;  %v4900_v46 = vrot.slane %v4899_v61, 4  ;;  %v4918_v48 = vrot.slane %v4916_v53, 5  ;;  %v9019_v34 = vrot.slane %v9017_v28, 4  ;;  %v9022_v54 = vrot.slane %v9020_v20, 5  ;;  %v8844_v61 = vld [vmem:[#allocation3 + $0x128] sm:$0xf] }
 0x3c3   : > { %v9010_v27 = vrot.slane %v9009_v57, 4  ;;  %v9028_v56 = vrot.slane %v9026_v62, 5  ;;  %v9033_v26 = vrot.slane %v9031_v59, 4  ;;  %v4913_v43 = vor.u32 %v4912_v22, %v4909_v24  ;;  %v8846_v20 = vld [vmem:[#allocation3 + $0x130] sm:$0xf] }
 0x3c4   : > { %v4905_v63 = vsel %vm14735_vm8, %v4900_v46, %v4904_v1  ;;  %v9034_v13 = vshll.u32 %v8842_v58, 16  ;;  %v9023_v6 = vor.u32 %v9022_v54, %v9019_v34  ;;  %v9040_v30 = vshll.u32 %v15731_v47, 16 }
 0x3c5   : > { %v9015_v31 = vsel %vm14735_vm8, %v9010_v27, %v9014_v15  ;;  %v4921_v3 = vshrl.u32 %v4720_v37, 16  ;;  %v4924_v57 = vshll.u32 %v4720_v37, 16  ;;  %v4914_v16 = vrot.slane %v4913_v43, 4 }
 0x3c6   : > { %v11548_v9 = vcombine.low %v9001_v35, %v9015_v31  ;;  %v9036_v15 = vrot.slane %v9034_v13, 5  ;;  %v4930_v53 = vshll.u32 %v15734_v10, 16  ;;  %v4935_v28 = vshrl.u32 %v4722_v55, 16  ;;  %v15744_v35 = vld [vmem:[#allocation3 + $0x12c] sm:$0x1] }
 0x3c7   : > { %v9024_v27 = vrot.slane %v9023_v6, 4  ;;  %v9042_v1 = vrot.slane %v9040_v30, 5  ;;  %v4923_v24 = vrot.slane %v4921_v3, 4  ;;  %v4926_v58 = vrot.slane %v4924_v57, 5 }
 0x3c8   : > { %12956 = vmatmul.mubr.bf16.gmra.mrb[8].mxu1 %v11548_v9  ;;  %v4919_v62 = vsel %vm14735_vm8, %v4914_v16, %v4918_v48  ;;  %v9037_v59 = vor.u32 %v9036_v15, %v9033_v26  ;;  %v4932_v46 = vrot.slane %v4930_v53, 5  ;;  %v4937_v37 = vrot.slane %v4935_v28, 4  ;;  %v15750_v9 = vld [vmem:[#allocation3 + $0x134] sm:$0x1] }
 0x3c9   : > { %v11293_v22 = vcombine.low %v4905_v63, %v4919_v62  ;;  %v9029_v34 = vsel %vm14735_vm8, %v9024_v27, %v9028_v56  ;;  %v4927_v31 = vor.u32 %v4926_v58, %v4923_v24  ;;  %v4938_v54 = vshll.u32 %v4722_v55, 16  ;;  %v5158_v55 = vld [vmem:[#allocation3 + $0x50] sm:$0xe] }
 0x3ca   : > { %v9038_v43 = vrot.slane %v9037_v59, 4  ;;  %v4944_v13 = vshll.u32 %v15741_v5, 16  ;;  %v9045_v6 = vshrl.u32 %v8844_v61, 16  ;;  %v9048_v30 = vshll.u32 %v8844_v61, 16  ;;  %v5159_v61 = vld [vmem:[#allocation3 + $0x58] sm:$0xe] }
 0x3cb   : > { %12575 = vmatprep.mubr.bf16.mxu0 %v11293_v22  ;;  %v4928_v3 = vrot.slane %v4927_v31, 4  ;;  %v4940_v57 = vrot.slane %v4938_v54, 5  ;;  %v9054_v48 = vshll.u32 %v15744_v35, 16  ;;  %v9059_v26 = vshrl.u32 %v8846_v20, 16  ;;  %v9282_v31 = vld [vmem:[#allocation3 + $0xa8] sm:$0xe] }
 0x3cc   : > { %v9043_v63 = vsel %vm14735_vm8, %v9038_v43, %v9042_v1  ;;  %v4946_v16 = vrot.slane %v4944_v13, 5  ;;  %v9047_v56 = vrot.slane %v9045_v6, 4  ;;  %v9050_v15 = vrot.slane %v9048_v30, 5  ;;  %v9283_v6 = vld [vmem:[#allocation3 + $0xb0] sm:$0xe] }
 0x3cd   : > { %v11549_v53 = vcombine.low %v9029_v34, %v9043_v63  ;;  %v4933_v28 = vsel %vm14735_vm8, %v4928_v3, %v4932_v46  ;;  %v4941_v27 = vor.u32 %v4940_v57, %v4937_v37  ;;  %v9056_v24 = vrot.slane %v9054_v48, 5  ;;  %v5160_v37 = vld [vmem:[#allocation3 + $0x60] sm:$0xe] }
 0x3ce   : > { %v9051_v58 = vor.u32 %v9050_v15, %v9047_v56  ;;  %v9061_v62 = vrot.slane %v9059_v26, 4  ;;  %v9062_v59 = vshll.u32 %v8846_v20, 16  ;;  %v9068_v22 = vshll.u32 %v15750_v9, 16  ;;  %v5161_v26 = vld [vmem:[#allocation3 + $0x68] sm:$0xe] }
 0x3cf   : > { %12959 = vmatprep.mubr.bf16.mxu1 %v11549_v53  ;;  %v4942_v54 = vrot.slane %v4941_v27, 4  ;;  %v11303_v1 = vrot.slane %v5158_v55, 9  ;;  %v5208_v43 = vrot.slane %v15592_v19, 5  ;;  %v11304_v13 = vrot.slane %v5159_v61, 9  ;;  %v9284_v56 = vld [vmem:[#allocation3 + $0xb8] sm:$0xe] }
 0x3d0   : > { %v9052_v34 = vrot.slane %v9051_v58, 4  ;;  %v9064_v30 = vrot.slane %v9062_v59, 5  ;;  %v9070_v63 = vrot.slane %v9068_v22, 5  ;;  %v5212_v46 = vrot.slane %v15594_v11, 5  ;;  %v9285_v58 = vld [vmem:[#allocation3 + $0xc0] sm:$0xe] }
 0x3d1   : > { %v4947_v3 = vsel %vm14735_vm8, %v4942_v54, %v4946_v16  ;;  %v5209_v20 = vsel %vm14936_vm11, %v11303_v1, %v5208_v43  ;;  %v11559_v57 = vrot.slane %v9282_v31, 9  ;;  %v9332_v48 = vrot.slane %v15598_v29, 5  ;;  %v5162_v31 = vld [vmem:[#allocation3 + $0x70] sm:$0xe]  ;;  %v5163_v43 = vld [vmem:[#allocation3 + $0x78] sm:$0xe] }
 0x3d2   : > { %v11294_v19 = vcombine.low %v4933_v28, %v4947_v3  ;;  %v9057_v15 = vsel %vm14735_vm8, %v9052_v34, %v9056_v24  ;;  %v9065_v55 = vor.u32 %v9064_v30, %v9061_v62  ;;  %v5213_v11 = vsel %vm14936_vm11, %v11304_v13, %v5212_v46  ;;  %v9286_v34 = vld [vmem:[#allocation3 + $0xc8] sm:$0xe]  ;;  %v9287_v30 = vld [vmem:[#allocation3 + $0xd0] sm:$0xe]  ;;  %v5164_v3 = vld [vmem:[#allocation3 + $0x80] sm:$0xe] }
 0x3d3   : > { %v11319_v53 = vcombine.low %v5209_v20, %v5213_v11  ;;  %v9333_v16 = vsel %vm14936_vm11, %v11559_v57, %v9332_v48  ;;  %v11560_v27 = vrot.slane %v9283_v6, 9  ;;  %v9336_v61 = vrot.slane %v15600_v38, 5  ;;  %v5165_v20 = vld [vmem:[#allocation3 + $0x88] sm:$0xe] }
 0x3d4   : > { %12576 = vmatmul.mubr.bf16.gmra.mrb[44].mxu0 %v11294_v19  ;;  %v9066_v29 = vrot.slane %v9065_v55, 4  ;;  %v11305_v59 = vrot.slane %v5160_v37, 9  ;;  %v5216_v28 = vrot.slane %v15604_v41, 5  ;;  %v11306_v22 = vrot.slane %v5161_v26, 9 }
 0x3d5   : > { %12595 = vmatprep.mubr.bf16.mxu0 %v11319_v53  ;;  %v9337_v24 = vsel %vm14936_vm11, %v11560_v27, %v9336_v61  ;;  %v5220_v62 = vrot.slane %v15606_v17, 5  ;;  %v11561_v54 = vrot.slane %v9284_v56, 9  ;;  %v9340_v1 = vrot.slane %v15615_v7, 5  ;;  %v9288_v56 = vld [vmem:[#allocation3 + $0xd8] sm:$0xe] }
 0x3d6   : > { %v9071_v38 = vsel %vm14735_vm8, %v9066_v29, %v9070_v63  ;;  %v11575_v13 = vcombine.low %v9333_v16, %v9337_v24  ;;  %v5217_v6 = vsel %vm14936_vm11, %v11305_v59, %v5216_v28  ;;  %v11562_v41 = vrot.slane %v9285_v58, 9  ;;  %v9289_v53 = vld [vmem:[#allocation3 + $0xe0] sm:$0xe]  ;;  %v5167_v24 = vld [vmem:[#allocation3 + $0xa8] sm:$0xe] }
 0x3d7   : > { %v11550_v46 = vcombine.low %v9057_v15, %v9071_v38  ;;  %v5221_v37 = vsel %vm14936_vm11, %v11306_v22, %v5220_v62  ;;  %v9341_v17 = vsel %vm14936_vm11, %v11561_v54, %v9340_v1  ;;  %v9344_v7 = vrot.slane %v15622_v44, 5  ;;  %v5166_v59 = vld [vmem:[#allocation3 + $0xa0] sm:$0xe] }
 0x3d8   : > { %v11320_v57 = vcombine.low %v5217_v6, %v5221_v37  ;;  %v11307_v63 = vrot.slane %v5162_v31, 9  ;;  %v5224_v48 = vrot.slane %v15629_v52, 5  ;;  %v11308_v26 = vrot.slane %v5163_v43, 9  ;;  %v9290_v43 = vld [vmem:[#allocation3 + $0xf8] sm:$0xe] }
 0x3d9   : > { %12960 = vmatmul.mubr.bf16.gmra.mrb[12].mxu1 %v11550_v46  ;;  %v9345_v19 = vsel %vm14936_vm11, %v11562_v41, %v9344_v7  ;;  %v5228_v15 = vrot.slane %v15633_v0, 5  ;;  %v11563_v55 = vrot.slane %v9286_v34, 9  ;;  %v9348_v11 = vrot.slane %v15638_v49, 5  ;;  %v9291_v38 = vld [vmem:[#allocation3 + $0x100] sm:$0xe] }
 0x3da   : > { %12979 = vmatprep.mubr.bf16.mxu1 %v11575_v13  ;;  %v11576_v44 = vcombine.low %v9341_v17, %v9345_v19  ;;  %v5225_v16 = vsel %vm14936_vm11, %v11307_v63, %v5224_v48  ;;  %v11564_v27 = vrot.slane %v9287_v30, 9  ;;  %v9352_v52 = vrot.slane %v15644_v45, 5  ;;  %v5169_v17 = vld [vmem:[#allocation3 + $0xb8] sm:$0xe]  ;;  %v9292_v7 = vld [vmem:[#allocation3 + $0x108] sm:$0xe] }
 0x3db   : > { %v5229_v61 = vsel %vm14936_vm11, %v11308_v26, %v5228_v15  ;;  %v9349_v58 = vsel %vm14936_vm11, %v11563_v55, %v9348_v11  ;;  %v11309_v29 = vrot.slane %v5164_v3, 9  ;;  %v5232_v0 = vrot.slane %v15647_v8, 5  ;;  %v13914_v8 = vld [vmem:[#allocation8 + $0x608] sm:$0xff]   ;;  %v13915_v63 = vld [vmem:[#allocation8 + $0x610] sm:$0xff]   ;;  %v5170_v15 = vld [vmem:[#allocation3 + $0xc0] sm:$0xe] }
 0x3dc   : > { %12596 = vmatmul.mubr.bf16.vlgmr.msra.gmra.mrb[32].mxu0 %v11320_v57  ;;  %v11321_v49 = vcombine.low %v5225_v16, %v5229_v61  ;;  %v9353_v28 = vsel %vm14936_vm11, %v11564_v27, %v9352_v52  ;;  %v11310_v22 = vrot.slane %v5165_v20, 9  ;;  %v5236_v31 = vrot.slane %v15652_v50, 5  ;;  %v5168_v50 = vld [vmem:[#allocation3 + $0xb0] sm:$0xe]  ;;  %v9294_v61 = vld [vmem:[#allocation3 + $0x118] sm:$0xe] }
 0x3dd   : > { %v11577_v45 = vcombine.low %v9349_v58, %v9353_v28  ;;  %v5233_v62 = vsel %vm14936_vm11, %v11309_v29, %v5232_v0  ;;  %v11565_v54 = vrot.slane %v9288_v56, 9  ;;  %v9356_v1 = vrot.slane %v15657_v4, 5 }
 0x3de   : > { %12599 = vmatprep.mubr.bf16.mxu0 %v11321_v49  ;;  %v5237_v13 = vsel %vm14936_vm11, %v11310_v22, %v5236_v31  ;;  %v11566_v6 = vrot.slane %v9289_v53, 9  ;;  %v9360_v41 = vrot.slane %v15662_v39, 5  ;;  %v11311_v34 = vrot.slane %v5166_v59, 9  ;;  %v9295_v59 = vld [vmem:[#allocation3 + $0x120] sm:$0xe] }
 0x3df   : > { %v11322_v30 = vcombine.low %v5233_v62, %v5237_v13  ;;  %v5240_v46 = vrot.slane %v15671_v33, 5  ;;  %v11312_v37 = vrot.slane %v5167_v24, 9  ;;  %v9357_v4 = vsel %vm14936_vm11, %v11565_v54, %v9356_v1  ;;  %v5172_v49 = vld [vmem:[#allocation3 + $0xd0] sm:$0xe]  ;;  %v5173_v24 = vld [vmem:[#allocation3 + $0xd8] sm:$0xe] }
 0x3e0   : > { %v5244_v3 = vrot.slane %v15674_v40, 5  ;;  %v11567_v20 = vrot.slane %v9290_v43, 9  ;;  %v9364_v57 = vrot.slane %v15681_v36, 5  ;;  %v9361_v39 = vsel %vm14936_vm11, %v11566_v6, %v9360_v41  ;;  %v9296_v43 = vld [vmem:[#allocation3 + $0x128] sm:$0xe]  ;;  %v13917_v41 = vld [vmem:[#allocation8 + $0x620] sm:$0xff]  }
 0x3e1   : > { %12980 = vmatmul.mubr.bf16.vlgmr.msra.gmra.mrb[0].mxu1 %v11576_v44  ;;  %v5241_v48 = vsel %vm14936_vm11, %v11311_v34, %v5240_v46  ;;  %v11568_v33 = vrot.slane %v9291_v38, 9  ;;  %v9368_v26 = vrot.slane %v15687_v18, 5  ;;  %v11313_v56 = vrot.slane %v5168_v50, 9  ;;  %v5171_v44 = vld [vmem:[#allocation3 + $0xc8] sm:$0xe] }
 0x3e2   : > { %12996 = vmatpush3.bf16.msra.mxu1 %v15713_v2  ;;  %12983 = vmatprep.mubr.bf16.mxu1 %v11577_v45  ;;  %v5245_v40 = vsel %vm14936_vm11, %v11312_v37, %v5244_v3  ;;  %v9365_v36 = vsel %vm14936_vm11, %v11567_v20, %v9364_v57  ;;  %v5248_v19 = vrot.slane %v15690_v23, 5  ;;  %v11314_v53 = vrot.slane %v5169_v17, 9  ;;  %v9293_v2 = vld [vmem:[#allocation3 + $0x110] sm:$0xe]  ;;  %v13916_v45 = vld [vmem:[#allocation8 + $0x618] sm:$0xff]  }
 0x3e3   : > { %12997 = vmatprep.subr.bf16.mxu1 %v13914_v8  ;;  %v11323_v55 = vcombine.low %v5241_v48, %v5245_v40  ;;  %v9369_v11 = vsel %vm14936_vm11, %v11568_v33, %v9368_v26  ;;  %v5252_v18 = vrot.slane %v15697_v12, 5  ;;  %v11578_v16 = vcombine.low %v9357_v4, %v9361_v39  ;;  %v9297_v37 = vld [vmem:[#allocation3 + $0x130] sm:$0xe]  ;;  %v13918_v39 = vld [vmem:[#allocation8 + $0x628] sm:$0xff]   ;;  %v13920_v40 = vld [vmem:[#allocation8 + $0x638] sm:$0xff]  }
 0x3e4   : > { %12600 = vmatmul.mubr.bf16.gmra.mrb[36].mxu0 %v11322_v30  ;;  %v11579_v27 = vcombine.low %v9365_v36, %v9369_v11  ;;  %v11569_v52 = vrot.slane %v9292_v7, 9  ;;  %v5249_v23 = vsel %vm14936_vm11, %v11313_v56, %v5248_v19  ;;  %v9372_v29 = vrot.slane %v15701_v21, 5  ;;  %v13919_v33 = vld [vmem:[#allocation8 + $0x630] sm:$0xff]   ;;  %v13922_v19 = vld [vmem:[#allocation3 + $0xc0] ss:$8 sps:$4 sm:$0xff]  }
 0x3e5   : > { %12603 = vmatprep.mubr.bf16.mxu0 %v11323_v55  ;;  %v5253_v58 = vsel %vm14936_vm11, %v11314_v53, %v5252_v18  ;;  %v11315_v0 = vrot.slane %v5170_v15, 9  ;;  %v11570_v12 = vrot.slane %v9293_v2, 9  ;;  %v9376_v28 = vrot.slane %v15708_v42, 5  ;;  %v13921_v36 = vld [vmem:[#allocation3 + $0xb0] ss:$8 sps:$4 sm:$0xff]   ;;  %v13924_v55 = vld [vmem:[#allocation8 + $0x648] sm:$0xff]  }
 0x3e6   : > { %12998 = vmatpush3.bf16.msra.mxu1 %v13914_v8  ;;  %v5256_v22 = vrot.slane %v15715_v14, 5  ;;  %v11316_v31 = vrot.slane %v5171_v44, 9  ;;  %v5260_v62 = vrot.slane %v15720_v32, 5  ;;  %v11571_v54 = vrot.slane %v9294_v61, 9  ;;  %v9847_v56 = vld [vmem:[#allocation3 + $0xb0] sm:$0xf] }
 0x3e7   : > { %12999 = vmatprep.subr.bf16.mxu1 %v13915_v63  ;;  %v9380_v1 = vrot.slane %v15723_v60, 5  ;;  %v11324_v21 = vcombine.low %v5249_v23, %v5253_v58  ;;  %v11572_v8 = vrot.slane %v9295_v59, 9  ;;  %v9384_v13 = vrot.slane %v15731_v47, 5  ;;  %v13925_v15 = vld [vmem:[#allocation3 + $0xd0] ss:$8 sps:$4 sm:$0xff]  }
 0x3e8   : > { %v5257_v38 = vsel %vm14936_vm11, %v11315_v0, %v5256_v22  ;;  %v9373_v42 = vsel %vm14936_vm11, %v11569_v52, %v9372_v29  ;;  %v5261_v14 = vsel %vm14936_vm11, %v11316_v31, %v5260_v62  ;;  %v11317_v6 = vrot.slane %v5172_v49, 9  ;;  %v9849_v11 = vld [vmem:[#allocation3 + $0xb8] sm:$0xf]  ;;  %v9851_v53 = vld [vmem:[#allocation3 + $0xc0] sm:$0xf] }
 0x3e9   : > { %12984 = vmatmul.mubr.bf16.gmra.mrb[4].mxu1 %v11578_v16  ;;  %v5264_v32 = vrot.slane %v15734_v10, 5  ;;  %v9377_v60 = vsel %vm14936_vm11, %v11570_v12, %v9376_v28  ;;  %v11325_v34 = vcombine.low %v5257_v38, %v5261_v14  ;;  %v11318_v50 = vrot.slane %v5173_v24, 9  ;;  %v9853_v44 = vld [vmem:[#allocation3 + $0xc8] sm:$0xf]  ;;  %v15862_v16 = vld [vmem:[#allocation3 + $0xb4] sm:$0x1] }
 0x3ea   : > { %13000 = vmatpush3.bf16.msra.mxu1 %v13915_v63  ;;  %12987 = vmatprep.mubr.bf16.mxu1 %v11579_v27  ;;  %v5268_v47 = vrot.slane %v15741_v5, 5  ;;  %v9381_v30 = vsel %vm14936_vm11, %v11571_v54, %v9380_v1  ;;  %v9385_v46 = vsel %vm14936_vm11, %v11572_v8, %v9384_v13  ;;  %v11573_v10 = vrot.slane %v9296_v43, 9  ;;  %v15864_v27 = vld [vmem:[#allocation3 + $0xbc] sm:$0x1]  ;;  %v13926_v12 = vld [vmem:[#allocation3 + $0xe0] ss:$8 sps:$4 sm:$0xff]  }
 0x3eb   : > { %13001 = vmatprep.subr.bf16.mxu1 %v13916_v45  ;;  %v9388_v17 = vrot.slane %v15744_v35, 5  ;;  %v11580_v7 = vcombine.low %v9373_v42, %v9377_v60  ;;  %v5265_v4 = vsel %vm14936_vm11, %v11317_v6, %v5264_v32  ;;  %v11581_v3 = vcombine.low %v9381_v30, %v9385_v46  ;;  %v13927_v28 = vld [vmem:[#allocation8 + $0x650] sm:$0xff]   ;;  %v13929_v24 = vld [vmem:[#allocation3 + $0x100] ss:$8 sps:$4 sm:$0xff]   ;;  %v15870_v38 = vld [vmem:[#allocation3 + $0xcc] sm:$0x1] }
 0x3ec   : > { %12604 = vmatmul.mubr.bf16.gmra.mrb[40].mxu0 %v11324_v21  ;;  %v5269_v5 = vsel %vm14936_vm11, %v11318_v50, %v5268_v47  ;;  %v11574_v20 = vrot.slane %v9297_v37, 9  ;;  %v9392_v57 = vrot.slane %v15750_v9, 5  ;;  %v13923_v9 = vld [vmem:[#allocation8 + $0x640] sm:$0xff]   ;;  %v9880_v18 = vshrl.u32 %v9847_v56, 16  ;;  %v9855_v43 = vld [vmem:[#allocation3 + $0xd0] sm:$0xf] }
 0x3ed   : > { %12607 = vmatprep.mubr.bf16.mxu0 %v11325_v34  ;;  %v11326_v63 = vcombine.low %v5265_v4, %v5269_v5  ;;  %v9389_v35 = vsel %vm14936_vm11, %v11573_v10, %v9388_v17  ;;  %v9883_v2 = vshll.u32 %v9847_v56, 16  ;;  %v9894_v52 = vshrl.u32 %v9849_v11, 16  ;;  %v15868_v21 = vld [vmem:[#allocation3 + $0xc4] sm:$0x1]  ;;  %v9857_v14 = vld [vmem:[#allocation3 + $0xd8] sm:$0xf] }
 0x3ee   : > { %13002 = vmatpush3.bf16.msra.mxu1 %v13916_v45  ;;  %v9393_v48 = vsel %vm14936_vm11, %v11574_v20, %v9392_v57  ;;  %v9897_v61 = vshll.u32 %v9849_v11, 16  ;;  %v9908_v23 = vshrl.u32 %v9851_v53, 16  ;;  %v9911_v58 = vshll.u32 %v9851_v53, 16  ;;  %v13928_v6 = vld [vmem:[#allocation8 + $0x658] sm:$0xff]   ;;  %v13931_v37 = vld [vmem:[#allocation8 + $0x660] sm:$0xff]  }
 0x3ef   : > { %13003 = vmatprep.subr.bf16.mxu1 %v13917_v41  ;;  %v11582_v26 = vcombine.low %v9389_v35, %v9393_v48  ;;  %v9922_v29 = vshrl.u32 %v9853_v44, 16  ;;  %v9925_v0 = vshll.u32 %v9853_v44, 16  ;;  %v9882_v59 = vrot.slane %v9880_v18, 4  ;;  %v13930_v5 = vld [vmem:[#allocation3 + $0x110] ss:$8 sps:$4 sm:$0xff]  }
 0x3f0   : > { %v9885_v49 = vrot.slane %v9883_v2, 5  ;;  %v9889_v22 = vshll.u32 %v15862_v16, 16  ;;  %v9903_v31 = vshll.u32 %v15864_v27, 16  ;;  %v9896_v45 = vrot.slane %v9894_v52, 4  ;;  %v15883_v53 = vld [vmem:[#allocation3 + $0xe4] sm:$0x1] }
 0x3f1   : > { %12988 = vmatmul.mubr.bf16.gmra.mrb[8].mxu1 %v11580_v7  ;;  %v9899_v62 = vrot.slane %v9897_v61, 5  ;;  %v9910_v54 = vrot.slane %v9908_v23, 4  ;;  %v9913_v1 = vrot.slane %v9911_v58, 5  ;;  %v9924_v8 = vrot.slane %v9922_v29, 4  ;;  %v9865_v61 = vld [vmem:[#allocation3 + $0x108] sm:$0xf] }
 0x3f2   : > { %13004 = vmatpush3.bf16.msra.mxu1 %v13917_v41  ;;  %12991 = vmatprep.mubr.bf16.mxu1 %v11581_v3  ;;  %v9927_v13 = vrot.slane %v9925_v0, 5  ;;  %v9886_v42 = vor.u32 %v9885_v49, %v9882_v59  ;;  %v9936_v32 = vshrl.u32 %v9855_v43, 16  ;;  %v9939_v60 = vshll.u32 %v9855_v43, 16  ;;  %v15878_v3 = vld [vmem:[#allocation3 + $0xd4] sm:$0x1] }
 0x3f3   : > { %13005 = vmatprep.subr.bf16.mxu1 %v13918_v39  ;;  %v9900_v41 = vor.u32 %v9899_v62, %v9896_v45  ;;  %v9914_v34 = vor.u32 %v9913_v1, %v9910_v54  ;;  %v9917_v50 = vshll.u32 %v15868_v21, 16  ;;  %v9931_v47 = vshll.u32 %v15870_v38, 16  ;;  %v13935_v54 = vld [vmem:[#allocation8 + $0x670] sm:$0xff]  }
 0x3f4   : > { %12608 = vmatmul.mubr.bf16.gmra.mrb[44].mxu0 %v11326_v63  ;;  %v9950_v30 = vshrl.u32 %v9857_v14, 16  ;;  %v9953_v46 = vshll.u32 %v9857_v14, 16  ;;  %v15874_v10 = vrot.slane %v9886_v42, 4  ;;  %v15876_v17 = vrot.slane %v9889_v22, 5  ;;  %v13933_v63 = vld [vmem:[#allocation3 + $0x120] ss:$8 sps:$4 sm:$0xff]  }
 0x3f5   : > { %v9905_v7 = vrot.slane %v9903_v31, 5  ;;  %v9928_v4 = vor.u32 %v9927_v13, %v9924_v8  ;;  %v9938_v20 = vrot.slane %v9936_v32, 4  ;;  %v9941_v57 = vrot.slane %v9939_v60, 5 }
 0x3f6   : > { %13006 = vmatpush3.bf16.msra.mxu1 %v13918_v39  ;;  %v9859_v39 = vld [vmem:[#allocation3 + $0xe0] sm:$0xf]  ;;  %v9901_v35 = vrot.slane %v9900_v41, 4  ;;  %v9915_v48 = vrot.slane %v9914_v34, 4  ;;  %v9955_v56 = vrot.slane %v9953_v46, 5  ;;  %v9945_v11 = vshll.u32 %v15878_v3, 16 }
 0x3f7   : > { %13007 = vmatprep.subr.bf16.mxu1 %v13919_v33  ;;  %v9964_v18 = vshrl.u32 %v9859_v39, 16  ;;  %v9967_v2 = vshll.u32 %v9859_v39, 16  ;;  %v9892_v44 = vsel %vm14735_vm8, %v15874_v10, %v15876_v17  ;;  %v9942_v52 = vor.u32 %v9941_v57, %v9938_v20  ;;  %v13934_v41 = vld [vmem:[#allocation3 + $0x130] ss:$8 sps:$4 sm:$0xff]   ;;  %v15906_v20 = vld [vmem:[#allocation3 + $0x10c] sm:$0x1] }
 0x3f8   : > { %v9906_v59 = vsel %vm14735_vm8, %v9901_v35, %v9905_v7  ;;  %v15896_v31 = vrot.slane %v9945_v11, 5  ;;  %v10006_v45 = vshrl.u32 %v9865_v61, 16  ;;  %v10009_v62 = vshll.u32 %v9865_v61, 16  ;;  %v9867_v10 = vld [vmem:[#allocation3 + $0x110] sm:$0xf]  ;;  %v13936_v7 = vld [vmem:[#allocation8 + $0x678] sm:$0xff]  }
 0x3f9   : > { %12992 = vmatmul.mubr.bf16.gmra.mrb[12].mxu1 %v11582_v26  ;;  %v9933_v26 = vrot.slane %v9931_v47, 5  ;;  %v9943_v1 = vrot.slane %v9942_v52, 4  ;;  %v9966_v43 = vrot.slane %v9964_v18, 4  ;;  %v9969_v8 = vrot.slane %v9967_v2, 5  ;;  %v9869_v17 = vld [vmem:[#allocation3 + $0x118] sm:$0xf] }
 0x3fa   : > { %13008 = vmatpush3.bf16.msra.mxu1 %v13919_v33  ;;  %13011 = vmatprep.mubr.bf16.mxu1 %v13921_v36  ;;  %v9919_v33 = vrot.slane %v9917_v50, 5  ;;  %v13932_v36 = vld [vmem:[#allocation8 + $0x668] sm:$0xff]   ;;  %v9973_v13 = vshll.u32 %v15883_v53, 16  ;;  %v10008_v46 = vrot.slane %v10006_v45, 4  ;;  %v10015_v2 = vshll.u32 %v15906_v20, 16 }
 0x3fb   : > { %13009 = vmatprep.subr.bf16.mxu1 %v13920_v40  ;;  %v9948_v39 = vsel %vm14735_vm8, %v9943_v1, %v15896_v31 }
 0x3fc   : > { %v9920_v49 = vsel %vm14735_vm8, %v9915_v48, %v9919_v33  ;;  %v9871_v33 = vld [vmem:[#allocation3 + $0x120] sm:$0xf] }
 0x3fd   : > { %v10051_v52 = vshll.u32 %v9871_v33, 16 }
 0x3fe   : > { %13010 = vmatpush3.bf16.msra.mxu1 %v13920_v40  ;;  %v15880_v40 = vld [vmem:[#allocation3 + $0xdc] sm:$0x1] }
 0x3ff   : > { %13027 = vmatprep.subr.bf16.mxu1 %v13923_v9 }
 0x401   : > { %13012 = vmatmul.mubr.bf16.vlgmr.msra.gmra.mrb[0].mxu1 %v13922_v19  ;;  %v9861_v19 = vld [vmem:[#allocation3 + $0xe8] sm:$0xf] }
 0x402   : > { %13028 = vmatpush3.bf16.msra.mxu1 %v13923_v9  ;;  %13015 = vmatprep.mubr.bf16.mxu1 %v13925_v15  ;;  %v9952_v9 = vrot.slane %v9950_v30, 4  ;;  %v9863_v15 = vld [vmem:[#allocation3 + $0x100] sm:$0xf]  ;;  %v9978_v23 = vshrl.u32 %v9861_v19, 16  ;;  %v9981_v58 = vshll.u32 %v9861_v19, 16  ;;  %v11607_v30 = vcombine.low %v9892_v44, %v9906_v59 }
 0x403   : > { %13029 = vmatprep.subr.bf16.mxu1 %v13924_v55  ;;  %v9992_v29 = vshrl.u32 %v9863_v15, 16  ;;  %v9995_v0 = vshll.u32 %v9863_v15, 16  ;;  %v10037_v19 = vshll.u32 %v9869_v17, 16  ;;  %v13937_v15 = vld [vmem:[#allocation8 + $0x680] sm:$0xff]   ;;  %v10048_v44 = vshrl.u32 %v9871_v33, 16 }
 0x404   : > { %v9980_v42 = vrot.slane %v9978_v23, 4  ;;  %v9983_v14 = vrot.slane %v9981_v58, 5 }
 0x405   : > { %v9994_v32 = vrot.slane %v9992_v29, 4  ;;  %v9997_v60 = vrot.slane %v9995_v0, 5 }
 0x406   : > { %13030 = vmatpush3.bf16.msra.mxu1 %v13924_v55  ;;  %v9929_v55 = vrot.slane %v9928_v4, 4  ;;  %v9984_v35 = vor.u32 %v9983_v14, %v9980_v42  ;;  %v10050_v42 = vrot.slane %v10048_v44, 4  ;;  %v10053_v14 = vrot.slane %v10051_v52, 5 }
 0x407   : > { %13031 = vmatprep.subr.bf16.mxu1 %v13927_v28  ;;  %v9998_v48 = vor.u32 %v9997_v60, %v9994_v32 }
 0x408   : > { %v9934_v22 = vsel %vm14735_vm8, %v9929_v55, %v9933_v26  ;;  %v9873_v26 = vld [vmem:[#allocation3 + $0x128] sm:$0xf]  ;;  %v9985_v29 = vrot.slane %v9984_v35, 4  ;;  %v13939_v35 = vld [vmem:[#allocation8 + $0x690] sm:$0xff]   ;;  %v10054_v33 = vor.u32 %v10053_v14, %v10050_v42  ;;  %v10314_v14 = vld [vmem:[#allocation3 + $0xb8] sm:$0xe] }
 0x409   : > { %13016 = vmatmul.mubr.bf16.gmra.mrb[4].mxu1 %v13926_v12  ;;  %v9956_v12 = vor.u32 %v9955_v56, %v9952_v9  ;;  %v11608_v4 = vcombine.low %v9920_v49, %v9934_v22  ;;  %v10023_v9 = vshll.u32 %v9867_v10, 16  ;;  %v10034_v56 = vshrl.u32 %v9869_v17, 16  ;;  %v15915_v49 = vld [vmem:[#allocation3 + $0x114] sm:$0x1]  ;;  %v10313_v42 = vld [vmem:[#allocation3 + $0xb0] sm:$0xe] }
 0x40a   : > { %13032 = vmatpush3.bf16.msra.mxu1 %v13927_v28  ;;  %13019 = vmatprep.mubr.bf16.mxu1 %v13929_v24  ;;  %v9959_v28 = vshll.u32 %v15880_v40, 16  ;;  %v15898_v24 = vld [vmem:[#allocation3 + $0xec] sm:$0x1]  ;;  %v10062_v61 = vshrl.u32 %v9873_v26, 16  ;;  %v10065_v23 = vshll.u32 %v9873_v26, 16  ;;  %v9999_v0 = vrot.slane %v9998_v48, 4 }
 0x40b   : > { %13033 = vmatprep.subr.bf16.mxu1 %v13928_v6  ;;  %v9957_v34 = vrot.slane %v9956_v12, 4  ;;  %v9987_v47 = vshll.u32 %v15898_v24, 16  ;;  %v13938_v12 = vld [vmem:[#allocation8 + $0x688] sm:$0xff]   ;;  %v10025_v31 = vrot.slane %v10023_v9, 5  ;;  %v10036_v45 = vrot.slane %v10034_v56, 4 }
 0x40c   : > { %v9961_v50 = vrot.slane %v9959_v28, 5  ;;  %v15917_v28 = vld [vmem:[#allocation3 + $0x11c] sm:$0x1]  ;;  %v10064_v32 = vrot.slane %v10062_v61, 4  ;;  %v10067_v60 = vrot.slane %v10065_v23, 5 }
 0x40d   : > { %v9989_v11 = vrot.slane %v9987_v47, 5  ;;  %v10029_v47 = vshll.u32 %v15915_v49, 16 }
 0x40e   : > { %13034 = vmatpush3.bf16.msra.mxu1 %v13928_v6  ;;  %v15901_v6 = vld [vmem:[#allocation3 + $0x104] sm:$0x1]  ;;  %v9962_v55 = vsel %vm14735_vm8, %v9957_v34, %v9961_v50 }
 0x40f   : > { %13035 = vmatprep.subr.bf16.mxu1 %v13931_v37  ;;  %v10001_v57 = vshll.u32 %v15901_v6, 16  ;;  %v9990_v50 = vsel %vm14735_vm8, %v9985_v29, %v9989_v11  ;;  %v10031_v9 = vrot.slane %v10029_v47, 5 }
 0x411   : > { %13020 = vmatmul.mubr.bf16.gmra.mrb[8].mxu1 %v13930_v5  ;;  %v15904_v5 = vrot.slane %v9973_v13, 5  ;;  %v10003_v59 = vrot.slane %v10001_v57, 5  ;;  %v9875_v13 = vld [vmem:[#allocation3 + $0x130] sm:$0xf] }
 0x412   : > { %13036 = vmatpush3.bf16.msra.mxu1 %v13931_v37  ;;  %13023 = vmatprep.mubr.bf16.mxu1 %v13933_v63  ;;  %v10011_v37 = vrot.slane %v10009_v62, 5  ;;  %v9970_v63 = vor.u32 %v9969_v8, %v9966_v43  ;;  %v10039_v62 = vrot.slane %v10037_v19, 5  ;;  %v10017_v43 = vrot.slane %v10015_v2, 5  ;;  %v15919_v8 = vld [vmem:[#allocation3 + $0x124] sm:$0x1] }
 0x413   : > { %13037 = vmatprep.subr.bf16.mxu1 %v13932_v36  ;;  %v10076_v17 = vshrl.u32 %v9875_v13, 16  ;;  %v10004_v57 = vsel %vm14735_vm8, %v9999_v0, %v10003_v59  ;;  %v15936_v19 = vld [vmem:[#allocation3 + $0x134] sm:$0x1] }
 0x414   : > { %v10012_v18 = vor.u32 %v10011_v37, %v10008_v46  ;;  %v9971_v58 = vrot.slane %v9970_v63, 4  ;;  %v15928_v46 = vld [vmem:[#allocation3 + $0x12c] sm:$0x1] }
 0x415   : > { %v10071_v26 = vshll.u32 %v15928_v46, 16  ;;  %v10078_v2 = vrot.slane %v10076_v17, 4  ;;  %v11624_v17 = vrot.slane %v10314_v14, 9  ;;  %v10324_v14 = vld [vmem:[#allocation3 + $0x118] sm:$0xe] }
 0x416   : > { %13038 = vmatpush3.bf16.msra.mxu1 %v13932_v36  ;;  %v10020_v36 = vshrl.u32 %v9867_v10, 16  ;;  %v10013_v1 = vrot.slane %v10012_v18, 4  ;;  %v9976_v34 = vsel %vm14735_vm8, %v9971_v58, %v15904_v5  ;;  %v10040_v10 = vor.u32 %v10039_v62, %v10036_v45  ;;  %v15938_v18 = vld [vmem:[#allocation3 + $0x13c] sm:$0x1] }
 0x417   : > { %13039 = vmatprep.subr.bf16.mxu1 %v13935_v54  ;;  %v10057_v5 = vshll.u32 %v15919_v8, 16  ;;  %v10055_v58 = vrot.slane %v10054_v33, 4  ;;  %v10073_v59 = vrot.slane %v10071_v26, 5  ;;  %v10318_v33 = vld [vmem:[#allocation3 + $0xd8] sm:$0xe] }
 0x418   : > { %v10022_v22 = vrot.slane %v10020_v36, 4  ;;  %v10018_v48 = vsel %vm14735_vm8, %v10013_v1, %v10017_v43  ;;  %v11610_v36 = vcombine.low %v9976_v34, %v9990_v50  ;;  %v10041_v11 = vrot.slane %v10040_v10, 4 }
 0x419   : > { %13024 = vmatmul.mubr.bf16.gmra.mrb[12].mxu1 %v13934_v41  ;;  %v9877_v41 = vld [vmem:[#allocation3 + $0x138] sm:$0xf]  ;;  %v11611_v52 = vcombine.low %v10004_v57, %v10018_v48  ;;  %v10059_v29 = vrot.slane %v10057_v5, 5  ;;  %v10099_v1 = vshll.u32 %v15938_v18, 16  ;;  %v10363_v10 = vrot.slane %v15862_v16, 5 }
 0x41a   : > { %13040 = vmatpush3.bf16.msra.mxu1 %v13935_v54  ;;  %13043 = vmatprep.mubr.bf16.mxu1 %v11607_v30  ;;  %v11609_v54 = vcombine.low %v9948_v39, %v9962_v55  ;;  %v10043_v30 = vshll.u32 %v15917_v28, 16  ;;  %v10026_v37 = vor.u32 %v10025_v31, %v10022_v22  ;;  %v10090_v39 = vshrl.u32 %v9877_v41, 16  ;;  %v10316_v48 = vld [vmem:[#allocation3 + $0xc8] sm:$0xe] }
 0x41b   : > { %13041 = vmatprep.subr.bf16.mxu1 %v13936_v7  ;;  %v10093_v63 = vshll.u32 %v9877_v41, 16  ;;  %v10085_v31 = vshll.u32 %v15936_v19, 16  ;;  %v10060_v43 = vsel %vm14735_vm8, %v10055_v58, %v10059_v29  ;;  %v10101_v47 = vrot.slane %v10099_v1, 5  ;;  %v10321_v58 = vld [vmem:[#allocation3 + $0x100] sm:$0xe] }
 0x41c   : > { %v10045_v56 = vrot.slane %v10043_v30, 5  ;;  %v10027_v55 = vrot.slane %v10026_v37, 4  ;;  %v10092_v61 = vrot.slane %v10090_v39, 4  ;;  %v13942_v30 = vld [vmem:[#allocation8 + $0x6a8] sm:$0xff]   ;;  %v11623_v37 = vrot.slane %v10313_v42, 9 }
 0x41d   : > { %v10095_v23 = vrot.slane %v10093_v63, 5  ;;  %v10315_v39 = vld [vmem:[#allocation3 + $0xc0] sm:$0xe]  ;;  %v13943_v63 = vld [vmem:[#allocation8 + $0x6b0] sm:$0xff]   ;;  %v11626_v25 = vrot.slane %v10316_v48, 9  ;;  %v10399_v1 = vrot.slane %v15906_v20, 5 }
 0x41e   : > { %13042 = vmatpush3.bf16.msra.mxu1 %v13936_v7  ;;  %v10079_v7 = vshll.u32 %v9875_v13, 16  ;;  %v10032_v22 = vsel %vm14735_vm8, %v10027_v55, %v10031_v9  ;;  %v10046_v45 = vsel %vm14735_vm8, %v10041_v11, %v10045_v56  ;;  %v11625_v26 = vrot.slane %v10315_v39, 9  ;;  %v10323_v42 = vld [vmem:[#allocation3 + $0x110] sm:$0xe]  ;;  %v13945_v39 = vld [vmem:[#allocation10] sm:$0xff]  }
 0x41f   : > { %13059 = vmatprep.subr.bf16.mxu1 %v13937_v15  ;;  %v10371_v9 = vrot.slane %v15868_v21, 5  ;;  %v10375_v56 = vrot.slane %v15870_v38, 5  ;;  %v10379_v11 = vrot.slane %v15878_v3, 5  ;;  %v11633_v20 = vrot.slane %v10323_v42, 9  ;;  %13091 = vmatprep.subr.bf16.mxu0 %v13945_v39 }
 0x420   : > { %v10081_v44 = vrot.slane %v10079_v7, 5  ;;  %v10367_v7 = vrot.slane %v15864_v27, 5  ;;  %v10317_v27 = vld [vmem:[#allocation3 + $0xd0] sm:$0xe]  ;;  %13092 = vmatpush3.bf16.msra.mxu0 %v13945_v39  ;;  %v10419_v48 = vrot.slane %v15936_v19, 5  ;;  %v13949_v19 = vld [vmem:[#allocation10 + $0x20] sm:$0xff]  }
 0x421   : > { %13044 = vmatmul.mubr.bf16.vlgmr.msra.gmra.mrb[0].mxu1 %v11608_v4  ;;  %v10068_v4 = vor.u32 %v10067_v60, %v10064_v32  ;;  %v11612_v32 = vcombine.low %v10032_v22, %v10046_v45  ;;  %v10087_v60 = vrot.slane %v10085_v31, 5  ;;  %v11627_v55 = vrot.slane %v10317_v27, 9 }
 0x422   : > { %13060 = vmatpush3.bf16.msra.mxu1 %v13937_v15  ;;  %13047 = vmatprep.mubr.bf16.mxu1 %v11609_v54  ;;  %v13940_v15 = vld [vmem:[#allocation8 + $0x698] sm:$0xff]   ;;  %v10082_v62 = vor.u32 %v10081_v44, %v10078_v2  ;;  %v10096_v54 = vor.u32 %v10095_v23, %v10092_v61  ;;  %v10368_v16 = vsel %vm14936_vm11, %v11624_v17, %v10367_v7  ;;  %v11628_v2 = vrot.slane %v10318_v33, 9  ;;  %v10319_v61 = vld [vmem:[#allocation3 + $0xe0] sm:$0xe]  ;;  %v10320_v23 = vld [vmem:[#allocation3 + $0xe8] sm:$0xe] }
 0x423   : > { %13061 = vmatprep.subr.bf16.mxu1 %v13938_v12  ;;  %v10069_v0 = vrot.slane %v10068_v4, 4  ;;  %v10383_v44 = vrot.slane %v15880_v40, 5  ;;  %v10376_v21 = vsel %vm14936_vm11, %v11626_v25, %v10375_v56  ;;  %v10380_v38 = vsel %vm14936_vm11, %v11627_v55, %v10379_v11  ;;  %v10322_v40 = vld [vmem:[#allocation3 + $0x108] sm:$0xe]  ;;  %v13951_v56 = vld [vmem:[#allocation10 + $0x30] sm:$0xff]  }
 0x424   : > { %v10083_v34 = vrot.slane %v10082_v62, 4  ;;  %v10097_v50 = vrot.slane %v10096_v54, 4  ;;  %v10387_v22 = vrot.slane %v15883_v53, 5  ;;  %v11630_v31 = vrot.slane %v10320_v23, 9 }
 0x425   : > { %v10074_v13 = vsel %vm14735_vm8, %v10069_v0, %v10073_v59  ;;  %v10384_v3 = vsel %vm14936_vm11, %v11628_v2, %v10383_v44  ;;  %v11629_v0 = vrot.slane %v10319_v61, 9  ;;  %v10391_v45 = vrot.slane %v15898_v24, 5 }
 0x426   : > { %13062 = vmatpush3.bf16.msra.mxu1 %v13938_v12  ;;  %v13941_v12 = vld [vmem:[#allocation8 + $0x6a0] sm:$0xff]   ;;  %v11613_v41 = vcombine.low %v10060_v43, %v10074_v13  ;;  %v10088_v57 = vsel %vm14735_vm8, %v10083_v34, %v10087_v60  ;;  %v10102_v5 = vsel %vm14735_vm8, %v10097_v50, %v10101_v47  ;;  %v11641_v59 = vcombine.low %v10380_v38, %v10384_v3 }
 0x427   : > { %13063 = vmatprep.subr.bf16.mxu1 %v13939_v35  ;;  %v11614_v4 = vcombine.low %v10088_v57, %v10102_v5  ;;  %v10395_v62 = vrot.slane %v15901_v6, 5  ;;  %v11632_v54 = vrot.slane %v10322_v40, 9  ;;  %v10388_v43 = vsel %vm14936_vm11, %v11629_v0, %v10387_v22  ;;  %v10325_v6 = vld [vmem:[#allocation3 + $0x120] sm:$0xe]  ;;  %v10327_v5 = vld [vmem:[#allocation3 + $0x130] sm:$0xe] }
 0x428   : > { %v10392_v13 = vsel %vm14936_vm11, %v11630_v31, %v10391_v45  ;;  %v10403_v34 = vrot.slane %v15915_v49, 5  ;;  %v11634_v50 = vrot.slane %v10324_v14, 9  ;;  %v10407_v47 = vrot.slane %v15917_v28, 5  ;;  %v13946_v49 = vld [vmem:[#allocation10 + $0x8] sm:$0xff]   ;;  %v16011_v31 = vld [vmem:[%s16138_s5] ss:$0 sm:$0xff] }
 0x429   : > { %13048 = vmatmul.mubr.bf16.gmra.mrb[4].mxu1 %v11610_v36  ;;  %v10400_v24 = vsel %vm14936_vm11, %v11632_v54, %v10399_v1  ;;  %v11642_v60 = vcombine.low %v10388_v43, %v10392_v13  ;;  %v10415_v17 = vrot.slane %v15928_v46, 5  ;;  %v10423_v33 = vrot.slane %v15938_v18, 5  ;;  %13093 = vmatprep.subr.bf16.mxu0 %v13946_v49  ;;  %v13950_v18 = vld [vmem:[#allocation10 + $0x28] sm:$0xff]  }
 0x42a   : > { %13064 = vmatpush3.bf16.msra.mxu1 %v13939_v35  ;;  %13051 = vmatprep.mubr.bf16.mxu1 %v11611_v52  ;;  %v10364_v35 = vsel %vm14936_vm11, %v11623_v37, %v10363_v10  ;;  %v10372_v52 = vsel %vm14936_vm11, %v11625_v26, %v10371_v9  ;;  %v10411_v37 = vrot.slane %v15919_v8, 5  ;;  %v10404_v7 = vsel %vm14936_vm11, %v11633_v20, %v10403_v34  ;;  %v13948_v9 = vld [vmem:[#allocation10 + $0x18] sm:$0xff]  }
 0x42b   : > { %13065 = vmatprep.subr.bf16.mxu1 %v13940_v15  ;;  %v11639_v36 = vcombine.low %v10364_v35, %v10368_v16  ;;  %v11640_v29 = vcombine.low %v10372_v52, %v10376_v21  ;;  %v10408_v57 = vsel %vm14936_vm11, %v11634_v50, %v10407_v47  ;;  %v11637_v35 = vrot.slane %v10327_v5, 9  ;;  %13094 = vmatpush3.bf16.msra.mxu0 %v13946_v49 }
 0x42c   : > { %v11644_v46 = vcombine.low %v10404_v7, %v10408_v57 }
 0x42d   : > { %v10420_v26 = vsel %vm14936_vm11, %v11637_v35, %v10419_v48 }
 0x42e   : > { %13066 = vmatpush3.bf16.msra.mxu1 %v13940_v15  ;;  %v13944_v15 = vld [vmem:[#allocation8 + $0x6b8] sm:$0xff]  }
 0x42f   : > { %13067 = vmatprep.subr.bf16.mxu1 %v13941_v12 }
 0x431   : > { %13052 = vmatmul.mubr.bf16.gmra.mrb[8].mxu1 %v11612_v32  ;;  %v10326_v32 = vld [vmem:[#allocation3 + $0x128] sm:$0xe] }
 0x432   : > { %13068 = vmatpush3.bf16.msra.mxu1 %v13941_v12  ;;  %13055 = vmatprep.mubr.bf16.mxu1 %v11613_v41  ;;  %v11631_v12 = vrot.slane %v10321_v58, 9  ;;  %v11636_v10 = vrot.slane %v10326_v32, 9 }
 0x433   : > { %13069 = vmatprep.subr.bf16.mxu1 %v13942_v30 }
 0x434   : > { %v10396_v53 = vsel %vm14936_vm11, %v11631_v12, %v10395_v62  ;;  %v10416_v8 = vsel %vm14936_vm11, %v11636_v10, %v10415_v17 }
 0x435   : > { %v11643_v41 = vcombine.low %v10396_v53, %v10400_v24 }
 0x436   : > { %13070 = vmatpush3.bf16.msra.mxu1 %v13942_v30  ;;  %v11635_v30 = vrot.slane %v10325_v6, 9 }
 0x437   : > { %13071 = vmatprep.subr.bf16.mxu1 %v13943_v63 }
 0x438   : > { %v10412_v28 = vsel %vm14936_vm11, %v11635_v30, %v10411_v37 }
 0x439   : > { %13056 = vmatmul.mubr.bf16.gmra.mrb[12].mxu1 %v11614_v4  ;;  %v11645_v16 = vcombine.low %v10412_v28, %v10416_v8  ;;  %v13947_v4 = vld [vmem:[#allocation10 + $0x10] sm:$0xff]  }
 0x43a   : > { %13072 = vmatpush3.bf16.msra.mxu1 %v13943_v63  ;;  %13075 = vmatprep.mubr.bf16.mxu1 %v11639_v36  ;;  %v10328_v63 = vld [vmem:[#allocation3 + $0x138] sm:$0xe] }
 0x43b   : > { %13073 = vmatprep.subr.bf16.mxu1 %v13944_v15  ;;  %v11638_v27 = vrot.slane %v10328_v63, 9  ;;  %13095 = vmatprep.subr.bf16.mxu0 %v13947_v4 }
 0x43c   : > { %13096 = vmatpush3.bf16.msra.mxu0 %v13947_v4 }
 0x43d   : > { %v10424_v36 = vsel %vm14936_vm11, %v11638_v27, %v10423_v33  ;;  %13097 = vmatprep.subr.bf16.mxu0 %v13948_v9 }
 0x43e   : > { %13074 = vmatpush3.bf16.msra.mxu1 %v13944_v15  ;;  %v11646_v25 = vcombine.low %v10420_v26, %v10424_v36  ;;  %v13952_v15 = vld [vmem:[#allocation10 + $0x38] sm:$0xff]  }
 0x440   : > { %13098 = vmatpush3.bf16.msra.mxu0 %v13948_v9 }
 0x441   : > { %13076 = vmatmul.mubr.bf16.vlgmr.msra.gmra.mrb[0].mxu1 %v11640_v29  ;;  %13099 = vmatprep.subr.bf16.mxu0 %v13949_v19 }
 0x442   : > { %13079 = vmatprep.mubr.bf16.mxu1 %v11641_v59 }
 0x444   : > { %13100 = vmatpush3.bf16.msra.mxu0 %v13949_v19 }
 0x445   : > { %13101 = vmatprep.subr.bf16.mxu0 %v13950_v18 }
 0x448   : > { %13102 = vmatpush3.bf16.msra.mxu0 %v13950_v18 }
 0x449   : > { %13080 = vmatmul.mubr.bf16.gmra.mrb[4].mxu1 %v11642_v60  ;;  %13103 = vmatprep.subr.bf16.mxu0 %v13951_v56 }
 0x44a   : > { %13083 = vmatprep.mubr.bf16.mxu1 %v11643_v41 }
 0x44c   : > { %13104 = vmatpush3.bf16.msra.mxu0 %v13951_v56 }
 0x44d   : > { %13105 = vmatprep.subr.bf16.mxu0 %v13952_v15 }
 0x450   : > { %13106 = vmatpush3.bf16.msra.mxu0 %v13952_v15 }
 0x451   : > { %13084 = vmatmul.mubr.bf16.gmra.mrb[8].mxu1 %v11644_v46 }
 0x452   : > { %13087 = vmatprep.mubr.bf16.mxu1 %v11645_v16 }
 0x459   : > { %13088 = vmatmul.mubr.bf16.gmra.mrb[12].mxu1 %v11646_v25 }
 0x4af   : > { %v12597_v51 = vpop.f32.mrb[32].mxu0 }
 0x4b0   : > { %v5401_v55 = vpop.f32.mrb[33].mxu0 }
 0x4b1   : > { %v12598_v11 = vpop.f32.mrb[34].mxu0 }
 0x4b2   : > { %v5404_v2 = vpop.f32.mrb[35].mxu0 }
 0x4b7   : > { %v12601_v44 = vpop.f32.mrb[36].mxu0 }
 0x4b8   : > { %v5417_v52 = vpop.f32.mrb[37].mxu0 }
 0x4b9   : > { %v12602_v21 = vpop.f32.mrb[38].mxu0 }
 0x4ba   : > { %v5420_v61 = vpop.f32.mrb[39].mxu0 }
 0x4bf   : > { %v12605_v38 = vpop.f32.mrb[40].mxu0 }
 0x4c0   : > { %v5433_v3 = vpop.f32.mrb[41].mxu0 }
 0x4c1   : > { %v12606_v23 = vpop.f32.mrb[42].mxu0 }
 0x4c2   : > { %v5436_v58 = vpop.f32.mrb[43].mxu0 }
 0x4c7   : > { %v12609_v40 = vpop.f32.mrb[44].mxu0 }
 0x4c8   : > { %v16002_v29 = vpop.f32.mrb[45].mxu0 }
 0x4c9   : > { %v16004_v0 = vpop.f32.mrb[46].mxu0 }
 0x4ca   : > { %v16006_v59 = vpop.f32.mrb[47].mxu0 }
 0x514   : > { %v13077_v22 = vpop.f32.mrb[0].mxu1 }
 0x515   : > { %v13123_v45 = vadd.f32 %v13077_v22, %v12597_v51  ;;  %v10556_v12 = vpop.f32.mrb[1].mxu1 }
 0x516   : > { %v13124_v62 = vadd.f32 %v10556_v12, %v5401_v55  ;;  %v13078_v54 = vpop.f32.mrb[2].mxu1 }
 0x517   : > { %v10644_v1 = vadd.f32 %v13123_v45, %v16011_v31  ;;  %v13125_v43 = vadd.f32 %v13078_v54, %v12598_v11  ;;  %v10559_v13 = vpop.f32.mrb[3].mxu1 }
 0x518   : > { %v10642_v42 = vadd.f32 %v13124_v62, %v16011_v31  ;;  %v13126_v53 = vadd.f32 %v10559_v13, %v5404_v2 }
 0x519   : > { %v10645_v24 = vadd.f32 %v13125_v43, %v16011_v31  ;;  %v10660_v6 = vmax.f32 %v10644_v1, 0.0 }
 0x51a   : > { %v10643_v14 = vadd.f32 %v13126_v53, %v16011_v31  ;;  %v10658_v60 = vmax.f32 %v10642_v42, 0.0 }
 0x51b   : > { %v10661_v32 = vmax.f32 %v10645_v24, 0.0 }
 0x51c   : > { %v10659_v20 = vmax.f32 %v10643_v14, 0.0  ;;  %v13081_v41 = vpop.f32.mrb[4].mxu1 }
 0x51d   : > { %v10675_v34 = vpack.c.bf16 %v10661_v32, %v10660_v6  ;;  %v13127_v50 = vadd.f32 %v13081_v41, %v12601_v44  ;;  %v10572_v47 = vpop.f32.mrb[5].mxu1 }
 0x51e   : > { %v13128_v30 = vadd.f32 %v10572_v47, %v5417_v52  ;;  %v13082_v37 = vpop.f32.mrb[6].mxu1  ;;  %v10674_v10 = vpack.c.bf16 %v10659_v20, %v10658_v60  ;;  %v10702_v20 = vld [vmem:[#allocation2 + $0x58] sm:$0xff]  ;;  %v10700_v47 = vld [vmem:[#allocation2 + $0x48] sm:$0xff] }
 0x51f   : > { %v10648_v17 = vadd.f32 %v13127_v50, %v16011_v31  ;;  %v13129_v7 = vadd.f32 %v13082_v37, %v12602_v21  ;;  %v10575_v57 = vpop.f32.mrb[7].mxu1 }
 0x520   : > { %v10646_v5 = vadd.f32 %v13128_v30, %v16011_v31  ;;  %v13130_v39 = vadd.f32 %v10575_v57, %v5420_v61  ;;  %13107 = vmatprep.mubr.bf16.mxu0 %v10674_v10  ;;  %v10705_v57 = vld [vmem:[#allocation2 + $0x70] sm:$0xff] }
 0x521   : > { %v10649_v49 = vadd.f32 %v13129_v7, %v16011_v31  ;;  %13108 = vmatmul.mubr.bf16.vlgmr.msra.gmra.mrb[48].mxu0 %v10675_v34  ;;  %v10664_v8 = vmax.f32 %v10648_v17, 0.0 }
 0x522   : > { %v10647_v28 = vadd.f32 %v13130_v39, %v16011_v31  ;;  %v10662_v46 = vmax.f32 %v10646_v5, 0.0 }
 0x523   : > { %v10665_v63 = vmax.f32 %v10649_v49, 0.0  ;;  %v10703_v49 = vld [vmem:[#allocation2 + $0x60] sm:$0xff] }
 0x524   : > { %v10663_v35 = vmax.f32 %v10647_v28, 0.0  ;;  %v13085_v16 = vpop.f32.mrb[8].mxu1 }
 0x525   : > { %v13131_v48 = vadd.f32 %v13085_v16, %v12605_v38  ;;  %v10588_v27 = vpop.f32.mrb[9].mxu1  ;;  %v10677_v33 = vpack.c.bf16 %v10665_v63, %v10664_v8  ;;  %v10706_v63 = vld [vmem:[#allocation2 + $0x78] sm:$0xff] }
 0x526   : > { %v13132_v4 = vadd.f32 %v10588_v27, %v5433_v3  ;;  %v13086_v26 = vpop.f32.mrb[10].mxu1  ;;  %v10676_v36 = vpack.c.bf16 %v10663_v35, %v10662_v46 }
 0x527   : > { %v10652_v9 = vadd.f32 %v13131_v48, %v16011_v31  ;;  %v13133_v25 = vadd.f32 %v13086_v26, %v12606_v23  ;;  %v10591_v19 = vpop.f32.mrb[11].mxu1  ;;  %v10704_v48 = vld [vmem:[#allocation2 + $0x68] sm:$0xff] }
 0x528   : > { %v10650_v18 = vadd.f32 %v13132_v4, %v16011_v31  ;;  %v13134_v56 = vadd.f32 %v10591_v19, %v5436_v58  ;;  %13111 = vmatprep.mubr.bf16.mxu0 %v10676_v36 }
 0x529   : > { %v10653_v15 = vadd.f32 %v13133_v25, %v16011_v31  ;;  %13112 = vmatmul.mubr.bf16.gmra.mrb[52].mxu0 %v10677_v33  ;;  %v10668_v55 = vmax.f32 %v10652_v9, 0.0  ;;  %v10709_v9 = vld [vmem:[#allocation2 + $0x90] sm:$0xff] }
 0x52a   : > { %v10651_v51 = vadd.f32 %v13134_v56, %v16011_v31  ;;  %v10666_v2 = vmax.f32 %v10650_v18, 0.0  ;;  %v10707_v18 = vld [vmem:[#allocation2 + $0x80] sm:$0xff] }
 0x52b   : > { %v10669_v11 = vmax.f32 %v10653_v15, 0.0 }
 0x52c   : > { %v10667_v44 = vmax.f32 %v10651_v51, 0.0  ;;  %v13089_v52 = vpop.f32.mrb[12].mxu1  ;;  %v10710_v51 = vld [vmem:[#allocation2 + $0x98] sm:$0xff] }
 0x52d   : > { %v13135_v21 = vadd.f32 %v13089_v52, %v12609_v40  ;;  %v10604_v61 = vpop.f32.mrb[13].mxu1  ;;  %v10679_v38 = vpack.c.bf16 %v10669_v11, %v10668_v55 }
 0x52e   : > { %v13136_v3 = vadd.f32 %v10604_v61, %v16002_v29  ;;  %v13090_v23 = vpop.f32.mrb[14].mxu1  ;;  %v10678_v22 = vpack.c.bf16 %v10667_v44, %v10666_v2  ;;  %v10708_v44 = vld [vmem:[#allocation2 + $0x88] sm:$0xff] }
 0x52f   : > { %v10656_v58 = vadd.f32 %v13135_v21, %v16011_v31  ;;  %v13137_v45 = vadd.f32 %v13090_v23, %v16004_v0  ;;  %v10607_v12 = vpop.f32.mrb[15].mxu1  ;;  %v16035_v0 = vld [vmem:[%s16139_s6] ss:$0 sm:$0xff]  ;;  %v10713_v23 = vld [vmem:[#allocation2 + $0xb0] sm:$0xff] }
 0x530   : > { %v10654_v62 = vadd.f32 %v13136_v3, %v16011_v31  ;;  %v13138_v54 = vadd.f32 %v10607_v12, %v16006_v59  ;;  %13115 = vmatprep.mubr.bf16.mxu0 %v10678_v22  ;;  %v10701_v59 = vld [vmem:[#allocation2 + $0x50] sm:$0xff] }
 0x531   : > { %v10657_v1 = vadd.f32 %v13137_v45, %v16011_v31  ;;  %13116 = vmatmul.mubr.bf16.gmra.mrb[56].mxu0 %v10679_v38  ;;  %v10672_v43 = vmax.f32 %v10656_v58, 0.0  ;;  %v10711_v45 = vld [vmem:[#allocation2 + $0xa0] sm:$0xff] }
 0x532   : > { %v10655_v40 = vadd.f32 %v13138_v54, %v16011_v31  ;;  %v10670_v29 = vmax.f32 %v10654_v62, 0.0  ;;  %v10699_v31 = vld [vmem:[#allocation2 + $0x40] sm:$0xff]  ;;  %v10714_v54 = vld [vmem:[#allocation2 + $0xb8] sm:$0xff] }
 0x533   : > { %v10673_v13 = vmax.f32 %v10657_v1, 0.0 }
 0x534   : > { %v10671_v42 = vmax.f32 %v10655_v40, 0.0 }
 0x535   : > { %v10681_v53 = vpack.c.bf16 %v10673_v13, %v10672_v43  ;;  %v10712_v13 = vld [vmem:[#allocation2 + $0xa8] sm:$0xff] }
 0x536   : > { %v10680_v24 = vpack.c.bf16 %v10671_v42, %v10670_v29 }
 0x538   : > { %13119 = vmatprep.mubr.bf16.mxu0 %v10680_v24 }
 0x539   : > { %13120 = vmatmul.mubr.bf16.gmra.mrb[60].mxu0 %v10681_v53 }
 0x5f4   : > { %v13109_v14 = vpop.f32.mrb[48].mxu0 }
 0x5f5   : > { %v10813_v6 = vadd.f32 %v13109_v14, %v16035_v0  ;;  %v10804_v32 = vpop.f32.mrb[49].mxu0 }
 0x5f6   : > { %v10805_v60 = vadd.f32 %v16035_v0, %v10804_v32  ;;  %v13110_v41 = vpop.f32.mrb[50].mxu0 }
 0x5f7   : > { %v10869_v34 = vadd.f32 %v10813_v6, %v10701_v59  ;;  %v10816_v50 = vadd.f32 %v13110_v41, %v16035_v0  ;;  %v10807_v30 = vpop.f32.mrb[51].mxu0 }
 0x5f8   : > { %v10867_v37 = vadd.f32 %v10805_v60, %v10699_v31  ;;  %v10808_v10 = vadd.f32 %v16035_v0, %v10807_v30 }
 0x5f9   : > { %10885 = vst [vmem:[%s14418_s22 + $0x10] sm:$0xff] %v10869_v34  ;;  %v10870_v17 = vadd.f32 %v10816_v50, %v10702_v20 }
 0x5fa   : > { %10883 = vst [vmem:[%s14418_s22] sm:$0xff] %v10867_v37  ;;  %v10868_v7 = vadd.f32 %v10808_v10, %v10700_v47 }
 0x5fb   : > { %10886 = vst [vmem:[%s14418_s22 + $0x18] sm:$0xff] %v10870_v17 }
 0x5fc   : > { %10884 = vst [vmem:[%s14418_s22 + $0x8] sm:$0xff] %v10868_v7  ;;  %v13113_v5 = vpop.f32.mrb[52].mxu0 }
 0x5fd   : > { %v10829_v39 = vadd.f32 %v13113_v5, %v16035_v0  ;;  %v10820_v28 = vpop.f32.mrb[53].mxu0 }
 0x5fe   : > { %v10821_v8 = vadd.f32 %v16035_v0, %v10820_v28  ;;  %v13114_v46 = vpop.f32.mrb[54].mxu0 }
 0x5ff   : > { %v10873_v35 = vadd.f32 %v10829_v39, %v10705_v57  ;;  %v10832_v16 = vadd.f32 %v13114_v46, %v16035_v0  ;;  %v10823_v27 = vpop.f32.mrb[55].mxu0 }
 0x600   : > { %v10871_v33 = vadd.f32 %v10821_v8, %v10703_v49  ;;  %v10824_v4 = vadd.f32 %v16035_v0, %v10823_v27 }
 0x601   : > { %10889 = vst [vmem:[%s14418_s22 + $0x30] sm:$0xff] %v10873_v35  ;;  %v10874_v26 = vadd.f32 %v10832_v16, %v10706_v63 }
 0x602   : > { %10887 = vst [vmem:[%s14418_s22 + $0x20] sm:$0xff] %v10871_v33  ;;  %v10872_v36 = vadd.f32 %v10824_v4, %v10704_v48 }
 0x603   : > { %10890 = vst [vmem:[%s14418_s22 + $0x38] sm:$0xff] %v10874_v26 }
 0x604   : > { %10888 = vst [vmem:[%s14418_s22 + $0x28] sm:$0xff] %v10872_v36  ;;  %v13117_v25 = vpop.f32.mrb[56].mxu0 }
 0x605   : > { %v10845_v19 = vadd.f32 %v13117_v25, %v16035_v0  ;;  %v10836_v56 = vpop.f32.mrb[57].mxu0 }
 0x606   : > { %v10837_v15 = vadd.f32 %v16035_v0, %v10836_v56  ;;  %v13118_v55 = vpop.f32.mrb[58].mxu0 }
 0x607   : > { %v10877_v11 = vadd.f32 %v10845_v19, %v10709_v9  ;;  %v10848_v2 = vadd.f32 %v13118_v55, %v16035_v0  ;;  %v10839_v52 = vpop.f32.mrb[59].mxu0 }
 0x608   : > { %v10875_v21 = vadd.f32 %v10837_v15, %v10707_v18  ;;  %v10840_v61 = vadd.f32 %v16035_v0, %v10839_v52 }
 0x609   : > { %10893 = vst [vmem:[%s14418_s22 + $0x50] sm:$0xff] %v10877_v11  ;;  %v10878_v38 = vadd.f32 %v10848_v2, %v10710_v51 }
 0x60a   : > { %10891 = vst [vmem:[%s14418_s22 + $0x40] sm:$0xff] %v10875_v21  ;;  %v10876_v3 = vadd.f32 %v10840_v61, %v10708_v44 }
 0x60b   : > { %10894 = vst [vmem:[%s14418_s22 + $0x58] sm:$0xff] %v10878_v38 }
 0x60c   : > { %10892 = vst [vmem:[%s14418_s22 + $0x48] sm:$0xff] %v10876_v3  ;;  %v13121_v22 = vpop.f32.mrb[60].mxu0 }
 0x60d   : > { %v10861_v58 = vadd.f32 %v13121_v22, %v16035_v0  ;;  %v10852_v12 = vpop.f32.mrb[61].mxu0 }
 0x60e   : > { %v10853_v62 = vadd.f32 %v16035_v0, %v10852_v12  ;;  %v13122_v1 = vpop.f32.mrb[62].mxu0 }
 0x60f   : > { %v10881_v40 = vadd.f32 %v10861_v58, %v10713_v23  ;;  %v10864_v43 = vadd.f32 %v13122_v1, %v16035_v0  ;;  %v10855_v29 = vpop.f32.mrb[63].mxu0 }
 0x610   : > { %v10879_v42 = vadd.f32 %v10853_v62, %v10711_v45  ;;  %v10856_v53 = vadd.f32 %v16035_v0, %v10855_v29 }
 0x611   : > { %10897 = vst [vmem:[%s14418_s22 + $0x70] sm:$0xff] %v10881_v40  ;;  %v10882_v24 = vadd.f32 %v10864_v43, %v10714_v54 }
 0x612   : > { %10895 = vst [vmem:[%s14418_s22 + $0x60] sm:$0xff] %v10879_v42  ;;  %v10880_v59 = vadd.f32 %v10856_v53, %v10712_v13 }
 0x613   : > { %10898 = vst [vmem:[%s14418_s22 + $0x78] sm:$0xff] %v10882_v24 }
 0x614   : > { %10896 = vst [vmem:[%s14418_s22 + $0x68] sm:$0xff] %v10880_v59 }
 0x615   : > { %14086 = shalt.err (!%p14083_p6)
}
 0x616   : > { %s14087_s29 = scalar_lea.hbm %s16072_s11, 2048  ;;  %s14091_s12 = scalar_lea.hbm %s16140_s7, 8192 }
 0x617   : > { %p14088_p7 = scmp.ne.s32.totalorder %s16072_s11, %s14087_s29  ;;  %p14092_p13 = scmp.lt.u32.totalorder %s16072_s11, %s16140_s7 }
 0x618   : > { %p14093_p3 = scmp.lt.u32.totalorder %s14091_s12, %s14087_s29  ;;  %p14095_p0 = scmp.lt.u32.totalorder %s14087_s29, %s16072_s11 }
 0x619   : > { %p14089_p9 = pnand %p14088_p7, %p16182_p8 }
 0x61a   : > { %p14094_p2 = por %p14093_p3, %p14092_p13 }
 0x61b   : > { %p14090_p11 = pneg %p14089_p9 }
 0x61c   : > { %p14096_p10 = por %p14095_p0, %p14094_p2 }
 0x61e   : > { %p14097_p12 = pnand %p14096_p10, %p14090_p11 }
 0x620   : > { %14100 = shalt.err (!%p14097_p12)
}
 0x621   : > { %s14189_s16 = smov 128   ;;  %s14190_s21 = smov 8  }
 0x622   : > { %13551 = dma.vmem_to_hbm [thread:$0]  (%p16182_p8), %s16074_s28, 2048, %s16072_s11, %s16081_s10, %s14189_s16, %s14189_s16, %s14190_s21  }
 0x623 PF: > { %s16183_s9 = sld [smem:[#allocation20_spill]]  ;;  %s16184_s18 = sld [smem:[#allocation26_spill]] }
 0x624   : > { %p13573_p1 = scmp.ge.s32.totalorder %s14177_s8, 2 }
 0x629   : > { %s10931_s27 = sand.u32 1, %s16183_s9   ;;  %p16185_p4 = scmp.ne.s32.totalorder %s16184_s18, 0 }
 0x62a   : > { %s10932_s20 = scalar_lea.sflag [#allocation7], %s10931_s27 }
 0x62b   : > { %p13564_p5 = pnand %p13573_p1, %p16185_p4 }
 0x62d   : > { %14144 = dma.done.wait (!%p13564_p5), %s10932_s20, 2048  }
 0x62e   : > { %14146 = vsyncadd (!%p13564_p5), %s10932_s20, 4294965248  ;;  %s22_s8 = sadd.s32 1, %s14177_s8   ;;  %s16186_s14 = sld [smem:[#allocation21_spill]] }
 0x62f   : > { %p19_p6 = scmp.ge.s32.totalorder %s22_s8, 6   ;;  %s16187_s26 = sld [smem:[#allocation27_spill]] }
 0x630   : > { %s16188_s27 = sld [smem:[#allocation22_spill]]  ;;  %s16189_s28 = sld [smem:[#allocation23_spill]] }
 0x631   : > { %s16190_s29 = sld [smem:[#allocation24_spill]]  ;;  %s16191_s30 = sld [smem:[#allocation25_spill]] }
 0x632   : > { %s16192_s24 = smov %s14153_s25  ;;  %21 = sbr.rel (!%p19_p6) target bundleno = 7 (0x7), region = 138 }
 0x634   : > { %s16193_s25 = smov %s16186_s14 }
 0x639   :  { %10937 = vsyncpa [#allocation6], 1 }
 0x63a   :  { %10939 = vsyncpa [#allocation6 + $0x1], 1 }
 0x63b   :  { %10940 = vsyncpa [#allocation9], 1 }
 0x63c   :  { %10941 = vsyncpa [#allocation7], 1 }
 0x63d   :  { %10943 = vsyncpa [#allocation7 + $0x1], 1 }
 0x63e   :  { %10944 = vsyncmov [#allocation4] }
 0x641   :  { %s10945_s15 = vpop.sfrf %10944 }
 0x642   :  { %p11672_p8 = scmp.ne.s32.totalorder %s10945_s15, 0 }
 0x644   :  { %10949 = shalt.err (%p11672_p8)  }

</bundles_post_ra>
